<compile_context>
chip_gen: v5e
topology: v5e:2x2
jax: 0.10.0
libtpu: 0.0.40
codegen_flags: <defaults>
</compile_context>

<pallas_src>
import functools

import jax
import jax.numpy as jnp
from jax.experimental import pallas as pl
from jax.experimental.pallas import tpu as pltpu

EPS = 1e-5


def _gelu(x):
    # tanh-approximate GELU (EUP-friendly)
    return 0.5 * x * (1.0 + jnp.tanh(0.7978845608028654 * (x + 0.044715 * x * x * x)))


def _round_up(v, m):
    return (v + m - 1) // m * m


def _vmem_limit_bytes():
    """Generation-aware scoped-VMEM budget: ~3/4 of physical VMEM, capped."""
    try:
        cap = int(pltpu.get_tpu_info().vmem_capacity_bytes)
    except Exception:  # CPU interpret mode / older runtimes
        cap = 64 * 1024 * 1024
    return int(min(100 * 1024 * 1024, max(32 * 1024 * 1024, cap * 3 // 4)))


# ---------------------------------------------------------------- kernels ---

def bn_stats_kernel(x_ref, mean_ref, rstd_ref, sum_sc, sq_sc, *, count):
    """Tiled per-channel batch statistics. x block: (TR, Cp), TR % 8 == 0.

    Partial sums are kept as (8, Cp) so the per-tile reduction stays on the VPU;
    the single cross-sublane (XLU) reduce happens only in the finalize branch.
    Zero padding rows contribute nothing to the sums (count = real rows).
    """
    i = pl.program_id(0)

    @pl.when(i == 0)
    def _init():
        sum_sc[...] = jnp.zeros_like(sum_sc)
        sq_sc[...] = jnp.zeros_like(sq_sc)

    x = x_ref[...].astype(jnp.float32)
    xg = x.reshape(-1, 8, x.shape[-1])                  # (TR//8, 8, Cp)
    sum_sc[...] += jnp.sum(xg, axis=0)
    sq_sc[...] += jnp.sum(xg * xg, axis=0)

    @pl.when(i == pl.num_programs(0) - 1)
    def _finalize():
        inv = 1.0 / count
        s = jnp.sum(sum_sc[...], axis=0, keepdims=True)
        sq = jnp.sum(sq_sc[...], axis=0, keepdims=True)
        mean = s * inv
        var = jnp.maximum(sq * inv - mean * mean, 0.0)
        mean_ref[...] = mean
        rstd_ref[...] = jax.lax.rsqrt(var + EPS)


def conv_block_kernel(x_ref, mean_ref, rstd_ref, gamma_ref, beta_ref,
                      w_ref, b_ref, o_ref, psum_ref, psq_ref, ypad_sc, *, H, W):
    """Fused BN1-normalize + 3x3 same conv + bias + GELU + residual for one
    image per grid step, plus fused BatchNorm-2 partial statistics of x1.

    x block: (HWp, Cp) f32 (rows of one image, row-padded to a multiple of 8)
    w: (9*Cp, Cp) bf16 (kh, kw, cin) x cout;  b/mean/rstd/gamma/beta: (1, Cp)
    ypad_sc: (H+2, W+2, Cp) bf16 zero-halo scratch.
    """
    Cp = x_ref.shape[-1]
    HW = H * W
    HWp = x_ref.shape[0]

    x = x_ref[:HW, :].astype(jnp.float32)                              # (HW, Cp)
    y = (x - mean_ref[...]) * rstd_ref[...] * gamma_ref[...] + beta_ref[...]

    # zero-halo scratch: cheap bulk zero (megacore-safe), interior overwritten
    ypad_sc[...] = jnp.zeros_like(ypad_sc)
    ypad_sc[1:H + 1, 1:W + 1, :] = y.astype(jnp.bfloat16).reshape(H, W, Cp)

    # 9 accumulating MXU dots on static taps of the scratch — no (HW, 9*Cp)
    # im2col slab, no pad concatenates.
    # TODO(synk): on v6e/v7x a single long-K (K=9*Cp) matmul has better MXU
    # depth utilisation for Cp < 256; revisit if this ever becomes MXU-bound.
    # TODO(synk): for very large H*W, additionally tile over row strips with a
    # +/-1 row halo (manual DMA) so the scratch + accumulator fit v7x VMEM.
    acc = jnp.zeros((HW, Cp), jnp.float32) + b_ref[...]
    for t in range(9):
        di, dj = t // 3, t % 3
        tap = ypad_sc[di:di + H, dj:dj + W, :].reshape(HW, Cp)
        acc = acc + jnp.dot(tap, w_ref[t * Cp:(t + 1) * Cp, :],
                            preferred_element_type=jnp.float32)

    x1 = x + _gelu(acc)                                                # f32
    o_ref[:HW, :] = x1.astype(o_ref.dtype)
    if HWp != HW:                                                      # static
        o_ref[HW:, :] = jnp.zeros((HWp - HW, Cp), o_ref.dtype)

    # fused BN2 partial statistics (real rows only) -> saves a full HBM re-read
    psum_ref[...] = jnp.sum(x1, axis=0, keepdims=True).reshape(1, 1, Cp)
    psq_ref[...] = jnp.sum(x1 * x1, axis=0, keepdims=True).reshape(1, 1, Cp)


def mlp_block_kernel(x_ref, mean_ref, rstd_ref, gamma_ref, beta_ref,
                     w1_ref, b1_ref, w2_ref, b2_ref, o_ref):
    """Fused BN2-normalize + per-pixel MLP (Cp -> Hdp -> Cp, GELU) + residual.

    x block: (TR, Cp) f32; w1 (Cp, Hdp) / w2 (Hdp, Cp) bf16 stay VMEM-resident.
    """
    x = x_ref[...].astype(jnp.float32)
    y = (x - mean_ref[...]) * rstd_ref[...] * gamma_ref[...] + beta_ref[...]
    h = jnp.dot(y.astype(jnp.bfloat16), w1_ref[...],
                preferred_element_type=jnp.float32) + b1_ref[...]
    h = _gelu(h)
    m = jnp.dot(h.astype(jnp.bfloat16), w2_ref[...],
                preferred_element_type=jnp.float32) + b2_ref[...]
    o_ref[...] = (x + m).astype(o_ref.dtype)


# ---------------------------------------------------------------- wrapper ---

def _bn_stats(x_flat, count, Cp, TR, vmem_limit):
    rows = x_flat.shape[0]
    return pl.pallas_call(
        functools.partial(bn_stats_kernel, count=float(count)),
        out_shape=(jax.ShapeDtypeStruct((1, Cp), jnp.float32),
                   jax.ShapeDtypeStruct((1, Cp), jnp.float32)),
        grid_spec=pltpu.PrefetchScalarGridSpec(
            num_scalar_prefetch=0,
            grid=(rows // TR,),
            in_specs=[pl.BlockSpec((TR, Cp), lambda i: (i, 0))],
            out_specs=(pl.BlockSpec((1, Cp), lambda i: (0, 0)),
                       pl.BlockSpec((1, Cp), lambda i: (0, 0))),
            scratch_shapes=[pltpu.VMEM((8, Cp), jnp.float32),
                            pltpu.VMEM((8, Cp), jnp.float32)]),
        compiler_params=pltpu.CompilerParams(
            dimension_semantics=("arbitrary",),
            vmem_limit_bytes=vmem_limit),
    )(x_flat)


def cnn_block_forward(x_nchw, params):
    out_dtype = x_nchw.dtype
    N, C, H, W = x_nchw.shape
    HW = H * W
    Cp = _round_up(C, 128)                    # lane-dense channels
    HWp = _round_up(HW, 8)                    # per-image sublane alignment
    Hd = params["mlp_w1"].shape[1]
    Hdp = _round_up(Hd, 128)
    R_real = N * HW                           # real rows (BatchNorm count)
    R_img = N * HWp
    vmem_limit = _vmem_limit_bytes()

    # Mem-bound stats/MLP passes: fixed 512-row tile, pad rows with zeros
    # instead of hunting exact divisors (zero rows don't perturb BN sums).
    TR = 512 if R_img >= 512 else _round_up(R_img, 8)
    R_pad = _round_up(R_img, TR)

    # ---- parameter packing (padding + bf16 cast; one-time work in a real
    #      deployment, kept here to stay self-contained) ----
    def pad2(a, r, c):
        return jnp.pad(a, ((0, r - a.shape[0]), (0, c - a.shape[1])))

    g1 = pad2(params["bn1_gamma"], 1, Cp)
    be1 = pad2(params["bn1_beta"], 1, Cp)
    g2 = pad2(params["bn2_gamma"], 1, Cp)
    be2 = pad2(params["bn2_beta"], 1, Cp)
    wc = jnp.pad(params["conv_w"], ((0, 0), (0, 0), (0, Cp - C), (0, Cp - C)))
    wc = wc.reshape(9 * Cp, Cp).astype(jnp.bfloat16)        # (kh,kw,cin) x cout
    bc = pad2(params["conv_b"], 1, Cp)
    w1 = pad2(params["mlp_w1"], Cp, Hdp).astype(jnp.bfloat16)
    b1 = pad2(params["mlp_b1"], 1, Hdp)
    w2 = pad2(params["mlp_w2"], Hdp, Cp).astype(jnp.bfloat16)
    b2 = pad2(params["mlp_b2"], 1, Cp)

    # ---- activation packing: NCHW -> lane-dense flat (rows, Cp) slab ----
    # TODO(synk): keep activations NHWC end-to-end in the surrounding model and
    # fold the channel/row pad into the first kernel's DMA to drop these
    # wrapper-side HBM passes; for C<=32 also consider folding W into the lane
    # axis (or bf16 transport of x1) to avoid the Cp/C padding inflation.
    x = jnp.transpose(x_nchw, (0, 2, 3, 1)).reshape(N, HW, C)
    if HWp != HW or Cp != C:
        x = jnp.pad(x, ((0, 0), (0, HWp - HW), (0, Cp - C)))
    x_flat = x.reshape(R_img, Cp)
    if R_pad != R_img:
        x_flat = jnp.pad(x_flat, ((0, R_pad - R_img), (0, 0)))

    # ---- norm1 statistics (tiled grid reduction) ----
    mean1, rstd1 = _bn_stats(x_flat, R_real, Cp, TR, vmem_limit)

    cvec = lambda n: (0, 0)                  # grid-invariant small vectors
    wspec = lambda shape: pl.BlockSpec(      # grid-invariant weights: 1 buffer
        shape, lambda n: (0, 0), pipeline_mode=pl.Buffered(1))

    # ---- norm1-normalize + cnn_block + dropout1(identity) + residual,
    #      with fused BN2 partial statistics ----
    x1_flat, psum2, psq2 = pl.pallas_call(
        functools.partial(conv_block_kernel, H=H, W=W),
        out_shape=(jax.ShapeDtypeStruct((R_pad, Cp), out_dtype),
                   jax.ShapeDtypeStruct((N, 1, Cp), jnp.float32),
                   jax.ShapeDtypeStruct((N, 1, Cp), jnp.float32)),
        grid_spec=pltpu.PrefetchScalarGridSpec(
            num_scalar_prefetch=0,
            grid=(N,),
            in_specs=[pl.BlockSpec((HWp, Cp), lambda n: (n, 0)),
                      pl.BlockSpec((1, Cp), cvec),            # mean1
                      pl.BlockSpec((1, Cp), cvec),            # rstd1
                      pl.BlockSpec((1, Cp), cvec),            # gamma1
                      pl.BlockSpec((1, Cp), cvec),            # beta1
                      wspec((9 * Cp, Cp)),                    # conv weight (bf16)
                      pl.BlockSpec((1, Cp), cvec)],           # conv bias
            out_specs=(pl.BlockSpec((HWp, Cp), lambda n: (n, 0)),
                       pl.BlockSpec((1, 1, Cp), lambda n: (n, 0, 0)),
                       pl.BlockSpec((1, 1, Cp), lambda n: (n, 0, 0))),
            scratch_shapes=[pltpu.VMEM((H + 2, W + 2, Cp), jnp.bfloat16)]),
        compiler_params=pltpu.CompilerParams(
            dimension_semantics=("parallel",),                # megacore on v7x
            vmem_limit_bytes=vmem_limit),
    )(x_flat, mean1, rstd1, g1, be1, wc, bc)

    # ---- norm2 statistics: finalize the fused partial sums (tiny jnp reduce,
    #      O(N*Cp) elements — negligible vs. a full HBM pass over x1) ----
    s2 = jnp.sum(psum2, axis=0)                               # (1, Cp)
    sq2 = jnp.sum(psq2, axis=0)
    mean2 = s2 / float(R_real)
    var2 = jnp.maximum(sq2 / float(R_real) - mean2 * mean2, 0.0)
    rstd2 = jax.lax.rsqrt(var2 + EPS)

    # ---- norm2-normalize + mlp_block + dropout(identity) + residual ----
    out_flat = pl.pallas_call(
        mlp_block_kernel,
        out_shape=jax.ShapeDtypeStruct((R_pad, Cp), out_dtype),
        grid_spec=pltpu.PrefetchScalarGridSpec(
            num_scalar_prefetch=0,
            grid=(R_pad // TR,),
            in_specs=[pl.BlockSpec((TR, Cp), lambda i: (i, 0)),
                      pl.BlockSpec((1, Cp), cvec),            # mean2
                      pl.BlockSpec((1, Cp), cvec),            # rstd2
                      pl.BlockSpec((1, Cp), cvec),            # gamma2
                      pl.BlockSpec((1, Cp), cvec),            # beta2
                      wspec((Cp, Hdp)),                       # w1 (bf16)
                      pl.BlockSpec((1, Hdp), cvec),           # b1
                      wspec((Hdp, Cp)),                       # w2 (bf16)
                      pl.BlockSpec((1, Cp), cvec)],           # b2
            out_specs=pl.BlockSpec((TR, Cp), lambda i: (i, 0))),
        compiler_params=pltpu.CompilerParams(
            dimension_semantics=("parallel",),
            vmem_limit_bytes=vmem_limit),
    )(x1_flat, mean2, rstd2, g2, be2, w1, b1, w2, b2)

    out = out_flat[:R_img].reshape(N, HWp, Cp)[:, :HW, :C].reshape(N, H, W, C)
    return jnp.transpose(out, (0, 3, 1, 2))                   # back to NCHW


# -------------------------------------------------------------- reference ---

def cnn_block_reference(x_nchw, params):
    """Pure-JAX reference mirroring the kernel math (bf16 matmul operands,
    f32 accumulation, f32 elementwise, tanh GELU, batch-stat BN)."""
    x = jnp.transpose(x_nchw, (0, 2, 3, 1)).astype(jnp.float32)
    N, H, W, C = x.shape

    def bn(v, g, b):
        mean = jnp.mean(v, axis=(0, 1, 2), keepdims=True)
        var = jnp.mean(v * v, axis=(0, 1, 2), keepdims=True) - mean * mean
        return (v - mean) * jax.lax.rsqrt(var + EPS) * g.reshape(1, 1, 1, -1) + b.reshape(1, 1, 1, -1)

    # conv branch
    y = bn(x, params["bn1_gamma"], params["bn1_beta"]).astype(jnp.bfloat16)
    yp = jnp.pad(y, ((0, 0), (1, 1), (1, 1), (0, 0)))
    col = jnp.concatenate(
        [yp[:, i:i + H, j:j + W, :] for i in range(3) for j in range(3)], axis=-1)
    wc = params["conv_w"].reshape(9 * C, C).astype(jnp.bfloat16)
    acc = jnp.einsum("nhwk,kc->nhwc", col, wc, preferred_element_type=jnp.float32)
    acc = acc + params["conv_b"].reshape(1, 1, 1, C)
    x1 = x + _gelu(acc)

    # mlp branch
    y = bn(x1, params["bn2_gamma"], params["bn2_beta"]).astype(jnp.bfloat16)
    h = jnp.einsum("nhwc,ck->nhwk", y, params["mlp_w1"].astype(jnp.bfloat16),
                   preferred_element_type=jnp.float32) + params["mlp_b1"].reshape(1, 1, 1, -1)
    h = _gelu(h)
    m = jnp.einsum("nhwk,kc->nhwc", h.astype(jnp.bfloat16),
                   params["mlp_w2"].astype(jnp.bfloat16),
                   preferred_element_type=jnp.float32) + params["mlp_b2"].reshape(1, 1, 1, C)
    out = x1 + m
    return jnp.transpose(out, (0, 3, 1, 2))


# ------------------------------------------------------------------- main ---

def make_params(key, embed_dim, hidden):
    ks = jax.random.split(key, 4)
    C = embed_dim
    return {
        "bn1_gamma": jnp.ones((1, C), jnp.float32),
        "bn1_beta": jnp.zeros((1, C), jnp.float32),
        "conv_w": jax.random.normal(ks[0], (3, 3, C, C), jnp.float32) * 0.05,
        "conv_b": jnp.zeros((1, C), jnp.float32),
        "bn2_gamma": jnp.ones((1, C), jnp.float32),
        "bn2_beta": jnp.zeros((1, C), jnp.float32),
        "mlp_w1": jax.random.normal(ks[1], (C, hidden), jnp.float32) * 0.05,
        "mlp_b1": jnp.zeros((1, hidden), jnp.float32),
        "mlp_w2": jax.random.normal(ks[2], (hidden, C), jnp.float32) * 0.05,
        "mlp_b2": jnp.zeros((1, C), jnp.float32),
    }


if __name__ == "__main__":
    key = jax.random.PRNGKey(0)
    k_x, k_p = jax.random.split(key)

    N, C, H, W = 2, 16, 16, 16          # NCHW, embed_dim = 16
    hidden = 4 * C
    x = jax.random.normal(k_x, (N, C, H, W), jnp.float32)
    params = make_params(k_p, C, hidden)

    out = jax.jit(cnn_block_forward)(x, params)
    out = jax.block_until_ready(out)

    ref = cnn_block_reference(x, params)
    assert out.shape == (N, C, H, W)
    max_err = float(jnp.max(jnp.abs(out - ref)))
    assert jnp.allclose(out, ref, atol=1e-2, rtol=1e-2), (
        f"mismatch vs JAX reference (max abs err {max_err})")

    print("KERNEL_OK")
</pallas_src>

<mosaic_0001>
module attributes {stable_mosaic.version = 11 : i64} {
  func.func @bn_stats_kernel(%arg0: i32, %arg1: memref<512x128xf32, #tpu.memory_space<vmem>>, %arg2: memref<1x128xf32, #tpu.memory_space<vmem>>, %arg3: memref<1x128xf32, #tpu.memory_space<vmem>>, %arg4: memref<8x128xf32, #tpu.memory_space<vmem>>, %arg5: memref<8x128xf32, #tpu.memory_space<vmem>>) attributes {dimension_semantics = [#tpu.dimension_semantics<arbitrary>], iteration_bounds = array<i64: 1>, scalar_prefetch = 0 : i64, scratch_operands = 2 : i64, tpu.core_type = #tpu.core_type<tc>, window_params = [{transform_indices = @transform_0, window_bounds = array<i64: 512, 128>}, {pipeline_mode = #tpu.pipeline_mode<synchronous>, transform_indices = @transform_1, window_bounds = array<i64: 1, 128>}, {pipeline_mode = #tpu.pipeline_mode<synchronous>, transform_indices = @transform_2, window_bounds = array<i64: 1, 128>}]} {
    %c0_i32 = arith.constant 0 : i32
    %0 = arith.cmpi eq, %arg0, %c0_i32 : i32
    %1 = arith.extui %0 : i1 to i32
    %c0_i32_0 = arith.constant 0 : i32
    %2 = arith.cmpi ne, %1, %c0_i32_0 : i32
    scf.if %2 {
      %cst_13 = arith.constant 0.000000e+00 : f32
      %17 = vector.broadcast %cst_13 : f32 to vector<8x128xf32>
      %c0_14 = arith.constant 0 : index
      %c0_15 = arith.constant 0 : index
      %18 = vector.load %arg4[%c0_14, %c0_15] : memref<8x128xf32, #tpu.memory_space<vmem>>, vector<8x128xf32>
      tpu.vector_store %arg4[%c0_14, %c0_15], %17 {strides = array<i32>} : memref<8x128xf32, #tpu.memory_space<vmem>>, vector<8x128xf32>,
      %cst_16 = arith.constant 0.000000e+00 : f32
      %19 = vector.broadcast %cst_16 : f32 to vector<8x128xf32>
      %c0_17 = arith.constant 0 : index
      %c0_18 = arith.constant 0 : index
      %20 = vector.load %arg5[%c0_17, %c0_18] : memref<8x128xf32, #tpu.memory_space<vmem>>, vector<8x128xf32>
      tpu.vector_store %arg5[%c0_17, %c0_18], %19 {strides = array<i32>} : memref<8x128xf32, #tpu.memory_space<vmem>>, vector<8x128xf32>,
    } else {
    }
    %c0 = arith.constant 0 : index
    %c0_1 = arith.constant 0 : index
    %3 = vector.load %arg1[%c0, %c0_1] : memref<512x128xf32, #tpu.memory_space<vmem>>, vector<512x128xf32>
    %4 = vector.shape_cast %3 : vector<512x128xf32> to vector<64x8x128xf32>
    %c0_2 = arith.constant 0 : index
    %c0_3 = arith.constant 0 : index
    %5 = vector.load %arg4[%c0_2, %c0_3] : memref<8x128xf32, #tpu.memory_space<vmem>>, vector<8x128xf32>
    %cst = arith.constant dense<0.000000e+00> : vector<8x128xf32>
    %6 = vector.multi_reduction <add>, %4, %cst [0] : vector<64x8x128xf32> to vector<8x128xf32>
    %7 = arith.addf %5, %6 : vector<8x128xf32>
    %c0_4 = arith.constant 0 : index
    %c0_5 = arith.constant 0 : index
    %8 = vector.load %arg4[%c0_4, %c0_5] : memref<8x128xf32, #tpu.memory_space<vmem>>, vector<8x128xf32>
    tpu.vector_store %arg4[%c0_4, %c0_5], %7 {strides = array<i32>} : memref<8x128xf32, #tpu.memory_space<vmem>>, vector<8x128xf32>,
    %c0_6 = arith.constant 0 : index
    %c0_7 = arith.constant 0 : index
    %9 = vector.load %arg5[%c0_6, %c0_7] : memref<8x128xf32, #tpu.memory_space<vmem>>, vector<8x128xf32>
    %10 = arith.mulf %4, %4 : vector<64x8x128xf32>
    %cst_8 = arith.constant dense<0.000000e+00> : vector<8x128xf32>
    %11 = vector.multi_reduction <add>, %10, %cst_8 [0] : vector<64x8x128xf32> to vector<8x128xf32>
    %12 = arith.addf %9, %11 : vector<8x128xf32>
    %c0_9 = arith.constant 0 : index
    %c0_10 = arith.constant 0 : index
    %13 = vector.load %arg5[%c0_9, %c0_10] : memref<8x128xf32, #tpu.memory_space<vmem>>, vector<8x128xf32>
    tpu.vector_store %arg5[%c0_9, %c0_10], %12 {strides = array<i32>} : memref<8x128xf32, #tpu.memory_space<vmem>>, vector<8x128xf32>,
    %c0_i32_11 = arith.constant 0 : i32
    %14 = arith.cmpi eq, %arg0, %c0_i32_11 : i32
    %15 = arith.extui %14 : i1 to i32
    %c0_i32_12 = arith.constant 0 : i32
    %16 = arith.cmpi ne, %15, %c0_i32_12 : i32
    scf.if %16 {
      %c0_13 = arith.constant 0 : index
      %c0_14 = arith.constant 0 : index
      %17 = vector.load %arg4[%c0_13, %c0_14] : memref<8x128xf32, #tpu.memory_space<vmem>>, vector<8x128xf32>
      %cst_15 = arith.constant dense<0.000000e+00> : vector<128xf32>
      %18 = vector.multi_reduction <add>, %17, %cst_15 [0] : vector<8x128xf32> to vector<128xf32>
      %19 = vector.shape_cast %18 : vector<128xf32> to vector<1x128xf32>
      %c0_16 = arith.constant 0 : index
      %c0_17 = arith.constant 0 : index
      %20 = vector.load %arg5[%c0_16, %c0_17] : memref<8x128xf32, #tpu.memory_space<vmem>>, vector<8x128xf32>
      %cst_18 = arith.constant dense<0.000000e+00> : vector<128xf32>
      %21 = vector.multi_reduction <add>, %20, %cst_18 [0] : vector<8x128xf32> to vector<128xf32>
      %22 = vector.shape_cast %21 : vector<128xf32> to vector<1x128xf32>
      %cst_19 = arith.constant 0.001953125 : f32
      %23 = vector.broadcast %cst_19 : f32 to vector<1x128xf32>
      %24 = arith.mulf %19, %23 : vector<1x128xf32>
      %cst_20 = arith.constant 0.001953125 : f32
      %25 = vector.broadcast %cst_20 : f32 to vector<1x128xf32>
      %26 = arith.mulf %22, %25 : vector<1x128xf32>
      %27 = arith.mulf %24, %24 : vector<1x128xf32>
      %28 = arith.subf %26, %27 : vector<1x128xf32>
      %cst_21 = arith.constant 0.000000e+00 : f32
      %29 = vector.broadcast %cst_21 : f32 to vector<1x128xf32>
      %30 = arith.maximumf %28, %29 : vector<1x128xf32>
      %c0_22 = arith.constant 0 : index
      %c0_23 = arith.constant 0 : index
      %31 = vector.load %arg2[%c0_22, %c0_23] : memref<1x128xf32, #tpu.memory_space<vmem>>, vector<1x128xf32>
      tpu.vector_store %arg2[%c0_22, %c0_23], %24 {strides = array<i32>} : memref<1x128xf32, #tpu.memory_space<vmem>>, vector<1x128xf32>,
      %cst_24 = arith.constant 9.99999974E-6 : f32
      %32 = vector.broadcast %cst_24 : f32 to vector<1x128xf32>
      %33 = arith.addf %30, %32 : vector<1x128xf32>
      %34 = math.rsqrt %33 : vector<1x128xf32>
      %c0_25 = arith.constant 0 : index
      %c0_26 = arith.constant 0 : index
      %35 = vector.load %arg3[%c0_25, %c0_26] : memref<1x128xf32, #tpu.memory_space<vmem>>, vector<1x128xf32>
      tpu.vector_store %arg3[%c0_25, %c0_26], %34 {strides = array<i32>} : memref<1x128xf32, #tpu.memory_space<vmem>>, vector<1x128xf32>,
    } else {
    }
    return
  }
  func.func @transform_0(%arg0: i32) -> (i32, i32) {
    %c0_i32 = arith.constant 0 : i32
    %c0_i32_0 = arith.constant 0 : i32
    return %arg0, %c0_i32 : i32, i32
  }
  func.func @transform_1(%arg0: i32) -> (i32, i32) {
    %c0_i32 = arith.constant 0 : i32
    %c0_i32_0 = arith.constant 0 : i32
    %c0_i32_1 = arith.constant 0 : i32
    return %c0_i32, %c0_i32_0 : i32, i32
  }
  func.func @transform_2(%arg0: i32) -> (i32, i32) {
    %c0_i32 = arith.constant 0 : i32
    %c0_i32_0 = arith.constant 0 : i32
    %c0_i32_1 = arith.constant 0 : i32
    return %c0_i32, %c0_i32_0 : i32, i32
  }
}

module attributes {stable_mosaic.version = 11 : i64} {
  func.func @conv_block_kernel(%arg0: i32, %arg1: memref<256x128xf32, #tpu.memory_space<vmem>>, %arg2: memref<1x128xf32, #tpu.memory_space<vmem>>, %arg3: memref<1x128xf32, #tpu.memory_space<vmem>>, %arg4: memref<1x128xf32, #tpu.memory_space<vmem>>, %arg5: memref<1x128xf32, #tpu.memory_space<vmem>>, %arg6: memref<1152x128xbf16, #tpu.memory_space<vmem>>, %arg7: memref<1x128xf32, #tpu.memory_space<vmem>>, %arg8: memref<256x128xf32, #tpu.memory_space<vmem>>, %arg9: memref<1x1x128xf32, #tpu.memory_space<vmem>>, %arg10: memref<1x1x128xf32, #tpu.memory_space<vmem>>, %arg11: memref<18x18x128xbf16, #tpu.memory_space<vmem>>) attributes {dimension_semantics = [#tpu.dimension_semantics<parallel>], iteration_bounds = array<i64: 2>, scalar_prefetch = 0 : i64, scratch_operands = 1 : i64, tpu.core_type = #tpu.core_type<tc>, window_params = [{transform_indices = @transform_0, window_bounds = array<i64: 256, 128>}, {pipeline_mode = #tpu.pipeline_mode<synchronous>, transform_indices = @transform_1, window_bounds = array<i64: 1, 128>}, {pipeline_mode = #tpu.pipeline_mode<synchronous>, transform_indices = @transform_2, window_bounds = array<i64: 1, 128>}, {pipeline_mode = #tpu.pipeline_mode<synchronous>, transform_indices = @transform_3, window_bounds = array<i64: 1, 128>}, {pipeline_mode = #tpu.pipeline_mode<synchronous>, transform_indices = @transform_4, window_bounds = array<i64: 1, 128>}, {pipeline_mode = #tpu.pipeline_mode<synchronous>, transform_indices = @transform_5, window_bounds = array<i64: 1152, 128>}, {pipeline_mode = #tpu.pipeline_mode<synchronous>, transform_indices = @transform_6, window_bounds = array<i64: 1, 128>}, {transform_indices = @transform_7, window_bounds = array<i64: 256, 128>}, {transform_indices = @transform_8, window_bounds = array<i64: 1, 1, 128>}, {transform_indices = @transform_9, window_bounds = array<i64: 1, 1, 128>}]} {
    %c0 = arith.constant 0 : index
    %c0_0 = arith.constant 0 : index
    %0 = vector.load %arg1[%c0, %c0_0] : memref<256x128xf32, #tpu.memory_space<vmem>>, vector<256x128xf32>
    %c0_1 = arith.constant 0 : index
    %c0_2 = arith.constant 0 : index
    %1 = vector.load %arg2[%c0_1, %c0_2] : memref<1x128xf32, #tpu.memory_space<vmem>>, vector<1x128xf32>
    %2 = vector.broadcast %1 : vector<1x128xf32> to vector<256x128xf32>
    %3 = arith.subf %0, %2 : vector<256x128xf32>
    %c0_3 = arith.constant 0 : index
    %c0_4 = arith.constant 0 : index
    %4 = vector.load %arg3[%c0_3, %c0_4] : memref<1x128xf32, #tpu.memory_space<vmem>>, vector<1x128xf32>
    %5 = vector.broadcast %4 : vector<1x128xf32> to vector<256x128xf32>
    %6 = arith.mulf %3, %5 : vector<256x128xf32>
    %c0_5 = arith.constant 0 : index
    %c0_6 = arith.constant 0 : index
    %7 = vector.load %arg4[%c0_5, %c0_6] : memref<1x128xf32, #tpu.memory_space<vmem>>, vector<1x128xf32>
    %8 = vector.broadcast %7 : vector<1x128xf32> to vector<256x128xf32>
    %9 = arith.mulf %6, %8 : vector<256x128xf32>
    %c0_7 = arith.constant 0 : index
    %c0_8 = arith.constant 0 : index
    %10 = vector.load %arg5[%c0_7, %c0_8] : memref<1x128xf32, #tpu.memory_space<vmem>>, vector<1x128xf32>
    %11 = vector.broadcast %10 : vector<1x128xf32> to vector<256x128xf32>
    %12 = arith.addf %9, %11 : vector<256x128xf32>
    %cst = arith.constant 0.000000e+00 : bf16
    %13 = vector.broadcast %cst : bf16 to vector<18x18x128xbf16>
    %c0_9 = arith.constant 0 : index
    %c0_10 = arith.constant 0 : index
    %c0_11 = arith.constant 0 : index
    %14 = vector.load %arg11[%c0_9, %c0_10, %c0_11] : memref<18x18x128xbf16, #tpu.memory_space<vmem>>, vector<18x18x128xbf16>
    tpu.vector_store %arg11[%c0_9, %c0_10, %c0_11], %13 {strides = array<i32>} : memref<18x18x128xbf16, #tpu.memory_space<vmem>>, vector<18x18x128xbf16>,
    %15 = arith.truncf %12 : vector<256x128xf32> to vector<256x128xbf16>
    %16 = vector.shape_cast %15 : vector<256x128xbf16> to vector<16x16x128xbf16>
    %c1 = arith.constant 1 : index
    %c1_12 = arith.constant 1 : index
    %c0_13 = arith.constant 0 : index
    %17 = vector.load %arg11[%c1, %c1_12, %c0_13] : memref<18x18x128xbf16, #tpu.memory_space<vmem>>, vector<16x16x128xbf16>
    tpu.vector_store %arg11[%c1, %c1_12, %c0_13], %16 {strides = array<i32>} : memref<18x18x128xbf16, #tpu.memory_space<vmem>>, vector<16x16x128xbf16>,
    %cst_14 = arith.constant 0.000000e+00 : f32
    %18 = vector.broadcast %cst_14 : f32 to vector<256x128xf32>
    %c0_15 = arith.constant 0 : index
    %c0_16 = arith.constant 0 : index
    %19 = vector.load %arg7[%c0_15, %c0_16] : memref<1x128xf32, #tpu.memory_space<vmem>>, vector<1x128xf32>
    %20 = vector.broadcast %19 : vector<1x128xf32> to vector<256x128xf32>
    %21 = arith.addf %18, %20 : vector<256x128xf32>
    %c0_17 = arith.constant 0 : index
    %c0_18 = arith.constant 0 : index
    %c0_19 = arith.constant 0 : index
    %22 = vector.load %arg11[%c0_17, %c0_18, %c0_19] : memref<18x18x128xbf16, #tpu.memory_space<vmem>>, vector<16x16x128xbf16>
    %23 = vector.shape_cast %22 : vector<16x16x128xbf16> to vector<256x128xbf16>
    %c0_20 = arith.constant 0 : index
    %c0_21 = arith.constant 0 : index
    %24 = vector.load %arg6[%c0_20, %c0_21] : memref<1152x128xbf16, #tpu.memory_space<vmem>>, vector<128x128xbf16>
    %cst_22 = arith.constant dense<0.000000e+00> : vector<256x128xf32>
    %25 = tpu.matmul %23, %24, %cst_22 {dimension_numbers = #tpu.dot_dimension_numbers<[1], [0], [0], [1], [0, 0, 1, 1], [], []>} : vector<256x128xbf16>, vector<128x128xbf16>, vector<256x128xf32> -> vector<256x128xf32>
    %26 = arith.addf %21, %25 : vector<256x128xf32>
    %c0_23 = arith.constant 0 : index
    %c1_24 = arith.constant 1 : index
    %c0_25 = arith.constant 0 : index
    %27 = vector.load %arg11[%c0_23, %c1_24, %c0_25] : memref<18x18x128xbf16, #tpu.memory_space<vmem>>, vector<16x16x128xbf16>
    %28 = vector.shape_cast %27 : vector<16x16x128xbf16> to vector<256x128xbf16>
    %c128 = arith.constant 128 : index
    %c0_26 = arith.constant 0 : index
    %29 = vector.load %arg6[%c128, %c0_26] : memref<1152x128xbf16, #tpu.memory_space<vmem>>, vector<128x128xbf16>
    %cst_27 = arith.constant dense<0.000000e+00> : vector<256x128xf32>
    %30 = tpu.matmul %28, %29, %cst_27 {dimension_numbers = #tpu.dot_dimension_numbers<[1], [0], [0], [1], [0, 0, 1, 1], [], []>} : vector<256x128xbf16>, vector<128x128xbf16>, vector<256x128xf32> -> vector<256x128xf32>
    %31 = arith.addf %26, %30 : vector<256x128xf32>
    %c0_28 = arith.constant 0 : index
    %c2 = arith.constant 2 : index
    %c0_29 = arith.constant 0 : index
    %32 = vector.load %arg11[%c0_28, %c2, %c0_29] : memref<18x18x128xbf16, #tpu.memory_space<vmem>>, vector<16x16x128xbf16>
    %33 = vector.shape_cast %32 : vector<16x16x128xbf16> to vector<256x128xbf16>
    %c256 = arith.constant 256 : index
    %c0_30 = arith.constant 0 : index
    %34 = vector.load %arg6[%c256, %c0_30] : memref<1152x128xbf16, #tpu.memory_space<vmem>>, vector<128x128xbf16>
    %cst_31 = arith.constant dense<0.000000e+00> : vector<256x128xf32>
    %35 = tpu.matmul %33, %34, %cst_31 {dimension_numbers = #tpu.dot_dimension_numbers<[1], [0], [0], [1], [0, 0, 1, 1], [], []>} : vector<256x128xbf16>, vector<128x128xbf16>, vector<256x128xf32> -> vector<256x128xf32>
    %36 = arith.addf %31, %35 : vector<256x128xf32>
    %c1_32 = arith.constant 1 : index
    %c0_33 = arith.constant 0 : index
    %c0_34 = arith.constant 0 : index
    %37 = vector.load %arg11[%c1_32, %c0_33, %c0_34] : memref<18x18x128xbf16, #tpu.memory_space<vmem>>, vector<16x16x128xbf16>
    %38 = vector.shape_cast %37 : vector<16x16x128xbf16> to vector<256x128xbf16>
    %c384 = arith.constant 384 : index
    %c0_35 = arith.constant 0 : index
    %39 = vector.load %arg6[%c384, %c0_35] : memref<1152x128xbf16, #tpu.memory_space<vmem>>, vector<128x128xbf16>
    %cst_36 = arith.constant dense<0.000000e+00> : vector<256x128xf32>
    %40 = tpu.matmul %38, %39, %cst_36 {dimension_numbers = #tpu.dot_dimension_numbers<[1], [0], [0], [1], [0, 0, 1, 1], [], []>} : vector<256x128xbf16>, vector<128x128xbf16>, vector<256x128xf32> -> vector<256x128xf32>
    %41 = arith.addf %36, %40 : vector<256x128xf32>
    %c1_37 = arith.constant 1 : index
    %c1_38 = arith.constant 1 : index
    %c0_39 = arith.constant 0 : index
    %42 = vector.load %arg11[%c1_37, %c1_38, %c0_39] : memref<18x18x128xbf16, #tpu.memory_space<vmem>>, vector<16x16x128xbf16>
    %43 = vector.shape_cast %42 : vector<16x16x128xbf16> to vector<256x128xbf16>
    %c512 = arith.constant 512 : index
    %c0_40 = arith.constant 0 : index
    %44 = vector.load %arg6[%c512, %c0_40] : memref<1152x128xbf16, #tpu.memory_space<vmem>>, vector<128x128xbf16>
    %cst_41 = arith.constant dense<0.000000e+00> : vector<256x128xf32>
    %45 = tpu.matmul %43, %44, %cst_41 {dimension_numbers = #tpu.dot_dimension_numbers<[1], [0], [0], [1], [0, 0, 1, 1], [], []>} : vector<256x128xbf16>, vector<128x128xbf16>, vector<256x128xf32> -> vector<256x128xf32>
    %46 = arith.addf %41, %45 : vector<256x128xf32>
    %c1_42 = arith.constant 1 : index
    %c2_43 = arith.constant 2 : index
    %c0_44 = arith.constant 0 : index
    %47 = vector.load %arg11[%c1_42, %c2_43, %c0_44] : memref<18x18x128xbf16, #tpu.memory_space<vmem>>, vector<16x16x128xbf16>
    %48 = vector.shape_cast %47 : vector<16x16x128xbf16> to vector<256x128xbf16>
    %c640 = arith.constant 640 : index
    %c0_45 = arith.constant 0 : index
    %49 = vector.load %arg6[%c640, %c0_45] : memref<1152x128xbf16, #tpu.memory_space<vmem>>, vector<128x128xbf16>
    %cst_46 = arith.constant dense<0.000000e+00> : vector<256x128xf32>
    %50 = tpu.matmul %48, %49, %cst_46 {dimension_numbers = #tpu.dot_dimension_numbers<[1], [0], [0], [1], [0, 0, 1, 1], [], []>} : vector<256x128xbf16>, vector<128x128xbf16>, vector<256x128xf32> -> vector<256x128xf32>
    %51 = arith.addf %46, %50 : vector<256x128xf32>
    %c2_47 = arith.constant 2 : index
    %c0_48 = arith.constant 0 : index
    %c0_49 = arith.constant 0 : index
    %52 = vector.load %arg11[%c2_47, %c0_48, %c0_49] : memref<18x18x128xbf16, #tpu.memory_space<vmem>>, vector<16x16x128xbf16>
    %53 = vector.shape_cast %52 : vector<16x16x128xbf16> to vector<256x128xbf16>
    %c768 = arith.constant 768 : index
    %c0_50 = arith.constant 0 : index
    %54 = vector.load %arg6[%c768, %c0_50] : memref<1152x128xbf16, #tpu.memory_space<vmem>>, vector<128x128xbf16>
    %cst_51 = arith.constant dense<0.000000e+00> : vector<256x128xf32>
    %55 = tpu.matmul %53, %54, %cst_51 {dimension_numbers = #tpu.dot_dimension_numbers<[1], [0], [0], [1], [0, 0, 1, 1], [], []>} : vector<256x128xbf16>, vector<128x128xbf16>, vector<256x128xf32> -> vector<256x128xf32>
    %56 = arith.addf %51, %55 : vector<256x128xf32>
    %c2_52 = arith.constant 2 : index
    %c1_53 = arith.constant 1 : index
    %c0_54 = arith.constant 0 : index
    %57 = vector.load %arg11[%c2_52, %c1_53, %c0_54] : memref<18x18x128xbf16, #tpu.memory_space<vmem>>, vector<16x16x128xbf16>
    %58 = vector.shape_cast %57 : vector<16x16x128xbf16> to vector<256x128xbf16>
    %c896 = arith.constant 896 : index
    %c0_55 = arith.constant 0 : index
    %59 = vector.load %arg6[%c896, %c0_55] : memref<1152x128xbf16, #tpu.memory_space<vmem>>, vector<128x128xbf16>
    %cst_56 = arith.constant dense<0.000000e+00> : vector<256x128xf32>
    %60 = tpu.matmul %58, %59, %cst_56 {dimension_numbers = #tpu.dot_dimension_numbers<[1], [0], [0], [1], [0, 0, 1, 1], [], []>} : vector<256x128xbf16>, vector<128x128xbf16>, vector<256x128xf32> -> vector<256x128xf32>
    %61 = arith.addf %56, %60 : vector<256x128xf32>
    %c2_57 = arith.constant 2 : index
    %c2_58 = arith.constant 2 : index
    %c0_59 = arith.constant 0 : index
    %62 = vector.load %arg11[%c2_57, %c2_58, %c0_59] : memref<18x18x128xbf16, #tpu.memory_space<vmem>>, vector<16x16x128xbf16>
    %63 = vector.shape_cast %62 : vector<16x16x128xbf16> to vector<256x128xbf16>
    %c1024 = arith.constant 1024 : index
    %c0_60 = arith.constant 0 : index
    %64 = vector.load %arg6[%c1024, %c0_60] : memref<1152x128xbf16, #tpu.memory_space<vmem>>, vector<128x128xbf16>
    %cst_61 = arith.constant dense<0.000000e+00> : vector<256x128xf32>
    %65 = tpu.matmul %63, %64, %cst_61 {dimension_numbers = #tpu.dot_dimension_numbers<[1], [0], [0], [1], [0, 0, 1, 1], [], []>} : vector<256x128xbf16>, vector<128x128xbf16>, vector<256x128xf32> -> vector<256x128xf32>
    %66 = arith.addf %61, %65 : vector<256x128xf32>
    %cst_62 = arith.constant 5.000000e-01 : f32
    %67 = vector.broadcast %cst_62 : f32 to vector<256x128xf32>
    %68 = arith.mulf %67, %66 : vector<256x128xf32>
    %cst_63 = arith.constant 4.471500e-02 : f32
    %69 = vector.broadcast %cst_63 : f32 to vector<256x128xf32>
    %70 = arith.mulf %69, %66 : vector<256x128xf32>
    %71 = arith.mulf %70, %66 : vector<256x128xf32>
    %72 = arith.mulf %71, %66 : vector<256x128xf32>
    %73 = arith.addf %66, %72 : vector<256x128xf32>
    %cst_64 = arith.constant 0.797884583 : f32
    %74 = vector.broadcast %cst_64 : f32 to vector<256x128xf32>
    %75 = arith.mulf %74, %73 : vector<256x128xf32>
    %76 = math.tanh %75 : vector<256x128xf32>
    %cst_65 = arith.constant 1.000000e+00 : f32
    %77 = vector.broadcast %cst_65 : f32 to vector<256x128xf32>
    %78 = arith.addf %77, %76 : vector<256x128xf32>
    %79 = arith.mulf %68, %78 : vector<256x128xf32>
    %80 = arith.addf %0, %79 : vector<256x128xf32>
    %c0_66 = arith.constant 0 : index
    %c0_67 = arith.constant 0 : index
    %81 = vector.load %arg8[%c0_66, %c0_67] : memref<256x128xf32, #tpu.memory_space<vmem>>, vector<256x128xf32>
    tpu.vector_store %arg8[%c0_66, %c0_67], %80 {strides = array<i32>} : memref<256x128xf32, #tpu.memory_space<vmem>>, vector<256x128xf32>,
    %cst_68 = arith.constant dense<0.000000e+00> : vector<128xf32>
    %82 = vector.multi_reduction <add>, %80, %cst_68 [0] : vector<256x128xf32> to vector<128xf32>
    %83 = vector.shape_cast %82 : vector<128xf32> to vector<1x128xf32>
    %84 = vector.shape_cast %83 : vector<1x128xf32> to vector<1x1x128xf32>
    %c0_69 = arith.constant 0 : index
    %c0_70 = arith.constant 0 : index
    %c0_71 = arith.constant 0 : index
    %85 = vector.load %arg9[%c0_69, %c0_70, %c0_71] : memref<1x1x128xf32, #tpu.memory_space<vmem>>, vector<1x1x128xf32>
    tpu.vector_store %arg9[%c0_69, %c0_70, %c0_71], %84 {strides = array<i32>} : memref<1x1x128xf32, #tpu.memory_space<vmem>>, vector<1x1x128xf32>,
    %86 = arith.mulf %80, %80 : vector<256x128xf32>
    %cst_72 = arith.constant dense<0.000000e+00> : vector<128xf32>
    %87 = vector.multi_reduction <add>, %86, %cst_72 [0] : vector<256x128xf32> to vector<128xf32>
    %88 = vector.shape_cast %87 : vector<128xf32> to vector<1x128xf32>
    %89 = vector.shape_cast %88 : vector<1x128xf32> to vector<1x1x128xf32>
    %c0_73 = arith.constant 0 : index
    %c0_74 = arith.constant 0 : index
    %c0_75 = arith.constant 0 : index
    %90 = vector.load %arg10[%c0_73, %c0_74, %c0_75] : memref<1x1x128xf32, #tpu.memory_space<vmem>>, vector<1x1x128xf32>
    tpu.vector_store %arg10[%c0_73, %c0_74, %c0_75], %89 {strides = array<i32>} : memref<1x1x128xf32, #tpu.memory_space<vmem>>, vector<1x1x128xf32>,
    return
  }
  func.func @transform_0(%arg0: i32) -> (i32, i32) {
    %c0_i32 = arith.constant 0 : i32
    %c0_i32_0 = arith.constant 0 : i32
    return %arg0, %c0_i32 : i32, i32
  }
  func.func @transform_1(%arg0: i32) -> (i32, i32) {
    %c0_i32 = arith.constant 0 : i32
    %c0_i32_0 = arith.constant 0 : i32
    %c0_i32_1 = arith.constant 0 : i32
    return %c0_i32, %c0_i32_0 : i32, i32
  }
  func.func @transform_2(%arg0: i32) -> (i32, i32) {
    %c0_i32 = arith.constant 0 : i32
    %c0_i32_0 = arith.constant 0 : i32
    %c0_i32_1 = arith.constant 0 : i32
    return %c0_i32, %c0_i32_0 : i32, i32
  }
  func.func @transform_3(%arg0: i32) -> (i32, i32) {
    %c0_i32 = arith.constant 0 : i32
    %c0_i32_0 = arith.constant 0 : i32
    %c0_i32_1 = arith.constant 0 : i32
    return %c0_i32, %c0_i32_0 : i32, i32
  }
  func.func @transform_4(%arg0: i32) -> (i32, i32) {
    %c0_i32 = arith.constant 0 : i32
    %c0_i32_0 = arith.constant 0 : i32
    %c0_i32_1 = arith.constant 0 : i32
    return %c0_i32, %c0_i32_0 : i32, i32
  }
  func.func @transform_5(%arg0: i32) -> (i32, i32) {
    %c0_i32 = arith.constant 0 : i32
    %c0_i32_0 = arith.constant 0 : i32
    %c0_i32_1 = arith.constant 0 : i32
    return %c0_i32, %c0_i32_0 : i32, i32
  }
  func.func @transform_6(%arg0: i32) -> (i32, i32) {
    %c0_i32 = arith.constant 0 : i32
    %c0_i32_0 = arith.constant 0 : i32
    %c0_i32_1 = arith.constant 0 : i32
    return %c0_i32, %c0_i32_0 : i32, i32
  }
  func.func @transform_7(%arg0: i32) -> (i32, i32) {
    %c0_i32 = arith.constant 0 : i32
    %c0_i32_0 = arith.constant 0 : i32
    return %arg0, %c0_i32 : i32, i32
  }
  func.func @transform_8(%arg0: i32) -> (i32, i32, i32) {
    %c0_i32 = arith.constant 0 : i32
    %c0_i32_0 = arith.constant 0 : i32
    %c0_i32_1 = arith.constant 0 : i32
    return %arg0, %c0_i32, %c0_i32_0 : i32, i32, i32
  }
  func.func @transform_9(%arg0: i32) -> (i32, i32, i32) {
    %c0_i32 = arith.constant 0 : i32
    %c0_i32_0 = arith.constant 0 : i32
    %c0_i32_1 = arith.constant 0 : i32
    return %arg0, %c0_i32, %c0_i32_0 : i32, i32, i32
  }
}

module attributes {stable_mosaic.version = 11 : i64} {
  func.func @mlp_block_kernel(%arg0: i32, %arg1: memref<512x128xf32, #tpu.memory_space<vmem>>, %arg2: memref<1x128xf32, #tpu.memory_space<vmem>>, %arg3: memref<1x128xf32, #tpu.memory_space<vmem>>, %arg4: memref<1x128xf32, #tpu.memory_space<vmem>>, %arg5: memref<1x128xf32, #tpu.memory_space<vmem>>, %arg6: memref<128x128xbf16, #tpu.memory_space<vmem>>, %arg7: memref<1x128xf32, #tpu.memory_space<vmem>>, %arg8: memref<128x128xbf16, #tpu.memory_space<vmem>>, %arg9: memref<1x128xf32, #tpu.memory_space<vmem>>, %arg10: memref<512x128xf32, #tpu.memory_space<vmem>>) attributes {dimension_semantics = [#tpu.dimension_semantics<parallel>], iteration_bounds = array<i64: 1>, scalar_prefetch = 0 : i64, scratch_operands = 0 : i64, tpu.core_type = #tpu.core_type<tc>, window_params = [{transform_indices = @transform_0, window_bounds = array<i64: 512, 128>}, {pipeline_mode = #tpu.pipeline_mode<synchronous>, transform_indices = @transform_1, window_bounds = array<i64: 1, 128>}, {pipeline_mode = #tpu.pipeline_mode<synchronous>, transform_indices = @transform_2, window_bounds = array<i64: 1, 128>}, {pipeline_mode = #tpu.pipeline_mode<synchronous>, transform_indices = @transform_3, window_bounds = array<i64: 1, 128>}, {pipeline_mode = #tpu.pipeline_mode<synchronous>, transform_indices = @transform_4, window_bounds = array<i64: 1, 128>}, {pipeline_mode = #tpu.pipeline_mode<synchronous>, transform_indices = @transform_5, window_bounds = array<i64: 128, 128>}, {pipeline_mode = #tpu.pipeline_mode<synchronous>, transform_indices = @transform_6, window_bounds = array<i64: 1, 128>}, {pipeline_mode = #tpu.pipeline_mode<synchronous>, transform_indices = @transform_7, window_bounds = array<i64: 128, 128>}, {pipeline_mode = #tpu.pipeline_mode<synchronous>, transform_indices = @transform_8, window_bounds = array<i64: 1, 128>}, {transform_indices = @transform_9, window_bounds = array<i64: 512, 128>}]} {
    %c0 = arith.constant 0 : index
    %c0_0 = arith.constant 0 : index
    %0 = vector.load %arg1[%c0, %c0_0] : memref<512x128xf32, #tpu.memory_space<vmem>>, vector<512x128xf32>
    %c0_1 = arith.constant 0 : index
    %c0_2 = arith.constant 0 : index
    %1 = vector.load %arg2[%c0_1, %c0_2] : memref<1x128xf32, #tpu.memory_space<vmem>>, vector<1x128xf32>
    %2 = vector.broadcast %1 : vector<1x128xf32> to vector<512x128xf32>
    %3 = arith.subf %0, %2 : vector<512x128xf32>
    %c0_3 = arith.constant 0 : index
    %c0_4 = arith.constant 0 : index
    %4 = vector.load %arg3[%c0_3, %c0_4] : memref<1x128xf32, #tpu.memory_space<vmem>>, vector<1x128xf32>
    %5 = vector.broadcast %4 : vector<1x128xf32> to vector<512x128xf32>
    %6 = arith.mulf %3, %5 : vector<512x128xf32>
    %c0_5 = arith.constant 0 : index
    %c0_6 = arith.constant 0 : index
    %7 = vector.load %arg4[%c0_5, %c0_6] : memref<1x128xf32, #tpu.memory_space<vmem>>, vector<1x128xf32>
    %8 = vector.broadcast %7 : vector<1x128xf32> to vector<512x128xf32>
    %9 = arith.mulf %6, %8 : vector<512x128xf32>
    %c0_7 = arith.constant 0 : index
    %c0_8 = arith.constant 0 : index
    %10 = vector.load %arg5[%c0_7, %c0_8] : memref<1x128xf32, #tpu.memory_space<vmem>>, vector<1x128xf32>
    %11 = vector.broadcast %10 : vector<1x128xf32> to vector<512x128xf32>
    %12 = arith.addf %9, %11 : vector<512x128xf32>
    %13 = arith.truncf %12 : vector<512x128xf32> to vector<512x128xbf16>
    %c0_9 = arith.constant 0 : index
    %c0_10 = arith.constant 0 : index
    %14 = vector.load %arg6[%c0_9, %c0_10] : memref<128x128xbf16, #tpu.memory_space<vmem>>, vector<128x128xbf16>
    %cst = arith.constant dense<0.000000e+00> : vector<512x128xf32>
    %15 = tpu.matmul %13, %14, %cst {dimension_numbers = #tpu.dot_dimension_numbers<[1], [0], [0], [1], [0, 0, 1, 1], [], []>} : vector<512x128xbf16>, vector<128x128xbf16>, vector<512x128xf32> -> vector<512x128xf32>
    %c0_11 = arith.constant 0 : index
    %c0_12 = arith.constant 0 : index
    %16 = vector.load %arg7[%c0_11, %c0_12] : memref<1x128xf32, #tpu.memory_space<vmem>>, vector<1x128xf32>
    %17 = vector.broadcast %16 : vector<1x128xf32> to vector<512x128xf32>
    %18 = arith.addf %15, %17 : vector<512x128xf32>
    %cst_13 = arith.constant 5.000000e-01 : f32
    %19 = vector.broadcast %cst_13 : f32 to vector<512x128xf32>
    %20 = arith.mulf %19, %18 : vector<512x128xf32>
    %cst_14 = arith.constant 4.471500e-02 : f32
    %21 = vector.broadcast %cst_14 : f32 to vector<512x128xf32>
    %22 = arith.mulf %21, %18 : vector<512x128xf32>
    %23 = arith.mulf %22, %18 : vector<512x128xf32>
    %24 = arith.mulf %23, %18 : vector<512x128xf32>
    %25 = arith.addf %18, %24 : vector<512x128xf32>
    %cst_15 = arith.constant 0.797884583 : f32
    %26 = vector.broadcast %cst_15 : f32 to vector<512x128xf32>
    %27 = arith.mulf %26, %25 : vector<512x128xf32>
    %28 = math.tanh %27 : vector<512x128xf32>
    %cst_16 = arith.constant 1.000000e+00 : f32
    %29 = vector.broadcast %cst_16 : f32 to vector<512x128xf32>
    %30 = arith.addf %29, %28 : vector<512x128xf32>
    %31 = arith.mulf %20, %30 : vector<512x128xf32>
    %32 = arith.truncf %31 : vector<512x128xf32> to vector<512x128xbf16>
    %c0_17 = arith.constant 0 : index
    %c0_18 = arith.constant 0 : index
    %33 = vector.load %arg8[%c0_17, %c0_18] : memref<128x128xbf16, #tpu.memory_space<vmem>>, vector<128x128xbf16>
    %cst_19 = arith.constant dense<0.000000e+00> : vector<512x128xf32>
    %34 = tpu.matmul %32, %33, %cst_19 {dimension_numbers = #tpu.dot_dimension_numbers<[1], [0], [0], [1], [0, 0, 1, 1], [], []>} : vector<512x128xbf16>, vector<128x128xbf16>, vector<512x128xf32> -> vector<512x128xf32>
    %c0_20 = arith.constant 0 : index
    %c0_21 = arith.constant 0 : index
    %35 = vector.load %arg9[%c0_20, %c0_21] : memref<1x128xf32, #tpu.memory_space<vmem>>, vector<1x128xf32>
    %36 = vector.broadcast %35 : vector<1x128xf32> to vector<512x128xf32>
    %37 = arith.addf %34, %36 : vector<512x128xf32>
    %38 = arith.addf %0, %37 : vector<512x128xf32>
    %c0_22 = arith.constant 0 : index
    %c0_23 = arith.constant 0 : index
    %39 = vector.load %arg10[%c0_22, %c0_23] : memref<512x128xf32, #tpu.memory_space<vmem>>, vector<512x128xf32>
    tpu.vector_store %arg10[%c0_22, %c0_23], %38 {strides = array<i32>} : memref<512x128xf32, #tpu.memory_space<vmem>>, vector<512x128xf32>,
    return
  }
  func.func @transform_0(%arg0: i32) -> (i32, i32) {
    %c0_i32 = arith.constant 0 : i32
    %c0_i32_0 = arith.constant 0 : i32
    return %arg0, %c0_i32 : i32, i32
  }
  func.func @transform_1(%arg0: i32) -> (i32, i32) {
    %c0_i32 = arith.constant 0 : i32
    %c0_i32_0 = arith.constant 0 : i32
    %c0_i32_1 = arith.constant 0 : i32
    return %c0_i32, %c0_i32_0 : i32, i32
  }
  func.func @transform_2(%arg0: i32) -> (i32, i32) {
    %c0_i32 = arith.constant 0 : i32
    %c0_i32_0 = arith.constant 0 : i32
    %c0_i32_1 = arith.constant 0 : i32
    return %c0_i32, %c0_i32_0 : i32, i32
  }
  func.func @transform_3(%arg0: i32) -> (i32, i32) {
    %c0_i32 = arith.constant 0 : i32
    %c0_i32_0 = arith.constant 0 : i32
    %c0_i32_1 = arith.constant 0 : i32
    return %c0_i32, %c0_i32_0 : i32, i32
  }
  func.func @transform_4(%arg0: i32) -> (i32, i32) {
    %c0_i32 = arith.constant 0 : i32
    %c0_i32_0 = arith.constant 0 : i32
    %c0_i32_1 = arith.constant 0 : i32
    return %c0_i32, %c0_i32_0 : i32, i32
  }
  func.func @transform_5(%arg0: i32) -> (i32, i32) {
    %c0_i32 = arith.constant 0 : i32
    %c0_i32_0 = arith.constant 0 : i32
    %c0_i32_1 = arith.constant 0 : i32
    return %c0_i32, %c0_i32_0 : i32, i32
  }
  func.func @transform_6(%arg0: i32) -> (i32, i32) {
    %c0_i32 = arith.constant 0 : i32
    %c0_i32_0 = arith.constant 0 : i32
    %c0_i32_1 = arith.constant 0 : i32
    return %c0_i32, %c0_i32_0 : i32, i32
  }
  func.func @transform_7(%arg0: i32) -> (i32, i32) {
    %c0_i32 = arith.constant 0 : i32
    %c0_i32_0 = arith.constant 0 : i32
    %c0_i32_1 = arith.constant 0 : i32
    return %c0_i32, %c0_i32_0 : i32, i32
  }
  func.func @transform_8(%arg0: i32) -> (i32, i32) {
    %c0_i32 = arith.constant 0 : i32
    %c0_i32_0 = arith.constant 0 : i32
    %c0_i32_1 = arith.constant 0 : i32
    return %c0_i32, %c0_i32_0 : i32, i32
  }
  func.func @transform_9(%arg0: i32) -> (i32, i32) {
    %c0_i32 = arith.constant 0 : i32
    %c0_i32_0 = arith.constant 0 : i32
    return %arg0, %c0_i32 : i32, i32
  }
}

</mosaic_0001>

<bundles_post_ra>
// kernel: cnn_block_forward.3
= control target key start
LH: loop header
LB: loop body
LE: loop exit
PB: predicated region body
PF: predicated region fallthrough
CT: control target
= control target key end

     0   :  { %s534_s0 = inlined_call_operand.vmem [shape: f32[512,128], index: 0, kind: input, shape index: {}]   ;;  %s535_s1 = inlined_call_operand.vmem [shape: f32[1,128], index: 1, kind: output, shape index: {0}]   ;;  %s536_s2 = inlined_call_operand.vmem [shape: f32[1,128], index: 2, kind: output, shape index: {1}]  }
   0x1   :  { %v16_v0 = vld [vmem:[%s534_s0] sm:$0xff]  ;;  %v17_v1 = vld [vmem:[%s534_s0 + $0x8] sm:$0xff]  ;;  %v18_v2 = vld [vmem:[%s534_s0 + $0x10] sm:$0xff] }
   0x2   :  { %v19_v3 = vld [vmem:[%s534_s0 + $0x18] sm:$0xff]  ;;  %v81_v4 = vadd.f32 %v17_v1, %v16_v0  ;;  %v147_v5 = vmul.f32 %v16_v0, %v16_v0  ;;  %v148_v6 = vmul.f32 %v17_v1, %v17_v1  ;;  %v149_v7 = vmul.f32 %v18_v2, %v18_v2  ;;  %v20_v8 = vld [vmem:[%s534_s0 + $0x20] sm:$0xff]  ;;  %v21_v12 = vld [vmem:[%s534_s0 + $0x28] sm:$0xff] }
   0x3   :  { %v150_v10 = vmul.f32 %v19_v3, %v19_v3  ;;  %v151_v14 = vmul.f32 %v20_v8, %v20_v8  ;;  %v22_v16 = vld [vmem:[%s534_s0 + $0x30] sm:$0xff]  ;;  %v152_v18 = vmul.f32 %v21_v12, %v21_v12  ;;  %v23_v20 = vld [vmem:[%s534_s0 + $0x38] sm:$0xff]  ;;  %v24_v24 = vld [vmem:[%s534_s0 + $0x40] sm:$0xff] }
   0x4   :  { %v82_v9 = vadd.f32 %v81_v4, %v18_v2  ;;  %v211_v11 = vadd.f32 %v148_v6, %v147_v5  ;;  %v153_v22 = vmul.f32 %v22_v16, %v22_v16  ;;  %v154_v26 = vmul.f32 %v23_v20, %v23_v20  ;;  %v25_v28 = vld [vmem:[%s534_s0 + $0x48] sm:$0xff]  ;;  %v26_v32 = vld [vmem:[%s534_s0 + $0x50] sm:$0xff]  ;;  %v27_v36 = vld [vmem:[%s534_s0 + $0x58] sm:$0xff] }
   0x5   :  { %v155_v30 = vmul.f32 %v24_v24, %v24_v24  ;;  %v156_v34 = vmul.f32 %v25_v28, %v25_v28  ;;  %v157_v38 = vmul.f32 %v26_v32, %v26_v32  ;;  %v28_v40 = vld [vmem:[%s534_s0 + $0x60] sm:$0xff]  ;;  %v158_v42 = vmul.f32 %v27_v36, %v27_v36  ;;  %v29_v44 = vld [vmem:[%s534_s0 + $0x68] sm:$0xff]  ;;  %v30_v48 = vld [vmem:[%s534_s0 + $0x70] sm:$0xff] }
   0x6   :  { %v83_v13 = vadd.f32 %v82_v9, %v19_v3  ;;  %v212_v15 = vadd.f32 %v211_v11, %v149_v7  ;;  %v159_v46 = vmul.f32 %v28_v40, %v28_v40  ;;  %v160_v50 = vmul.f32 %v29_v44, %v29_v44  ;;  %v31_v52 = vld [vmem:[%s534_s0 + $0x78] sm:$0xff]  ;;  %v32_v56 = vld [vmem:[%s534_s0 + $0x80] sm:$0xff]  ;;  %v33_v60 = vld [vmem:[%s534_s0 + $0x88] sm:$0xff] }
   0x7   :  { %v161_v54 = vmul.f32 %v30_v48, %v30_v48  ;;  %v162_v58 = vmul.f32 %v31_v52, %v31_v52  ;;  %v163_v62 = vmul.f32 %v32_v56, %v32_v56  ;;  %v34_v0 = vld [vmem:[%s534_s0 + $0x90] sm:$0xff]  ;;  %v164_v2 = vmul.f32 %v33_v60, %v33_v60  ;;  %v35_v4 = vld [vmem:[%s534_s0 + $0x98] sm:$0xff] }
   0x8   :  { %v84_v17 = vadd.f32 %v83_v13, %v20_v8  ;;  %v213_v19 = vadd.f32 %v212_v15, %v150_v10  ;;  %v165_v6 = vmul.f32 %v34_v0, %v34_v0  ;;  %v36_v8 = vld [vmem:[%s534_s0 + $0xa0] sm:$0xff]  ;;  %v166_v10 = vmul.f32 %v35_v4, %v35_v4 }
   0xa   :  { %v85_v21 = vadd.f32 %v84_v17, %v21_v12  ;;  %v214_v23 = vadd.f32 %v213_v19, %v151_v14  ;;  %v37_v12 = vld [vmem:[%s534_s0 + $0xa8] sm:$0xff]  ;;  %v167_v14 = vmul.f32 %v36_v8, %v36_v8 }
   0xc   :  { %v86_v25 = vadd.f32 %v85_v21, %v22_v16  ;;  %v215_v27 = vadd.f32 %v214_v23, %v152_v18  ;;  %v38_v16 = vld [vmem:[%s534_s0 + $0xb0] sm:$0xff]  ;;  %v168_v18 = vmul.f32 %v37_v12, %v37_v12 }
   0xe   :  { %v87_v29 = vadd.f32 %v86_v25, %v23_v20  ;;  %v216_v31 = vadd.f32 %v215_v27, %v153_v22  ;;  %v39_v20 = vld [vmem:[%s534_s0 + $0xb8] sm:$0xff]  ;;  %v169_v22 = vmul.f32 %v38_v16, %v38_v16 }
  0x10   :  { %v88_v33 = vadd.f32 %v87_v29, %v24_v24  ;;  %v217_v35 = vadd.f32 %v216_v31, %v154_v26  ;;  %v40_v24 = vld [vmem:[%s534_s0 + $0xc0] sm:$0xff]  ;;  %v170_v26 = vmul.f32 %v39_v20, %v39_v20 }
  0x12   :  { %v89_v37 = vadd.f32 %v88_v33, %v25_v28  ;;  %v218_v39 = vadd.f32 %v217_v35, %v155_v30  ;;  %v41_v28 = vld [vmem:[%s534_s0 + $0xc8] sm:$0xff]  ;;  %v171_v30 = vmul.f32 %v40_v24, %v40_v24 }
  0x14   :  { %v90_v41 = vadd.f32 %v89_v37, %v26_v32  ;;  %v219_v43 = vadd.f32 %v218_v39, %v156_v34  ;;  %v42_v32 = vld [vmem:[%s534_s0 + $0xd0] sm:$0xff]  ;;  %v172_v34 = vmul.f32 %v41_v28, %v41_v28 }
  0x16   :  { %v91_v45 = vadd.f32 %v90_v41, %v27_v36  ;;  %v220_v47 = vadd.f32 %v219_v43, %v157_v38  ;;  %v43_v36 = vld [vmem:[%s534_s0 + $0xd8] sm:$0xff]  ;;  %v173_v38 = vmul.f32 %v42_v32, %v42_v32 }
  0x18   :  { %v92_v49 = vadd.f32 %v91_v45, %v28_v40  ;;  %v221_v51 = vadd.f32 %v220_v47, %v158_v42  ;;  %v44_v40 = vld [vmem:[%s534_s0 + $0xe0] sm:$0xff]  ;;  %v174_v42 = vmul.f32 %v43_v36, %v43_v36 }
  0x1a   :  { %v93_v53 = vadd.f32 %v92_v49, %v29_v44  ;;  %v222_v55 = vadd.f32 %v221_v51, %v159_v46  ;;  %v45_v44 = vld [vmem:[%s534_s0 + $0xe8] sm:$0xff]  ;;  %v175_v46 = vmul.f32 %v44_v40, %v44_v40 }
  0x1c   :  { %v94_v57 = vadd.f32 %v93_v53, %v30_v48  ;;  %v223_v59 = vadd.f32 %v222_v55, %v160_v50  ;;  %v46_v48 = vld [vmem:[%s534_s0 + $0xf0] sm:$0xff]  ;;  %v176_v50 = vmul.f32 %v45_v44, %v45_v44 }
  0x1e   :  { %v95_v61 = vadd.f32 %v94_v57, %v31_v52  ;;  %v224_v63 = vadd.f32 %v223_v59, %v161_v54  ;;  %v47_v52 = vld [vmem:[%s534_s0 + $0xf8] sm:$0xff]  ;;  %v177_v54 = vmul.f32 %v46_v48, %v46_v48 }
  0x20   :  { %v96_v1 = vadd.f32 %v95_v61, %v32_v56  ;;  %v225_v3 = vadd.f32 %v224_v63, %v162_v58  ;;  %v48_v56 = vld [vmem:[%s534_s0 + $0x100] sm:$0xff]  ;;  %v178_v58 = vmul.f32 %v47_v52, %v47_v52 }
  0x22   :  { %v97_v5 = vadd.f32 %v96_v1, %v33_v60  ;;  %v226_v7 = vadd.f32 %v225_v3, %v163_v62  ;;  %v49_v60 = vld [vmem:[%s534_s0 + $0x108] sm:$0xff]  ;;  %v179_v62 = vmul.f32 %v48_v56, %v48_v56 }
  0x24   :  { %v98_v9 = vadd.f32 %v97_v5, %v34_v0  ;;  %v227_v11 = vadd.f32 %v226_v7, %v164_v2  ;;  %v50_v0 = vld [vmem:[%s534_s0 + $0x110] sm:$0xff]  ;;  %v180_v2 = vmul.f32 %v49_v60, %v49_v60 }
  0x26   :  { %v99_v13 = vadd.f32 %v98_v9, %v35_v4  ;;  %v228_v15 = vadd.f32 %v227_v11, %v165_v6  ;;  %v51_v4 = vld [vmem:[%s534_s0 + $0x118] sm:$0xff]  ;;  %v181_v6 = vmul.f32 %v50_v0, %v50_v0 }
  0x28   :  { %v100_v17 = vadd.f32 %v99_v13, %v36_v8  ;;  %v229_v19 = vadd.f32 %v228_v15, %v166_v10  ;;  %v52_v8 = vld [vmem:[%s534_s0 + $0x120] sm:$0xff]  ;;  %v182_v10 = vmul.f32 %v51_v4, %v51_v4 }
  0x2a   :  { %v101_v21 = vadd.f32 %v100_v17, %v37_v12  ;;  %v230_v23 = vadd.f32 %v229_v19, %v167_v14  ;;  %v53_v12 = vld [vmem:[%s534_s0 + $0x128] sm:$0xff]  ;;  %v183_v14 = vmul.f32 %v52_v8, %v52_v8 }
  0x2c   :  { %v102_v25 = vadd.f32 %v101_v21, %v38_v16  ;;  %v231_v27 = vadd.f32 %v230_v23, %v168_v18  ;;  %v54_v16 = vld [vmem:[%s534_s0 + $0x130] sm:$0xff]  ;;  %v184_v18 = vmul.f32 %v53_v12, %v53_v12 }
  0x2e   :  { %v103_v29 = vadd.f32 %v102_v25, %v39_v20  ;;  %v232_v31 = vadd.f32 %v231_v27, %v169_v22  ;;  %v55_v20 = vld [vmem:[%s534_s0 + $0x138] sm:$0xff]  ;;  %v185_v22 = vmul.f32 %v54_v16, %v54_v16 }
  0x30   :  { %v104_v33 = vadd.f32 %v103_v29, %v40_v24  ;;  %v233_v35 = vadd.f32 %v232_v31, %v170_v26  ;;  %v56_v24 = vld [vmem:[%s534_s0 + $0x140] sm:$0xff]  ;;  %v186_v26 = vmul.f32 %v55_v20, %v55_v20 }
  0x32   :  { %v105_v37 = vadd.f32 %v104_v33, %v41_v28  ;;  %v234_v39 = vadd.f32 %v233_v35, %v171_v30  ;;  %v57_v28 = vld [vmem:[%s534_s0 + $0x148] sm:$0xff]  ;;  %v187_v30 = vmul.f32 %v56_v24, %v56_v24 }
  0x34   :  { %v106_v41 = vadd.f32 %v105_v37, %v42_v32  ;;  %v235_v43 = vadd.f32 %v234_v39, %v172_v34  ;;  %v58_v32 = vld [vmem:[%s534_s0 + $0x150] sm:$0xff]  ;;  %v188_v34 = vmul.f32 %v57_v28, %v57_v28 }
  0x36   :  { %v107_v45 = vadd.f32 %v106_v41, %v43_v36  ;;  %v236_v47 = vadd.f32 %v235_v43, %v173_v38  ;;  %v59_v36 = vld [vmem:[%s534_s0 + $0x158] sm:$0xff]  ;;  %v189_v38 = vmul.f32 %v58_v32, %v58_v32 }
  0x38   :  { %v108_v49 = vadd.f32 %v107_v45, %v44_v40  ;;  %v237_v51 = vadd.f32 %v236_v47, %v174_v42  ;;  %v60_v40 = vld [vmem:[%s534_s0 + $0x160] sm:$0xff]  ;;  %v190_v42 = vmul.f32 %v59_v36, %v59_v36 }
  0x3a   :  { %v109_v53 = vadd.f32 %v108_v49, %v45_v44  ;;  %v238_v55 = vadd.f32 %v237_v51, %v175_v46  ;;  %v61_v44 = vld [vmem:[%s534_s0 + $0x168] sm:$0xff]  ;;  %v191_v46 = vmul.f32 %v60_v40, %v60_v40 }
  0x3c   :  { %v110_v57 = vadd.f32 %v109_v53, %v46_v48  ;;  %v239_v59 = vadd.f32 %v238_v55, %v176_v50  ;;  %v62_v48 = vld [vmem:[%s534_s0 + $0x170] sm:$0xff]  ;;  %v192_v50 = vmul.f32 %v61_v44, %v61_v44 }
  0x3e   :  { %v111_v61 = vadd.f32 %v110_v57, %v47_v52  ;;  %v240_v63 = vadd.f32 %v239_v59, %v177_v54  ;;  %v63_v52 = vld [vmem:[%s534_s0 + $0x178] sm:$0xff]  ;;  %v193_v54 = vmul.f32 %v62_v48, %v62_v48 }
  0x40   :  { %v112_v1 = vadd.f32 %v111_v61, %v48_v56  ;;  %v241_v3 = vadd.f32 %v240_v63, %v178_v58  ;;  %v64_v56 = vld [vmem:[%s534_s0 + $0x180] sm:$0xff]  ;;  %v194_v58 = vmul.f32 %v63_v52, %v63_v52 }
  0x42   :  { %v113_v5 = vadd.f32 %v112_v1, %v49_v60  ;;  %v242_v7 = vadd.f32 %v241_v3, %v179_v62  ;;  %v65_v60 = vld [vmem:[%s534_s0 + $0x188] sm:$0xff]  ;;  %v195_v62 = vmul.f32 %v64_v56, %v64_v56 }
  0x44   :  { %v114_v9 = vadd.f32 %v113_v5, %v50_v0  ;;  %v243_v11 = vadd.f32 %v242_v7, %v180_v2  ;;  %v66_v0 = vld [vmem:[%s534_s0 + $0x190] sm:$0xff]  ;;  %v196_v2 = vmul.f32 %v65_v60, %v65_v60 }
  0x46   :  { %v115_v13 = vadd.f32 %v114_v9, %v51_v4  ;;  %v244_v15 = vadd.f32 %v243_v11, %v181_v6  ;;  %v67_v4 = vld [vmem:[%s534_s0 + $0x198] sm:$0xff]  ;;  %v197_v6 = vmul.f32 %v66_v0, %v66_v0 }
  0x48   :  { %v116_v17 = vadd.f32 %v115_v13, %v52_v8  ;;  %v245_v19 = vadd.f32 %v244_v15, %v182_v10  ;;  %v68_v8 = vld [vmem:[%s534_s0 + $0x1a0] sm:$0xff]  ;;  %v198_v10 = vmul.f32 %v67_v4, %v67_v4 }
  0x4a   :  { %v117_v21 = vadd.f32 %v116_v17, %v53_v12  ;;  %v246_v23 = vadd.f32 %v245_v19, %v183_v14  ;;  %v69_v12 = vld [vmem:[%s534_s0 + $0x1a8] sm:$0xff]  ;;  %v199_v14 = vmul.f32 %v68_v8, %v68_v8 }
  0x4c   :  { %v118_v25 = vadd.f32 %v117_v21, %v54_v16  ;;  %v247_v27 = vadd.f32 %v246_v23, %v184_v18  ;;  %v70_v16 = vld [vmem:[%s534_s0 + $0x1b0] sm:$0xff]  ;;  %v200_v18 = vmul.f32 %v69_v12, %v69_v12 }
  0x4e   :  { %v119_v29 = vadd.f32 %v118_v25, %v55_v20  ;;  %v248_v31 = vadd.f32 %v247_v27, %v185_v22  ;;  %v71_v20 = vld [vmem:[%s534_s0 + $0x1b8] sm:$0xff]  ;;  %v201_v22 = vmul.f32 %v70_v16, %v70_v16 }
  0x50   :  { %v120_v33 = vadd.f32 %v119_v29, %v56_v24  ;;  %v249_v35 = vadd.f32 %v248_v31, %v186_v26  ;;  %v72_v24 = vld [vmem:[%s534_s0 + $0x1c0] sm:$0xff]  ;;  %v202_v26 = vmul.f32 %v71_v20, %v71_v20 }
  0x52   :  { %v121_v37 = vadd.f32 %v120_v33, %v57_v28  ;;  %v250_v39 = vadd.f32 %v249_v35, %v187_v30  ;;  %v73_v28 = vld [vmem:[%s534_s0 + $0x1c8] sm:$0xff]  ;;  %v203_v30 = vmul.f32 %v72_v24, %v72_v24 }
  0x54   :  { %v122_v41 = vadd.f32 %v121_v37, %v58_v32  ;;  %v251_v43 = vadd.f32 %v250_v39, %v188_v34  ;;  %v74_v32 = vld [vmem:[%s534_s0 + $0x1d0] sm:$0xff]  ;;  %v204_v34 = vmul.f32 %v73_v28, %v73_v28 }
  0x56   :  { %v123_v45 = vadd.f32 %v122_v41, %v59_v36  ;;  %v252_v47 = vadd.f32 %v251_v43, %v189_v38  ;;  %v75_v36 = vld [vmem:[%s534_s0 + $0x1d8] sm:$0xff]  ;;  %v205_v38 = vmul.f32 %v74_v32, %v74_v32 }
  0x58   :  { %v124_v49 = vadd.f32 %v123_v45, %v60_v40  ;;  %v253_v51 = vadd.f32 %v252_v47, %v190_v42  ;;  %v76_v40 = vld [vmem:[%s534_s0 + $0x1e0] sm:$0xff]  ;;  %v206_v42 = vmul.f32 %v75_v36, %v75_v36 }
  0x5a   :  { %v125_v53 = vadd.f32 %v124_v49, %v61_v44  ;;  %v254_v55 = vadd.f32 %v253_v51, %v191_v46  ;;  %v77_v44 = vld [vmem:[%s534_s0 + $0x1e8] sm:$0xff]  ;;  %v207_v46 = vmul.f32 %v76_v40, %v76_v40 }
  0x5c   :  { %v126_v57 = vadd.f32 %v125_v53, %v62_v48  ;;  %v255_v59 = vadd.f32 %v254_v55, %v192_v50  ;;  %v78_v48 = vld [vmem:[%s534_s0 + $0x1f0] sm:$0xff]  ;;  %v208_v50 = vmul.f32 %v77_v44, %v77_v44 }
  0x5e   :  { %v127_v61 = vadd.f32 %v126_v57, %v63_v52  ;;  %v256_v63 = vadd.f32 %v255_v59, %v193_v54  ;;  %v79_v52 = vld [vmem:[%s534_s0 + $0x1f8] sm:$0xff]  ;;  %v209_v54 = vmul.f32 %v78_v48, %v78_v48 }
  0x5f   :  { %v210_v57 = vmul.f32 %v79_v52, %v79_v52 }
  0x60   :  { %v128_v1 = vadd.f32 %v127_v61, %v64_v56  ;;  %v257_v3 = vadd.f32 %v256_v63, %v194_v58 }
  0x62   :  { %v129_v5 = vadd.f32 %v128_v1, %v65_v60  ;;  %v258_v7 = vadd.f32 %v257_v3, %v195_v62 }
  0x64   :  { %v130_v9 = vadd.f32 %v129_v5, %v66_v0  ;;  %v259_v11 = vadd.f32 %v258_v7, %v196_v2 }
  0x66   :  { %v131_v13 = vadd.f32 %v130_v9, %v67_v4  ;;  %v260_v15 = vadd.f32 %v259_v11, %v197_v6 }
  0x68   :  { %v132_v17 = vadd.f32 %v131_v13, %v68_v8  ;;  %v261_v19 = vadd.f32 %v260_v15, %v198_v10 }
  0x6a   :  { %v133_v21 = vadd.f32 %v132_v17, %v69_v12  ;;  %v262_v23 = vadd.f32 %v261_v19, %v199_v14 }
  0x6c   :  { %v134_v25 = vadd.f32 %v133_v21, %v70_v16  ;;  %v263_v27 = vadd.f32 %v262_v23, %v200_v18 }
  0x6e   :  { %v135_v29 = vadd.f32 %v134_v25, %v71_v20  ;;  %v264_v31 = vadd.f32 %v263_v27, %v201_v22 }
  0x70   :  { %v136_v33 = vadd.f32 %v135_v29, %v72_v24  ;;  %v265_v35 = vadd.f32 %v264_v31, %v202_v26 }
  0x72   :  { %v137_v37 = vadd.f32 %v136_v33, %v73_v28  ;;  %v266_v39 = vadd.f32 %v265_v35, %v203_v30 }
  0x74   :  { %v138_v41 = vadd.f32 %v137_v37, %v74_v32  ;;  %v267_v43 = vadd.f32 %v266_v39, %v204_v34 }
  0x76   :  { %v139_v45 = vadd.f32 %v138_v41, %v75_v36  ;;  %v268_v47 = vadd.f32 %v267_v43, %v205_v38 }
  0x78   :  { %v140_v49 = vadd.f32 %v139_v45, %v76_v40  ;;  %v269_v51 = vadd.f32 %v268_v47, %v206_v42 }
  0x7a   :  { %v141_v53 = vadd.f32 %v140_v49, %v77_v44  ;;  %v270_v55 = vadd.f32 %v269_v51, %v207_v46 }
  0x7c   :  { %v142_v56 = vadd.f32 %v141_v53, %v78_v48  ;;  %v271_v58 = vadd.f32 %v270_v55, %v208_v50 }
  0x7e   :  { %v143_v59 = vadd.f32 %v142_v56, %v79_v52  ;;  %v272_v60 = vadd.f32 %v271_v58, %v209_v54 }
  0x80   :  { %v280_v61 = vrot.slane %v143_v59, 4  ;;  %v273_v62 = vadd.f32 %v272_v60, %v210_v57 }
  0x82   :  { %v281_v63 = vadd.f32 %v280_v61, %v143_v59  ;;  %v287_v0 = vrot.slane %v273_v62, 4 }
  0x84   :  { %v282_v1 = vrot.slane %v281_v63, 2  ;;  %v288_v2 = vadd.f32 %v287_v0, %v273_v62 }
  0x86   :  { %v283_v3 = vadd.f32 %v282_v1, %v281_v63  ;;  %v289_v4 = vrot.slane %v288_v2, 2 }
  0x88   :  { %v284_v5 = vrot.slane %v283_v3, 1  ;;  %v290_v6 = vadd.f32 %v289_v4, %v288_v2 }
  0x8a   :  { %v285_v7 = vadd.f32 %v284_v5, %v283_v3  ;;  %v291_v8 = vrot.slane %v290_v6, 1 }
  0x8c   :  { %v293_v9 = vmul.f32 0.001953125, %v285_v7  ;;  %v292_v10 = vadd.f32 %v291_v8, %v290_v6 }
  0x8e   :  { %v295_v11 = vmul.f32 %v293_v9, %v293_v9  ;;  %298 = vst [vmem:[%s535_s1] sm:$0x1] %v293_v9  ;;  %v294_v12 = vmul.f32 0.001953125, %v292_v10 }
  0x90   :  { %v296_v13 = vsub.f32 %v294_v12, %v295_v11 }
  0x92   :  { %v297_v14 = vmax.f32 %v296_v13, 0.0 }
  0x94   :  { %v299_v15 = vadd.f32 1e-05, %v297_v14 }
  0x96   :  { %319 = vrsqrt.f32 %v299_v15  ;;  %vm306_vm0 = vweird.f32 %v299_v15 }
  0x9c   :  { %v320_v16 = vpop.eup %319 }
  0x9d   :  { %v301_v17 = vmul.f32 %v320_v16, %v299_v15  ;;  %vm307_vm1 = vweird.f32 %v320_v16 }
  0x9e   :  { %vm308_vm2 = vmor %vm306_vm0, %vm307_vm1 }
  0x9f   :  { %v302_v18 = vmul.f32 %v320_v16, %v301_v17 }
  0xa1   :  { %v303_v19 = vmul.f32 0.5, %v302_v18 }
  0xa3   :  { %v304_v20 = vsub.f32 1.5, %v303_v19 }
  0xa5   :  { %v305_v21 = vmul.f32 %v320_v16, %v304_v20 }
  0xa7   :  { %v309_v22 = vsel %vm308_vm2, %v320_v16, %v305_v21 }
  0xa8   :  { %310 = vst [vmem:[%s536_s2] sm:$0x1] %v309_v22 }

// kernel: cnn_block_forward.5
= control target key start
LH: loop header
LB: loop body
LE: loop exit
PB: predicated region body
PF: predicated region fallthrough
CT: control target
= control target key end

     0   :  { %s3475_s5 = inlined_call_operand.vmem [shape: bf16[128,128], index: 5, kind: input, shape index: {}]   ;;  %s3476_s1 = inlined_call_operand.vmem [shape: f32[1,128], index: 1, kind: input, shape index: {}]   ;;  %s3477_s2 = inlined_call_operand.vmem [shape: f32[1,128], index: 2, kind: input, shape index: {}]   ;;  %s3478_s3 = inlined_call_operand.vmem [shape: f32[1,128], index: 3, kind: input, shape index: {}]   ;;  %s3479_s4 = inlined_call_operand.vmem [shape: f32[1,128], index: 4, kind: input, shape index: {}]   ;;  %s3480_s0 = inlined_call_operand.vmem [shape: f32[512,128], index: 0, kind: input, shape index: {}]   ;;  %s3481_s6 = inlined_call_operand.vmem [shape: f32[1,128], index: 6, kind: input, shape index: {}]   ;;  %s3482_s7 = inlined_call_operand.vmem [shape: bf16[128,128], index: 7, kind: input, shape index: {}]   ;;  %s3483_s8 = inlined_call_operand.vmem [shape: f32[1,128], index: 8, kind: input, shape index: {}]   ;;  %s3484_s9 = inlined_call_operand.vmem [shape: f32[512,128], index: 9, kind: output, shape index: {}]  }
   0x1   :  { %v1685_v0 = vld [vmem:[%s3475_s5 + $0x38] sm:$0xff]  ;;  %v1684_v1 = vld [vmem:[%s3475_s5 + $0x30] sm:$0xff]  ;;  %v1683_v2 = vld [vmem:[%s3475_s5 + $0x28] sm:$0xff] }
   0x2   :  { %468 = vmatpush.bf16.msra.mxu0 %v1685_v0  ;;  %1694 = vmatpush.bf16.msra.mxu2 %v1685_v0  ;;  %v1682_v3 = vld [vmem:[%s3475_s5 + $0x20] sm:$0xff]  ;;  %v33_v6 = vld [vmem:[%s3480_s0 + $0x8] sm:$0xff]  ;;  %v1681_v14 = vld [vmem:[%s3475_s5 + $0x18] sm:$0xff] }
   0x3   :  { %v32_v4 = vld [vmem:[%s3480_s0] sm:$0xff]  ;;  %v65_v8 = vld [vmem:[%s3480_s0 + $0x108] sm:$0xff]  ;;  %v1680_v20 = vld [vmem:[%s3475_s5 + $0x10] sm:$0xff] }
   0x4   :  { %v1983_v5 = vld [vmem:[%s3476_s1] ss:$0 sm:$0xff]  ;;  %v1679_v26 = vld [vmem:[%s3475_s5 + $0x8] sm:$0xff]  ;;  %v34_v31 = vld [vmem:[%s3480_s0 + $0x10] sm:$0xff] }
   0x5   :  { %v64_v7 = vld [vmem:[%s3480_s0 + $0x100] sm:$0xff]  ;;  %v100_v9 = vsub.f32 %v32_v4, %v1983_v5  ;;  %v101_v10 = vsub.f32 %v33_v6, %v1983_v5  ;;  %v133_v13 = vsub.f32 %v65_v8, %v1983_v5  ;;  %v35_v32 = vld [vmem:[%s3480_s0 + $0x18] sm:$0xff]  ;;  %v66_v34 = vld [vmem:[%s3480_s0 + $0x110] sm:$0xff]  ;;  %v102_v36 = vsub.f32 %v34_v31, %v1983_v5 }
   0x6   :  { %469 = vmatpush.bf16.msra.mxu0 %v1684_v1  ;;  %1695 = vmatpush.bf16.msra.mxu2 %v1684_v1  ;;  %v1999_v11 = vld [vmem:[%s3477_s2] ss:$0 sm:$0xff]  ;;  %v132_v12 = vsub.f32 %v64_v7, %v1983_v5  ;;  %v67_v35 = vld [vmem:[%s3480_s0 + $0x118] sm:$0xff]  ;;  %v103_v37 = vsub.f32 %v35_v32, %v1983_v5  ;;  %v134_v40 = vsub.f32 %v66_v34, %v1983_v5  ;;  %v37_v55 = vld [vmem:[%s3480_s0 + $0x28] sm:$0xff] }
   0x7   :  { %v168_v15 = vmul.f32 %v1999_v11, %v100_v9  ;;  %v169_v16 = vmul.f32 %v1999_v11, %v101_v10  ;;  %v2011_v17 = vld [vmem:[%s3478_s3] ss:$0 sm:$0xff]  ;;  %v201_v19 = vmul.f32 %v1999_v11, %v133_v13  ;;  %v135_v41 = vsub.f32 %v67_v35, %v1983_v5  ;;  %v69_v57 = vld [vmem:[%s3480_s0 + $0x128] sm:$0xff] }
   0x8   :  { %v200_v18 = vmul.f32 %v1999_v11, %v132_v12  ;;  %v2023_v23 = vld [vmem:[%s3479_s4] ss:$0 sm:$0xff]  ;;  %v170_v42 = vmul.f32 %v1999_v11, %v102_v36  ;;  %v171_v43 = vmul.f32 %v1999_v11, %v103_v37  ;;  %v202_v44 = vmul.f32 %v1999_v11, %v134_v40 }
   0x9   :  { %v236_v21 = vmul.f32 %v2011_v17, %v168_v15  ;;  %v237_v22 = vmul.f32 %v2011_v17, %v169_v16  ;;  %v269_v25 = vmul.f32 %v2011_v17, %v201_v19  ;;  %v1678_v33 = vld [vmem:[%s3475_s5] sm:$0xff]  ;;  %v203_v45 = vmul.f32 %v1999_v11, %v135_v41  ;;  %v39_v15 = vld [vmem:[%s3480_s0 + $0x38] sm:$0xff]  ;;  %v70_v16 = vld [vmem:[%s3480_s0 + $0x130] sm:$0xff] }
   0xa   :  { %470 = vmatpush.bf16.msra.mxu0 %v1683_v2  ;;  %1696 = vmatpush.bf16.msra.mxu2 %v1683_v2  ;;  %v268_v24 = vmul.f32 %v2011_v17, %v200_v18  ;;  %v238_v46 = vmul.f32 %v2011_v17, %v170_v42  ;;  %v239_v47 = vmul.f32 %v2011_v17, %v171_v43  ;;  %v36_v54 = vld [vmem:[%s3480_s0 + $0x20] sm:$0xff]  ;;  %v71_v18 = vld [vmem:[%s3480_s0 + $0x138] sm:$0xff]  ;;  %v73_v41 = vld [vmem:[%s3480_s0 + $0x148] sm:$0xff] }
   0xb   :  { %v304_v27 = vadd.f32 %v2023_v23, %v236_v21  ;;  %v305_v28 = vadd.f32 %v2023_v23, %v237_v22  ;;  %v337_v30 = vadd.f32 %v2023_v23, %v269_v25  ;;  %v270_v48 = vmul.f32 %v2011_v17, %v202_v44  ;;  %v68_v56 = vld [vmem:[%s3480_s0 + $0x120] sm:$0xff] }
   0xc   :  { %v336_v29 = vadd.f32 %v2023_v23, %v268_v24  ;;  %v271_v49 = vmul.f32 %v2011_v17, %v203_v45  ;;  %v306_v50 = vadd.f32 %v2023_v23, %v238_v46  ;;  %v307_v51 = vadd.f32 %v2023_v23, %v239_v47  ;;  %v72_v40 = vld [vmem:[%s3480_s0 + $0x140] sm:$0xff] }
   0xd   :  { %v368_v38 = vpack.c.bf16 %v305_v28, %v304_v27  ;;  %v338_v52 = vadd.f32 %v2023_v23, %v270_v48  ;;  %v104_v59 = vsub.f32 %v36_v54, %v1983_v5  ;;  %v105_v61 = vsub.f32 %v37_v55, %v1983_v5 }
   0xe   :  { %471 = vmatpush.bf16.msra.mxu0 %v1682_v3  ;;  %1697 = vmatpush.bf16.msra.mxu2 %v1682_v3  ;;  %v384_v39 = vpack.c.bf16 %v337_v30, %v336_v29  ;;  %v339_v53 = vadd.f32 %v2023_v23, %v271_v49  ;;  %v369_v58 = vpack.c.bf16 %v307_v51, %v306_v50 }
   0xf   :  { %v136_v62 = vsub.f32 %v68_v56, %v1983_v5  ;;  %v137_v63 = vsub.f32 %v69_v57, %v1983_v5  ;;  %v172_v0 = vmul.f32 %v1999_v11, %v104_v59  ;;  %v173_v1 = vmul.f32 %v1999_v11, %v105_v61  ;;  %v43_v61 = vld [vmem:[%s3480_s0 + $0x58] sm:$0xff] }
  0x10   :  { %v385_v60 = vpack.c.bf16 %v339_v53, %v338_v52  ;;  %v138_v24 = vsub.f32 %v70_v16, %v1983_v5  ;;  %v139_v25 = vsub.f32 %v71_v18, %v1983_v5  ;;  %v140_v46 = vsub.f32 %v72_v40, %v1983_v5 }
  0x11   :  { %v204_v2 = vmul.f32 %v1999_v11, %v136_v62  ;;  %v205_v3 = vmul.f32 %v1999_v11, %v137_v63  ;;  %v240_v4 = vmul.f32 %v2011_v17, %v172_v0  ;;  %v241_v6 = vmul.f32 %v2011_v17, %v173_v1  ;;  %v74_v62 = vld [vmem:[%s3480_s0 + $0x150] sm:$0xff]  ;;  %v75_v63 = vld [vmem:[%s3480_s0 + $0x158] sm:$0xff] }
  0x12   :  { %472 = vmatpush.bf16.msra.mxu0 %v1681_v14  ;;  %1698 = vmatpush.bf16.msra.mxu2 %v1681_v14  ;;  %v38_v14 = vld [vmem:[%s3480_s0 + $0x30] sm:$0xff]  ;;  %v206_v28 = vmul.f32 %v1999_v11, %v138_v24  ;;  %v207_v29 = vmul.f32 %v1999_v11, %v139_v25  ;;  %v141_v47 = vsub.f32 %v73_v41, %v1983_v5  ;;  %v76_v24 = vld [vmem:[%s3480_s0 + $0x160] sm:$0xff]  ;;  %v77_v25 = vld [vmem:[%s3480_s0 + $0x168] sm:$0xff] }
  0x13   :  { %v272_v7 = vmul.f32 %v2011_v17, %v204_v2  ;;  %v273_v8 = vmul.f32 %v2011_v17, %v205_v3  ;;  %v308_v9 = vadd.f32 %v2023_v23, %v240_v4  ;;  %v309_v10 = vadd.f32 %v2023_v23, %v241_v6 }
  0x14   :  { %v106_v19 = vsub.f32 %v38_v14, %v1983_v5  ;;  %v274_v32 = vmul.f32 %v2011_v17, %v206_v28  ;;  %v208_v50 = vmul.f32 %v1999_v11, %v140_v46  ;;  %v209_v51 = vmul.f32 %v1999_v11, %v141_v47  ;;  %v78_v46 = vld [vmem:[%s3480_s0 + $0x170] sm:$0xff]  ;;  %v79_v47 = vld [vmem:[%s3480_s0 + $0x178] sm:$0xff] }
  0x15   :  { %v340_v12 = vadd.f32 %v2023_v23, %v272_v7  ;;  %v341_v13 = vadd.f32 %v2023_v23, %v273_v8  ;;  %v370_v21 = vpack.c.bf16 %v309_v10, %v308_v9  ;;  %v111_v1 = vsub.f32 %v43_v61, %v1983_v5 }
  0x16   :  { %473 = vmatpush.bf16.msra.mxu0 %v1680_v20  ;;  %1699 = vmatpush.bf16.msra.mxu2 %v1680_v20  ;;  %v107_v20 = vsub.f32 %v39_v15, %v1983_v5  ;;  %v342_v36 = vadd.f32 %v2023_v23, %v274_v32  ;;  %v276_v54 = vmul.f32 %v2011_v17, %v208_v50 }
  0x17   :  { %v386_v22 = vpack.c.bf16 %v341_v13, %v340_v12  ;;  %v277_v55 = vmul.f32 %v2011_v17, %v209_v51  ;;  %v142_v4 = vsub.f32 %v74_v62, %v1983_v5  ;;  %v143_v6 = vsub.f32 %v75_v63, %v1983_v5 }
  0x18   :  { %v175_v27 = vmul.f32 %v1999_v11, %v107_v20  ;;  %v179_v8 = vmul.f32 %v1999_v11, %v111_v1 }
  0x19   :  { %v345_v59 = vadd.f32 %v2023_v23, %v277_v55  ;;  %v210_v9 = vmul.f32 %v1999_v11, %v142_v4  ;;  %v211_v10 = vmul.f32 %v1999_v11, %v143_v6  ;;  %v48_v6 = vld [vmem:[%s3480_s0 + $0x80] sm:$0xff] }
  0x1a   :  { %474 = vmatpush.bf16.msra.mxu0 %v1679_v26  ;;  %1700 = vmatpush.bf16.msra.mxu2 %v1679_v26  ;;  %v174_v26 = vmul.f32 %v1999_v11, %v106_v19  ;;  %v243_v31 = vmul.f32 %v2011_v17, %v175_v27  ;;  %v247_v13 = vmul.f32 %v2011_v17, %v179_v8  ;;  %v80_v8 = vld [vmem:[%s3480_s0 + $0x180] sm:$0xff] }
  0x1b   :  { %v278_v14 = vmul.f32 %v2011_v17, %v210_v9  ;;  %v279_v15 = vmul.f32 %v2011_v17, %v211_v10  ;;  %v81_v9 = vld [vmem:[%s3480_s0 + $0x188] sm:$0xff]  ;;  %v1690_v10 = vld [vmem:[%s3482_s7 + $0x20] sm:$0xff] }
  0x1c   :  { %v242_v30 = vmul.f32 %v2011_v17, %v174_v26  ;;  %v311_v35 = vadd.f32 %v2023_v23, %v243_v31  ;;  %v315_v18 = vadd.f32 %v2023_v23, %v247_v13  ;;  %v145_v31 = vsub.f32 %v77_v25, %v1983_v5  ;;  %v1688_v25 = vld [vmem:[%s3482_s7 + $0x10] sm:$0xff] }
  0x1d   :  { %v346_v19 = vadd.f32 %v2023_v23, %v278_v14  ;;  %v347_v20 = vadd.f32 %v2023_v23, %v279_v15  ;;  %v116_v13 = vsub.f32 %v48_v6, %v1983_v5  ;;  %v85_v6 = vld [vmem:[%s3480_s0 + $0x1a8] sm:$0xff] }
  0x1e   :  { %475 = vmatpush.bf16.msra.mxu0 %v1678_v33  ;;  %1701 = vmatpush.bf16.msra.mxu2 %v1678_v33  ;;  %v275_v33 = vmul.f32 %v2011_v17, %v207_v29  ;;  %v310_v34 = vadd.f32 %v2023_v23, %v242_v30  ;;  %v144_v30 = vsub.f32 %v76_v24, %v1983_v5 }
  0x1f   :  { %v389_v28 = vpack.c.bf16 %v347_v20, %v346_v19  ;;  %v1689_v19 = vld [vmem:[%s3482_s7 + $0x18] sm:$0xff]  ;;  %v184_v20 = vmul.f32 %v1999_v11, %v116_v13 }
  0x20   :  { %v343_v37 = vadd.f32 %v2023_v23, %v275_v33  ;;  %v371_v42 = vpack.c.bf16 %v311_v35, %v310_v34  ;;  %v212_v34 = vmul.f32 %v1999_v11, %v144_v30  ;;  %v213_v35 = vmul.f32 %v1999_v11, %v145_v31  ;;  %v1687_v30 = vld [vmem:[%s3482_s7 + $0x8] sm:$0xff] }
  0x21   :  { %476 = vmatmul.bf16.vlgmr.msra.gmra.mxu0 %v368_v38  ;;  %556 = vmatmul.bf16.vlgmr.msra.gmra.mxu2 %v384_v39  ;;  %v40_v38 = vld [vmem:[%s3480_s0 + $0x40] sm:$0xff]  ;;  %v41_v39 = vld [vmem:[%s3480_s0 + $0x48] sm:$0xff] }
  0x22   :  { %v108_v43 = vsub.f32 %v40_v38, %v1983_v5  ;;  %v387_v44 = vpack.c.bf16 %v343_v37, %v342_v36  ;;  %v109_v45 = vsub.f32 %v41_v39, %v1983_v5  ;;  %v280_v38 = vmul.f32 %v2011_v17, %v212_v34 }
  0x23   :  { %v281_v39 = vmul.f32 %v2011_v17, %v213_v35  ;;  %v50_v35 = vld [vmem:[%s3480_s0 + $0x90] sm:$0xff] }
  0x24   :  { %v176_v48 = vmul.f32 %v1999_v11, %v108_v43  ;;  %v177_v49 = vmul.f32 %v1999_v11, %v109_v45  ;;  %v47_v45 = vld [vmem:[%s3480_s0 + $0x78] sm:$0xff] }
  0x25   :  { %v349_v43 = vadd.f32 %v2023_v23, %v281_v39  ;;  %v2297_v39 = vld [vmem:[%s3481_s6] ss:$0 sm:$0xff] }
  0x26   :  { %v244_v52 = vmul.f32 %v2011_v17, %v176_v48  ;;  %v245_v53 = vmul.f32 %v2011_v17, %v177_v49  ;;  %v115_v49 = vsub.f32 %v47_v45, %v1983_v5 }
  0x28   :  { %v312_v56 = vadd.f32 %v2023_v23, %v244_v52  ;;  %v313_v57 = vadd.f32 %v2023_v23, %v245_v53  ;;  %v146_v52 = vsub.f32 %v78_v46, %v1983_v5  ;;  %v147_v53 = vsub.f32 %v79_v47, %v1983_v5 }
  0x2a   :  { %v372_v2 = vpack.c.bf16 %v313_v57, %v312_v56  ;;  %v183_v56 = vmul.f32 %v1999_v11, %v115_v49  ;;  %v214_v57 = vmul.f32 %v1999_v11, %v146_v52 }
  0x2c   :  { %v251_v61 = vmul.f32 %v2011_v17, %v183_v56  ;;  %v282_v62 = vmul.f32 %v2011_v17, %v214_v57 }
  0x31   :  { %481 = vmatmul.bf16.gmra.mxu0 %v369_v58  ;;  %561 = vmatmul.bf16.gmra.mxu2 %v385_v60  ;;  %v344_v58 = vadd.f32 %v2023_v23, %v276_v54  ;;  %v42_v60 = vld [vmem:[%s3480_s0 + $0x50] sm:$0xff]  ;;  %v1693_v54 = vld [vmem:[%s3482_s7 + $0x38] sm:$0xff] }
  0x32   :  { %v110_v0 = vsub.f32 %v42_v60, %v1983_v5  ;;  %1313 = vmatpush.bf16.msra.mxu1 %v1693_v54  ;;  %1702 = vmatpush.bf16.msra.mxu3 %v1693_v54 }
  0x33   :  { %v388_v3 = vpack.c.bf16 %v345_v59, %v344_v58  ;;  %v215_v58 = vmul.f32 %v1999_v11, %v147_v53  ;;  %v1692_v59 = vld [vmem:[%s3482_s7 + $0x30] sm:$0xff] }
  0x34   :  { %v178_v7 = vmul.f32 %v1999_v11, %v110_v0  ;;  %v1691_v0 = vld [vmem:[%s3482_s7 + $0x28] sm:$0xff] }
  0x35   :  { %v283_v63 = vmul.f32 %v2011_v17, %v215_v58 }
  0x36   :  { %v246_v12 = vmul.f32 %v2011_v17, %v178_v7  ;;  %1314 = vmatpush.bf16.msra.mxu1 %v1692_v59  ;;  %1703 = vmatpush.bf16.msra.mxu3 %v1692_v59  ;;  %v49_v7 = vld [vmem:[%s3480_s0 + $0x88] sm:$0xff] }
  0x37   :  { %v351_v4 = vadd.f32 %v2023_v23, %v283_v63  ;;  %v117_v15 = vsub.f32 %v49_v7, %v1983_v5  ;;  %v53_v63 = vld [vmem:[%s3480_s0 + $0xa8] sm:$0xff] }
  0x38   :  { %v314_v16 = vadd.f32 %v2023_v23, %v246_v12 }
  0x3a   :  { %v373_v26 = vpack.c.bf16 %v315_v18, %v314_v16  ;;  %1315 = vmatpush.bf16.msra.mxu1 %v1691_v0  ;;  %1704 = vmatpush.bf16.msra.mxu3 %v1691_v0  ;;  %v148_v16 = vsub.f32 %v80_v8, %v1983_v5  ;;  %v149_v18 = vsub.f32 %v81_v9, %v1983_v5 }
  0x3c   :  { %v217_v24 = vmul.f32 %v1999_v11, %v149_v18  ;;  %v153_v18 = vsub.f32 %v85_v6, %v1983_v5  ;;  %v87_v6 = vld [vmem:[%s3480_s0 + $0x1b8] sm:$0xff] }
  0x3e   :  { %1316 = vmatpush.bf16.msra.mxu1 %v1690_v10  ;;  %1705 = vmatpush.bf16.msra.mxu3 %v1690_v10  ;;  %v121_v10 = vsub.f32 %v53_v63, %v1983_v5  ;;  %v86_v63 = vld [vmem:[%s3480_s0 + $0x1b0] sm:$0xff] }
  0x41   :  { %486 = vmatmul.bf16.gmra.mxu0 %v370_v21  ;;  %566 = vmatmul.bf16.gmra.mxu2 %v386_v22  ;;  %v44_v21 = vld [vmem:[%s3480_s0 + $0x60] sm:$0xff]  ;;  %v45_v22 = vld [vmem:[%s3480_s0 + $0x68] sm:$0xff] }
  0x42   :  { %v112_v27 = vsub.f32 %v44_v21, %v1983_v5  ;;  %v113_v29 = vsub.f32 %v45_v22, %v1983_v5  ;;  %v185_v21 = vmul.f32 %v1999_v11, %v117_v15  ;;  %v216_v22 = vmul.f32 %v1999_v11, %v148_v16  ;;  %1317 = vmatpush.bf16.msra.mxu1 %v1689_v19 }
  0x43   :  { %1706 = vmatpush.bf16.msra.mxu3 %v1689_v19 }
  0x44   :  { %v180_v32 = vmul.f32 %v1999_v11, %v112_v27  ;;  %v181_v33 = vmul.f32 %v1999_v11, %v113_v29  ;;  %v253_v27 = vmul.f32 %v2011_v17, %v185_v21  ;;  %v285_v29 = vmul.f32 %v2011_v17, %v217_v24 }
  0x46   :  { %v248_v36 = vmul.f32 %v2011_v17, %v180_v32  ;;  %v249_v37 = vmul.f32 %v2011_v17, %v181_v33  ;;  %1318 = vmatpush.bf16.msra.mxu1 %v1688_v25  ;;  %v321_v32 = vadd.f32 %v2023_v23, %v253_v27  ;;  %v353_v34 = vadd.f32 %v2023_v23, %v285_v29 }
  0x47   :  { %1707 = vmatpush.bf16.msra.mxu3 %v1688_v25 }
  0x48   :  { %v316_v40 = vadd.f32 %v2023_v23, %v248_v36  ;;  %v317_v41 = vadd.f32 %v2023_v23, %v249_v37  ;;  %v51_v36 = vld [vmem:[%s3480_s0 + $0x98] sm:$0xff]  ;;  %v82_v37 = vld [vmem:[%s3480_s0 + $0x190] sm:$0xff] }
  0x49   :  { %v150_v45 = vsub.f32 %v82_v37, %v1983_v5 }
  0x4a   :  { %v374_v50 = vpack.c.bf16 %v317_v41, %v316_v40  ;;  %1319 = vmatpush.bf16.msra.mxu1 %v1687_v30  ;;  %v1686_v40 = vld [vmem:[%s3482_s7] sm:$0xff]  ;;  %v118_v41 = vsub.f32 %v50_v35, %v1983_v5 }
  0x4b   :  { %1708 = vmatpush.bf16.msra.mxu3 %v1687_v30  ;;  %v218_v52 = vmul.f32 %v1999_v11, %v150_v45 }
  0x4c   :  { %v186_v49 = vmul.f32 %v1999_v11, %v118_v41 }
  0x4d   :  { %v286_v59 = vmul.f32 %v2011_v17, %v218_v52 }
  0x4e   :  { %1320 = vmatpush.bf16.msra.mxu1 %v1686_v40  ;;  %v254_v56 = vmul.f32 %v2011_v17, %v186_v49  ;;  %v54_v49 = vld [vmem:[%s3480_s0 + $0xb0] sm:$0xff] }
  0x4f   :  { %1709 = vmatpush.bf16.msra.mxu3 %v1686_v40 }
  0x50   :  { %v322_v7 = vadd.f32 %v2023_v23, %v254_v56 }
  0x51   :  { %491 = vmatmul.bf16.gmra.mxu0 %v371_v42  ;;  %571 = vmatmul.bf16.gmra.mxu2 %v387_v44  ;;  %v348_v42 = vadd.f32 %v2023_v23, %v280_v38  ;;  %v46_v44 = vld [vmem:[%s3480_s0 + $0x70] sm:$0xff]  ;;  %v83_v38 = vld [vmem:[%s3480_s0 + $0x198] sm:$0xff] }
  0x52   :  { %v114_v48 = vsub.f32 %v46_v44, %v1983_v5  ;;  %v151_v46 = vsub.f32 %v83_v38, %v1983_v5 }
  0x53   :  { %v390_v51 = vpack.c.bf16 %v349_v43, %v348_v42  ;;  %v119_v42 = vsub.f32 %v51_v36, %v1983_v5 }
  0x54   :  { %v182_v55 = vmul.f32 %v1999_v11, %v114_v48  ;;  %v219_v53 = vmul.f32 %v1999_v11, %v151_v46 }
  0x56   :  { %v250_v60 = vmul.f32 %v2011_v17, %v182_v55 }
  0x58   :  { %v318_v1 = vadd.f32 %v2023_v23, %v250_v60  ;;  %v287_v60 = vmul.f32 %v2011_v17, %v219_v53 }
  0x5a   :  { %v355_v13 = vadd.f32 %v2023_v23, %v287_v60 }
  0x61   :  { %496 = vmatmul.bf16.gmra.mxu0 %v372_v2  ;;  %576 = vmatmul.bf16.gmra.mxu2 %v388_v3  ;;  %v319_v2 = vadd.f32 %v2023_v23, %v251_v61  ;;  %v350_v3 = vadd.f32 %v2023_v23, %v282_v62  ;;  %v52_v62 = vld [vmem:[%s3480_s0 + $0xa0] sm:$0xff] }
  0x62   :  { %v120_v9 = vsub.f32 %v52_v62, %v1983_v5  ;;  %v122_v62 = vsub.f32 %v54_v49, %v1983_v5 }
  0x63   :  { %v375_v12 = vpack.c.bf16 %v319_v2, %v318_v1  ;;  %v391_v14 = vpack.c.bf16 %v351_v4, %v350_v3  ;;  %v84_v4 = vld [vmem:[%s3480_s0 + $0x1a0] sm:$0xff] }
  0x64   :  { %v152_v16 = vsub.f32 %v84_v4, %v1983_v5  ;;  %v188_v25 = vmul.f32 %v1999_v11, %v120_v9 }
  0x66   :  { %v256_v37 = vmul.f32 %v2011_v17, %v188_v25  ;;  %v190_v25 = vmul.f32 %v1999_v11, %v122_v62 }
  0x71   :  { %501 = vmatmul.bf16.gmra.mxu0 %v373_v26  ;;  %581 = vmatmul.bf16.gmra.mxu2 %v389_v28  ;;  %v252_v26 = vmul.f32 %v2011_v17, %v184_v20  ;;  %v284_v28 = vmul.f32 %v2011_v17, %v216_v22 }
  0x73   :  { %v320_v31 = vadd.f32 %v2023_v23, %v252_v26  ;;  %v352_v33 = vadd.f32 %v2023_v23, %v284_v28  ;;  %v189_v26 = vmul.f32 %v1999_v11, %v121_v10 }
  0x75   :  { %v376_v43 = vpack.c.bf16 %v321_v32, %v320_v31  ;;  %v392_v44 = vpack.c.bf16 %v353_v34, %v352_v33  ;;  %v220_v32 = vmul.f32 %v1999_v11, %v152_v16  ;;  %v221_v33 = vmul.f32 %v1999_v11, %v153_v18 }
  0x76   :  { %v257_v38 = vmul.f32 %v2011_v17, %v189_v26  ;;  %v155_v18 = vsub.f32 %v87_v6, %v1983_v5 }
  0x77   :  { %v289_v45 = vmul.f32 %v2011_v17, %v221_v33 }
  0x78   :  { %v325_v52 = vadd.f32 %v2023_v23, %v257_v38  ;;  %v223_v38 = vmul.f32 %v1999_v11, %v155_v18 }
  0x81   :  { %506 = vmatmul.bf16.gmra.mxu0 %v374_v50  ;;  %586 = vmatmul.bf16.gmra.mxu2 %v390_v51  ;;  %v187_v50 = vmul.f32 %v1999_v11, %v119_v42 }
  0x83   :  { %v255_v57 = vmul.f32 %v2011_v17, %v187_v50 }
  0x85   :  { %v323_v8 = vadd.f32 %v2023_v23, %v255_v57  ;;  %v55_v57 = vld [vmem:[%s3480_s0 + $0xb8] sm:$0xff] }
  0x86   :  { %v123_v9 = vsub.f32 %v55_v57, %v1983_v5  ;;  %v291_v57 = vmul.f32 %v2011_v17, %v223_v38 }
  0x87   :  { %v377_v24 = vpack.c.bf16 %v323_v8, %v322_v7 }
  0x91   :  { %511 = vmatmul.bf16.gmra.mxu0 %v375_v12  ;;  %591 = vmatmul.bf16.gmra.mxu2 %v391_v14  ;;  %v354_v12 = vadd.f32 %v2023_v23, %v286_v59 }
  0x93   :  { %v393_v28 = vpack.c.bf16 %v355_v13, %v354_v12 }
  0x9e   :  { %v477_v47 = vpop.f32.mrf.mxu0 }
  0x9f   :  { %v2307_v48 = vadd.f32 %v2297_v39, %v477_v47 }
  0xa1   :  { %v701_v51 = vmul.f32 0.044715, %v2307_v48  ;;  %516 = vmatmul.bf16.gmra.mxu0 %v376_v43  ;;  %596 = vmatmul.bf16.gmra.mxu2 %v392_v44  ;;  %v288_v44 = vmul.f32 %v2011_v17, %v220_v32  ;;  %v637_v12 = vmul.f32 0.5, %v2307_v48 }
  0xa3   :  { %v765_v54 = vmul.f32 %v701_v51, %v2307_v48  ;;  %v324_v51 = vadd.f32 %v2023_v23, %v256_v37  ;;  %v356_v60 = vadd.f32 %v2023_v23, %v288_v44 }
  0xa4   :  { %v557_v55 = vpop.f32.mrf.mxu2 }
  0xa5   :  { %v2318_v58 = vadd.f32 %v2297_v39, %v557_v55  ;;  %v829_v61 = vmul.f32 %v765_v54, %v2307_v48  ;;  %v378_v8 = vpack.c.bf16 %v325_v52, %v324_v51 }
  0xa6   :  { %v479_v0 = vpop.f32.mrf.mxu0 }
  0xa7   :  { %v733_v1 = vmul.f32 0.044715, %v2318_v58  ;;  %v2331_v2 = vadd.f32 %v2297_v39, %v479_v0  ;;  %v893_v3 = vadd.f32 %v829_v61, %v2307_v48  ;;  %v357_v61 = vadd.f32 %v2023_v23, %v289_v45 }
  0xa9   :  { %v702_v14 = vmul.f32 0.044715, %v2331_v2  ;;  %v797_v15 = vmul.f32 %v733_v1, %v2318_v58  ;;  %v957_v20 = vmul.f32 0.7978846, %v893_v3 }
  0xab   :  { %v766_v19 = vmul.f32 %v702_v14, %v2331_v2  ;;  %v861_v21 = vmul.f32 %v797_v15, %v2318_v58  ;;  %1716 = vtanh.f32 %v957_v20  ;;  %v154_v14 = vsub.f32 %v86_v63, %v1983_v5 }
  0xac   :  { %v559_v22 = vpop.f32.mrf.mxu2  ;;  %v638_v15 = vmul.f32 0.5, %v2331_v2 }
  0xad   :  { %v2355_v27 = vadd.f32 %v2297_v39, %v559_v22  ;;  %v830_v29 = vmul.f32 %v766_v19, %v2331_v2  ;;  %v925_v30 = vadd.f32 %v861_v21, %v2318_v58  ;;  %v394_v21 = vpack.c.bf16 %v357_v61, %v356_v60  ;;  %v56_v60 = vld [vmem:[%s3480_s0 + $0xc0] sm:$0xff] }
  0xae   :  { %v482_v31 = vpop.f32.mrf.mxu0  ;;  %v222_v33 = vmul.f32 %v1999_v11, %v154_v14  ;;  %v88_v14 = vld [vmem:[%s3480_s0 + $0x1c0] sm:$0xff] }
  0xaf   :  { %v2362_v34 = vadd.f32 %v2297_v39, %v482_v31  ;;  %v894_v35 = vadd.f32 %v830_v29, %v2331_v2  ;;  %v734_v36 = vmul.f32 0.044715, %v2355_v27  ;;  %v989_v43 = vmul.f32 0.7978846, %v925_v30 }
  0xb0   :  { %v191_v29 = vmul.f32 %v1999_v11, %v123_v9  ;;  %v669_v31 = vmul.f32 0.5, %v2318_v58  ;;  %v670_v44 = vmul.f32 0.5, %v2355_v27 }
  0xb1   :  { %v703_v40 = vmul.f32 0.044715, %v2362_v34  ;;  %521 = vmatmul.bf16.gmra.mxu0 %v377_v24  ;;  %601 = vmatmul.bf16.gmra.mxu2 %v393_v28  ;;  %v958_v41 = vmul.f32 0.7978846, %v894_v35  ;;  %v798_v42 = vmul.f32 %v734_v36, %v2355_v27  ;;  %v1717_v53 = vpop.eup %1716 }
  0xb2   :  { %v1085_v7 = vadd.f32 1.0, %v1717_v53 }
  0xb3   :  { %1718 = vtanh.f32 %v958_v41  ;;  %v862_v46 = vmul.f32 %v798_v42, %v2355_v27  ;;  %v767_v47 = vmul.f32 %v703_v40, %v2362_v34 }
  0xb4   :  { %v562_v50 = vpop.f32.mrf.mxu2  ;;  %1720 = vtanh.f32 %v989_v43  ;;  %v1149_v26 = vmul.f32 %v1085_v7, %v637_v12  ;;  %v359_v12 = vadd.f32 %v2023_v23, %v291_v57 }
  0xb5   :  { %v2380_v54 = vadd.f32 %v2297_v39, %v562_v50  ;;  %v926_v55 = vadd.f32 %v862_v46, %v2355_v27  ;;  %v831_v56 = vmul.f32 %v767_v47, %v2362_v34  ;;  %v258_v46 = vmul.f32 %v2011_v17, %v190_v25 }
  0xb6   :  { %v484_v59 = vpop.f32.mrf.mxu0  ;;  %v259_v47 = vmul.f32 %v2011_v17, %v191_v29 }
  0xb7   :  { %v735_v0 = vmul.f32 0.044715, %v2380_v54  ;;  %v2395_v1 = vadd.f32 %v2297_v39, %v484_v59  ;;  %v990_v3 = vmul.f32 0.7978846, %v926_v55  ;;  %v895_v4 = vadd.f32 %v831_v56, %v2362_v34 }
  0xb8   :  { %v290_v56 = vmul.f32 %v2011_v17, %v222_v33  ;;  %v326_v63 = vadd.f32 %v2023_v23, %v258_v46 }
  0xb9   :  { %v1719_v10 = vpop.eup %1718  ;;  %1722 = vtanh.f32 %v990_v3  ;;  %v704_v13 = vmul.f32 0.044715, %v2395_v1  ;;  %v799_v19 = vmul.f32 %v735_v0, %v2380_v54  ;;  %v959_v24 = vmul.f32 0.7978846, %v895_v4 }
  0xba   :  { %v1086_v16 = vadd.f32 1.0, %v1719_v10  ;;  %v1721_v20 = vpop.eup %1720  ;;  %v327_v0 = vadd.f32 %v2023_v23, %v259_v47  ;;  %v358_v10 = vadd.f32 %v2023_v23, %v290_v56  ;;  %v640_v29 = vmul.f32 0.5, %v2395_v1 }
  0xbb   :  { %v768_v22 = vmul.f32 %v704_v13, %v2395_v1  ;;  %v863_v30 = vmul.f32 %v799_v19, %v2380_v54  ;;  %v1117_v37 = vadd.f32 1.0, %v1721_v20  ;;  %1724 = vtanh.f32 %v959_v24  ;;  %v89_v20 = vld [vmem:[%s3480_s0 + $0x1c8] sm:$0xff] }
  0xbc   :  { %v564_v48 = vpop.f32.mrf.mxu2  ;;  %v1150_v28 = vmul.f32 %v1086_v16, %v638_v15  ;;  %v124_v13 = vsub.f32 %v56_v60, %v1983_v5 }
  0xbd   :  { %v2413_v2 = vadd.f32 %v2297_v39, %v564_v48  ;;  %v832_v32 = vmul.f32 %v768_v22, %v2395_v1  ;;  %v927_v40 = vadd.f32 %v863_v30, %v2380_v54  ;;  %v1181_v53 = vmul.f32 %v1117_v37, %v669_v31 }
  0xbe   :  { %v487_v35 = vpop.f32.mrf.mxu0  ;;  %v1213_v36 = vpack.c.bf16 %v1150_v28, %v1149_v26  ;;  %v379_v22 = vpack.c.bf16 %v327_v0, %v326_v63  ;;  %v639_v48 = vmul.f32 0.5, %v2362_v34  ;;  %v156_v28 = vsub.f32 %v88_v14, %v1983_v5 }
  0xbf   :  { %v1723_v41 = vpop.eup %1722  ;;  %v2421_v42 = vadd.f32 %v2297_v39, %v487_v35  ;;  %v896_v43 = vadd.f32 %v832_v32, %v2395_v1  ;;  %v736_v58 = vmul.f32 0.044715, %v2413_v2  ;;  %v991_v52 = vmul.f32 0.7978846, %v927_v40 }
  0xc0   :  { %1321 = vmatmul.bf16.vlgmr.msra.gmra.mxu1 %v1213_v36  ;;  %v1118_v45 = vadd.f32 1.0, %v1723_v41  ;;  %v157_v31 = vsub.f32 %v89_v20, %v1983_v5  ;;  %v395_v35 = vpack.c.bf16 %v359_v12, %v358_v10  ;;  %v192_v38 = vmul.f32 %v1999_v11, %v124_v13  ;;  %v59_v20 = vld [vmem:[%s3480_s0 + $0xd8] sm:$0xff] }
  0xc1   :  { %v705_v49 = vmul.f32 0.044715, %v2421_v42  ;;  %526 = vmatmul.bf16.gmra.mxu0 %v378_v8  ;;  %606 = vmatmul.bf16.gmra.mxu2 %v394_v21  ;;  %v960_v50 = vmul.f32 0.7978846, %v896_v43  ;;  %v800_v51 = vmul.f32 %v736_v58, %v2413_v2  ;;  %v1725_v3 = vpop.eup %1724  ;;  %v57_v8 = vld [vmem:[%s3480_s0 + $0xc8] sm:$0xff]  ;;  %v224_v46 = vmul.f32 %v1999_v11, %v156_v28 }
  0xc2   :  { %v1182_v55 = vmul.f32 %v1118_v45, %v670_v44  ;;  %v1087_v21 = vadd.f32 1.0, %v1725_v3  ;;  %v125_v24 = vsub.f32 %v57_v8, %v1983_v5  ;;  %v671_v44 = vmul.f32 0.5, %v2380_v54 }
  0xc3   :  { %1726 = vtanh.f32 %v960_v50  ;;  %v864_v27 = vmul.f32 %v800_v51, %v2413_v2  ;;  %v769_v59 = vmul.f32 %v705_v49, %v2421_v42  ;;  %v225_v51 = vmul.f32 %v1999_v11, %v157_v31  ;;  %v91_v31 = vld [vmem:[%s3480_s0 + $0x1d8] sm:$0xff] }
  0xc4   :  { %v567_v61 = vpop.f32.mrf.mxu2  ;;  %v1229_v62 = vpack.c.bf16 %v1182_v55, %v1181_v53  ;;  %1728 = vtanh.f32 %v991_v52  ;;  %v1151_v40 = vmul.f32 %v1087_v21, %v639_v48  ;;  %v193_v43 = vmul.f32 %v1999_v11, %v125_v24  ;;  %v90_v48 = vld [vmem:[%s3480_s0 + $0x1d0] sm:$0xff] }
  0xc5   :  { %v2440_v4 = vadd.f32 %v2297_v39, %v567_v61  ;;  %v928_v6 = vadd.f32 %v864_v27, %v2413_v2  ;;  %v833_v7 = vmul.f32 %v769_v59, %v2421_v42  ;;  %v672_v57 = vmul.f32 0.5, %v2413_v2 }
  0xc6   :  { %v489_v9 = vpop.f32.mrf.mxu0  ;;  %1401 = vmatmul.bf16.vlgmr.msra.gmra.mxu3 %v1229_v62  ;;  %v260_v59 = vmul.f32 %v2011_v17, %v192_v38  ;;  %v261_v60 = vmul.f32 %v2011_v17, %v193_v43  ;;  %v2533_v38 = vld [vmem:[%s3476_s1] ss:$0 sm:$0xff] }
  0xc7   :  { %v737_v15 = vmul.f32 0.044715, %v2440_v4  ;;  %v2455_v16 = vadd.f32 %v2297_v39, %v489_v9  ;;  %v992_v18 = vmul.f32 0.7978846, %v928_v6  ;;  %v897_v19 = vadd.f32 %v833_v7, %v2421_v42  ;;  %v58_v9 = vld [vmem:[%s3480_s0 + $0xd0] sm:$0xff] }
  0xc8   :  { %v292_v6 = vmul.f32 %v2011_v17, %v224_v46  ;;  %v293_v7 = vmul.f32 %v2011_v17, %v225_v51  ;;  %v2498_v13 = vadd.f32 %v2023_v23, %v260_v59  ;;  %v2501_v14 = vadd.f32 %v2023_v23, %v261_v60  ;;  %v2543_v46 = vld [vmem:[%s3477_s2] ss:$0 sm:$0xff] }
  0xc9   :  { %v1727_v25 = vpop.eup %1726  ;;  %1730 = vtanh.f32 %v992_v18  ;;  %v706_v26 = vmul.f32 0.044715, %v2455_v16  ;;  %v801_v32 = vmul.f32 %v737_v15, %v2440_v4  ;;  %v961_v37 = vmul.f32 0.7978846, %v897_v19 }
  0xca   :  { %v1088_v30 = vadd.f32 1.0, %v1727_v25  ;;  %v1729_v33 = vpop.eup %1728  ;;  %v361_v24 = vadd.f32 %v2023_v23, %v293_v7  ;;  %v126_v25 = vsub.f32 %v58_v9, %v1983_v5  ;;  %v2565_v7 = vld [vmem:[%s3478_s3] ss:$0 sm:$0xff] }
  0xcb   :  { %v770_v36 = vmul.f32 %v706_v26, %v2455_v16  ;;  %v865_v58 = vmul.f32 %v801_v32, %v2440_v4  ;;  %v1119_v50 = vadd.f32 1.0, %v1729_v33  ;;  %1732 = vtanh.f32 %v961_v37 }
  0xcc   :  { %v569_v34 = vpop.f32.mrf.mxu2  ;;  %v1152_v41 = vmul.f32 %v1088_v30, %v640_v29  ;;  %v127_v33 = vsub.f32 %v59_v20, %v1983_v5 }
  0xcd   :  { %v2473_v1 = vadd.f32 %v2297_v39, %v569_v34  ;;  %v834_v45 = vmul.f32 %v770_v36, %v2455_v16  ;;  %v929_v52 = vadd.f32 %v865_v58, %v2440_v4  ;;  %v1183_v0 = vmul.f32 %v1119_v50, %v671_v44 }
  0xce   :  { %v492_v47 = vpop.f32.mrf.mxu0  ;;  %v1214_v49 = vpack.c.bf16 %v1152_v41, %v1151_v40  ;;  %v380_v36 = vpack.c.bf16 %v2501_v14, %v2498_v13  ;;  %v158_v34 = vsub.f32 %v90_v48, %v2533_v38  ;;  %v642_v40 = vmul.f32 0.5, %v2455_v16 }
  0xcf   :  { %v1731_v53 = vpop.eup %1730  ;;  %v2481_v55 = vadd.f32 %v2297_v39, %v492_v47  ;;  %v898_v56 = vadd.f32 %v834_v45, %v2455_v16  ;;  %v738_v54 = vmul.f32 0.044715, %v2473_v1  ;;  %v993_v63 = vmul.f32 0.7978846, %v929_v52 }
  0xd0   :  { %1326 = vmatmul.bf16.gmra.mxu1 %v1214_v49  ;;  %v1120_v27 = vadd.f32 1.0, %v1731_v53  ;;  %v159_v41 = vsub.f32 %v91_v31, %v2533_v38  ;;  %v194_v47 = vmul.f32 %v2543_v46, %v126_v25  ;;  %v195_v51 = vmul.f32 %v2543_v46, %v127_v33  ;;  %v2581_v25 = vld [vmem:[%s3479_s4] ss:$0 sm:$0xff] }
  0xd1   :  { %v707_v11 = vmul.f32 0.044715, %v2481_v55  ;;  %531 = vmatmul.bf16.gmra.mxu0 %v379_v22  ;;  %611 = vmatmul.bf16.gmra.mxu2 %v395_v35  ;;  %v962_v61 = vmul.f32 0.7978846, %v898_v56  ;;  %v802_v62 = vmul.f32 %v738_v54, %v2473_v1  ;;  %v1733_v15 = vpop.eup %1732  ;;  %v360_v22 = vadd.f32 %v2023_v23, %v292_v6 }
  0xd2   :  { %v1184_v3 = vmul.f32 %v1120_v27, %v672_v57  ;;  %v641_v23 = vmul.f32 0.5, %v2421_v42  ;;  %v1089_v32 = vadd.f32 1.0, %v1733_v15  ;;  %v673_v56 = vmul.f32 0.5, %v2440_v4 }
  0xd3   :  { %1734 = vtanh.f32 %v962_v61  ;;  %v866_v2 = vmul.f32 %v802_v62, %v2473_v1  ;;  %v771_v8 = vmul.f32 %v707_v11, %v2481_v55  ;;  %v396_v58 = vpack.c.bf16 %v361_v24, %v360_v22 }
  0xd4   :  { %v572_v10 = vpop.f32.mrf.mxu2  ;;  %v1230_v12 = vpack.c.bf16 %v1184_v3, %v1183_v0  ;;  %1736 = vtanh.f32 %v993_v63  ;;  %v1153_v50 = vmul.f32 %v1089_v32, %v641_v23  ;;  %v226_v57 = vmul.f32 %v2543_v46, %v158_v34  ;;  %v61_v32 = vld [vmem:[%s3480_s0 + $0xe8] sm:$0xff]  ;;  %v92_v34 = vld [vmem:[%s3480_s0 + $0x1e0] sm:$0xff] }
  0xd5   :  { %v2504_v17 = vadd.f32 %v2297_v39, %v572_v10  ;;  %v930_v18 = vadd.f32 %v866_v2, %v2473_v1  ;;  %v835_v19 = vmul.f32 %v771_v8, %v2481_v55  ;;  %v227_v11 = vmul.f32 %v2543_v46, %v159_v41 }
  0xd6   :  { %v494_v21 = vpop.f32.mrf.mxu0  ;;  %1406 = vmatmul.bf16.gmra.mxu3 %v1230_v12  ;;  %v674_v3 = vmul.f32 0.5, %v2473_v1  ;;  %v262_v2 = vmul.f32 %v2565_v7, %v194_v47  ;;  %v263_v8 = vmul.f32 %v2565_v7, %v195_v51  ;;  %v294_v15 = vmul.f32 %v2565_v7, %v226_v57 }
  0xd7   :  { %v739_v26 = vmul.f32 0.044715, %v2504_v17  ;;  %v2519_v28 = vadd.f32 %v2297_v39, %v494_v21  ;;  %v994_v29 = vmul.f32 0.7978846, %v930_v18  ;;  %v899_v30 = vadd.f32 %v835_v19, %v2481_v55  ;;  %v60_v21 = vld [vmem:[%s3480_s0 + $0xe0] sm:$0xff] }
  0xd8   :  { %v295_v18 = vmul.f32 %v2565_v7, %v227_v11  ;;  %v330_v48 = vadd.f32 %v2581_v25, %v262_v2 }
  0xd9   :  { %v1735_v35 = vpop.eup %1734  ;;  %1738 = vtanh.f32 %v994_v29  ;;  %v708_v37 = vmul.f32 0.044715, %v2519_v28  ;;  %v803_v5 = vmul.f32 %v739_v26, %v2504_v17  ;;  %v963_v45 = vmul.f32 0.7978846, %v899_v30 }
  0xda   :  { %v1090_v42 = vadd.f32 1.0, %v1735_v35  ;;  %v1737_v43 = vpop.eup %1736  ;;  %v331_v26 = vadd.f32 %v2581_v25, %v263_v8  ;;  %v362_v35 = vadd.f32 %v2581_v25, %v294_v15  ;;  %v644_v51 = vmul.f32 0.5, %v2519_v28 }
  0xdb   :  { %v772_v44 = vmul.f32 %v708_v37, %v2519_v28  ;;  %v867_v52 = vmul.f32 %v803_v5, %v2504_v17  ;;  %v1121_v60 = vadd.f32 1.0, %v1737_v43  ;;  %1740 = vtanh.f32 %v963_v45  ;;  %v93_v43 = vld [vmem:[%s3480_s0 + $0x1e8] sm:$0xff] }
  0xdc   :  { %v574_v49 = vpop.f32.mrf.mxu2  ;;  %v1154_v16 = vmul.f32 %v1090_v42, %v642_v40  ;;  %v128_v37 = vsub.f32 %v60_v21, %v2533_v38  ;;  %v129_v45 = vsub.f32 %v61_v32, %v2533_v38 }
  0xdd   :  { %v2549_v53 = vadd.f32 %v2297_v39, %v574_v49  ;;  %v836_v54 = vmul.f32 %v772_v44, %v2519_v28  ;;  %v931_v61 = vadd.f32 %v867_v52, %v2504_v17  ;;  %v1185_v14 = vmul.f32 %v1121_v60, %v673_v56 }
  0xde   :  { %v497_v27 = vpop.f32.mrf.mxu0  ;;  %v1215_v59 = vpack.c.bf16 %v1154_v16, %v1153_v50  ;;  %v381_v50 = vpack.c.bf16 %v331_v26, %v330_v48  ;;  %v160_v16 = vsub.f32 %v92_v34, %v2533_v38  ;;  %v161_v56 = vsub.f32 %v93_v43, %v2533_v38 }
  0xdf   :  { %v1739_v62 = vpop.eup %1738  ;;  %v2557_v63 = vadd.f32 %v2297_v39, %v497_v27  ;;  %v900_v0 = vadd.f32 %v836_v54, %v2519_v28  ;;  %v740_v4 = vmul.f32 0.044715, %v2549_v53  ;;  %v995_v13 = vmul.f32 0.7978846, %v931_v61 }
  0xe0   :  { %1331 = vmatmul.bf16.gmra.mxu1 %v1215_v59  ;;  %v1122_v6 = vadd.f32 1.0, %v1739_v62  ;;  %v196_v60 = vmul.f32 %v2543_v46, %v128_v37  ;;  %v228_v2 = vmul.f32 %v2543_v46, %v160_v16 }
  0xe1   :  { %v709_v9 = vmul.f32 0.044715, %v2557_v63  ;;  %536 = vmatmul.bf16.gmra.mxu0 %v380_v36  ;;  %616 = vmatmul.bf16.gmra.mxu2 %v396_v58  ;;  %v964_v10 = vmul.f32 0.7978846, %v900_v0  ;;  %v804_v12 = vmul.f32 %v740_v4, %v2549_v53  ;;  %v1741_v29 = vpop.eup %1740  ;;  %v363_v36 = vadd.f32 %v2581_v25, %v295_v18 }
  0xe2   :  { %v1186_v1 = vmul.f32 %v1122_v6, %v674_v3  ;;  %v643_v58 = vmul.f32 0.5, %v2481_v55  ;;  %v1091_v44 = vadd.f32 1.0, %v1741_v29  ;;  %v197_v0 = vmul.f32 %v2543_v46, %v129_v45 }
  0xe3   :  { %1742 = vtanh.f32 %v964_v10  ;;  %v868_v19 = vmul.f32 %v804_v12, %v2549_v53  ;;  %v773_v20 = vmul.f32 %v709_v9, %v2557_v63  ;;  %v397_v27 = vpack.c.bf16 %v363_v36, %v362_v35 }
  0xe4   :  { %v577_v22 = vpop.f32.mrf.mxu2  ;;  %v1231_v24 = vpack.c.bf16 %v1186_v1, %v1185_v14  ;;  %1744 = vtanh.f32 %v995_v13  ;;  %v1155_v61 = vmul.f32 %v1091_v44, %v643_v58  ;;  %v675_v3 = vmul.f32 0.5, %v2504_v17 }
  0xe5   :  { %v2586_v30 = vadd.f32 %v2297_v39, %v577_v22  ;;  %v932_v31 = vadd.f32 %v868_v19, %v2549_v53  ;;  %v837_v23 = vmul.f32 %v773_v20, %v2557_v63  ;;  %v229_v12 = vmul.f32 %v2543_v46, %v161_v56 }
  0xe6   :  { %v499_v33 = vpop.f32.mrf.mxu0  ;;  %1411 = vmatmul.bf16.gmra.mxu3 %v1231_v24  ;;  %v676_v17 = vmul.f32 0.5, %v2549_v53  ;;  %v264_v20 = vmul.f32 %v2565_v7, %v196_v60  ;;  %v265_v21 = vmul.f32 %v2565_v7, %v197_v0  ;;  %v645_v56 = vmul.f32 0.5, %v2557_v63 }
  0xe7   :  { %v741_v40 = vmul.f32 0.044715, %v2586_v30  ;;  %v2601_v42 = vadd.f32 %v2297_v39, %v499_v33  ;;  %v996_v41 = vmul.f32 0.7978846, %v932_v31  ;;  %v901_v5 = vadd.f32 %v837_v23, %v2557_v63 }
  0xe8   :  { %v296_v23 = vmul.f32 %v2565_v7, %v228_v2  ;;  %v297_v32 = vmul.f32 %v2565_v7, %v229_v12  ;;  %v332_v37 = vadd.f32 %v2581_v25, %v264_v20  ;;  %v333_v34 = vadd.f32 %v2581_v25, %v265_v21 }
  0xe9   :  { %v1743_v47 = vpop.eup %1742  ;;  %v710_v49 = vmul.f32 0.044715, %v2601_v42  ;;  %1746 = vtanh.f32 %v996_v41  ;;  %v805_v54 = vmul.f32 %v741_v40, %v2586_v30  ;;  %v965_v59 = vmul.f32 0.7978846, %v901_v5 }
  0xea   :  { %v1092_v52 = vadd.f32 1.0, %v1743_v47  ;;  %v1745_v57 = vpop.eup %1744  ;;  %v364_v44 = vadd.f32 %v2581_v25, %v296_v23  ;;  %v365_v45 = vadd.f32 %v2581_v25, %v297_v32  ;;  %v62_v47 = vld [vmem:[%s3480_s0 + $0xf0] sm:$0xff] }
  0xeb   :  { %v774_v55 = vmul.f32 %v710_v49, %v2601_v42  ;;  %v869_v4 = vmul.f32 %v805_v54, %v2586_v30  ;;  %v1123_v10 = vadd.f32 1.0, %v1745_v57  ;;  %1748 = vtanh.f32 %v965_v59  ;;  %v94_v57 = vld [vmem:[%s3480_s0 + $0x1f0] sm:$0xff] }
  0xec   :  { %v579_v11 = vpop.f32.mrf.mxu2  ;;  %v1156_v62 = vmul.f32 %v1092_v52, %v644_v51  ;;  %v63_v52 = vld [vmem:[%s3480_s0 + $0xf8] sm:$0xff]  ;;  %v382_v59 = vpack.c.bf16 %v333_v34, %v332_v37  ;;  %v130_v60 = vsub.f32 %v62_v47, %v2533_v38 }
  0xed   :  { %v2619_v28 = vadd.f32 %v2297_v39, %v579_v11  ;;  %v838_v6 = vmul.f32 %v774_v55, %v2601_v42  ;;  %v933_v13 = vadd.f32 %v869_v4, %v2586_v30  ;;  %v1187_v29 = vmul.f32 %v1123_v10, %v675_v3  ;;  %v95_v11 = vld [vmem:[%s3480_s0 + $0x1f8] sm:$0xff] }
  0xee   :  { %v502_v8 = vpop.f32.mrf.mxu0  ;;  %v1216_v9 = vpack.c.bf16 %v1156_v62, %v1155_v61  ;;  %v646_v61 = vmul.f32 0.5, %v2601_v42  ;;  %v131_v63 = vsub.f32 %v63_v52, %v2533_v38  ;;  %v398_v3 = vpack.c.bf16 %v365_v45, %v364_v44 }
  0xef   :  { %v1747_v14 = vpop.eup %1746  ;;  %v742_v1 = vmul.f32 0.044715, %v2619_v28  ;;  %v2628_v15 = vadd.f32 %v2297_v39, %v502_v8  ;;  %v902_v18 = vadd.f32 %v838_v6, %v2601_v42  ;;  %v997_v26 = vmul.f32 0.7978846, %v933_v13 }
  0xf0   :  { %1336 = vmatmul.bf16.gmra.mxu1 %v1216_v9  ;;  %v1124_v19 = vadd.f32 1.0, %v1747_v14  ;;  %v162_v8 = vsub.f32 %v94_v57, %v2533_v38  ;;  %v163_v13 = vsub.f32 %v95_v11, %v2533_v38 }
  0xf1   :  { %v711_v22 = vmul.f32 0.044715, %v2628_v15  ;;  %541 = vmatmul.bf16.gmra.mxu0 %v381_v50  ;;  %621 = vmatmul.bf16.gmra.mxu2 %v397_v27  ;;  %v966_v24 = vmul.f32 0.7978846, %v902_v18  ;;  %v806_v48 = vmul.f32 %v742_v1, %v2619_v28  ;;  %v1749_v40 = vpop.eup %1748  ;;  %v677_v1 = vmul.f32 0.5, %v2586_v30 }
  0xf2   :  { %v1188_v31 = vmul.f32 %v1124_v19, %v676_v17  ;;  %v1093_v54 = vadd.f32 1.0, %v1749_v40  ;;  %v198_v17 = vmul.f32 %v2543_v46, %v130_v60  ;;  %v678_v30 = vmul.f32 0.5, %v2619_v28 }
  0xf3   :  { %1750 = vtanh.f32 %v966_v24  ;;  %v870_v53 = vmul.f32 %v806_v48, %v2619_v28  ;;  %v775_v33 = vmul.f32 %v711_v22, %v2628_v15  ;;  %v199_v22 = vmul.f32 %v2543_v46, %v131_v63 }
  0xf4   :  { %v582_v35 = vpop.f32.mrf.mxu2  ;;  %v1232_v36 = vpack.c.bf16 %v1188_v31, %v1187_v29  ;;  %1752 = vtanh.f32 %v997_v26  ;;  %v1157_v10 = vmul.f32 %v1093_v54, %v645_v56  ;;  %v230_v23 = vmul.f32 %v2543_v46, %v162_v8 }
  0xf5   :  { %v2643_v41 = vadd.f32 %v2297_v39, %v582_v35  ;;  %v934_v5 = vadd.f32 %v870_v53, %v2619_v28  ;;  %v839_v43 = vmul.f32 %v775_v33, %v2628_v15  ;;  %v231_v32 = vmul.f32 %v2543_v46, %v163_v13 }
  0xf6   :  { %v504_v58 = vpop.f32.mrf.mxu0  ;;  %1416 = vmatmul.bf16.gmra.mxu3 %v1232_v36  ;;  %v266_v40 = vmul.f32 %v2565_v7, %v198_v17  ;;  %v267_v46 = vmul.f32 %v2565_v7, %v199_v22  ;;  %v298_v44 = vmul.f32 %v2565_v7, %v230_v23  ;;  %v647_v63 = vmul.f32 0.5, %v2628_v15 }
  0xf7   :  { %v743_v49 = vmul.f32 0.044715, %v2643_v41  ;;  %v2654_v50 = vadd.f32 %v2297_v39, %v504_v58  ;;  %v998_v16 = vmul.f32 0.7978846, %v934_v5  ;;  %v903_v51 = vadd.f32 %v839_v43, %v2628_v15 }
  0xf8   :  { %v299_v45 = vmul.f32 %v2565_v7, %v231_v32 }
  0xf9   :  { %v1751_v27 = vpop.eup %1750  ;;  %v712_v55 = vmul.f32 0.044715, %v2654_v50  ;;  %1754 = vtanh.f32 %v998_v16  ;;  %v807_v0 = vmul.f32 %v743_v49, %v2643_v41  ;;  %v967_v2 = vmul.f32 0.7978846, %v903_v51 }
  0xfa   :  { %v1094_v62 = vadd.f32 1.0, %v1751_v27  ;;  %v1753_v4 = vpop.eup %1752 }
  0xfb   :  { %v776_v6 = vmul.f32 %v712_v55, %v2654_v50  ;;  %v871_v14 = vmul.f32 %v807_v0, %v2643_v41  ;;  %v1125_v21 = vadd.f32 1.0, %v1753_v4  ;;  %1756 = vtanh.f32 %v967_v2 }
  0xfc   :  { %v584_v9 = vpop.f32.mrf.mxu2  ;;  %v1158_v12 = vmul.f32 %v1094_v62, %v646_v61  ;;  %v334_v55 = vadd.f32 %v2581_v25, %v266_v40  ;;  %v366_v61 = vadd.f32 %v2581_v25, %v298_v44  ;;  %v367_v62 = vadd.f32 %v2581_v25, %v299_v45 }
  0xfd   :  { %v2677_v42 = vadd.f32 %v2297_v39, %v584_v9  ;;  %v840_v18 = vmul.f32 %v776_v6, %v2654_v50  ;;  %v935_v24 = vadd.f32 %v871_v14, %v2643_v41  ;;  %v1189_v37 = vmul.f32 %v1125_v21, %v677_v1 }
  0xfe   :  { %v507_v19 = vpop.f32.mrf.mxu0  ;;  %v1217_v20 = vpack.c.bf16 %v1158_v12, %v1157_v10  ;;  %v648_v0 = vmul.f32 0.5, %v2654_v50  ;;  %v399_v1 = vpack.c.bf16 %v367_v62, %v366_v61 }
  0xff   :  { %v1755_v48 = vpop.eup %1754  ;;  %v744_v38 = vmul.f32 0.044715, %v2677_v42  ;;  %v2686_v26 = vadd.f32 %v2297_v39, %v507_v19  ;;  %v904_v29 = vadd.f32 %v840_v18, %v2654_v50  ;;  %v999_v36 = vmul.f32 0.7978846, %v935_v24 }
 0x100   :  { %1341 = vmatmul.bf16.gmra.mxu1 %v1217_v20  ;;  %v1126_v31 = vadd.f32 1.0, %v1755_v48  ;;  %v679_v48 = vmul.f32 0.5, %v2643_v41 }
 0x101   :  { %v713_v53 = vmul.f32 0.044715, %v2686_v26  ;;  %546 = vmatmul.bf16.gmra.mxu0 %v382_v59  ;;  %626 = vmatmul.bf16.gmra.mxu2 %v398_v3  ;;  %v968_v33 = vmul.f32 0.7978846, %v904_v29  ;;  %v808_v35 = vmul.f32 %v744_v38, %v2677_v42  ;;  %v1757_v47 = vpop.eup %1756  ;;  %v335_v59 = vadd.f32 %v2581_v25, %v267_v46 }
 0x102   :  { %v1190_v34 = vmul.f32 %v1126_v31, %v678_v30  ;;  %v1095_v7 = vadd.f32 1.0, %v1757_v47  ;;  %v680_v38 = vmul.f32 0.5, %v2677_v42 }
 0x103   :  { %1758 = vtanh.f32 %v968_v33  ;;  %v872_v28 = vmul.f32 %v808_v35, %v2677_v42  ;;  %v777_v5 = vmul.f32 %v713_v53, %v2686_v26  ;;  %v383_v25 = vpack.c.bf16 %v335_v59, %v334_v55 }
 0x104   :  { %v587_v43 = vpop.f32.mrf.mxu2  ;;  %v1233_v58 = vpack.c.bf16 %v1190_v34, %v1189_v37  ;;  %1760 = vtanh.f32 %v999_v36  ;;  %v1159_v10 = vmul.f32 %v1095_v7, %v647_v63 }
 0x105   :  { %v2701_v49 = vadd.f32 %v2297_v39, %v587_v43  ;;  %v936_v16 = vadd.f32 %v872_v28, %v2677_v42  ;;  %v841_v51 = vmul.f32 %v777_v5, %v2686_v26  ;;  %v2739_v42 = vld [vmem:[%s3481_s6] ss:$0 sm:$0xff] }
 0x106   :  { %v509_v52 = vpop.f32.mrf.mxu0  ;;  %1421 = vmatmul.bf16.gmra.mxu3 %v1233_v58 }
 0x107   :  { %v745_v56 = vmul.f32 0.044715, %v2701_v49  ;;  %v2707_v54 = vadd.f32 %v2297_v39, %v509_v52  ;;  %v1000_v57 = vmul.f32 0.7978846, %v936_v16  ;;  %v905_v27 = vadd.f32 %v841_v51, %v2686_v26 }
 0x108   :  { %v649_v51 = vmul.f32 0.5, %v2686_v26 }
 0x109   :  { %v1759_v60 = vpop.eup %1758  ;;  %v714_v11 = vmul.f32 0.044715, %v2707_v54  ;;  %1762 = vtanh.f32 %v1000_v57  ;;  %v809_v3 = vmul.f32 %v745_v56, %v2701_v49  ;;  %v969_v8 = vmul.f32 0.7978846, %v905_v27 }
 0x10a   :  { %v1096_v4 = vadd.f32 1.0, %v1759_v60  ;;  %v1761_v6 = vpop.eup %1760  ;;  %v650_v52 = vmul.f32 0.5, %v2707_v54 }
 0x10b   :  { %v778_v2 = vmul.f32 %v714_v11, %v2707_v54  ;;  %v873_v13 = vmul.f32 %v809_v3, %v2701_v49  ;;  %v1127_v17 = vadd.f32 1.0, %v1761_v6  ;;  %1764 = vtanh.f32 %v969_v8 }
 0x10c   :  { %v589_v9 = vpop.f32.mrf.mxu2  ;;  %v1160_v12 = vmul.f32 %v1096_v4, %v648_v0 }
 0x10d   :  { %v2721_v14 = vadd.f32 %v2297_v39, %v589_v9  ;;  %v842_v15 = vmul.f32 %v778_v2, %v2707_v54  ;;  %v937_v19 = vadd.f32 %v873_v13, %v2701_v49  ;;  %v1191_v53 = vmul.f32 %v1127_v17, %v679_v48 }
 0x10e   :  { %v512_v50 = vpop.f32.mrf.mxu0  ;;  %v1218_v18 = vpack.c.bf16 %v1160_v12, %v1159_v10  ;;  %v681_v9 = vmul.f32 0.5, %v2701_v49 }
 0x10f   :  { %v1763_v20 = vpop.eup %1762  ;;  %v746_v21 = vmul.f32 0.044715, %v2721_v14  ;;  %v2727_v22 = vadd.f32 %v2297_v39, %v512_v50  ;;  %v906_v24 = vadd.f32 %v842_v15, %v2707_v54  ;;  %v1001_v32 = vmul.f32 0.7978846, %v937_v19 }
 0x110   :  { %1346 = vmatmul.bf16.gmra.mxu1 %v1218_v18  ;;  %v1128_v29 = vadd.f32 1.0, %v1763_v20  ;;  %v682_v10 = vmul.f32 0.5, %v2721_v14 }
 0x111   :  { %v715_v30 = vmul.f32 0.044715, %v2727_v22  ;;  %551 = vmatmul.bf16.gmra.mxu0 %v383_v25  ;;  %631 = vmatmul.bf16.gmra.mxu2 %v399_v1  ;;  %v970_v31 = vmul.f32 0.7978846, %v906_v24  ;;  %v810_v23 = vmul.f32 %v746_v21, %v2721_v14  ;;  %v1765_v37 = vpop.eup %1764 }
 0x112   :  { %v1192_v39 = vmul.f32 %v1128_v29, %v680_v38  ;;  %v1097_v45 = vadd.f32 1.0, %v1765_v37 }
 0x113   :  { %1766 = vtanh.f32 %v970_v31  ;;  %v874_v33 = vmul.f32 %v810_v23, %v2721_v14  ;;  %v779_v35 = vmul.f32 %v715_v30, %v2727_v22 }
 0x114   :  { %v592_v36 = vpop.f32.mrf.mxu2  ;;  %v1234_v41 = vpack.c.bf16 %v1192_v39, %v1191_v53  ;;  %1768 = vtanh.f32 %v1001_v32  ;;  %v1161_v60 = vmul.f32 %v1097_v45, %v649_v51 }
 0x115   :  { %v2742_v34 = vadd.f32 %v2739_v42, %v592_v36  ;;  %v938_v40 = vadd.f32 %v874_v33, %v2721_v14  ;;  %v843_v28 = vmul.f32 %v779_v35, %v2727_v22  ;;  %v651_v33 = vmul.f32 0.5, %v2727_v22 }
 0x116   :  { %v514_v5 = vpop.f32.mrf.mxu0  ;;  %1426 = vmatmul.bf16.gmra.mxu3 %v1234_v41 }
 0x117   :  { %v747_v43 = vmul.f32 0.044715, %v2742_v34  ;;  %v515_v58 = vadd.f32 %v2739_v42, %v514_v5  ;;  %v1002_v46 = vmul.f32 0.7978846, %v938_v40  ;;  %v907_v44 = vadd.f32 %v843_v28, %v2727_v22 }
 0x119   :  { %v1767_v47 = vpop.eup %1766  ;;  %v716_v16 = vmul.f32 0.044715, %v515_v58  ;;  %1770 = vtanh.f32 %v1002_v46  ;;  %v811_v57 = vmul.f32 %v747_v43, %v2742_v34  ;;  %v971_v55 = vmul.f32 0.7978846, %v907_v44 }
 0x11a   :  { %v1098_v56 = vadd.f32 1.0, %v1767_v47  ;;  %v1769_v27 = vpop.eup %1768  ;;  %v652_v35 = vmul.f32 0.5, %v515_v58 }
 0x11b   :  { %v780_v7 = vmul.f32 %v716_v16, %v515_v58  ;;  %v875_v61 = vmul.f32 %v811_v57, %v2742_v34  ;;  %v1129_v26 = vadd.f32 1.0, %v1769_v27  ;;  %1772 = vtanh.f32 %v971_v55 }
 0x11c   :  { %v594_v59 = vpop.f32.mrf.mxu2  ;;  %v1162_v11 = vmul.f32 %v1098_v56, %v650_v52 }
 0x11d   :  { %v2754_v62 = vadd.f32 %v2739_v42, %v594_v59  ;;  %v844_v63 = vmul.f32 %v780_v7, %v515_v58  ;;  %v939_v54 = vadd.f32 %v875_v61, %v2742_v34  ;;  %v1193_v50 = vmul.f32 %v1129_v26, %v681_v9 }
 0x11e   :  { %v517_v0 = vpop.f32.mrf.mxu0  ;;  %v1219_v4 = vpack.c.bf16 %v1162_v11, %v1161_v60  ;;  %v683_v7 = vmul.f32 0.5, %v2742_v34 }
 0x11f   :  { %v1771_v3 = vpop.eup %1770  ;;  %v748_v6 = vmul.f32 0.044715, %v2754_v62  ;;  %v2759_v2 = vadd.f32 %v2739_v42, %v517_v0  ;;  %v908_v8 = vadd.f32 %v844_v63, %v515_v58  ;;  %v1003_v15 = vmul.f32 0.7978846, %v939_v54 }
 0x120   :  { %1351 = vmatmul.bf16.gmra.mxu1 %v1219_v4  ;;  %v1130_v12 = vadd.f32 1.0, %v1771_v3  ;;  %v684_v55 = vmul.f32 0.5, %v2754_v62 }
 0x121   :  { %v717_v13 = vmul.f32 0.044715, %v2759_v2  ;;  %v972_v25 = vmul.f32 0.7978846, %v908_v8  ;;  %v812_v1 = vmul.f32 %v748_v6, %v2754_v62  ;;  %v1773_v24 = vpop.eup %1772 }
 0x122   :  { %v1194_v18 = vmul.f32 %v1130_v12, %v682_v10  ;;  %v1099_v32 = vadd.f32 1.0, %v1773_v24 }
 0x123   :  { %1774 = vtanh.f32 %v972_v25  ;;  %v876_v17 = vmul.f32 %v812_v1, %v2754_v62  ;;  %v781_v19 = vmul.f32 %v717_v13, %v2759_v2 }
 0x124   :  { %v597_v20 = vpop.f32.mrf.mxu2  ;;  %v1235_v21 = vpack.c.bf16 %v1194_v18, %v1193_v50  ;;  %1776 = vtanh.f32 %v1003_v15  ;;  %v1163_v43 = vmul.f32 %v1099_v32, %v651_v33 }
 0x125   :  { %v2768_v49 = vadd.f32 %v2739_v42, %v597_v20  ;;  %v940_v14 = vadd.f32 %v876_v17, %v2754_v62  ;;  %v845_v48 = vmul.f32 %v781_v19, %v2759_v2  ;;  %v2806_v17 = vld [vmem:[%s3483_s8] ss:$0 sm:$0xff]  ;;  %v653_v19 = vmul.f32 0.5, %v2759_v2 }
 0x126   :  { %v519_v38 = vpop.f32.mrf.mxu0  ;;  %1431 = vmatmul.bf16.gmra.mxu3 %v1235_v21 }
 0x127   :  { %v749_v29 = vmul.f32 0.044715, %v2768_v49  ;;  %v520_v30 = vadd.f32 %v2739_v42, %v519_v38  ;;  %v1004_v31 = vmul.f32 0.7978846, %v940_v14  ;;  %v909_v23 = vadd.f32 %v845_v48, %v2759_v2 }
 0x129   :  { %v1775_v53 = vpop.eup %1774  ;;  %v718_v39 = vmul.f32 0.044715, %v520_v30  ;;  %1778 = vtanh.f32 %v1004_v31  ;;  %v813_v41 = vmul.f32 %v749_v29, %v2768_v49  ;;  %v973_v28 = vmul.f32 0.7978846, %v909_v23 }
 0x12a   :  { %v1100_v36 = vadd.f32 1.0, %v1775_v53  ;;  %v1777_v37 = vpop.eup %1776  ;;  %v654_v20 = vmul.f32 0.5, %v520_v30 }
 0x12b   :  { %v782_v40 = vmul.f32 %v718_v39, %v520_v30  ;;  %v877_v44 = vmul.f32 %v813_v41, %v2768_v49  ;;  %v1131_v52 = vadd.f32 1.0, %v1777_v37  ;;  %1780 = vtanh.f32 %v973_v28 }
 0x12c   :  { %v599_v5 = vpop.f32.mrf.mxu2  ;;  %v1164_v46 = vmul.f32 %v1100_v36, %v652_v35 }
 0x12d   :  { %v2779_v45 = vadd.f32 %v2739_v42, %v599_v5  ;;  %v846_v47 = vmul.f32 %v782_v40, %v520_v30  ;;  %v941_v22 = vadd.f32 %v877_v44, %v2768_v49  ;;  %v1195_v0 = vmul.f32 %v1131_v52, %v683_v7 }
 0x12e   :  { %v522_v16 = vpop.f32.mrf.mxu0  ;;  %v1220_v51 = vpack.c.bf16 %v1164_v46, %v1163_v43  ;;  %v1849_v43 = vld [vmem:[%s3480_s0] sm:$0xff]  ;;  %v685_v44 = vmul.f32 0.5, %v2768_v49 }
 0x12f   :  { %v1779_v58 = vpop.eup %1778  ;;  %v750_v56 = vmul.f32 0.044715, %v2779_v45  ;;  %v2784_v57 = vadd.f32 %v2739_v42, %v522_v16  ;;  %v910_v27 = vadd.f32 %v846_v47, %v520_v30  ;;  %v1005_v63 = vmul.f32 0.7978846, %v941_v22 }
 0x130   :  { %1356 = vmatmul.bf16.gmra.mxu1 %v1220_v51  ;;  %v1132_v59 = vadd.f32 1.0, %v1779_v58  ;;  %v686_v47 = vmul.f32 0.5, %v2779_v45 }
 0x131   :  { %v719_v60 = vmul.f32 0.044715, %v2784_v57  ;;  %v974_v11 = vmul.f32 0.7978846, %v910_v27  ;;  %v814_v61 = vmul.f32 %v750_v56, %v2779_v45  ;;  %v1781_v8 = vpop.eup %1780 }
 0x132   :  { %v1196_v4 = vmul.f32 %v1132_v59, %v684_v55  ;;  %v1101_v15 = vadd.f32 1.0, %v1781_v8  ;;  %v1850_v8 = vld [vmem:[%s3480_s0 + $0x8] sm:$0xff] }
 0x133   :  { %1782 = vtanh.f32 %v974_v11  ;;  %v878_v26 = vmul.f32 %v814_v61, %v2779_v45  ;;  %v783_v54 = vmul.f32 %v719_v60, %v2784_v57 }
 0x134   :  { %v602_v3 = vpop.f32.mrf.mxu2  ;;  %v1236_v6 = vpack.c.bf16 %v1196_v4, %v1195_v0  ;;  %1784 = vtanh.f32 %v1005_v63  ;;  %v1165_v31 = vmul.f32 %v1101_v15, %v653_v19 }
 0x135   :  { %v2793_v34 = vadd.f32 %v2739_v42, %v602_v3  ;;  %v942_v62 = vadd.f32 %v878_v26, %v2779_v45  ;;  %v847_v9 = vmul.f32 %v783_v54, %v2784_v57 }
 0x136   :  { %v524_v10 = vpop.f32.mrf.mxu0  ;;  %1436 = vmatmul.bf16.gmra.mxu3 %v1236_v6 }
 0x137   :  { %v751_v12 = vmul.f32 0.044715, %v2793_v34  ;;  %v2799_v13 = vadd.f32 %v2739_v42, %v524_v10  ;;  %v1006_v25 = vmul.f32 0.7978846, %v942_v62  ;;  %v911_v1 = vadd.f32 %v847_v9, %v2784_v57 }
 0x139   :  { %v1783_v50 = vpop.eup %1782  ;;  %v720_v18 = vmul.f32 0.044715, %v2799_v13  ;;  %1786 = vtanh.f32 %v1006_v25  ;;  %v815_v24 = vmul.f32 %v751_v12, %v2793_v34  ;;  %v975_v38 = vmul.f32 0.7978846, %v911_v1 }
 0x13a   :  { %v1102_v21 = vadd.f32 1.0, %v1783_v50  ;;  %v1785_v14 = vpop.eup %1784  ;;  %v655_v1 = vmul.f32 0.5, %v2784_v57  ;;  %v656_v50 = vmul.f32 0.5, %v2799_v13  ;;  %v1851_v57 = vld [vmem:[%s3480_s0 + $0x100] sm:$0xff] }
 0x13b   :  { %v784_v48 = vmul.f32 %v720_v18, %v2799_v13  ;;  %v879_v32 = vmul.f32 %v815_v24, %v2793_v34  ;;  %v1133_v36 = vadd.f32 1.0, %v1785_v14  ;;  %1788 = vtanh.f32 %v975_v38 }
 0x13c   :  { %v604_v29 = vpop.f32.mrf.mxu2  ;;  %v1166_v23 = vmul.f32 %v1102_v21, %v654_v20 }
 0x13d   :  { %v2813_v53 = vadd.f32 %v2739_v42, %v604_v29  ;;  %v1322_v39 = vpop.f32.mrf.mxu1  ;;  %v848_v33 = vmul.f32 %v784_v48, %v2799_v13  ;;  %v943_v41 = vadd.f32 %v879_v32, %v2793_v34  ;;  %v1197_v56 = vmul.f32 %v1133_v36, %v685_v44 }
 0x13e   :  { %v1323_v2 = vadd.f32 %v2806_v17, %v1322_v39  ;;  %v527_v30 = vpop.f32.mrf.mxu0  ;;  %v1221_v35 = vpack.c.bf16 %v1166_v23, %v1165_v31 }
 0x13f   :  { %v1787_v37 = vpop.eup %1786  ;;  %v752_v40 = vmul.f32 0.044715, %v2813_v53  ;;  %v2820_v28 = vadd.f32 %v2739_v42, %v527_v30  ;;  %v912_v5 = vadd.f32 %v848_v33, %v2799_v13  ;;  %v1007_v58 = vmul.f32 0.7978846, %v943_v41 }
 0x140   :  { %v1482_v46 = vadd.f32 %v1849_v43, %v1323_v2  ;;  %1361 = vmatmul.bf16.gmra.mxu1 %v1221_v35  ;;  %v1134_v16 = vadd.f32 1.0, %v1787_v37  ;;  %v688_v44 = vmul.f32 0.5, %v2813_v53 }
 0x141   :  { %v721_v51 = vmul.f32 0.044715, %v2820_v28  ;;  %v976_v52 = vmul.f32 0.7978846, %v912_v5  ;;  %v816_v22 = vmul.f32 %v752_v40, %v2813_v53  ;;  %v1789_v59 = vpop.eup %1788  ;;  %v1852_v5 = vld [vmem:[%s3480_s0 + $0x10] sm:$0xff] }
 0x142   :  { %1546 = vst [vmem:[%s3484_s9] sm:$0xff] %v1482_v46  ;;  %v1198_v27 = vmul.f32 %v1134_v16, %v686_v47  ;;  %v1103_v9 = vadd.f32 1.0, %v1789_v59  ;;  %v687_v46 = vmul.f32 0.5, %v2793_v34 }
 0x143   :  { %1790 = vtanh.f32 %v976_v52  ;;  %v880_v7 = vmul.f32 %v816_v22, %v2813_v53  ;;  %v785_v49 = vmul.f32 %v721_v51, %v2820_v28 }
 0x144   :  { %v607_v55 = vpop.f32.mrf.mxu2  ;;  %v1237_v45 = vpack.c.bf16 %v1198_v27, %v1197_v56  ;;  %1792 = vtanh.f32 %v1007_v58  ;;  %v1167_v38 = vmul.f32 %v1103_v9, %v655_v1 }
 0x145   :  { %v2836_v60 = vadd.f32 %v2739_v42, %v607_v55  ;;  %v1324_v11 = vpop.f32.mrf.mxu1  ;;  %v944_v61 = vadd.f32 %v880_v7, %v2813_v53  ;;  %v849_v63 = vmul.f32 %v785_v49, %v2820_v28  ;;  %v1853_v49 = vld [vmem:[%s3480_s0 + $0x108] sm:$0xff] }
 0x146   :  { %v1325_v0 = vadd.f32 %v2806_v17, %v1324_v11  ;;  %v529_v4 = vpop.f32.mrf.mxu0  ;;  %1441 = vmatmul.bf16.gmra.mxu3 %v1237_v45 }
 0x147   :  { %v753_v26 = vmul.f32 0.044715, %v2836_v60  ;;  %v2843_v54 = vadd.f32 %v2739_v42, %v529_v4  ;;  %v1008_v3 = vmul.f32 0.7978846, %v944_v61  ;;  %v913_v6 = vadd.f32 %v849_v63, %v2820_v28 }
 0x148   :  { %v1483_v62 = vadd.f32 %v1850_v8, %v1325_v0 }
 0x149   :  { %v1791_v10 = vpop.eup %1790  ;;  %v722_v12 = vmul.f32 0.044715, %v2843_v54  ;;  %v1402_v25 = vpop.f32.mrf.mxu3  ;;  %1794 = vtanh.f32 %v1008_v3  ;;  %v817_v19 = vmul.f32 %v753_v26, %v2836_v60  ;;  %v977_v24 = vmul.f32 0.7978846, %v913_v6 }
 0x14a   :  { %1547 = vst [vmem:[%s3484_s9 + $0x8] sm:$0xff] %v1483_v62  ;;  %v1403_v15 = vadd.f32 %v2806_v17, %v1402_v25  ;;  %v1104_v18 = vadd.f32 1.0, %v1791_v10  ;;  %v1793_v20 = vpop.eup %1792  ;;  %v1854_v10 = vld [vmem:[%s3480_s0 + $0x18] sm:$0xff] }
 0x14b   :  { %v786_v21 = vmul.f32 %v722_v12, %v2843_v54  ;;  %v881_v31 = vmul.f32 %v817_v19, %v2836_v60  ;;  %v1135_v30 = vadd.f32 1.0, %v1793_v20  ;;  %1796 = vtanh.f32 %v977_v24 }
 0x14c   :  { %v1514_v14 = vadd.f32 %v1851_v57, %v1403_v15  ;;  %v609_v48 = vpop.f32.mrf.mxu2  ;;  %v1168_v29 = vmul.f32 %v1104_v18, %v656_v50  ;;  %v657_v18 = vmul.f32 0.5, %v2820_v28  ;;  %v658_v20 = vmul.f32 0.5, %v2843_v54  ;;  %v1855_v28 = vld [vmem:[%s3480_s0 + $0x110] sm:$0xff] }
 0x14d   :  { %v2863_v23 = vadd.f32 %v2739_v42, %v609_v48  ;;  %v1327_v13 = vpop.f32.mrf.mxu1  ;;  %v850_v32 = vmul.f32 %v786_v21, %v2843_v54  ;;  %v945_v35 = vadd.f32 %v881_v31, %v2836_v60  ;;  %v1199_v27 = vmul.f32 %v1135_v30, %v687_v46 }
 0x14e   :  { %1578 = vst [vmem:[%s3484_s9 + $0x100] sm:$0xff] %v1514_v14  ;;  %v1328_v39 = vadd.f32 %v2806_v17, %v1327_v13  ;;  %v532_v33 = vpop.f32.mrf.mxu0  ;;  %v1222_v2 = vpack.c.bf16 %v1168_v29, %v1167_v38 }
 0x14f   :  { %v1795_v36 = vpop.eup %1794  ;;  %v754_v41 = vmul.f32 0.044715, %v2863_v23  ;;  %v2873_v37 = vadd.f32 %v2739_v42, %v532_v33  ;;  %v914_v40 = vadd.f32 %v850_v32, %v2843_v54  ;;  %v1009_v58 = vmul.f32 0.7978846, %v945_v35 }
 0x150   :  { %v1484_v43 = vadd.f32 %v1852_v5, %v1328_v39  ;;  %1366 = vmatmul.bf16.gmra.mxu1 %v1222_v2  ;;  %v1136_v47 = vadd.f32 1.0, %v1795_v36 }
 0x151   :  { %v723_v16 = vmul.f32 0.044715, %v2873_v37  ;;  %v1404_v51 = vpop.f32.mrf.mxu3  ;;  %v978_v52 = vmul.f32 0.7978846, %v914_v40  ;;  %v818_v22 = vmul.f32 %v754_v41, %v2863_v23  ;;  %v1797_v11 = vpop.eup %1796 }
 0x152   :  { %1548 = vst [vmem:[%s3484_s9 + $0x10] sm:$0xff] %v1484_v43  ;;  %v1405_v56 = vadd.f32 %v2806_v17, %v1404_v51  ;;  %v1200_v7 = vmul.f32 %v1136_v47, %v688_v44  ;;  %v1105_v25 = vadd.f32 1.0, %v1797_v11  ;;  %v1856_v44 = vld [vmem:[%s3480_s0 + $0x20] sm:$0xff]  ;;  %v690_v51 = vmul.f32 0.5, %v2863_v23 }
 0x153   :  { %1798 = vtanh.f32 %v978_v52  ;;  %v882_v34 = vmul.f32 %v818_v22, %v2863_v23  ;;  %v787_v53 = vmul.f32 %v723_v16, %v2873_v37  ;;  %v689_v16 = vmul.f32 0.5, %v2836_v60 }
 0x154   :  { %v1515_v55 = vadd.f32 %v1853_v49, %v1405_v56  ;;  %v612_v45 = vpop.f32.mrf.mxu2  ;;  %v1238_v59 = vpack.c.bf16 %v1200_v7, %v1199_v27  ;;  %1800 = vtanh.f32 %v1009_v58  ;;  %v1169_v31 = vmul.f32 %v1105_v25, %v657_v18 }
 0x155   :  { %v2893_v61 = vadd.f32 %v2739_v42, %v612_v45  ;;  %v1329_v63 = vpop.f32.mrf.mxu1  ;;  %v946_v0 = vadd.f32 %v882_v34, %v2863_v23  ;;  %v851_v4 = vmul.f32 %v787_v53, %v2873_v37 }
 0x156   :  { %1579 = vst [vmem:[%s3484_s9 + $0x108] sm:$0xff] %v1515_v55  ;;  %v1330_v26 = vadd.f32 %v2806_v17, %v1329_v63  ;;  %v534_v3 = vpop.f32.mrf.mxu0  ;;  %1446 = vmatmul.bf16.gmra.mxu3 %v1238_v59  ;;  %v1857_v55 = vld [vmem:[%s3480_s0 + $0x118] sm:$0xff] }
 0x157   :  { %v755_v6 = vmul.f32 0.044715, %v2893_v61  ;;  %v2903_v8 = vadd.f32 %v2739_v42, %v534_v3  ;;  %v1010_v62 = vmul.f32 0.7978846, %v946_v0  ;;  %v915_v9 = vadd.f32 %v851_v4, %v2873_v37 }
 0x158   :  { %v1485_v12 = vadd.f32 %v1854_v10, %v1330_v26 }
 0x159   :  { %v1799_v1 = vpop.eup %1798  ;;  %v724_v15 = vmul.f32 0.044715, %v2903_v8  ;;  %v1407_v50 = vpop.f32.mrf.mxu3  ;;  %1802 = vtanh.f32 %v1010_v62  ;;  %v819_v24 = vmul.f32 %v755_v6, %v2893_v61  ;;  %v979_v48 = vmul.f32 0.7978846, %v915_v9 }
 0x15a   :  { %1549 = vst [vmem:[%s3484_s9 + $0x18] sm:$0xff] %v1485_v12  ;;  %v1408_v19 = vadd.f32 %v2806_v17, %v1407_v50  ;;  %v1106_v21 = vadd.f32 1.0, %v1799_v1  ;;  %v1801_v57 = vpop.eup %1800  ;;  %v1858_v1 = vld [vmem:[%s3480_s0 + $0x28] sm:$0xff] }
 0x15b   :  { %v788_v14 = vmul.f32 %v724_v15, %v2903_v8  ;;  %v883_v32 = vmul.f32 %v819_v24, %v2893_v61  ;;  %v1137_v36 = vadd.f32 1.0, %v1801_v57  ;;  %1804 = vtanh.f32 %v979_v48 }
 0x15c   :  { %v1516_v38 = vadd.f32 %v1855_v28, %v1408_v19  ;;  %v614_v29 = vpop.f32.mrf.mxu2  ;;  %v1170_v13 = vmul.f32 %v1106_v21, %v658_v20  ;;  %v659_v57 = vmul.f32 0.5, %v2873_v37 }
 0x15d   :  { %v2923_v39 = vadd.f32 %v2739_v42, %v614_v29  ;;  %v1332_v54 = vpop.f32.mrf.mxu1  ;;  %v852_v33 = vmul.f32 %v788_v14, %v2903_v8  ;;  %v947_v41 = vadd.f32 %v883_v32, %v2893_v61  ;;  %v1201_v53 = vmul.f32 %v1137_v36, %v689_v16 }
 0x15e   :  { %1580 = vst [vmem:[%s3484_s9 + $0x110] sm:$0xff] %v1516_v38  ;;  %v1333_v2 = vadd.f32 %v2806_v17, %v1332_v54  ;;  %v537_v30 = vpop.f32.mrf.mxu0  ;;  %v1223_v35 = vpack.c.bf16 %v1170_v13, %v1169_v31  ;;  %v660_v14 = vmul.f32 0.5, %v2903_v8  ;;  %v1859_v13 = vld [vmem:[%s3480_s0 + $0x120] sm:$0xff] }
 0x15f   :  { %v1803_v40 = vpop.eup %1802  ;;  %v756_v5 = vmul.f32 0.044715, %v2923_v39  ;;  %v2933_v43 = vadd.f32 %v2739_v42, %v537_v30  ;;  %v916_v46 = vadd.f32 %v852_v33, %v2903_v8  ;;  %v1011_v7 = vmul.f32 0.7978846, %v947_v41 }
 0x160   :  { %v1486_v47 = vadd.f32 %v1856_v44, %v1333_v2  ;;  %1371 = vmatmul.bf16.gmra.mxu1 %v1223_v35  ;;  %v1138_v52 = vadd.f32 1.0, %v1803_v40 }
 0x161   :  { %v725_v22 = vmul.f32 0.044715, %v2933_v43  ;;  %v1409_v58 = vpop.f32.mrf.mxu3  ;;  %v980_v56 = vmul.f32 0.7978846, %v916_v46  ;;  %v820_v27 = vmul.f32 %v756_v5, %v2923_v39  ;;  %v1805_v63 = vpop.eup %1804 }
 0x162   :  { %1550 = vst [vmem:[%s3484_s9 + $0x20] sm:$0xff] %v1486_v47  ;;  %v1410_v34 = vadd.f32 %v2806_v17, %v1409_v58  ;;  %v1202_v49 = vmul.f32 %v1138_v52, %v690_v51  ;;  %v1107_v50 = vadd.f32 1.0, %v1805_v63  ;;  %v1860_v51 = vld [vmem:[%s3480_s0 + $0x30] sm:$0xff]  ;;  %v692_v58 = vmul.f32 0.5, %v2923_v39 }
 0x163   :  { %v789_v60 = vmul.f32 %v725_v22, %v2933_v43  ;;  %1806 = vtanh.f32 %v980_v56  ;;  %v884_v23 = vmul.f32 %v820_v27, %v2923_v39  ;;  %v691_v22 = vmul.f32 0.5, %v2893_v61 }
 0x164   :  { %v1517_v45 = vadd.f32 %v1857_v55, %v1410_v34  ;;  %v617_v59 = vpop.f32.mrf.mxu2  ;;  %v1239_v11 = vpack.c.bf16 %v1202_v49, %v1201_v53  ;;  %1808 = vtanh.f32 %v1011_v7  ;;  %v1171_v33 = vmul.f32 %v1107_v50, %v659_v57 }
 0x165   :  { %v2953_v0 = vadd.f32 %v2739_v42, %v617_v59  ;;  %v1334_v4 = vpop.f32.mrf.mxu1  ;;  %v948_v26 = vadd.f32 %v884_v23, %v2923_v39  ;;  %v853_v3 = vmul.f32 %v789_v60, %v2933_v43 }
 0x166   :  { %1581 = vst [vmem:[%s3484_s9 + $0x118] sm:$0xff] %v1517_v45  ;;  %v1335_v6 = vadd.f32 %v2806_v17, %v1334_v4  ;;  %v539_v62 = vpop.f32.mrf.mxu0  ;;  %1451 = vmatmul.bf16.gmra.mxu3 %v1239_v11  ;;  %v1861_v45 = vld [vmem:[%s3480_s0 + $0x128] sm:$0xff] }
 0x167   :  { %v757_v9 = vmul.f32 0.044715, %v2953_v0  ;;  %v2963_v10 = vadd.f32 %v2739_v42, %v539_v62  ;;  %v1012_v12 = vmul.f32 0.7978846, %v948_v26  ;;  %v917_v25 = vadd.f32 %v853_v3, %v2933_v43 }
 0x168   :  { %v1487_v15 = vadd.f32 %v1858_v1, %v1335_v6 }
 0x169   :  { %v1807_v18 = vpop.eup %1806  ;;  %v821_v19 = vmul.f32 %v757_v9, %v2953_v0  ;;  %v726_v20 = vmul.f32 0.044715, %v2963_v10  ;;  %v1412_v21 = vpop.f32.mrf.mxu3  ;;  %1810 = vtanh.f32 %v1012_v12  ;;  %v981_v29 = vmul.f32 0.7978846, %v917_v25 }
 0x16a   :  { %1551 = vst [vmem:[%s3484_s9 + $0x28] sm:$0xff] %v1487_v15  ;;  %v1413_v24 = vadd.f32 %v2806_v17, %v1412_v21  ;;  %v1108_v48 = vadd.f32 1.0, %v1807_v18  ;;  %v1809_v28 = vpop.eup %1808  ;;  %v1862_v18 = vld [vmem:[%s3480_s0 + $0x38] sm:$0xff] }
 0x16b   :  { %v790_v38 = vmul.f32 %v726_v20, %v2963_v10  ;;  %v885_v31 = vmul.f32 %v821_v19, %v2953_v0  ;;  %v1139_v5 = vadd.f32 1.0, %v1809_v28  ;;  %1812 = vtanh.f32 %v981_v29 }
 0x16c   :  { %v1518_v32 = vadd.f32 %v1859_v13, %v1413_v24  ;;  %v619_v54 = vpop.f32.mrf.mxu2  ;;  %v1172_v2 = vmul.f32 %v1108_v48, %v660_v14  ;;  %v661_v28 = vmul.f32 0.5, %v2933_v43 }
 0x16d   :  { %v2983_v30 = vadd.f32 %v2739_v42, %v619_v54  ;;  %v1337_v37 = vpop.f32.mrf.mxu1  ;;  %v854_v8 = vmul.f32 %v790_v38, %v2963_v10  ;;  %v949_v35 = vadd.f32 %v885_v31, %v2953_v0  ;;  %v1203_v23 = vmul.f32 %v1139_v5, %v691_v22 }
 0x16e   :  { %1582 = vst [vmem:[%s3484_s9 + $0x120] sm:$0xff] %v1518_v32  ;;  %v1338_v36 = vadd.f32 %v2806_v17, %v1337_v37  ;;  %v542_v41 = vpop.f32.mrf.mxu0  ;;  %v1224_v40 = vpack.c.bf16 %v1172_v2, %v1171_v33  ;;  %v662_v38 = vmul.f32 0.5, %v2963_v10  ;;  %v1863_v33 = vld [vmem:[%s3480_s0 + $0x130] sm:$0xff] }
 0x16f   :  { %v1811_v46 = vpop.eup %1810  ;;  %v758_v44 = vmul.f32 0.044715, %v2983_v30  ;;  %v2993_v47 = vadd.f32 %v2739_v42, %v542_v41  ;;  %v918_v16 = vadd.f32 %v854_v8, %v2963_v10  ;;  %v1013_v49 = vmul.f32 0.7978846, %v949_v35 }
 0x170   :  { %v1488_v52 = vadd.f32 %v1860_v51, %v1338_v36  ;;  %1376 = vmatmul.bf16.gmra.mxu1 %v1224_v40  ;;  %v1140_v56 = vadd.f32 1.0, %v1811_v46 }
 0x171   :  { %v822_v27 = vmul.f32 %v758_v44, %v2983_v30  ;;  %v727_v7 = vmul.f32 0.044715, %v2993_v47  ;;  %v1414_v34 = vpop.f32.mrf.mxu3  ;;  %v982_v53 = vmul.f32 0.7978846, %v918_v16  ;;  %v1813_v4 = vpop.eup %1812 }
 0x172   :  { %1552 = vst [vmem:[%s3484_s9 + $0x30] sm:$0xff] %v1488_v52  ;;  %v1415_v60 = vadd.f32 %v2806_v17, %v1414_v34  ;;  %v1204_v55 = vmul.f32 %v1140_v56, %v692_v58  ;;  %v1109_v20 = vadd.f32 1.0, %v1813_v4  ;;  %v1864_v58 = vld [vmem:[%s3480_s0 + $0x40] sm:$0xff] }
 0x173   :  { %v791_v61 = vmul.f32 %v727_v7, %v2993_v47  ;;  %1814 = vtanh.f32 %v982_v53  ;;  %v886_v39 = vmul.f32 %v822_v27, %v2983_v30  ;;  %v693_v27 = vmul.f32 0.5, %v2953_v0 }
 0x174   :  { %v1519_v59 = vadd.f32 %v1861_v45, %v1415_v60  ;;  %v622_v11 = vpop.f32.mrf.mxu2  ;;  %v1240_v63 = vpack.c.bf16 %v1204_v55, %v1203_v23  ;;  %1816 = vtanh.f32 %v1013_v49  ;;  %v1173_v8 = vmul.f32 %v1109_v20, %v661_v28 }
 0x175   :  { %v3013_v26 = vadd.f32 %v2739_v42, %v622_v11  ;;  %v1339_v3 = vpop.f32.mrf.mxu1  ;;  %v950_v6 = vadd.f32 %v886_v39, %v2983_v30  ;;  %v855_v62 = vmul.f32 %v791_v61, %v2993_v47  ;;  %v694_v7 = vmul.f32 0.5, %v2983_v30 }
 0x176   :  { %1583 = vst [vmem:[%s3484_s9 + $0x128] sm:$0xff] %v1519_v59  ;;  %v1340_v9 = vadd.f32 %v2806_v17, %v1339_v3  ;;  %v544_v12 = vpop.f32.mrf.mxu0  ;;  %1456 = vmatmul.bf16.gmra.mxu3 %v1240_v63  ;;  %v1865_v59 = vld [vmem:[%s3480_s0 + $0x138] sm:$0xff] }
 0x177   :  { %v759_v25 = vmul.f32 0.044715, %v3013_v26  ;;  %v3023_v1 = vadd.f32 %v2739_v42, %v544_v12  ;;  %v1014_v15 = vmul.f32 0.7978846, %v950_v6  ;;  %v919_v50 = vadd.f32 %v855_v62, %v2993_v47 }
 0x178   :  { %v1489_v19 = vadd.f32 %v1862_v18, %v1340_v9 }
 0x179   :  { %v1815_v21 = vpop.eup %1814  ;;  %v823_v24 = vmul.f32 %v759_v25, %v3013_v26  ;;  %v728_v57 = vmul.f32 0.044715, %v3023_v1  ;;  %v1417_v14 = vpop.f32.mrf.mxu3  ;;  %1818 = vtanh.f32 %v1014_v15  ;;  %v983_v32 = vmul.f32 0.7978846, %v919_v50 }
 0x17a   :  { %1553 = vst [vmem:[%s3484_s9 + $0x38] sm:$0xff] %v1489_v19  ;;  %v1418_v48 = vadd.f32 %v2806_v17, %v1417_v14  ;;  %v1110_v29 = vadd.f32 1.0, %v1815_v21  ;;  %v1817_v31 = vpop.eup %1816  ;;  %v1866_v21 = vld [vmem:[%s3480_s0 + $0x48] sm:$0xff] }
 0x17b   :  { %v792_v13 = vmul.f32 %v728_v57, %v3023_v1  ;;  %v887_v54 = vmul.f32 %v823_v24, %v3013_v26  ;;  %v1141_v44 = vadd.f32 1.0, %v1817_v31  ;;  %1820 = vtanh.f32 %v983_v32 }
 0x17c   :  { %v1520_v2 = vadd.f32 %v1863_v33, %v1418_v48  ;;  %v624_v37 = vpop.f32.mrf.mxu2  ;;  %v1174_v35 = vmul.f32 %v1110_v29, %v662_v38  ;;  %v663_v31 = vmul.f32 0.5, %v2993_v47 }
 0x17d   :  { %v3043_v36 = vadd.f32 %v2739_v42, %v624_v37  ;;  %v1342_v43 = vpop.f32.mrf.mxu1  ;;  %v856_v10 = vmul.f32 %v792_v13, %v3023_v1  ;;  %v951_v41 = vadd.f32 %v887_v54, %v3013_v26  ;;  %v1205_v39 = vmul.f32 %v1141_v44, %v693_v27 }
 0x17e   :  { %1584 = vst [vmem:[%s3484_s9 + $0x130] sm:$0xff] %v1520_v2  ;;  %v1343_v40 = vadd.f32 %v2806_v17, %v1342_v43  ;;  %v547_v5 = vpop.f32.mrf.mxu0  ;;  %v1225_v46 = vpack.c.bf16 %v1174_v35, %v1173_v8  ;;  %v664_v13 = vmul.f32 0.5, %v3023_v1  ;;  %v1867_v8 = vld [vmem:[%s3480_s0 + $0x140] sm:$0xff] }
 0x17f   :  { %v1819_v16 = vpop.eup %1818  ;;  %v760_v51 = vmul.f32 0.044715, %v3043_v36  ;;  %v3053_v52 = vadd.f32 %v2739_v42, %v547_v5  ;;  %v920_v22 = vadd.f32 %v856_v10, %v3023_v1  ;;  %v1015_v55 = vmul.f32 0.7978846, %v951_v41 }
 0x180   :  { %v1490_v56 = vadd.f32 %v1864_v58, %v1343_v40  ;;  %1381 = vmatmul.bf16.gmra.mxu1 %v1225_v46  ;;  %v1142_v34 = vadd.f32 1.0, %v1819_v16 }
 0x181   :  { %v824_v53 = vmul.f32 %v760_v51, %v3043_v36  ;;  %v729_v49 = vmul.f32 0.044715, %v3053_v52  ;;  %v1419_v60 = vpop.f32.mrf.mxu3  ;;  %v984_v23 = vmul.f32 0.7978846, %v920_v22  ;;  %v1821_v3 = vpop.eup %1820 }
 0x182   :  { %1554 = vst [vmem:[%s3484_s9 + $0x40] sm:$0xff] %v1490_v56  ;;  %v1420_v61 = vadd.f32 %v2806_v17, %v1419_v60  ;;  %v1206_v45 = vmul.f32 %v1142_v34, %v694_v7  ;;  %v1111_v57 = vadd.f32 1.0, %v1821_v3  ;;  %v1868_v7 = vld [vmem:[%s3480_s0 + $0x50] sm:$0xff] }
 0x183   :  { %v793_v0 = vmul.f32 %v729_v49, %v3053_v52  ;;  %1822 = vtanh.f32 %v984_v23  ;;  %v888_v30 = vmul.f32 %v824_v53, %v3043_v36  ;;  %v695_v53 = vmul.f32 0.5, %v3013_v26 }
 0x184   :  { %v1521_v11 = vadd.f32 %v1865_v59, %v1420_v61  ;;  %v627_v63 = vpop.f32.mrf.mxu2  ;;  %v1241_v4 = vpack.c.bf16 %v1206_v45, %v1205_v39  ;;  %1824 = vtanh.f32 %v1015_v55  ;;  %v1175_v10 = vmul.f32 %v1111_v57, %v663_v31 }
 0x185   :  { %v3073_v6 = vadd.f32 %v2739_v42, %v627_v63  ;;  %v1344_v62 = vpop.f32.mrf.mxu1  ;;  %v952_v9 = vadd.f32 %v888_v30, %v3043_v36  ;;  %v857_v12 = vmul.f32 %v793_v0, %v3053_v52  ;;  %v696_v49 = vmul.f32 0.5, %v3043_v36 }
 0x186   :  { %1585 = vst [vmem:[%s3484_s9 + $0x138] sm:$0xff] %v1521_v11  ;;  %v1345_v25 = vadd.f32 %v2806_v17, %v1344_v62  ;;  %v549_v15 = vpop.f32.mrf.mxu0  ;;  %1461 = vmatmul.bf16.gmra.mxu3 %v1241_v4  ;;  %v1869_v11 = vld [vmem:[%s3480_s0 + $0x148] sm:$0xff] }
 0x187   :  { %v761_v50 = vmul.f32 0.044715, %v3073_v6  ;;  %v3083_v18 = vadd.f32 %v2739_v42, %v549_v15  ;;  %v1016_v19 = vmul.f32 0.7978846, %v952_v9  ;;  %v921_v20 = vadd.f32 %v857_v12, %v3053_v52 }
 0x188   :  { %v1491_v24 = vadd.f32 %v1866_v21, %v1345_v25 }
 0x189   :  { %v1823_v14 = vpop.eup %1822  ;;  %v825_v48 = vmul.f32 %v761_v50, %v3073_v6  ;;  %v730_v28 = vmul.f32 0.044715, %v3083_v18  ;;  %v1422_v38 = vpop.f32.mrf.mxu3  ;;  %1826 = vtanh.f32 %v1016_v19  ;;  %v985_v2 = vmul.f32 0.7978846, %v921_v20 }
 0x18a   :  { %1555 = vst [vmem:[%s3484_s9 + $0x48] sm:$0xff] %v1491_v24  ;;  %v1423_v29 = vadd.f32 %v2806_v17, %v1422_v38  ;;  %v1112_v32 = vadd.f32 1.0, %v1823_v14  ;;  %v1825_v54 = vpop.eup %1824  ;;  %v1870_v14 = vld [vmem:[%s3480_s0 + $0x58] sm:$0xff] }
 0x18b   :  { %v794_v33 = vmul.f32 %v730_v28, %v3083_v18  ;;  %v889_v37 = vmul.f32 %v825_v48, %v3073_v6  ;;  %v1143_v51 = vadd.f32 1.0, %v1825_v54  ;;  %1828 = vtanh.f32 %v985_v2 }
 0x18c   :  { %v1522_v35 = vadd.f32 %v1867_v8, %v1423_v29  ;;  %v629_v43 = vpop.f32.mrf.mxu2  ;;  %v1176_v41 = vmul.f32 %v1112_v32, %v664_v13  ;;  %v665_v32 = vmul.f32 0.5, %v3053_v52  ;;  %v666_v54 = vmul.f32 0.5, %v3083_v18  ;;  %v1872_v52 = vld [vmem:[%s3481_s6] ss:$0 sm:$0xff] }
 0x18d   :  { %v3103_v40 = vadd.f32 %v2739_v42, %v629_v43  ;;  %v1347_v47 = vpop.f32.mrf.mxu1  ;;  %v858_v1 = vmul.f32 %v794_v33, %v3083_v18  ;;  %v953_v5 = vadd.f32 %v889_v37, %v3073_v6  ;;  %v1207_v30 = vmul.f32 %v1143_v51, %v695_v53  ;;  %v1871_v43 = vld [vmem:[%s3480_s0 + $0x150] sm:$0xff] }
 0x18e   :  { %1586 = vst [vmem:[%s3484_s9 + $0x140] sm:$0xff] %v1522_v35  ;;  %v1348_v46 = vadd.f32 %v2806_v17, %v1347_v47  ;;  %v552_v44 = vpop.f32.mrf.mxu0  ;;  %v1226_v16 = vpack.c.bf16 %v1176_v41, %v1175_v10 }
 0x18f   :  { %v1827_v22 = vpop.eup %1826  ;;  %v762_v58 = vmul.f32 0.044715, %v3103_v40  ;;  %v3113_v56 = vadd.f32 %v2739_v42, %v552_v44  ;;  %v922_v27 = vadd.f32 %v858_v1, %v3083_v18  ;;  %v1017_v45 = vmul.f32 0.7978846, %v953_v5 }
 0x190   :  { %v1492_v34 = vadd.f32 %v1868_v7, %v1348_v46  ;;  %1386 = vmatmul.bf16.gmra.mxu1 %v1226_v16  ;;  %v1144_v60 = vadd.f32 1.0, %v1827_v22 }
 0x191   :  { %v826_v23 = vmul.f32 %v762_v58, %v3103_v40  ;;  %v731_v55 = vmul.f32 0.044715, %v3113_v56  ;;  %v1424_v61 = vpop.f32.mrf.mxu3  ;;  %v986_v39 = vmul.f32 0.7978846, %v922_v27  ;;  %v1829_v62 = vpop.eup %1828 }
 0x192   :  { %1556 = vst [vmem:[%s3484_s9 + $0x50] sm:$0xff] %v1492_v34  ;;  %v1425_v0 = vadd.f32 %v2806_v17, %v1424_v61  ;;  %v1208_v59 = vmul.f32 %v1144_v60, %v696_v49  ;;  %v1113_v28 = vadd.f32 1.0, %v1829_v62  ;;  %v1873_v34 = vld [vmem:[%s3480_s0 + $0x60] sm:$0xff]  ;;  %v697_v49 = vmul.f32 0.5, %v3073_v6  ;;  %v1874_v6 = vld [vmem:[%s3480_s0 + $0x158] sm:$0xff] }
 0x193   :  { %v795_v26 = vmul.f32 %v731_v55, %v3113_v56  ;;  %1830 = vtanh.f32 %v986_v39  ;;  %v890_v36 = vmul.f32 %v826_v23, %v3103_v40  ;;  %v698_v60 = vmul.f32 0.5, %v3103_v40 }
 0x194   :  { %v1523_v63 = vadd.f32 %v1869_v11, %v1425_v0  ;;  %v632_v4 = vpop.f32.mrf.mxu2  ;;  %v1242_v3 = vpack.c.bf16 %v1208_v59, %v1207_v30  ;;  %1832 = vtanh.f32 %v1017_v45  ;;  %v1177_v47 = vmul.f32 %v1113_v28, %v665_v32  ;;  %v1876_v28 = vld [vmem:[%s3480_s0 + $0x160] sm:$0xff] }
 0x195   :  { %v3133_v9 = vadd.f32 %v2739_v42, %v632_v4  ;;  %v1349_v12 = vpop.f32.mrf.mxu1  ;;  %v954_v25 = vadd.f32 %v890_v36, %v3103_v40  ;;  %v859_v15 = vmul.f32 %v795_v26, %v3113_v56 }
 0x196   :  { %1587 = vst [vmem:[%s3484_s9 + $0x148] sm:$0xff] %v1523_v63  ;;  %v1350_v50 = vadd.f32 %v2806_v17, %v1349_v12  ;;  %v554_v19 = vpop.f32.mrf.mxu0  ;;  %1466 = vmatmul.bf16.gmra.mxu3 %v1242_v3  ;;  %v1875_v12 = vld [vmem:[%s3480_s0 + $0x68] sm:$0xff] }
 0x197   :  { %v763_v20 = vmul.f32 0.044715, %v3133_v9  ;;  %v3143_v21 = vadd.f32 %v2739_v42, %v554_v19  ;;  %v1018_v24 = vmul.f32 0.7978846, %v954_v25  ;;  %v923_v57 = vadd.f32 %v859_v15, %v3113_v56 }
 0x198   :  { %v1493_v48 = vadd.f32 %v1870_v14, %v1350_v50 }
 0x199   :  { %v1831_v38 = vpop.eup %1830  ;;  %v827_v29 = vmul.f32 %v763_v20, %v3133_v9  ;;  %v732_v31 = vmul.f32 0.044715, %v3143_v21  ;;  %v1427_v13 = vpop.f32.mrf.mxu3  ;;  %1834 = vtanh.f32 %v1018_v24  ;;  %v987_v8 = vmul.f32 0.7978846, %v923_v57 }
 0x19a   :  { %1557 = vst [vmem:[%s3484_s9 + $0x58] sm:$0xff] %v1493_v48  ;;  %v1428_v42 = vadd.f32 %v2806_v17, %v1427_v13  ;;  %v1114_v33 = vadd.f32 1.0, %v1831_v38  ;;  %v1833_v2 = vpop.eup %1832  ;;  %v667_v24 = vmul.f32 0.5, %v3113_v56  ;;  %v668_v57 = vmul.f32 0.5, %v3143_v21 }
 0x19b   :  { %v796_v37 = vmul.f32 %v732_v31, %v3143_v21  ;;  %v891_v35 = vmul.f32 %v827_v29, %v3133_v9  ;;  %v1145_v22 = vadd.f32 1.0, %v1833_v2  ;;  %1836 = vtanh.f32 %v987_v8 }
 0x19c   :  { %v1524_v10 = vadd.f32 %v1871_v43, %v1428_v42  ;;  %v634_v41 = vpop.f32.mrf.mxu2  ;;  %v1178_v1 = vmul.f32 %v1114_v33, %v666_v54  ;;  %v699_v2 = vmul.f32 0.5, %v3133_v9 }
 0x19d   :  { %v3165_v18 = vadd.f32 %v1872_v52, %v634_v41  ;;  %v1352_v5 = vpop.f32.mrf.mxu1  ;;  %v860_v46 = vmul.f32 %v796_v37, %v3143_v21  ;;  %v955_v44 = vadd.f32 %v891_v35, %v3133_v9  ;;  %v1209_v30 = vmul.f32 %v1145_v22, %v697_v49 }
 0x19e   :  { %1588 = vst [vmem:[%s3484_s9 + $0x150] sm:$0xff] %v1524_v10  ;;  %v1353_v16 = vadd.f32 %v2806_v17, %v1352_v5  ;;  %v1227_v51 = vpack.c.bf16 %v1178_v1, %v1177_v47  ;;  %v1878_v47 = vld [vmem:[%s3480_s0 + $0x168] sm:$0xff] }
 0x19f   :  { %v1835_v58 = vpop.eup %1834  ;;  %v764_v27 = vmul.f32 0.044715, %v3165_v18  ;;  %v924_v7 = vadd.f32 %v860_v46, %v3143_v21  ;;  %v1019_v45 = vmul.f32 0.7978846, %v955_v44  ;;  %v1877_v21 = vld [vmem:[%s3480_s0 + $0x70] sm:$0xff]  ;;  %v700_v37 = vmul.f32 0.5, %v3165_v18 }
 0x1a0   :  { %v1494_v53 = vadd.f32 %v1873_v34, %v1353_v16  ;;  %1391 = vmatmul.bf16.gmra.mxu1 %v1227_v51  ;;  %v1146_v23 = vadd.f32 1.0, %v1835_v58  ;;  %v1880_v51 = vld [vmem:[%s3480_s0 + $0x170] sm:$0xff] }
 0x1a1   :  { %v828_v55 = vmul.f32 %v764_v27, %v3165_v18  ;;  %v1429_v61 = vpop.f32.mrf.mxu3  ;;  %v988_v39 = vmul.f32 0.7978846, %v924_v7  ;;  %v1837_v11 = vpop.eup %1836  ;;  %v1881_v7 = vld [vmem:[%s3480_s0 + $0x80] sm:$0xff] }
 0x1a2   :  { %1558 = vst [vmem:[%s3484_s9 + $0x60] sm:$0xff] %v1494_v53  ;;  %v1430_v0 = vadd.f32 %v2806_v17, %v1429_v61  ;;  %v1210_v59 = vmul.f32 %v1146_v23, %v698_v60  ;;  %v1115_v15 = vadd.f32 1.0, %v1837_v11  ;;  %v1882_v60 = vld [vmem:[%s3480_s0 + $0x178] sm:$0xff] }
 0x1a3   :  { %1838 = vtanh.f32 %v988_v39  ;;  %v892_v26 = vmul.f32 %v828_v55, %v3165_v18  ;;  %v1883_v39 = vld [vmem:[%s3480_s0 + $0x88] sm:$0xff] }
 0x1a4   :  { %v1525_v40 = vadd.f32 %v1874_v6, %v1430_v0  ;;  %v1243_v36 = vpack.c.bf16 %v1210_v59, %v1209_v30  ;;  %1840 = vtanh.f32 %v1019_v45  ;;  %v1179_v29 = vmul.f32 %v1115_v15, %v667_v24  ;;  %v1884_v59 = vld [vmem:[%s3480_s0 + $0x180] sm:$0xff]  ;;  %v1888_v15 = vld [vmem:[%s3480_s0 + $0x98] sm:$0xff]  ;;  %v1889_v24 = vld [vmem:[%s3480_s0 + $0x190] sm:$0xff] }
 0x1a5   :  { %v1354_v63 = vpop.f32.mrf.mxu1  ;;  %v956_v4 = vadd.f32 %v892_v26, %v3165_v18  ;;  %v1879_v18 = vld [vmem:[%s3480_s0 + $0x78] sm:$0xff] }
 0x1a6   :  { %1589 = vst [vmem:[%s3484_s9 + $0x158] sm:$0xff] %v1525_v40  ;;  %v1355_v3 = vadd.f32 %v2806_v17, %v1354_v63  ;;  %1471 = vmatmul.bf16.gmra.mxu3 %v1243_v36  ;;  %v3270_v40 = vld [vmem:[%s3483_s8] ss:$0 sm:$0xff] }
 0x1a7   :  { %v1020_v62 = vmul.f32 0.7978846, %v956_v4 }
 0x1a8   :  { %v1495_v25 = vadd.f32 %v1875_v12, %v1355_v3  ;;  %v1887_v3 = vld [vmem:[%s3480_s0 + $0x188] sm:$0xff] }
 0x1a9   :  { %v1839_v50 = vpop.eup %1838  ;;  %v1432_v19 = vpop.f32.mrf.mxu3  ;;  %1842 = vtanh.f32 %v1020_v62 }
 0x1aa   :  { %1559 = vst [vmem:[%s3484_s9 + $0x68] sm:$0xff] %v1495_v25  ;;  %v1433_v20 = vadd.f32 %v2806_v17, %v1432_v19  ;;  %v1116_v14 = vadd.f32 1.0, %v1839_v50  ;;  %v1841_v48 = vpop.eup %1840 }
 0x1ab   :  { %v1147_v56 = vadd.f32 1.0, %v1841_v48 }
 0x1ac   :  { %v1526_v38 = vadd.f32 %v1876_v28, %v1433_v20  ;;  %v1180_v31 = vmul.f32 %v1116_v14, %v668_v57  ;;  %v1890_v28 = vld [vmem:[%s3480_s0 + $0xa0] sm:$0xff] }
 0x1ad   :  { %v1357_v13 = vpop.f32.mrf.mxu1  ;;  %v1211_v10 = vmul.f32 %v1147_v56, %v699_v2 }
 0x1ae   :  { %1590 = vst [vmem:[%s3484_s9 + $0x160] sm:$0xff] %v1526_v38  ;;  %v1358_v42 = vadd.f32 %v2806_v17, %v1357_v13  ;;  %v1228_v32 = vpack.c.bf16 %v1180_v31, %v1179_v29  ;;  %v1891_v13 = vld [vmem:[%s3480_s0 + $0x198] sm:$0xff] }
 0x1af   :  { %v1843_v54 = vpop.eup %1842 }
 0x1b0   :  { %v1496_v33 = vadd.f32 %v1877_v21, %v1358_v42  ;;  %1396 = vmatmul.bf16.gmra.mxu1 %v1228_v32  ;;  %v1148_v8 = vadd.f32 1.0, %v1843_v54  ;;  %v1892_v54 = vld [vmem:[%s3480_s0 + $0xa8] sm:$0xff] }
 0x1b1   :  { %v1434_v35 = vpop.f32.mrf.mxu3 }
 0x1b2   :  { %1560 = vst [vmem:[%s3484_s9 + $0x70] sm:$0xff] %v1496_v33  ;;  %v1435_v43 = vadd.f32 %v2806_v17, %v1434_v35  ;;  %v1212_v41 = vmul.f32 %v1148_v8, %v700_v37  ;;  %v1893_v37 = vld [vmem:[%s3480_s0 + $0x1a0] sm:$0xff] }
 0x1b4   :  { %v1527_v1 = vadd.f32 %v1878_v47, %v1435_v43  ;;  %v1244_v52 = vpack.c.bf16 %v1212_v41, %v1211_v10  ;;  %v1894_v10 = vld [vmem:[%s3480_s0 + $0xb0] sm:$0xff] }
 0x1b5   :  { %v1359_v5 = vpop.f32.mrf.mxu1 }
 0x1b6   :  { %1591 = vst [vmem:[%s3484_s9 + $0x168] sm:$0xff] %v1527_v1  ;;  %v1360_v9 = vadd.f32 %v2806_v17, %v1359_v5  ;;  %1476 = vmatmul.bf16.gmra.mxu3 %v1244_v52  ;;  %v1895_v52 = vld [vmem:[%s3480_s0 + $0x1a8] sm:$0xff] }
 0x1b8   :  { %v1497_v46 = vadd.f32 %v1879_v18, %v1360_v9 }
 0x1b9   :  { %v1437_v44 = vpop.f32.mrf.mxu3 }
 0x1ba   :  { %1561 = vst [vmem:[%s3484_s9 + $0x78] sm:$0xff] %v1497_v46  ;;  %v1438_v16 = vadd.f32 %v2806_v17, %v1437_v44  ;;  %v1896_v46 = vld [vmem:[%s3480_s0 + $0xb8] sm:$0xff] }
 0x1bc   :  { %v1528_v22 = vadd.f32 %v1880_v51, %v1438_v16 }
 0x1bd   :  { %v1362_v58 = vpop.f32.mrf.mxu1 }
 0x1be   :  { %1592 = vst [vmem:[%s3484_s9 + $0x170] sm:$0xff] %v1528_v22  ;;  %v1363_v27 = vadd.f32 %v2806_v17, %v1362_v58  ;;  %v1897_v22 = vld [vmem:[%s3480_s0 + $0x1b0] sm:$0xff] }
 0x1c0   :  { %v1498_v34 = vadd.f32 %v1881_v7, %v1363_v27 }
 0x1c1   :  { %v1439_v53 = vpop.f32.mrf.mxu3 }
 0x1c2   :  { %1562 = vst [vmem:[%s3484_s9 + $0x80] sm:$0xff] %v1498_v34  ;;  %v1440_v49 = vadd.f32 %v2806_v17, %v1439_v53  ;;  %v1898_v34 = vld [vmem:[%s3480_s0 + $0xc0] sm:$0xff] }
 0x1c4   :  { %v1529_v23 = vadd.f32 %v1882_v60, %v1440_v49 }
 0x1c5   :  { %v1364_v55 = vpop.f32.mrf.mxu1 }
 0x1c6   :  { %1593 = vst [vmem:[%s3484_s9 + $0x178] sm:$0xff] %v1529_v23  ;;  %v1365_v61 = vadd.f32 %v2806_v17, %v1364_v55  ;;  %v1899_v23 = vld [vmem:[%s3480_s0 + $0x1b8] sm:$0xff] }
 0x1c8   :  { %v1499_v45 = vadd.f32 %v1883_v39, %v1365_v61 }
 0x1c9   :  { %v1442_v0 = vpop.f32.mrf.mxu3 }
 0x1ca   :  { %1563 = vst [vmem:[%s3484_s9 + $0x88] sm:$0xff] %v1499_v45  ;;  %v1443_v30 = vadd.f32 %v2806_v17, %v1442_v0  ;;  %v1886_v17 = vld [vmem:[%s3480_s0 + $0x90] sm:$0xff]  ;;  %v1900_v45 = vld [vmem:[%s3480_s0 + $0xc8] sm:$0xff] }
 0x1cc   :  { %v1530_v26 = vadd.f32 %v1884_v59, %v1443_v30 }
 0x1cd   :  { %v1367_v6 = vpop.f32.mrf.mxu1 }
 0x1ce   :  { %1594 = vst [vmem:[%s3484_s9 + $0x180] sm:$0xff] %v1530_v26  ;;  %v1368_v36 = vadd.f32 %v3270_v40, %v1367_v6  ;;  %v1901_v26 = vld [vmem:[%s3480_s0 + $0x1c0] sm:$0xff] }
 0x1d0   :  { %v1500_v11 = vadd.f32 %v1886_v17, %v1368_v36 }
 0x1d1   :  { %v1444_v63 = vpop.f32.mrf.mxu3 }
 0x1d2   :  { %1564 = vst [vmem:[%s3484_s9 + $0x90] sm:$0xff] %v1500_v11  ;;  %v1445_v4 = vadd.f32 %v3270_v40, %v1444_v63  ;;  %v1902_v11 = vld [vmem:[%s3480_s0 + $0xd0] sm:$0xff] }
 0x1d4   :  { %v1531_v62 = vadd.f32 %v1887_v3, %v1445_v4 }
 0x1d5   :  { %v1369_v12 = vpop.f32.mrf.mxu1 }
 0x1d6   :  { %1595 = vst [vmem:[%s3484_s9 + $0x188] sm:$0xff] %v1531_v62  ;;  %v1370_v25 = vadd.f32 %v3270_v40, %v1369_v12  ;;  %v1903_v62 = vld [vmem:[%s3480_s0 + $0x1c8] sm:$0xff] }
 0x1d8   :  { %v1501_v50 = vadd.f32 %v1888_v15, %v1370_v25 }
 0x1d9   :  { %v1447_v19 = vpop.f32.mrf.mxu3 }
 0x1da   :  { %1565 = vst [vmem:[%s3484_s9 + $0x98] sm:$0xff] %v1501_v50  ;;  %v1448_v20 = vadd.f32 %v3270_v40, %v1447_v19  ;;  %v1904_v50 = vld [vmem:[%s3480_s0 + $0xd8] sm:$0xff] }
 0x1dc   :  { %v1532_v57 = vadd.f32 %v1889_v24, %v1448_v20 }
 0x1dd   :  { %v1372_v14 = vpop.f32.mrf.mxu1 }
 0x1de   :  { %1596 = vst [vmem:[%s3484_s9 + $0x190] sm:$0xff] %v1532_v57  ;;  %v1373_v48 = vadd.f32 %v3270_v40, %v1372_v14  ;;  %v1905_v57 = vld [vmem:[%s3480_s0 + $0x1d0] sm:$0xff] }
 0x1e0   :  { %v1502_v38 = vadd.f32 %v1890_v28, %v1373_v48 }
 0x1e1   :  { %v1449_v29 = vpop.f32.mrf.mxu3 }
 0x1e2   :  { %1566 = vst [vmem:[%s3484_s9 + $0xa0] sm:$0xff] %v1502_v38  ;;  %v1450_v31 = vadd.f32 %v3270_v40, %v1449_v29  ;;  %v1906_v38 = vld [vmem:[%s3480_s0 + $0xe0] sm:$0xff] }
 0x1e4   :  { %v1533_v42 = vadd.f32 %v1891_v13, %v1450_v31 }
 0x1e5   :  { %v1374_v32 = vpop.f32.mrf.mxu1 }
 0x1e6   :  { %1597 = vst [vmem:[%s3484_s9 + $0x198] sm:$0xff] %v1533_v42  ;;  %v1375_v56 = vadd.f32 %v3270_v40, %v1374_v32  ;;  %v1907_v42 = vld [vmem:[%s3480_s0 + $0x1d8] sm:$0xff] }
 0x1e8   :  { %v1503_v21 = vadd.f32 %v1892_v54, %v1375_v56 }
 0x1e9   :  { %v1452_v33 = vpop.f32.mrf.mxu3 }
 0x1ea   :  { %1567 = vst [vmem:[%s3484_s9 + $0xa8] sm:$0xff] %v1503_v21  ;;  %v1453_v2 = vadd.f32 %v3270_v40, %v1452_v33  ;;  %v1908_v21 = vld [vmem:[%s3480_s0 + $0xe8] sm:$0xff] }
 0x1ec   :  { %v1534_v8 = vadd.f32 %v1893_v37, %v1453_v2 }
 0x1ed   :  { %v1377_v35 = vpop.f32.mrf.mxu1 }
 0x1ee   :  { %1598 = vst [vmem:[%s3484_s9 + $0x1a0] sm:$0xff] %v1534_v8  ;;  %v1378_v43 = vadd.f32 %v3270_v40, %v1377_v35  ;;  %v1909_v8 = vld [vmem:[%s3480_s0 + $0x1e0] sm:$0xff] }
 0x1f0   :  { %v1504_v41 = vadd.f32 %v1894_v10, %v1378_v43 }
 0x1f1   :  { %v1454_v47 = vpop.f32.mrf.mxu3 }
 0x1f2   :  { %1568 = vst [vmem:[%s3484_s9 + $0xb0] sm:$0xff] %v1504_v41  ;;  %v1455_v1 = vadd.f32 %v3270_v40, %v1454_v47  ;;  %v1910_v41 = vld [vmem:[%s3480_s0 + $0xf0] sm:$0xff] }
 0x1f4   :  { %v1535_v5 = vadd.f32 %v1895_v52, %v1455_v1 }
 0x1f5   :  { %v1379_v9 = vpop.f32.mrf.mxu1 }
 0x1f6   :  { %1599 = vst [vmem:[%s3484_s9 + $0x1a8] sm:$0xff] %v1535_v5  ;;  %v1380_v18 = vadd.f32 %v3270_v40, %v1379_v9  ;;  %v1911_v5 = vld [vmem:[%s3480_s0 + $0x1e8] sm:$0xff] }
 0x1f8   :  { %v1505_v44 = vadd.f32 %v1896_v46, %v1380_v18 }
 0x1f9   :  { %v1457_v16 = vpop.f32.mrf.mxu3 }
 0x1fa   :  { %1569 = vst [vmem:[%s3484_s9 + $0xb8] sm:$0xff] %v1505_v44  ;;  %v1458_v51 = vadd.f32 %v3270_v40, %v1457_v16  ;;  %v1912_v44 = vld [vmem:[%s3480_s0 + $0xf8] sm:$0xff] }
 0x1fc   :  { %v1536_v58 = vadd.f32 %v1897_v22, %v1458_v51 }
 0x1fd   :  { %v1382_v27 = vpop.f32.mrf.mxu1 }
 0x1fe   :  { %1600 = vst [vmem:[%s3484_s9 + $0x1b0] sm:$0xff] %v1536_v58  ;;  %v1383_v7 = vadd.f32 %v3270_v40, %v1382_v27  ;;  %v1913_v58 = vld [vmem:[%s3480_s0 + $0x1f0] sm:$0xff] }
 0x200   :  { %v1506_v53 = vadd.f32 %v1898_v34, %v1383_v7 }
 0x201   :  { %v1459_v49 = vpop.f32.mrf.mxu3 }
 0x202   :  { %1570 = vst [vmem:[%s3484_s9 + $0xc0] sm:$0xff] %v1506_v53  ;;  %v1460_v60 = vadd.f32 %v3270_v40, %v1459_v49  ;;  %v1914_v53 = vld [vmem:[%s3480_s0 + $0x1f8] sm:$0xff] }
 0x204   :  { %v1537_v55 = vadd.f32 %v1899_v23, %v1460_v60 }
 0x205   :  { %v1384_v61 = vpop.f32.mrf.mxu1 }
 0x206   :  { %1601 = vst [vmem:[%s3484_s9 + $0x1b8] sm:$0xff] %v1537_v55  ;;  %v1385_v39 = vadd.f32 %v3270_v40, %v1384_v61 }
 0x208   :  { %v1507_v0 = vadd.f32 %v1900_v45, %v1385_v39 }
 0x209   :  { %v1462_v30 = vpop.f32.mrf.mxu3 }
 0x20a   :  { %1571 = vst [vmem:[%s3484_s9 + $0xc8] sm:$0xff] %v1507_v0  ;;  %v1463_v59 = vadd.f32 %v3270_v40, %v1462_v30 }
 0x20c   :  { %v1538_v6 = vadd.f32 %v1901_v26, %v1463_v59 }
 0x20d   :  { %v1387_v36 = vpop.f32.mrf.mxu1 }
 0x20e   :  { %1602 = vst [vmem:[%s3484_s9 + $0x1c0] sm:$0xff] %v1538_v6  ;;  %v1388_v17 = vadd.f32 %v3270_v40, %v1387_v36 }
 0x210   :  { %v1508_v63 = vadd.f32 %v1902_v11, %v1388_v17 }
 0x211   :  { %v1464_v4 = vpop.f32.mrf.mxu3 }
 0x212   :  { %1572 = vst [vmem:[%s3484_s9 + $0xd0] sm:$0xff] %v1508_v63  ;;  %v1465_v3 = vadd.f32 %v3270_v40, %v1464_v4 }
 0x214   :  { %v1539_v12 = vadd.f32 %v1903_v62, %v1465_v3 }
 0x215   :  { %v1389_v25 = vpop.f32.mrf.mxu1 }
 0x216   :  { %1603 = vst [vmem:[%s3484_s9 + $0x1c8] sm:$0xff] %v1539_v12  ;;  %v1390_v15 = vadd.f32 %v3270_v40, %v1389_v25 }
 0x218   :  { %v1509_v19 = vadd.f32 %v1904_v50, %v1390_v15 }
 0x219   :  { %v1467_v20 = vpop.f32.mrf.mxu3 }
 0x21a   :  { %1573 = vst [vmem:[%s3484_s9 + $0xd8] sm:$0xff] %v1509_v19  ;;  %v1468_v24 = vadd.f32 %v3270_v40, %v1467_v20 }
 0x21c   :  { %v1540_v14 = vadd.f32 %v1905_v57, %v1468_v24 }
 0x21d   :  { %v1392_v48 = vpop.f32.mrf.mxu1 }
 0x21e   :  { %1604 = vst [vmem:[%s3484_s9 + $0x1d0] sm:$0xff] %v1540_v14  ;;  %v1393_v28 = vadd.f32 %v3270_v40, %v1392_v48 }
 0x220   :  { %v1510_v29 = vadd.f32 %v1906_v38, %v1393_v28 }
 0x221   :  { %v1469_v31 = vpop.f32.mrf.mxu3 }
 0x222   :  { %1574 = vst [vmem:[%s3484_s9 + $0xe0] sm:$0xff] %v1510_v29  ;;  %v1470_v13 = vadd.f32 %v3270_v40, %v1469_v31 }
 0x224   :  { %v1541_v32 = vadd.f32 %v1907_v42, %v1470_v13 }
 0x225   :  { %v1394_v56 = vpop.f32.mrf.mxu1 }
 0x226   :  { %1605 = vst [vmem:[%s3484_s9 + $0x1d8] sm:$0xff] %v1541_v32  ;;  %v1395_v54 = vadd.f32 %v3270_v40, %v1394_v56 }
 0x228   :  { %v1511_v33 = vadd.f32 %v1908_v21, %v1395_v54 }
 0x229   :  { %v1472_v2 = vpop.f32.mrf.mxu3 }
 0x22a   :  { %1575 = vst [vmem:[%s3484_s9 + $0xe8] sm:$0xff] %v1511_v33  ;;  %v1473_v37 = vadd.f32 %v3270_v40, %v1472_v2 }
 0x22c   :  { %v1542_v35 = vadd.f32 %v1909_v8, %v1473_v37 }
 0x22d   :  { %v1397_v43 = vpop.f32.mrf.mxu1 }
 0x22e   :  { %1606 = vst [vmem:[%s3484_s9 + $0x1e0] sm:$0xff] %v1542_v35  ;;  %v1398_v10 = vadd.f32 %v3270_v40, %v1397_v43 }
 0x230   :  { %v1512_v47 = vadd.f32 %v1910_v41, %v1398_v10 }
 0x231   :  { %v1474_v1 = vpop.f32.mrf.mxu3 }
 0x232   :  { %1576 = vst [vmem:[%s3484_s9 + $0xf0] sm:$0xff] %v1512_v47  ;;  %v1475_v52 = vadd.f32 %v3270_v40, %v1474_v1 }
 0x234   :  { %v1543_v9 = vadd.f32 %v1911_v5, %v1475_v52 }
 0x235   :  { %v1399_v18 = vpop.f32.mrf.mxu1 }
 0x236   :  { %1607 = vst [vmem:[%s3484_s9 + $0x1e8] sm:$0xff] %v1543_v9  ;;  %v1400_v46 = vadd.f32 %v3270_v40, %v1399_v18 }
 0x238   :  { %v1513_v16 = vadd.f32 %v1912_v44, %v1400_v46 }
 0x239   :  { %v1477_v51 = vpop.f32.mrf.mxu3 }
 0x23a   :  { %1577 = vst [vmem:[%s3484_s9 + $0xf8] sm:$0xff] %v1513_v16  ;;  %v1478_v22 = vadd.f32 %v3270_v40, %v1477_v51 }
 0x23c   :  { %v1544_v27 = vadd.f32 %v1913_v58, %v1478_v22 }
 0x23e   :  { %1608 = vst [vmem:[%s3484_s9 + $0x1f0] sm:$0xff] %v1544_v27 }
 0x241   :  { %v1479_v7 = vpop.f32.mrf.mxu3 }
 0x242   :  { %v1480_v34 = vadd.f32 %v3270_v40, %v1479_v7 }
 0x244   :  { %v1545_v49 = vadd.f32 %v1914_v53, %v1480_v34 }
 0x246   :  { %1609 = vst [vmem:[%s3484_s9 + $0x1f8] sm:$0xff] %v1545_v49 }

// kernel: cnn_block_forward.4
= control target key start
LH: loop header
LB: loop body
LE: loop exit
PB: predicated region body
PF: predicated region fallthrough
CT: control target
= control target key end

     0   :  { %s6784_s30 = smov 0   ;;  %s8977_s0 = inlined_call_operand.vmem [shape: f32[512,128], index: 0, kind: input, shape index: {}]   ;;  %s8978_s1 = inlined_call_operand.vmem [shape: f32[1,128], index: 1, kind: input, shape index: {}]   ;;  %s8979_s2 = inlined_call_operand.vmem [shape: f32[1,128], index: 2, kind: input, shape index: {}]   ;;  %s8980_s3 = inlined_call_operand.vmem [shape: f32[1,128], index: 3, kind: input, shape index: {}]   ;;  %s8981_s4 = inlined_call_operand.vmem [shape: f32[1,128], index: 4, kind: input, shape index: {}]   ;;  %s8982_s5 = inlined_call_operand.vmem [shape: bf16[1152,128], index: 5, kind: input, shape index: {}]   ;;  %s8983_s6 = inlined_call_operand.vmem [shape: f32[1,128], index: 6, kind: input, shape index: {}]   ;;  %s8984_s7 = inlined_call_operand.vmem [shape: f32[512,128], index: 7, kind: output, shape index: {0}]   ;;  %s8985_s8 = inlined_call_operand.vmem [shape: f32[2,1,128], index: 8, kind: output, shape index: {1}]   ;;  %s8986_s9 = inlined_call_operand.vmem [shape: f32[2,1,128], index: 9, kind: output, shape index: {2}]  }
   0x1 LB: > { %s6790_s10 = sadd.s32 4294967295, %s6731_s30   ;;  %p5896_p0 = scmp.ge.s32.totalorder %s6731_s30, 1  ;;  %s6731_s30 = sphi %s6784_s30, %s20_s30  }
   0x2   : > { %p293_p1 = scmp.lt.s32.totalorder %s6731_s30, 3 }
   0x4   : > { %p294_p2 = pnand %p5896_p0, %p293_p1 }
   0x6   : > { %297 = sbr.rel (%p294_p2) target bundleno = 824 (0x338), region = 48 }
   0xb   : > { %v6454_v0 = vld [vmem:[%s8982_s5 + $0x38] sm:$0xff]  ;;  %s5897_s13 = sshll.u32 %s6790_s10, 5  ;;  %v6733_v1 = vmov 0   ;;  %v6453_v2 = vld [vmem:[%s8982_s5 + $0x30] sm:$0xff]  ;;  %v6808_v3 = vld [vmem:[%s8978_s1] ss:$0 sm:$0xff] }
   0xc   : > { %p336_p3 = scmp.lt.s32.totalorder %s5897_s13, 63  ;;  %542 = vst [vmem:[#allocation2 + $0x30] sm:$0xf] %v6733_v1  ;;  %6551 = vmatpush.bf16.msra.mxu1 %v6454_v0  ;;  %6552 = vmatpush.bf16.msra.mxu2 %v6454_v0  ;;  %v6452_v4 = vld [vmem:[%s8982_s5 + $0x28] sm:$0xff]  ;;  %v6824_v5 = vld [vmem:[%s8979_s2] ss:$0 sm:$0xff] }
   0xd   : > { %543 = vst [vmem:[#allocation2 + $0x34] sm:$0xf] %v6733_v1  ;;  %6553 = vmatpush.bf16.msra.mxu3 %v6454_v0  ;;  %1254 = vmatpush.bf16.msra.mxu0 %v6454_v0  ;;  %v6834_v10 = vld [vmem:[%s8980_s3] ss:$0 sm:$0xff]  ;;  %v6450_v28 = vld [vmem:[%s8982_s5 + $0x18] sm:$0xff]  ;;  %vm940_vm0 = vcmask 1043456  }
   0xe   : > { %s9039_s13 = smov (!%p336_p3, %s5897_s13), 63  ;;  %530 = vst [vmem:[#allocation2] sm:$0xf] %v6733_v1  ;;  %v6451_v14 = vld [vmem:[%s8982_s5 + $0x20] sm:$0xff]  ;;  %vm616_vm1 = vsmask.f32 256 }
   0xf   : > { %s5898_s18 = sshll.u32 %s9039_s13, 3  ;;  %531 = vst [vmem:[#allocation2 + $0x4] sm:$0xf] %v6733_v1  ;;  %v6849_v17 = vld [vmem:[%s8981_s4] ss:$0 sm:$0xff]  ;;  %v6449_v35 = vld [vmem:[%s8982_s5 + $0x10] sm:$0xff] }
  0x10   : > { %6554 = vmatpush.bf16.msra.mxu1 %v6453_v2  ;;  %6555 = vmatpush.bf16.msra.mxu2 %v6453_v2  ;;  %s6819_s23 = scalar_lea.vmem %s8977_s0, %s5898_s18  ;;  %532 = vst [vmem:[#allocation2 + $0x8] sm:$0x1] %v6733_v1  ;;  %vm617_vm2 = vsmask.f32 4368  ;;  %vm941_vm3 = vsmask.f32 7938  ;;  %s8664_s28 = scalar_lea.vmem %s8984_s7, %s5898_s18 }
  0x11   : > { %6556 = vmatpush.bf16.msra.mxu3 %v6453_v2  ;;  %1255 = vmatpush.bf16.msra.mxu0 %v6453_v2  ;;  %v360_v6 = vld [vmem:[%s6819_s23 + $0x30] sm:$0xff]  ;;  %v361_v7 = vld [vmem:[%s6819_s23 + $0x38] sm:$0xff]  ;;  %533 = vst [vmem:[#allocation2 + $0xc] sm:$0xf] %v6733_v1  ;;  %vm6888_vm4 = vmor %vm616_vm1, %vm617_vm2  ;;  %vm947_vm6 = vcmask 1040384   ;;  %vm2123_vm11 = vcmask 1042432  }
  0x12   : > { %v396_v8 = vsub.f32 %v360_v6, %v6808_v3  ;;  %v397_v9 = vsub.f32 %v361_v7, %v6808_v3  ;;  %v368_v11 = vld [vmem:[%s6819_s23 + $0x70] sm:$0xff]  ;;  %v369_v12 = vld [vmem:[%s6819_s23 + $0x78] sm:$0xff]  ;;  %534 = vst [vmem:[#allocation2 + $0x10] sm:$0xf] %v6733_v1  ;;  %vm6897_vm5 = vmand %vm940_vm0, %vm941_vm3  ;;  %vm1423_vm8 = vsmask.f32 3328 }
  0x13   : > { %v404_v13 = vsub.f32 %v368_v11, %v6808_v3  ;;  %v405_v18 = vsub.f32 %v369_v12, %v6808_v3  ;;  %535 = vst [vmem:[#allocation2 + $0x14] sm:$0x1] %v6733_v1  ;;  %v376_v22 = vld [vmem:[%s6819_s23 + $0xb0] sm:$0xff]  ;;  %v377_v23 = vld [vmem:[%s6819_s23 + $0xb8] sm:$0xff]  ;;  %v6448_v51 = vld [vmem:[%s8982_s5 + $0x8] sm:$0xff]  ;;  %vm2124_vm12 = vcmask 1046532  }
  0x14   : > { %6557 = vmatpush.bf16.msra.mxu1 %v6452_v4  ;;  %6558 = vmatpush.bf16.msra.mxu2 %v6452_v4  ;;  %v432_v15 = vmul.f32 %v6824_v5, %v396_v8  ;;  %v433_v16 = vmul.f32 %v6824_v5, %v397_v9  ;;  %536 = vst [vmem:[#allocation2 + $0x18] sm:$0xf] %v6733_v1  ;;  %v966_v48 = vld [vmem:[#allocation2 + $0x30] sm:$0xf]  ;;  %v6447_v60 = vld [vmem:[%s8982_s5] sm:$0xff]  ;;  %v363_v9 = vld [vmem:[%s6819_s23 + $0x48] sm:$0xff] }
  0x15   : > { %6559 = vmatpush.bf16.msra.mxu3 %v6452_v4  ;;  %1256 = vmatpush.bf16.msra.mxu0 %v6452_v4  ;;  %v440_v19 = vmul.f32 %v6824_v5, %v404_v13  ;;  %v441_v24 = vmul.f32 %v6824_v5, %v405_v18  ;;  %v412_v26 = vsub.f32 %v376_v22, %v6808_v3  ;;  %v362_v8 = vld [vmem:[%s6819_s23 + $0x40] sm:$0xff]  ;;  %v379_v18 = vld [vmem:[%s6819_s23 + $0xc8] sm:$0xff]  ;;  %vm7332_vm7 = vmand %vm947_vm6, %vm616_vm1  ;;  %vm1424_vm9 = vsmask.f32 7440  ;;  %p347_p4 = scmp.lt.s32.totalorder %s6790_s10, 1 }
  0x16   : > { %v468_v20 = vmul.f32 %v6834_v10, %v432_v15  ;;  %v469_v21 = vmul.f32 %v6834_v10, %v433_v16  ;;  %v413_v27 = vsub.f32 %v377_v23, %v6808_v3  ;;  %537 = vst [vmem:[#allocation2 + $0x1c] sm:$0xf] %v6733_v1  ;;  %v370_v11 = vld [vmem:[%s6819_s23 + $0x80] sm:$0xff]  ;;  %v398_v13 = vsub.f32 %v362_v8, %v6808_v3  ;;  %v371_v15 = vld [vmem:[%s6819_s23 + $0x88] sm:$0xff]  ;;  %v6494_v8 = vld [vmem:[%s8982_s5 + $0xf8] sm:$0xff] }
  0x17   : > { %v476_v25 = vmul.f32 %v6834_v10, %v440_v19  ;;  %538 = vst [vmem:[#allocation2 + $0x20] sm:$0x1] %v6733_v1  ;;  %v448_v32 = vmul.f32 %v6824_v5, %v412_v26  ;;  %v477_v36 = vmul.f32 %v6834_v10, %v441_v24  ;;  %v378_v16 = vld [vmem:[%s6819_s23 + $0xc0] sm:$0xff]  ;;  %v406_v19 = vsub.f32 %v370_v11, %v6808_v3  ;;  %v355_v24 = vld [vmem:[%s6819_s23 + $0x8] sm:$0xff]  ;;  %vm7408_vm10 = vmor %vm1423_vm8, %vm1424_vm9  ;;  %s9041_s10 = smov (!%p347_p4, %s6790_s10), 1 }
  0x18   : > { %6560 = vmatpush.bf16.msra.mxu1 %v6451_v14  ;;  %6561 = vmatpush.bf16.msra.mxu2 %v6451_v14  ;;  %v504_v29 = vadd.f32 %v6849_v17, %v468_v20  ;;  %v505_v30 = vadd.f32 %v6849_v17, %v469_v21  ;;  %539 = vst [vmem:[#allocation2 + $0x24] sm:$0xf] %v6733_v1  ;;  %v354_v23 = vld [vmem:[%s6819_s23] sm:$0xff]  ;;  %vm7430_vm13 = vmor %vm2123_vm11, %vm2124_vm12  ;;  %s352_s12 = scalar_lea.vmem %s8986_s9, %s9041_s10 }
  0x19   : > { %6562 = vmatpush.bf16.msra.mxu3 %v6451_v14  ;;  %1257 = vmatpush.bf16.msra.mxu0 %v6451_v14  ;;  %v512_v31 = vadd.f32 %v6849_v17, %v476_v25  ;;  %540 = vst [vmem:[#allocation2 + $0x28] sm:$0xf] %v6733_v1  ;;  %v449_v38 = vmul.f32 %v6824_v5, %v413_v27 }
  0x1a   : > { %v590_v33 = vpack.c.bf16 %v504_v29, %v504_v29  ;;  %v591_v34 = vpack.c.bf16 %v505_v30, %v505_v30  ;;  %541 = vst [vmem:[#allocation2 + $0x2c] sm:$0x1] %v6733_v1  ;;  %v484_v43 = vmul.f32 %v6834_v10, %v448_v32  ;;  %v513_v49 = vadd.f32 %v6849_v17, %v477_v36 }
  0x1b   : > { %v6880_v37 = vpack.c.bf16 %v512_v31, %v512_v31  ;;  %544 = vst [vmem:[#allocation2 + $0x38] sm:$0x1] %v6733_v1  ;;  %v485_v50 = vmul.f32 %v6834_v10, %v449_v38  ;;  %v399_v14 = vsub.f32 %v363_v9, %v6808_v3  ;;  %v407_v20 = vsub.f32 %v371_v15, %v6808_v3 }
  0x1c   : > { %6563 = vmatpush.bf16.msra.mxu1 %v6450_v28  ;;  %6564 = vmatpush.bf16.msra.mxu2 %v6450_v28  ;;  %v671_v39 = vshrl.u32 %v590_v33, 16  ;;  %v674_v40 = vshll.u32 %v590_v33, 16  ;;  %v679_v41 = vshrl.u32 %v591_v34, 16  ;;  %v682_v42 = vshll.u32 %v591_v34, 16  ;;  %545 = vst [vmem:[#allocation2 + $0x3c] sm:$0xf] %v6733_v1 }
  0x1d   : > { %6565 = vmatpush.bf16.msra.mxu3 %v6450_v28  ;;  %1258 = vmatpush.bf16.msra.mxu0 %v6450_v28  ;;  %546 = vst [vmem:[#allocation2 + $0x40] sm:$0xf] %v6733_v1  ;;  %v739_v55 = vshrl.u32 %v6880_v37, 16  ;;  %v520_v56 = vadd.f32 %v6849_v17, %v484_v43  ;;  %v6917_v59 = vpack.c.bf16 %v513_v49, %v513_v49  ;;  %v742_v0 = vshll.u32 %v6880_v37, 16 }
  0x1e   : > { %v673_v45 = vrot.slane %v671_v39, 7  ;;  %v6892_v46 = vrot.slane %v679_v41, 7  ;;  %547 = vst [vmem:[#allocation2 + $0x44] sm:$0x1] %v6733_v1  ;;  %v521_v62 = vadd.f32 %v6849_v17, %v485_v50  ;;  %v414_v21 = vsub.f32 %v378_v16, %v6808_v3 }
  0x1f   : > { %548 = vst [vmem:[#allocation2 + $0x48] sm:$0xf] %v6733_v1  ;;  %v6922_v61 = vrot.slane %v739_v55, 7  ;;  %v6926_v63 = vpack.c.bf16 %v520_v56, %v520_v56  ;;  %v747_v2 = vshrl.u32 %v6917_v59, 16  ;;  %v750_v4 = vshll.u32 %v6917_v59, 16 }
  0x20   : > { %6566 = vmatpush.bf16.msra.mxu1 %v6449_v35  ;;  %6567 = vmatpush.bf16.msra.mxu2 %v6449_v35  ;;  %v676_v52 = vor.u32 %v674_v40, %v673_v45  ;;  %v677_v53 = vrot.slane %v673_v45, 4  ;;  %v684_v54 = vor.u32 %v682_v42, %v6892_v46  ;;  %549 = vst [vmem:[#allocation2 + $0x4c] sm:$0xf] %v6733_v1 }
  0x21   : > { %6568 = vmatpush.bf16.msra.mxu3 %v6449_v35  ;;  %1259 = vmatpush.bf16.msra.mxu0 %v6449_v35  ;;  %550 = vst [vmem:[#allocation2 + $0x50] sm:$0x1] %v6733_v1  ;;  %v745_v6 = vrot.slane %v6922_v61, 4  ;;  %v6935_v7 = vpack.c.bf16 %v521_v62, %v521_v62  ;;  %v807_v12 = vshrl.u32 %v6926_v63, 16  ;;  %v415_v22 = vsub.f32 %v379_v18, %v6808_v3  ;;  %v6469_v18 = vld [vmem:[%s8982_s5 + $0xb0] sm:$0xff] }
  0x22   : > { %v685_v57 = vsel %vm6888_vm4, %v677_v53, %v684_v54  ;;  %v967_v58 = vsel %vm6897_vm5, %v676_v52, %v966_v48  ;;  %551 = vst [vmem:[#allocation2 + $0x54] sm:$0xf] %v6733_v1  ;;  %v434_v26 = vmul.f32 %v6824_v5, %v398_v13  ;;  %v435_v27 = vmul.f32 %v6824_v5, %v399_v14 }
  0x23   : > { %968 = vst [vmem:[#allocation2 + $0x30] sm:$0xf] %v967_v58  ;;  %v390_v28 = vsub.f32 %v354_v23, %v6808_v3  ;;  %v391_v29 = vsub.f32 %v355_v24, %v6808_v3  ;;  %v442_v30 = vmul.f32 %v6824_v5, %v406_v19  ;;  %v443_v31 = vmul.f32 %v6824_v5, %v407_v20  ;;  %v6502_v19 = vld [vmem:[%s8982_s5 + $0x138] sm:$0xff]  ;;  %v6493_v23 = vld [vmem:[%s8982_s5 + $0xf0] sm:$0xff] }
  0x24   : > { %6569 = vmatpush.bf16.msra.mxu1 %v6448_v51  ;;  %6570 = vmatpush.bf16.msra.mxu2 %v6448_v51  ;;  %969 = vst [vmem:[#allocation2 + $0x34] sm:$0xf] %v685_v57  ;;  %v450_v32 = vmul.f32 %v6824_v5, %v414_v21  ;;  %v451_v33 = vmul.f32 %v6824_v5, %v415_v22  ;;  %v6965_v34 = vrot.slane %v747_v2, 7  ;;  %v815_v39 = vshrl.u32 %v6935_v7, 16  ;;  %v6470_v2 = vld [vmem:[%s8982_s5 + $0xb8] sm:$0xff]  ;;  %v6461_v24 = vld [vmem:[%s8982_s5 + $0x70] sm:$0xff] }
  0x25   : > { %6571 = vmatpush.bf16.msra.mxu3 %v6448_v51  ;;  %1260 = vmatpush.bf16.msra.mxu0 %v6448_v51  ;;  %552 = vst [vmem:[#allocation2 + $0x58] sm:$0xf] %v6733_v1  ;;  %v470_v35 = vmul.f32 %v6834_v10, %v434_v26  ;;  %v471_v36 = vmul.f32 %v6834_v10, %v435_v27  ;;  %v6981_v50 = vrot.slane %v807_v12, 7  ;;  %v810_v58 = vshll.u32 %v6926_v63, 16  ;;  %v6462_v12 = vld [vmem:[%s8982_s5 + $0x78] sm:$0xff] }
  0x26   : > { %553 = vst [vmem:[#allocation2 + $0x5c] sm:$0x1] %v6733_v1  ;;  %v426_v38 = vmul.f32 %v6824_v5, %v390_v28  ;;  %v478_v40 = vmul.f32 %v6834_v10, %v442_v30  ;;  %v479_v41 = vmul.f32 %v6834_v10, %v443_v31  ;;  %v486_v42 = vmul.f32 %v6834_v10, %v450_v32 }
  0x27   : > { %554 = vst [vmem:[#allocation2 + $0x60] sm:$0xf] %v6733_v1  ;;  %v506_v43 = vadd.f32 %v6849_v17, %v470_v35  ;;  %v507_v45 = vadd.f32 %v6849_v17, %v471_v36  ;;  %v487_v48 = vmul.f32 %v6834_v10, %v451_v33  ;;  %v427_v49 = vmul.f32 %v6824_v5, %v391_v29  ;;  %v7052_v36 = vld [vmem:[#allocation2 + $0x3c] sm:$0xf] }
  0x28   : > { %6572 = vmatpush.bf16.msra.mxu1 %v6447_v60  ;;  %6573 = vmatpush.bf16.msra.mxu2 %v6447_v60  ;;  %555 = vst [vmem:[#allocation2 + $0x64] sm:$0xf] %v6733_v1  ;;  %v514_v51 = vadd.f32 %v6849_v17, %v478_v40  ;;  %v515_v52 = vadd.f32 %v6849_v17, %v479_v41  ;;  %v6991_v59 = vrot.slane %v815_v39, 7 }
  0x29   : > { %6574 = vmatpush.bf16.msra.mxu3 %v6447_v60  ;;  %1261 = vmatpush.bf16.msra.mxu0 %v6447_v60  ;;  %556 = vst [vmem:[#allocation2 + $0x68] sm:$0x1] %v6733_v1  ;;  %v522_v53 = vadd.f32 %v6849_v17, %v486_v42  ;;  %v752_v54 = vor.u32 %v750_v4, %v6965_v34  ;;  %v818_v60 = vshll.u32 %v6935_v7, 16  ;;  %v6431_v4 = vld [vmem:[#allocation2] sm:$0xff]  ;;  %v813_v7 = vrot.slane %v6981_v50, 4 }
  0x2a   : > { %557 = vst [vmem:[#allocation2 + $0x6c] sm:$0xf] %v6733_v1  ;;  %v592_v55 = vpack.c.bf16 %v506_v43, %v506_v43  ;;  %v593_v56 = vpack.c.bf16 %v507_v45, %v507_v45  ;;  %v462_v57 = vmul.f32 %v6834_v10, %v426_v38  ;;  %v6994_v62 = vpack.c.bf16 %v514_v51, %v514_v51 }
  0x2b   : > { %v6435_v25 = vld [vmem:[#allocation2 + $0x30] sm:$0xff]  ;;  %558 = vst [vmem:[#allocation2 + $0x70] sm:$0xf] %v6733_v1  ;;  %v523_v63 = vadd.f32 %v6849_v17, %v487_v48  ;;  %v463_v11 = vmul.f32 %v6834_v10, %v427_v49  ;;  %v601_v14 = vpack.c.bf16 %v515_v52, %v515_v52  ;;  %v608_v15 = vpack.c.bf16 %v522_v53, %v522_v53 }
  0x2c   : > { %1282 = vmatmul.bf16.vlgmr.msra.gmra.mxu1 %v6435_v25  ;;  %559 = vst [vmem:[#allocation2 + $0x74] sm:$0x1] %v6733_v1  ;;  %v688_v9 = vshrl.u32 %v592_v55, 16  ;;  %v691_v13 = vshll.u32 %v592_v55, 16  ;;  %v7014_v16 = vor.u32 %v742_v0, %v6922_v61  ;;  %2366 = vmatpush.bf16.msrb.mxu2 %v6470_v2  ;;  %v696_v21 = vshrl.u32 %v593_v56, 16 }
  0x2d   : > { %560 = vst [vmem:[#allocation2 + $0x78] sm:$0xf] %v6733_v1  ;;  %1262 = vmatmul.bf16.vlgmr.msra.gmra.mxu0 %v6431_v4  ;;  %v498_v22 = vadd.f32 %v6849_v17, %v462_v57  ;;  %v7028_v37 = vsel %vm6888_vm4, %v745_v6, %v752_v54  ;;  %v820_v0 = vor.u32 %v818_v60, %v6991_v59  ;;  %v699_v25 = vshll.u32 %v593_v56, 16  ;;  %v365_v60 = vld [vmem:[%s6819_s23 + $0x58] sm:$0xff] }
  0x2e   : > { %561 = vst [vmem:[#allocation2 + $0x7c] sm:$0xf] %v6733_v1  ;;  %v690_v20 = vrot.slane %v688_v9, 7  ;;  %2679 = vmatpush.bf16.msrb.mxu3 %v6494_v8  ;;  %1938 = vmatpush.bf16.msrb.mxu1 %v6462_v12  ;;  %v756_v26 = vshrl.u32 %v6994_v62, 16  ;;  %v7039_v61 = vld [vmem:[#allocation2 + $0x60] sm:$0xf]  ;;  %v609_v28 = vpack.c.bf16 %v523_v63, %v523_v63  ;;  %v499_v29 = vadd.f32 %v6849_v17, %v463_v11 }
  0x2f   : > { %562 = vst [vmem:[#allocation2 + $0x80] sm:$0x1] %v6733_v1  ;;  %3360 = vmatpush.bf16.msrb.mxu0 %v6502_v19  ;;  %v7043_v27 = vrot.slane %v696_v21, 7  ;;  %v759_v31 = vshll.u32 %v6994_v62, 16  ;;  %v764_v32 = vshrl.u32 %v601_v14, 16  ;;  %v824_v33 = vshrl.u32 %v608_v15, 16 }
  0x30   : > { %563 = vst [vmem:[#allocation2 + $0x84] sm:$0xf] %v6733_v1  ;;  %v7041_v6 = vor.u32 %v691_v13, %v690_v20  ;;  %v758_v30 = vrot.slane %v756_v26, 7  ;;  %v7050_v35 = vor.u32 %v810_v58, %v6981_v50  ;;  %2367 = vmatpush.bf16.msrb.mxu2 %v6469_v18  ;;  %v767_v38 = vshll.u32 %v601_v14, 16  ;;  %v364_v58 = vld [vmem:[%s6819_s23 + $0x50] sm:$0xff]  ;;  %v373_v13 = vld [vmem:[%s6819_s23 + $0x98] sm:$0xff] }
  0x31   : > { %564 = vst [vmem:[#allocation2 + $0x88] sm:$0xf] %v6733_v1  ;;  %v827_v39 = vshll.u32 %v608_v15, 16  ;;  %v584_v40 = vpack.c.bf16 %v498_v22, %v498_v22  ;;  %v694_v41 = vrot.slane %v690_v20, 4  ;;  %v701_v42 = vor.u32 %v699_v25, %v7043_v27  ;;  %v7076_v57 = vld [vmem:[#allocation2 + $0x6c] sm:$0xf] }
  0x32   : > { %565 = vst [vmem:[#allocation2 + $0x8c] sm:$0x1] %v6733_v1  ;;  %2680 = vmatpush.bf16.msrb.mxu3 %v6493_v23  ;;  %1939 = vmatpush.bf16.msrb.mxu1 %v6461_v24  ;;  %v7056_v43 = vrot.slane %v764_v32, 7  ;;  %v826_v45 = vrot.slane %v824_v33, 7  ;;  %v762_v48 = vrot.slane %v758_v30, 4  ;;  %v832_v49 = vshrl.u32 %v609_v28, 16 }
  0x33   : > { %566 = vst [vmem:[#allocation2 + $0x90] sm:$0xf] %v6733_v1  ;;  %v835_v50 = vshll.u32 %v609_v28, 16  ;;  %v585_v51 = vpack.c.bf16 %v499_v29, %v499_v29  ;;  %v995_v52 = vsel %vm6897_vm5, %v7014_v16, %v7039_v61  ;;  %v7066_v53 = vsel %vm6888_vm4, %v813_v7, %v820_v0  ;;  %v372_v9 = vld [vmem:[%s6819_s23 + $0x90] sm:$0xff] }
  0x34   : > { %567 = vst [vmem:[#allocation2 + $0x94] sm:$0xf] %v6733_v1  ;;  %v974_v55 = vsel %vm6897_vm5, %v7041_v6, %v7052_v36  ;;  %v7074_v56 = vor.u32 %v759_v31, %v758_v30  ;;  %v769_v62 = vor.u32 %v767_v38, %v7056_v43  ;;  %v7082_v2 = vor.u32 %v827_v39, %v826_v45  ;;  %v380_v24 = vld [vmem:[%s6819_s23 + $0xd0] sm:$0xff]  ;;  %v6468_v38 = vld [vmem:[%s8982_s5 + $0xa8] sm:$0xff] }
  0x35   : > { %568 = vst [vmem:[#allocation2 + $0x98] sm:$0x1] %v6733_v1  ;;  %v7084_v4 = vrot.slane %v832_v49, 7  ;;  %v620_v8 = vshrl.u32 %v584_v40, 16  ;;  %v7090_v63 = vsel %vm6888_vm4, %v694_v41, %v701_v42  ;;  %v830_v11 = vrot.slane %v826_v45, 4  ;;  %v6492_v41 = vld [vmem:[%s8982_s5 + $0xe8] sm:$0xff]  ;;  %2368 = vmatpush.bf16.msrb.mxu2 %v6468_v38 }
  0x36   : > { %569 = vst [vmem:[#allocation2 + $0x9c] sm:$0xf] %v6733_v1  ;;  %v623_v7 = vshll.u32 %v584_v40, 16  ;;  %v628_v12 = vshrl.u32 %v585_v51, 16  ;;  %v400_v19 = vsub.f32 %v364_v58, %v6808_v3  ;;  %v401_v20 = vsub.f32 %v365_v60, %v6808_v3  ;;  %v6501_v42 = vld [vmem:[%s8982_s5 + $0x130] sm:$0xff]  ;;  %2681 = vmatpush.bf16.msrb.mxu3 %v6492_v41 }
  0x37   : > { %570 = vst [vmem:[#allocation2 + $0xa0] sm:$0xf] %v6733_v1  ;;  %v837_v14 = vor.u32 %v835_v50, %v7084_v4  ;;  %v7097_v18 = vrot.slane %v620_v8, 7  ;;  %v631_v22 = vshll.u32 %v585_v51, 16  ;;  %v408_v0 = vsub.f32 %v372_v9, %v6808_v3  ;;  %v6460_v50 = vld [vmem:[%s8982_s5 + $0x68] sm:$0xff]  ;;  %v356_v60 = vld [vmem:[%s6819_s23 + $0x10] sm:$0xff]  ;;  %3361 = vmatpush.bf16.msrb.mxu0 %v6501_v42 }
  0x38   : > { %571 = vst [vmem:[#allocation2 + $0xa4] sm:$0x1] %v6733_v1  ;;  %v7102_v21 = vrot.slane %v628_v12, 7  ;;  %v409_v23 = vsub.f32 %v373_v13, %v6808_v3  ;;  %v7114_v26 = vsel %vm6888_vm4, %v762_v48, %v769_v62  ;;  %v1002_v28 = vsel %vm6897_vm5, %v7074_v56, %v7076_v57  ;;  %v6467_v62 = vld [vmem:[%s8982_s5 + $0xa0] sm:$0xff]  ;;  %v357_v12 = vld [vmem:[%s6819_s23 + $0x18] sm:$0xff]  ;;  %1940 = vmatpush.bf16.msrb.mxu1 %v6460_v50  ;;  %v6500_v13 = vld [vmem:[%s8982_s5 + $0x128] sm:$0xff] }
  0x39   : > { %572 = vst [vmem:[#allocation2 + $0xa8] sm:$0xf] %v6733_v1  ;;  %v7127_v30 = vsel %vm6888_vm4, %v830_v11, %v837_v14  ;;  %v436_v31 = vmul.f32 %v6824_v5, %v400_v19  ;;  %v437_v32 = vmul.f32 %v6824_v5, %v401_v20  ;;  %v444_v33 = vmul.f32 %v6824_v5, %v408_v0  ;;  %v6491_v8 = vld [vmem:[%s8982_s5 + $0xe0] sm:$0xff]  ;;  %v943_v38 = vld [vmem:[#allocation2 + $0xc] sm:$0xf] }
  0x3a   : > { %573 = vst [vmem:[#allocation2 + $0xac] sm:$0xf] %v6733_v1  ;;  %v7068_v54 = vld [vmem:[#allocation2 + $0x90] sm:$0xf]  ;;  %v7138_v39 = vor.u32 %v623_v7, %v7097_v18  ;;  %v626_v40 = vrot.slane %v7097_v18, 4  ;;  %v445_v45 = vmul.f32 %v6824_v5, %v409_v23  ;;  %v416_v48 = vsub.f32 %v380_v24, %v6808_v3  ;;  %v6459_v14 = vld [vmem:[%s8982_s5 + $0x60] sm:$0xff]  ;;  %2369 = vmatpush.bf16.msrb.mxu2 %v6467_v62 }
  0x3b   : > { %574 = vst [vmem:[#allocation2 + $0xb0] sm:$0x1] %v6733_v1  ;;  %v1023_v25 = vsel %vm6897_vm5, %v7050_v35, %v7068_v54  ;;  %v381_v35 = vld [vmem:[%s6819_s23 + $0xd8] sm:$0xff]  ;;  %v7151_v49 = vor.u32 %v631_v22, %v7102_v21  ;;  %v472_v51 = vmul.f32 %v6834_v10, %v436_v31  ;;  %v473_v54 = vmul.f32 %v6834_v10, %v437_v32  ;;  %v980_v36 = vld [vmem:[#allocation2 + $0x48] sm:$0xf] }
  0x3c   : > { %575 = vst [vmem:[#allocation2 + $0xb4] sm:$0xf] %v6733_v1  ;;  %v480_v58 = vmul.f32 %v6834_v10, %v444_v33  ;;  %v481_v9 = vmul.f32 %v6834_v10, %v445_v45  ;;  %v417_v11 = vsub.f32 %v381_v35, %v6808_v3  ;;  %v452_v7 = vmul.f32 %v6824_v5, %v416_v48  ;;  %v1008_v56 = vld [vmem:[#allocation2 + $0x78] sm:$0xf] }
  0x3d   : > { %576 = vst [vmem:[#allocation2 + $0xb8] sm:$0xf] %v6733_v1  ;;  %v7095_v15 = vld [vmem:[#allocation2 + $0x9c] sm:$0xf]  ;;  %v508_v19 = vadd.f32 %v6849_v17, %v472_v51  ;;  %v509_v20 = vadd.f32 %v6849_v17, %v473_v54  ;;  %v392_v24 = vsub.f32 %v356_v60, %v6808_v3  ;;  %v393_v35 = vsub.f32 %v357_v12, %v6808_v3 }
  0x3e   : > { %577 = vst [vmem:[#allocation2 + $0xbc] sm:$0x1] %v6733_v1  ;;  %v1030_v29 = vsel %vm6897_vm5, %v7082_v2, %v7095_v15  ;;  %v516_v22 = vadd.f32 %v6849_v17, %v480_v58  ;;  %v453_v0 = vmul.f32 %v6824_v5, %v417_v11  ;;  %v488_v23 = vmul.f32 %v6834_v10, %v452_v7 }
  0x3f   : > { %578 = vst [vmem:[#allocation2 + $0xc0] sm:$0xf] %v6733_v1  ;;  %v594_v31 = vpack.c.bf16 %v508_v19, %v508_v19  ;;  %v595_v32 = vpack.c.bf16 %v509_v20, %v509_v20  ;;  %2682 = vmatpush.bf16.msrb.mxu3 %v6491_v8  ;;  %3362 = vmatpush.bf16.msrb.mxu0 %v6500_v13  ;;  %v367_v19 = vld [vmem:[%s6819_s23 + $0x68] sm:$0xff] }
  0x40   : > { %579 = vst [vmem:[#allocation2 + $0xc4] sm:$0xf] %v6733_v1  ;;  %v602_v33 = vpack.c.bf16 %v516_v22, %v516_v22  ;;  %v489_v61 = vmul.f32 %v6834_v10, %v453_v0  ;;  %1941 = vmatpush.bf16.msrb.mxu1 %v6459_v14  ;;  %v944_v6 = vsel %vm6897_vm5, %v7138_v39, %v943_v38  ;;  %v1036_v20 = vld [vmem:[#allocation2 + $0xa8] sm:$0xf] }
  0x41   : > { %580 = vst [vmem:[#allocation2 + $0xc8] sm:$0x1] %v6733_v1  ;;  %v705_v41 = vshrl.u32 %v594_v31, 16  ;;  %v713_v42 = vshrl.u32 %v595_v32, 16  ;;  %v716_v45 = vshll.u32 %v595_v32, 16  ;;  %v429_v57 = vmul.f32 %v6824_v5, %v393_v35  ;;  %v6466_v32 = vld [vmem:[%s8982_s5 + $0x98] sm:$0xff] }
  0x42   : > { %581 = vst [vmem:[#allocation2 + $0xcc] sm:$0xf] %v6733_v1  ;;  %v776_v48 = vshll.u32 %v602_v33, 16  ;;  %v525_v58 = vadd.f32 %v6849_v17, %v489_v61  ;;  %v6490_v35 = vld [vmem:[%s8982_s5 + $0xd8] sm:$0xff]  ;;  %2370 = vmatpush.bf16.msrb.mxu2 %v6466_v32 }
  0x43   : > { %582 = vst [vmem:[#allocation2 + $0xd0] sm:$0xf] %v6733_v1  ;;  %v707_v54 = vrot.slane %v705_v41, 7  ;;  %2683 = vmatpush.bf16.msrb.mxu3 %v6490_v35 }
  0x44   : > { %583 = vst [vmem:[#allocation2 + $0xd4] sm:$0x1] %v6733_v1  ;;  %v517_v1 = vadd.f32 %v6849_v17, %v481_v9  ;;  %v611_v2 = vpack.c.bf16 %v525_v58, %v525_v58 }
  0x45   : > { %996 = vst [vmem:[#allocation2 + $0x60] sm:$0xf] %v995_v52  ;;  %v524_v52 = vadd.f32 %v6849_v17, %v488_v23  ;;  %v711_v9 = vrot.slane %v707_v54, 4 }
  0x46   : > { %997 = vst [vmem:[#allocation2 + $0x64] sm:$0xf] %v7028_v37  ;;  %v603_v16 = vpack.c.bf16 %v517_v1, %v517_v1  ;;  %v708_v37 = vshll.u32 %v594_v31, 16  ;;  %v849_v0 = vshrl.u32 %v611_v2, 16  ;;  %v852_v23 = vshll.u32 %v611_v2, 16 }
  0x47   : > { %1024 = vst [vmem:[#allocation2 + $0x90] sm:$0xf] %v1023_v25  ;;  %v773_v25 = vshrl.u32 %v602_v33, 16  ;;  %v610_v60 = vpack.c.bf16 %v524_v52, %v524_v52 }
  0x48   : > { %1025 = vst [vmem:[#allocation2 + $0x94] sm:$0xf] %v7066_v53  ;;  %v781_v50 = vshrl.u32 %v603_v16, 16  ;;  %v784_v51 = vshll.u32 %v603_v16, 16  ;;  %v7201_v53 = vrot.slane %v713_v42, 7  ;;  %v710_v8 = vor.u32 %v708_v37, %v707_v54  ;;  %v6499_v42 = vld [vmem:[%s8982_s5 + $0x120] sm:$0xff] }
  0x49   : > { %975 = vst [vmem:[#allocation2 + $0x3c] sm:$0xf] %v974_v55  ;;  %v775_v55 = vrot.slane %v773_v25, 7  ;;  %v841_v15 = vshrl.u32 %v610_v60, 16  ;;  %v403_v16 = vsub.f32 %v367_v19, %v6808_v3  ;;  %v7251_v41 = vrot.slane %v849_v0, 7  ;;  %v374_v54 = vld [vmem:[%s6819_s23 + $0xa0] sm:$0xff]  ;;  %3363 = vmatpush.bf16.msrb.mxu0 %v6499_v42 }
  0x4a   : > { %976 = vst [vmem:[#allocation2 + $0x40] sm:$0xf] %v7090_v63  ;;  %v7212_v62 = vrot.slane %v781_v50, 7  ;;  %v428_v63 = vmul.f32 %v6824_v5, %v392_v24  ;;  %v718_v11 = vor.u32 %v716_v45, %v7201_v53  ;;  %v981_v14 = vsel %vm6897_vm5, %v710_v8, %v980_v36  ;;  %v6458_v45 = vld [vmem:[%s8982_s5 + $0x58] sm:$0xff]  ;;  %v6489_v36 = vld [vmem:[%s8982_s5 + $0xd0] sm:$0xff] }
  0x4b   : > { %1003 = vst [vmem:[#allocation2 + $0x6c] sm:$0xf] %v1002_v28  ;;  %v778_v39 = vor.u32 %v776_v48, %v775_v55  ;;  %v779_v7 = vrot.slane %v775_v55, 4  ;;  %v843_v1 = vrot.slane %v841_v15, 7  ;;  %v465_v24 = vmul.f32 %v6834_v10, %v429_v57  ;;  %v6465_v48 = vld [vmem:[%s8982_s5 + $0x90] sm:$0xff]  ;;  %v375_v55 = vld [vmem:[%s6819_s23 + $0xa8] sm:$0xff]  ;;  %1942 = vmatpush.bf16.msrb.mxu1 %v6458_v45  ;;  %2684 = vmatpush.bf16.msrb.mxu3 %v6489_v36 }
  0x4c   : > { %1004 = vst [vmem:[#allocation2 + $0x70] sm:$0xf] %v7114_v26  ;;  %v634_v26 = vsel %vm6888_vm4, %v626_v40, %v7151_v49  ;;  %v786_v12 = vor.u32 %v784_v51, %v7212_v62  ;;  %v719_v13 = vsel %vm6888_vm4, %v711_v9, %v718_v11  ;;  %v464_v22 = vmul.f32 %v6834_v10, %v428_v63  ;;  %v382_v63 = vld [vmem:[%s6819_s23 + $0xe0] sm:$0xff]  ;;  %v6457_v11 = vld [vmem:[%s8982_s5 + $0x50] sm:$0xff] }
  0x4d   : > { %v6439_v28 = vld [vmem:[#allocation2 + $0x60] sm:$0xff]  ;;  %1031 = vst [vmem:[#allocation2 + $0x9c] sm:$0xf] %v1030_v29  ;;  %v1009_v49 = vsel %vm6897_vm5, %v778_v39, %v1008_v56  ;;  %v847_v52 = vrot.slane %v843_v1, 4  ;;  %v501_v37 = vadd.f32 %v6849_v17, %v465_v24  ;;  %v439_v51 = vmul.f32 %v6824_v5, %v403_v16  ;;  %2371 = vmatpush.bf16.msrb.mxu2 %v6465_v48  ;;  %v359_v48 = vld [vmem:[%s6819_s23 + $0x28] sm:$0xff] }
  0x4e   : > { %1032 = vst [vmem:[#allocation2 + $0xa0] sm:$0xf] %v7127_v30  ;;  %v366_v29 = vld [vmem:[%s6819_s23 + $0x60] sm:$0xff]  ;;  %1302 = vmatmul.bf16.vlgmr.msra.gmra.mxu2 %v6439_v28  ;;  %v787_v40 = vsel %vm6888_vm4, %v779_v7, %v786_v12  ;;  %v844_v30 = vshll.u32 %v610_v60, 16  ;;  %v500_v33 = vadd.f32 %v6849_v17, %v464_v22  ;;  %v854_v58 = vor.u32 %v852_v23, %v7251_v41  ;;  %v383_v28 = vld [vmem:[%s6819_s23 + $0xe8] sm:$0xff]  ;;  %v6498_v12 = vld [vmem:[%s8982_s5 + $0x118] sm:$0xff] }
  0x4f   : > { %v6443_v18 = vld [vmem:[#allocation2 + $0x90] sm:$0xff]  ;;  %945 = vst [vmem:[#allocation2 + $0xc] sm:$0xf] %v944_v6  ;;  %v402_v38 = vsub.f32 %v366_v29, %v6808_v3  ;;  %v587_v6 = vpack.c.bf16 %v501_v37, %v501_v37  ;;  %v475_v57 = vmul.f32 %v6834_v10, %v439_v51  ;;  %v411_v19 = vsub.f32 %v375_v55, %v6808_v3 }
  0x50   : > { %946 = vst [vmem:[#allocation2 + $0x10] sm:$0xf] %v634_v26  ;;  %1322 = vmatmul.bf16.vlgmr.msra.gmra.mxu3 %v6443_v18  ;;  %v846_v61 = vor.u32 %v844_v30, %v843_v1  ;;  %v586_v25 = vpack.c.bf16 %v500_v33, %v500_v33  ;;  %v855_v26 = vsel %vm6888_vm4, %v847_v52, %v854_v58  ;;  %v358_v52 = vld [vmem:[%s6819_s23 + $0x20] sm:$0xff]  ;;  %v987_v36 = vld [vmem:[#allocation2 + $0x54] sm:$0xf] }
  0x51   : > { %v6436_v31 = vld [vmem:[#allocation2 + $0x3c] sm:$0xff]  ;;  %982 = vst [vmem:[#allocation2 + $0x48] sm:$0xf] %v981_v14  ;;  %v438_v50 = vmul.f32 %v6824_v5, %v402_v38  ;;  %v645_v39 = vshrl.u32 %v587_v6, 16  ;;  %v648_v7 = vshll.u32 %v587_v6, 16  ;;  %v511_v29 = vadd.f32 %v6849_v17, %v475_v57  ;;  %1943 = vmatpush.bf16.msrb.mxu1 %v6457_v11  ;;  %3364 = vmatpush.bf16.msrb.mxu0 %v6498_v12 }
  0x52   : > { %983 = vst [vmem:[#allocation2 + $0x4c] sm:$0xf] %v719_v13  ;;  %1287 = vmatmul.bf16.gmra.mxu1 %v6436_v31  ;;  %v1037_v60 = vsel %vm6897_vm5, %v846_v61, %v1036_v20  ;;  %v637_v8 = vshrl.u32 %v586_v25, 16  ;;  %v640_v9 = vshll.u32 %v586_v25, 16  ;;  %v410_v13 = vsub.f32 %v374_v54, %v6808_v3 }
  0x53   : > { %1010 = vst [vmem:[#allocation2 + $0x78] sm:$0xf] %v1009_v49  ;;  %v474_v56 = vmul.f32 %v6834_v10, %v438_v50  ;;  %v7289_v18 = vrot.slane %v645_v39, 7  ;;  %v418_v30 = vsub.f32 %v382_v63, %v6808_v3  ;;  %v419_v20 = vsub.f32 %v383_v28, %v6808_v3  ;;  %v6440_v33 = vld [vmem:[#allocation2 + $0x6c] sm:$0xff] }
  0x54   : > { %1011 = vst [vmem:[#allocation2 + $0x7c] sm:$0xf] %v787_v40  ;;  %v639_v2 = vrot.slane %v637_v8, 7  ;;  %v952_v40 = vld [vmem:[#allocation2 + $0x18] sm:$0xf]  ;;  %v446_v49 = vmul.f32 %v6824_v5, %v410_v13  ;;  %v597_v23 = vpack.c.bf16 %v511_v29, %v511_v29  ;;  %v447_v31 = vmul.f32 %v6824_v5, %v411_v19  ;;  %v6488_v29 = vld [vmem:[%s8982_s5 + $0xc8] sm:$0xff] }
  0x55   : > { %1038 = vst [vmem:[#allocation2 + $0xa8] sm:$0xf] %v1037_v60  ;;  %v510_v15 = vadd.f32 %v6849_v17, %v474_v56  ;;  %v650_v24 = vor.u32 %v648_v7, %v7289_v18  ;;  %v6444_v50 = vld [vmem:[#allocation2 + $0x9c] sm:$0xff]  ;;  %v454_v58 = vmul.f32 %v6824_v5, %v418_v30  ;;  %v455_v60 = vmul.f32 %v6824_v5, %v419_v20  ;;  %v6497_v19 = vld [vmem:[%s8982_s5 + $0x110] sm:$0xff] }
  0x56   : > { %1039 = vst [vmem:[#allocation2 + $0xac] sm:$0xf] %v855_v26  ;;  %v642_v22 = vor.u32 %v640_v9, %v639_v2  ;;  %v643_v1 = vrot.slane %v639_v2, 4  ;;  %v482_v32 = vmul.f32 %v6834_v10, %v446_v49  ;;  %v730_v61 = vshrl.u32 %v597_v23, 16  ;;  %2685 = vmatpush.bf16.msrb.mxu3 %v6488_v29  ;;  %3365 = vmatpush.bf16.msrb.mxu0 %v6497_v19  ;;  %v959_v19 = vld [vmem:[#allocation2 + $0x24] sm:$0xf] }
  0x57   : > { %v6432_v14 = vld [vmem:[#allocation2 + $0xc] sm:$0xff]  ;;  %v596_v0 = vpack.c.bf16 %v510_v15, %v510_v15  ;;  %v733_v42 = vshll.u32 %v597_v23, 16  ;;  %v483_v45 = vmul.f32 %v6834_v10, %v447_v31  ;;  %v635_v6 = vrot.slane %v7102_v21, 4  ;;  %v949_v21 = vld [vmem:[#allocation2 + $0x14] sm:$0x1] }
  0x58   : > { %1267 = vmatmul.bf16.gmra.mxu0 %v6432_v14  ;;  %v953_v35 = vsel %vm6897_vm5, %v642_v22, %v952_v40  ;;  %v651_v37 = vsel %vm6888_vm4, %v643_v1, %v650_v24  ;;  %v518_v25 = vadd.f32 %v6849_v17, %v482_v32  ;;  %v7305_v54 = vrot.slane %v730_v61, 7  ;;  %v6464_v15 = vld [vmem:[%s8982_s5 + $0x88] sm:$0xff]  ;;  %v6463_v32 = vld [vmem:[%s8982_s5 + $0x80] sm:$0xff] }
  0x59   : > { %v722_v38 = vshrl.u32 %v596_v0, 16  ;;  %v725_v16 = vshll.u32 %v596_v0, 16  ;;  %954 = vst [vmem:[#allocation2 + $0x18] sm:$0xf] %v953_v35  ;;  %v519_v55 = vadd.f32 %v6849_v17, %v483_v45  ;;  %v394_v8 = vsub.f32 %v358_v52, %v6808_v3  ;;  %v6437_v9 = vld [vmem:[#allocation2 + $0x48] sm:$0xff]  ;;  %2372 = vmatpush.bf16.msrb.mxu2 %v6464_v15  ;;  %v6487_v61 = vld [vmem:[%s8982_s5 + $0xc0] sm:$0xff] }
  0x5a   : > { %955 = vst [vmem:[#allocation2 + $0x1c] sm:$0xf] %v651_v37  ;;  %v604_v63 = vpack.c.bf16 %v518_v25, %v518_v25  ;;  %v735_v57 = vor.u32 %v733_v42, %v7305_v54  ;;  %v395_v28 = vsub.f32 %v359_v48, %v6808_v3  ;;  %v490_v12 = vmul.f32 %v6834_v10, %v454_v58  ;;  %v6456_v1 = vld [vmem:[%s8982_s5 + $0x48] sm:$0xff]  ;;  %v1015_v0 = vld [vmem:[#allocation2 + $0x84] sm:$0xf] }
  0x5b   : > { %v724_v51 = vrot.slane %v722_v38, 7  ;;  %v605_v26 = vpack.c.bf16 %v519_v55, %v519_v55  ;;  %v491_v2 = vmul.f32 %v6834_v10, %v455_v60  ;;  %v430_v3 = vmul.f32 %v6824_v5, %v394_v8  ;;  %v6653_v37 = vld [vmem:[%s8980_s3] ss:$0 sm:$0xff]  ;;  %1944 = vmatpush.bf16.msrb.mxu1 %v6456_v1  ;;  %2686 = vmatpush.bf16.msrb.mxu3 %v6487_v61 }
  0x5c   : > { %v790_v39 = vshrl.u32 %v604_v63, 16  ;;  %v793_v7 = vshll.u32 %v604_v63, 16  ;;  %v526_v22 = vadd.f32 %v6849_v17, %v490_v12  ;;  %v431_v24 = vmul.f32 %v6824_v5, %v395_v28  ;;  %v6496_v5 = vld [vmem:[%s8982_s5 + $0x108] sm:$0xff]  ;;  %v6455_v25 = vld [vmem:[%s8982_s5 + $0x40] sm:$0xff]  ;;  %v1043_v28 = vld [vmem:[#allocation2 + $0xb4] sm:$0xf] }
  0x5d   : > { %v727_v11 = vor.u32 %v725_v16, %v724_v51  ;;  %v728_v56 = vrot.slane %v724_v51, 4  ;;  %v798_v30 = vshrl.u32 %v605_v26, 16  ;;  %v801_v20 = vshll.u32 %v605_v26, 16  ;;  %v1375_v60 = vld [vmem:[#allocation2] sm:$0xf]  ;;  %2373 = vmatpush.bf16.msrb.mxu2 %v6463_v32  ;;  %3366 = vmatpush.bf16.msrb.mxu0 %v6496_v5 }
  0x5e   : > { %1307 = vmatmul.bf16.gmra.mxu2 %v6440_v33  ;;  %v792_v49 = vrot.slane %v790_v39, 7  ;;  %v527_v23 = vadd.f32 %v6849_v17, %v491_v2  ;;  %v466_v31 = vmul.f32 %v6834_v10, %v430_v3  ;;  %v612_v16 = vpack.c.bf16 %v526_v22, %v526_v22  ;;  %v6654_v63 = vld [vmem:[%s8981_s4] ss:$0 sm:$0xff]  ;;  %v6441_v2 = vld [vmem:[#allocation2 + $0x78] sm:$0xff] }
  0x5f   : > { %v736_v13 = vsel %vm6888_vm4, %v728_v56, %v735_v57  ;;  %v988_v14 = vsel %vm6897_vm5, %v727_v11, %v987_v36  ;;  %v7346_v38 = vrot.slane %v798_v30, 7  ;;  %v467_v42 = vmul.f32 %v6653_v37, %v431_v24  ;;  %v6495_v56 = vld [vmem:[%s8982_s5 + $0x100] sm:$0xff]  ;;  %1945 = vmatpush.bf16.msrb.mxu1 %v6455_v25  ;;  %v2800_v37 = vld [vmem:[#allocation2 + $0xc] sm:$0xf] }
  0x60   : > { %1327 = vmatmul.bf16.gmra.mxu3 %v6444_v50  ;;  %989 = vst [vmem:[#allocation2 + $0x54] sm:$0xf] %v988_v14  ;;  %v795_v33 = vor.u32 %v793_v7, %v792_v49  ;;  %v796_v35 = vrot.slane %v792_v49, 4  ;;  %v613_v52 = vpack.c.bf16 %v527_v23, %v527_v23  ;;  %v502_v45 = vadd.f32 %v6849_v17, %v466_v31  ;;  %v7376_v14 = vld [vmem:[#allocation2 + $0x4] sm:$0xf] }
  0x61   : > { %990 = vst [vmem:[#allocation2 + $0x58] sm:$0xf] %v736_v13  ;;  %v6433_v10 = vld [vmem:[#allocation2 + $0x18] sm:$0xff]  ;;  %v950_v48 = vsel %vm7332_vm7, %v635_v6, %v949_v21  ;;  %v803_v50 = vor.u32 %v801_v20, %v7346_v38  ;;  %v858_v58 = vshrl.u32 %v612_v16, 16  ;;  %v861_v36 = vshll.u32 %v612_v16, 16  ;;  %3367 = vmatpush.bf16.msrb.mxu0 %v6495_v56 }
  0x62   : > { %1292 = vmatmul.bf16.gmra.mxu1 %v6437_v9  ;;  %v1016_v51 = vsel %vm6897_vm5, %v795_v33, %v1015_v0  ;;  %951 = vst [vmem:[#allocation2 + $0x14] sm:$0x1] %v950_v48  ;;  %v866_v55 = vshrl.u32 %v613_v52, 16  ;;  %v869_v17 = vshll.u32 %v613_v52, 16  ;;  %v503_v8 = vadd.f32 %v6654_v63, %v467_v42  ;;  %v7381_v20 = vld [vmem:[#allocation2 + $0x8] sm:$0x1] }
  0x63   : > { %1017 = vst [vmem:[#allocation2 + $0x84] sm:$0xf] %v1016_v51  ;;  %v804_v6 = vsel %vm6888_vm4, %v796_v35, %v803_v50  ;;  %v860_v9 = vrot.slane %v858_v58, 7  ;;  %v588_v11 = vpack.c.bf16 %v502_v45, %v502_v45  ;;  %v1427_v39 = vshrl.u32 %v1375_v60, 16  ;;  %v6445_v0 = vld [vmem:[#allocation2 + $0xa8] sm:$0xff]  ;;  %v6534_v58 = vld [vmem:[%s8982_s5 + $0x1b8] sm:$0xff] }
  0x64   : > { %1018 = vst [vmem:[#allocation2 + $0x88] sm:$0xf] %v804_v6  ;;  %v7374_v57 = vrot.slane %v866_v55, 7  ;;  %v589_v26 = vpack.c.bf16 %v503_v8, %v503_v8  ;;  %v1430_v1 = vshll.u32 %v1375_v60, 16  ;;  %v1436_v31 = vshll.u32 %v7376_v14, 16  ;;  %v6542_v60 = vld [vmem:[%s8982_s5 + $0x1f8] sm:$0xff]  ;;  %4099 = vmatpush.bf16.msra.mxu2 %v6534_v58 }
  0x65   : > { %v863_v7 = vor.u32 %v861_v36, %v860_v9  ;;  %v864_v12 = vrot.slane %v860_v9, 4  ;;  %v654_v21 = vshrl.u32 %v588_v11, 16  ;;  %v657_v13 = vshll.u32 %v588_v11, 16  ;;  %v2801_v48 = vld [vmem:[#allocation2 + $0x10] sm:$0xf]  ;;  %v6510_v8 = vld [vmem:[%s8982_s5 + $0x178] sm:$0xff]  ;;  %4780 = vmatpush.bf16.msra.mxu3 %v6542_v60 }
  0x66   : > { %v871_v15 = vor.u32 %v869_v17, %v7374_v57  ;;  %v662_v3 = vshrl.u32 %v589_v26, 16  ;;  %v665_v29 = vshll.u32 %v589_v26, 16  ;;  %v1429_v22 = vrot.slane %v1427_v39, 4  ;;  %v6550_v6 = vld [vmem:[%s8982_s5 + $0x238] sm:$0xff]  ;;  %v1378_v39 = vld [vmem:[#allocation2 + $0xc] sm:$0xf]  ;;  %3785 = vmatpush.bf16.msra.mxu1 %v6510_v8 }
  0x67   : > { %v1044_v49 = vsel %vm6897_vm5, %v863_v7, %v1043_v28  ;;  %v656_v30 = vrot.slane %v654_v21, 7  ;;  %v1440_v32 = vshrl.u32 %v7376_v14, 16  ;;  %v1432_v16 = vrot.slane %v1430_v1, 5  ;;  %5205 = vmatpush.bf16.msra.mxu0 %v6550_v6  ;;  %v2804_v60 = vld [vmem:[#allocation2 + $0x1c] sm:$0xf] }
  0x68   : > { %1272 = vmatmul.bf16.gmra.mxu0 %v6433_v10  ;;  %v872_v23 = vsel %vm6888_vm4, %v864_v12, %v871_v15  ;;  %1045 = vst [vmem:[#allocation2 + $0xb4] sm:$0xf] %v1044_v49  ;;  %v7385_v24 = vrot.slane %v662_v3, 7  ;;  %v6438_v61 = vld [vmem:[#allocation2 + $0x54] sm:$0xff]  ;;  %v1438_v10 = vrot.slane %v1436_v31, 5  ;;  %v1446_v25 = vshll.u32 %v7381_v20, 16 }
  0x69   : > { %1046 = vst [vmem:[#allocation2 + $0xb8] sm:$0xf] %v872_v23  ;;  %v659_v33 = vor.u32 %v657_v13, %v656_v30  ;;  %v660_v35 = vrot.slane %v656_v30, 4  ;;  %v1442_v52 = vrot.slane %v1440_v32, 4  ;;  %v1433_v45 = vor.u32 %v1432_v16, %v1429_v22  ;;  %v2802_v7 = vld [vmem:[#allocation2 + $0x14] sm:$0x1] }
  0x6a   : > { %v667_v5 = vor.u32 %v665_v29, %v7385_v24  ;;  %v2849_v36 = vshrl.u32 %v2800_v37, 16  ;;  %v2852_v55 = vshll.u32 %v2800_v37, 16  ;;  %v2858_v63 = vshll.u32 %v2801_v48, 16  ;;  %v7414_v15 = vld [vmem:[#allocation2 + $0x10] sm:$0xf] }
  0x6b   : > { %v960_v42 = vsel %vm6897_vm5, %v659_v33, %v959_v19  ;;  %v1443_v51 = vor.u32 %v1442_v52, %v1438_v10  ;;  %v1434_v17 = vrot.slane %v1433_v45, 4  ;;  %v1448_v56 = vrot.slane %v1446_v25, 5  ;;  %v2059_v31 = vld [vmem:[#allocation2] sm:$0xe]  ;;  %v956_v16 = vld [vmem:[#allocation2 + $0x20] sm:$0x1] }
  0x6c   : > { %v668_v50 = vsel %vm6888_vm4, %v660_v35, %v667_v5  ;;  %961 = vst [vmem:[#allocation2 + $0x24] sm:$0xf] %v960_v42  ;;  %v2851_v28 = vrot.slane %v2849_v36, 4  ;;  %v2854_v26 = vrot.slane %v2852_v55, 5  ;;  %v2860_v12 = vrot.slane %v2858_v63, 5 }
  0x6d   : > { %962 = vst [vmem:[#allocation2 + $0x28] sm:$0xf] %v668_v50  ;;  %v1444_v11 = vrot.slane %v1443_v51, 4  ;;  %v2862_v21 = vshrl.u32 %v2801_v48, 16  ;;  %v1439_v13 = vsel %vm7408_vm10, %v1434_v17, %v1438_v10  ;;  %v1451_v3 = vshrl.u32 %v1378_v39, 16 }
  0x6e   : > { %1312 = vmatmul.bf16.gmra.mxu2 %v6441_v2  ;;  %v2855_v2 = vor.u32 %v2854_v26, %v2851_v28  ;;  %v652_v29 = vrot.slane %v7289_v18, 4  ;;  %v2868_v30 = vshll.u32 %v2802_v7, 16  ;;  %v2128_v1 = vrot.slane %v7376_v14, 5  ;;  %v6442_v18 = vld [vmem:[#allocation2 + $0x84] sm:$0xff]  ;;  %v7422_v10 = vld [vmem:[#allocation2 + $0x14] sm:$0x1] }
  0x6f   : > { %v1449_v19 = vsel %vm7408_vm10, %v1444_v11, %v1448_v56  ;;  %v2864_v49 = vrot.slane %v2862_v21, 4  ;;  %v1826_v23 = vunpack.c.l.b16 %v1439_v13  ;;  %v1460_v33 = vshll.u32 %v7414_v15, 16  ;;  %v2803_v48 = vld [vmem:[#allocation2 + $0x18] sm:$0xf] }
  0x70   : > { %1332 = vmatmul.bf16.gmra.mxu3 %v6445_v0  ;;  %v1454_v0 = vshll.u32 %v1378_v39, 16  ;;  %v1464_v35 = vshrl.u32 %v7414_v15, 16  ;;  %v2856_v5 = vrot.slane %v2855_v2, 4  ;;  %v1453_v52 = vrot.slane %v1451_v3, 4  ;;  %v6446_v50 = vld [vmem:[#allocation2 + $0xb4] sm:$0xff] }
  0x71   : > { %v2865_v32 = vor.u32 %v2864_v49, %v2860_v12  ;;  %v2870_v45 = vrot.slane %v2868_v30, 5  ;;  %v7424_v14 = vrot.slane %v1460_v33, 5  ;;  %v6029_v51 = vrot.slane %v2059_v31, 9  ;;  %v1381_v2 = vld [vmem:[#allocation2 + $0x18] sm:$0xf] }
  0x72   : > { %1297 = vmatmul.bf16.gmra.mxu1 %v6438_v61  ;;  %v1827_v61 = vunpack.c.l.b16 %v1449_v19  ;;  %v1456_v37 = vrot.slane %v1454_v0, 5  ;;  %v1466_v25 = vrot.slane %v1464_v35, 4  ;;  %v957_v58 = vsel %vm7332_vm7, %v652_v29, %v956_v16  ;;  %v7446_v49 = vld [vmem:[#allocation2 + $0x1c] sm:$0xf]  ;;  %v963_v30 = vld [vmem:[#allocation2 + $0x2c] sm:$0x1] }
  0x73   : > { %v2866_v42 = vrot.slane %v2865_v32, 4  ;;  %v2130_v55 = vrot.slane %v2128_v1, 4  ;;  %v2131_v17 = vrot.slane %v7381_v20, 5  ;;  %v1470_v63 = vshll.u32 %v7422_v10, 16  ;;  %958 = vst [vmem:[#allocation2 + $0x20] sm:$0x1] %v957_v58 }
  0x74   : > { %v6434_v22 = vld [vmem:[#allocation2 + $0x24] sm:$0xff]  ;;  %v1858_v8 = vpack.c.b16 %v1827_v61, %v1826_v23  ;;  %v2861_v6 = vsel %vm7408_vm10, %v2856_v5, %v2860_v12  ;;  %v1457_v11 = vor.u32 %v1456_v37, %v1453_v52  ;;  %v2873_v56 = vshrl.u32 %v2803_v48, 16 }
  0x75   : > { %v2871_v28 = vsel %vm7408_vm10, %v2866_v42, %v2870_v45  ;;  %v1467_v26 = vor.u32 %v1466_v25, %v7424_v14  ;;  %v2876_v39 = vshll.u32 %v2803_v48, 16  ;;  %v2882_v7 = vshll.u32 %v2804_v60, 16 }
  0x76   : > { %v669_v20 = vrot.slane %v7385_v24, 4  ;;  %v2129_v21 = vsel %vm7430_vm13, %v6029_v51, %v2128_v1  ;;  %v2875_v13 = vrot.slane %v2873_v56, 4  ;;  %v2132_v12 = vsel %vm7430_vm13, %v2130_v55, %v2131_v17  ;;  %v2060_v51 = vld [vmem:[#allocation2 + $0xc] sm:$0xe] }
  0x77   : > { %v3248_v3 = vunpack.c.l.b16 %v2861_v6  ;;  %v1472_v29 = vrot.slane %v1470_v63, 5  ;;  %v2878_v19 = vrot.slane %v2876_v39, 5  ;;  %v1458_v0 = vrot.slane %v1457_v11, 4 }
  0x78   : > { %1277 = vmatmul.bf16.gmra.mxu0 %v6434_v22  ;;  %v3249_v22 = vunpack.c.l.b16 %v2871_v28  ;;  %v2884_v23 = vrot.slane %v2882_v7, 5  ;;  %v2886_v31 = vshrl.u32 %v2804_v60, 16  ;;  %v1468_v24 = vrot.slane %v1467_v26, 4  ;;  %v2806_v28 = vld [vmem:[#allocation2 + $0x24] sm:$0xf] }
  0x79   : > { %v2879_v32 = vor.u32 %v2878_v19, %v2875_v13  ;;  %v1475_v33 = vshrl.u32 %v1381_v2, 16  ;;  %v1478_v1 = vshll.u32 %v1381_v2, 16  ;;  %v1488_v61 = vshrl.u32 %v7446_v49, 16  ;;  %v2807_v7 = vld [vmem:[#allocation2 + $0x28] sm:$0xf]  ;;  %v6471_v2 = vld [vmem:[#allocation2 + $0xc] sm:$0xff] }
  0x7a   : > { %v2805_v35 = vld [vmem:[#allocation2 + $0x20] sm:$0x1]  ;;  %v2888_v16 = vrot.slane %v2886_v31, 4  ;;  %v964_v5 = vsel %vm7332_vm7, %v669_v20, %v963_v30  ;;  %v2254_v37 = vunpack.c.l.b16 %v2129_v21  ;;  %v2255_v42 = vunpack.c.l.b16 %v2132_v12 }
  0x7b   : > { %v2892_v52 = vshll.u32 %v2805_v35, 16  ;;  %965 = vst [vmem:[#allocation2 + $0x2c] sm:$0x1] %v964_v5  ;;  %v3280_v45 = vpack.c.b16 %v3249_v22, %v3248_v3  ;;  %v1463_v48 = vsel %vm7408_vm10, %v1458_v0, %v7424_v14  ;;  %v2135_v58 = vrot.slane %v7414_v15, 5  ;;  %v7458_v17 = vld [vmem:[#allocation2 + $0x20] sm:$0x1] }
  0x7c   : > { %v2889_v25 = vor.u32 %v2888_v16, %v2884_v23  ;;  %v1477_v60 = vrot.slane %v1475_v33, 4  ;;  %v2880_v55 = vrot.slane %v2879_v32, 4  ;;  %v1480_v63 = vrot.slane %v1478_v1, 5  ;;  %v970_v35 = vld [vmem:[#allocation2 + $0x38] sm:$0x1] }
  0x7d   : > { %v1490_v6 = vrot.slane %v1488_v61, 4  ;;  %v2894_v56 = vrot.slane %v2892_v52, 5  ;;  %v2286_v26 = vpack.c.b16 %v2255_v42, %v2254_v37  ;;  %v1828_v14 = vunpack.c.l.b16 %v1463_v48  ;;  %v6533_v61 = vld [vmem:[%s8982_s5 + $0x1b0] sm:$0xff] }
  0x7e   : > { %1317 = vmatmul.bf16.gmra.mxu2 %v6442_v18  ;;  %v1484_v18 = vshll.u32 %v7446_v49, 16  ;;  %v2890_v11 = vrot.slane %v2889_v25, 4  ;;  %v6030_v20 = vrot.slane %v2060_v51, 9  ;;  %v2137_v21 = vrot.slane %v2135_v58, 4  ;;  %v6541_v52 = vld [vmem:[%s8982_s5 + $0x1f0] sm:$0xff] }
  0x7f   : > { %v2138_v15 = vrot.slane %v7422_v10, 5  ;;  %v1494_v13 = vshll.u32 %v7458_v17, 16  ;;  %v2885_v12 = vsel %vm7408_vm10, %v2880_v55, %v2884_v23  ;;  %v1481_v3 = vor.u32 %v1480_v63, %v1477_v60  ;;  %v6509_v37 = vld [vmem:[%s8982_s5 + $0x170] sm:$0xff]  ;;  %4100 = vmatpush.bf16.msra.mxu2 %v6533_v61  ;;  %4781 = vmatpush.bf16.msra.mxu3 %v6541_v52  ;;  %v7490_v60 = vld [vmem:[#allocation2 + $0x28] sm:$0xf] }
  0x80   : > { %1337 = vmatmul.bf16.gmra.mxu3 %v6446_v50  ;;  %v1473_v50 = vsel %vm7408_vm10, %v1468_v24, %v1472_v29  ;;  %v2897_v19 = vshrl.u32 %v2806_v28, 16  ;;  %v686_v30 = vrot.slane %v6892_v46, 4  ;;  %v2895_v22 = vsel %vm7408_vm10, %v2890_v11, %v2894_v56  ;;  %v6549_v48 = vld [vmem:[%s8982_s5 + $0x230] sm:$0xff]  ;;  %3786 = vmatpush.bf16.msra.mxu1 %v6509_v37 }
  0x81   : > { %v1829_v39 = vunpack.c.l.b16 %v1473_v50  ;;  %v2900_v0 = vshll.u32 %v2806_v28, 16  ;;  %v2906_v31 = vshll.u32 %v2807_v7, 16  ;;  %v2910_v10 = vshrl.u32 %v2807_v7, 16  ;;  %5206 = vmatpush.bf16.msra.mxu0 %v6549_v48  ;;  %v977_v48 = vld [vmem:[#allocation2 + $0x44] sm:$0x1] }
  0x82   : > { %1946 = vmatmul.bf16.vlgmr.msrb.gmra.mxu1 %v1858_v8  ;;  %v7460_v8 = vrot.slane %v1484_v18, 5  ;;  %v2136_v32 = vsel %vm7430_vm13, %v6030_v20, %v2135_v58  ;;  %v2139_v23 = vsel %vm7430_vm13, %v2137_v21, %v2138_v15  ;;  %v3250_v33 = vunpack.c.l.b16 %v2885_v12  ;;  %v2808_v51 = vld [vmem:[#allocation2 + $0x2c] sm:$0x1]  ;;  %v1384_v58 = vld [vmem:[#allocation2 + $0x24] sm:$0xf] }
  0x83   : > { %v1859_v24 = vpack.c.b16 %v1829_v39, %v1828_v14  ;;  %v1496_v1 = vrot.slane %v1494_v13, 5  ;;  %v3251_v16 = vunpack.c.l.b16 %v2895_v22  ;;  %v1482_v46 = vrot.slane %v1481_v3, 4  ;;  %v2061_v12 = vld [vmem:[#allocation2 + $0x18] sm:$0xe] }
  0x84   : > { %v1491_v29 = vor.u32 %v1490_v6, %v7460_v8  ;;  %v2899_v5 = vrot.slane %v2897_v19, 4  ;;  %v2902_v42 = vrot.slane %v2900_v0, 5  ;;  %v2912_v25 = vrot.slane %v2910_v10, 4 }
  0x85   : > { %v971_v50 = vsel %vm7332_vm7, %v686_v30, %v970_v35  ;;  %v2256_v55 = vunpack.c.l.b16 %v2136_v32  ;;  %v2257_v63 = vunpack.c.l.b16 %v2139_v23  ;;  %v1487_v6 = vsel %vm7408_vm10, %v1482_v46, %v7460_v8  ;;  %v7501_v30 = vld [vmem:[#allocation2 + $0x2c] sm:$0x1]  ;;  %v2809_v32 = vld [vmem:[#allocation2 + $0x30] sm:$0xf]  ;;  %v6472_v23 = vld [vmem:[#allocation2 + $0x18] sm:$0xff] }
  0x86   : > { %v1492_v18 = vrot.slane %v1491_v29, 4  ;;  %972 = vst [vmem:[#allocation2 + $0x38] sm:$0x1] %v971_v50  ;;  %v3281_v56 = vpack.c.b16 %v3251_v16, %v3250_v33  ;;  %v2903_v28 = vor.u32 %v2902_v42, %v2899_v5  ;;  %v2916_v14 = vshll.u32 %v2808_v51, 16  ;;  %v2810_v35 = vld [vmem:[#allocation2 + $0x34] sm:$0xf] }
  0x87   : > { %v1499_v39 = vshrl.u32 %v1384_v58, 16  ;;  %v1502_v7 = vshll.u32 %v1384_v58, 16  ;;  %v1508_v20 = vshll.u32 %v7490_v60, 16  ;;  %v1512_v21 = vshrl.u32 %v7490_v60, 16  ;;  %v1387_v50 = vld [vmem:[#allocation2 + $0x30] sm:$0xf] }
  0x88   : > { %3368 = vmatmul.bf16.vlgmr.msrb.gmra.mxu0 %v3280_v45  ;;  %v7483_v45 = vrot.slane %v2906_v31, 5  ;;  %v1497_v11 = vsel %vm7408_vm10, %v1492_v18, %v1496_v1  ;;  %v2287_v15 = vpack.c.b16 %v2257_v63, %v2256_v55  ;;  %v1830_v13 = vunpack.c.l.b16 %v1487_v6  ;;  %v7517_v6 = vld [vmem:[#allocation2 + $0x34] sm:$0xf] }
  0x89   : > { %v2142_v8 = vrot.slane %v7446_v49, 5  ;;  %v2904_v3 = vrot.slane %v2903_v28, 4  ;;  %v2918_v19 = vrot.slane %v2916_v14, 5  ;;  %v1501_v22 = vrot.slane %v1499_v39, 4 }
  0x8a   : > { %v1504_v0 = vrot.slane %v1502_v7, 5  ;;  %v1510_v31 = vrot.slane %v1508_v20, 5  ;;  %v703_v10 = vrot.slane %v7043_v27, 4  ;;  %v6031_v33 = vrot.slane %v2061_v12, 9 }
  0x8b   : > { %v2144_v1 = vrot.slane %v2142_v8, 4  ;;  %v2145_v49 = vrot.slane %v7458_v17, 5  ;;  %v2909_v46 = vsel %vm7408_vm10, %v2904_v3, %v7483_v45  ;;  %v1518_v61 = vshll.u32 %v7501_v30, 16 }
  0x8c   : > { %v1505_v5 = vor.u32 %v1504_v0, %v1501_v22  ;;  %v2921_v52 = vshrl.u32 %v2809_v32, 16  ;;  %v2924_v37 = vshll.u32 %v2809_v32, 16  ;;  %v2930_v42 = vshll.u32 %v2810_v35, 16 }
  0x8d   : > { %v2143_v17 = vsel %vm7430_vm13, %v6031_v33, %v2142_v8  ;;  %v2146_v51 = vsel %vm7430_vm13, %v2144_v1, %v2145_v49  ;;  %v3252_v58 = vunpack.c.l.b16 %v2909_v46  ;;  %v1520_v63 = vrot.slane %v1518_v61, 5  ;;  %v7528_v32 = vld [vmem:[#allocation2 + $0x38] sm:$0x1]  ;;  %v2812_v49 = vld [vmem:[#allocation2 + $0x3c] sm:$0xf] }
  0x8e   : > { %2374 = vmatmul.bf16.vlgmr.msrb.gmra.mxu2 %v2286_v26  ;;  %v2913_v26 = vor.u32 %v2912_v25, %v7483_v45  ;;  %v2934_v25 = vshrl.u32 %v2810_v35, 16  ;;  %v978_v45 = vsel %vm7332_vm7, %v703_v10, %v977_v48  ;;  %v2923_v28 = vrot.slane %v2921_v52, 4  ;;  %v2813_v61 = vld [vmem:[#allocation2 + $0x40] sm:$0xf] }
  0x8f   : > { %v7519_v14 = vrot.slane %v2930_v42, 5  ;;  %v1523_v7 = vshrl.u32 %v1387_v50, 16  ;;  %v1526_v20 = vshll.u32 %v1387_v50, 16  ;;  %979 = vst [vmem:[#allocation2 + $0x44] sm:$0x1] %v978_v45  ;;  %v2258_v8 = vunpack.c.l.b16 %v2143_v17 }
  0x90   : > { %2687 = vmatmul.bf16.vlgmr.msrb.gmra.mxu3 %v6471_v2  ;;  %v1831_v2 = vunpack.c.l.b16 %v1497_v11  ;;  %v2914_v29 = vrot.slane %v2913_v26, 4  ;;  %v1506_v11 = vrot.slane %v1505_v5, 4  ;;  %v2926_v26 = vrot.slane %v2924_v37, 5 }
  0x91   : > { %v2936_v39 = vrot.slane %v2934_v25, 4  ;;  %v1528_v10 = vrot.slane %v1526_v20, 5  ;;  %v2149_v46 = vrot.slane %v7490_v60, 5  ;;  %v1542_v37 = vshll.u32 %v7528_v32, 16  ;;  %v6473_v25 = vld [vmem:[#allocation2 + $0x24] sm:$0xff] }
  0x92   : > { %1951 = vmatmul.bf16.gmra.mxu1 %v1859_v24  ;;  %v1514_v24 = vrot.slane %v1512_v21, 4  ;;  %v1860_v16 = vpack.c.b16 %v1831_v2, %v1830_v13  ;;  %v2919_v18 = vsel %vm7408_vm10, %v2914_v29, %v2918_v19  ;;  %v2811_v21 = vld [vmem:[#allocation2 + $0x38] sm:$0x1]  ;;  %v1536_v13 = vshrl.u32 %v7517_v6, 16 }
  0x93   : > { %v3253_v55 = vunpack.c.l.b16 %v2919_v18  ;;  %v2259_v2 = vunpack.c.l.b16 %v2146_v51  ;;  %v1511_v3 = vsel %vm7408_vm10, %v1506_v11, %v1510_v31  ;;  %v2927_v19 = vor.u32 %v2926_v26, %v2923_v28  ;;  %v984_v26 = vld [vmem:[#allocation2 + $0x50] sm:$0x1] }
  0x94   : > { %v1515_v27 = vor.u32 %v1514_v24, %v1510_v31  ;;  %v2937_v22 = vor.u32 %v2936_v39, %v7519_v14  ;;  %v2940_v0 = vshll.u32 %v2811_v21, 16  ;;  %v1525_v24 = vrot.slane %v1523_v7, 4  ;;  %v2062_v31 = vld [vmem:[#allocation2 + $0x24] sm:$0xe]  ;;  %v6532_v7 = vld [vmem:[%s8982_s5 + $0x1a8] sm:$0xff] }
  0x95   : > { %v3282_v12 = vpack.c.b16 %v3253_v55, %v3252_v58  ;;  %v1538_v33 = vrot.slane %v1536_v13, 4  ;;  %v2288_v1 = vpack.c.b16 %v2259_v2, %v2258_v8  ;;  %v1832_v35 = vunpack.c.l.b16 %v1511_v3  ;;  %4101 = vmatpush.bf16.msra.mxu2 %v6532_v7 }
  0x96   : > { %v2928_v18 = vrot.slane %v2927_v19, 4  ;;  %v2938_v5 = vrot.slane %v2937_v22, 4  ;;  %v1529_v52 = vor.u32 %v1528_v10, %v1525_v24  ;;  %v720_v42 = vrot.slane %v7201_v53, 4  ;;  %v2814_v3 = vld [vmem:[#allocation2 + $0x44] sm:$0x1] }
  0x97   : > { %v2945_v17 = vshrl.u32 %v2812_v49, 16  ;;  %v2948_v50 = vshll.u32 %v2812_v49, 16  ;;  %v6032_v45 = vrot.slane %v2062_v31, 9  ;;  %v2954_v51 = vshll.u32 %v2813_v61, 16  ;;  %v7556_v22 = vld [vmem:[#allocation2 + $0x40] sm:$0xf] }
  0x98   : > { %3373 = vmatmul.bf16.gmra.mxu0 %v3281_v56  ;;  %v1516_v56 = vrot.slane %v1515_v27, 4  ;;  %v2942_v27 = vrot.slane %v2940_v0, 5  ;;  %v2958_v58 = vshrl.u32 %v2813_v61, 16  ;;  %v2151_v60 = vrot.slane %v2149_v46, 4  ;;  %v6548_v49 = vld [vmem:[%s8982_s5 + $0x228] sm:$0xff] }
  0x99   : > { %v2933_v11 = vsel %vm7408_vm10, %v2928_v18, %v7519_v14  ;;  %v1544_v28 = vrot.slane %v1542_v37, 5  ;;  %v2947_v20 = vrot.slane %v2945_v17, 4  ;;  %v2950_v21 = vrot.slane %v2948_v50, 5  ;;  %5207 = vmatpush.bf16.msra.mxu0 %v6548_v49  ;;  %v2063_v37 = vld [vmem:[#allocation2 + $0x30] sm:$0xe] }
  0x9a   : > { %v1521_v29 = vsel %vm7408_vm10, %v1516_v56, %v1520_v63  ;;  %v2152_v63 = vrot.slane %v7501_v30, 5  ;;  %v2943_v53 = vsel %vm7408_vm10, %v2938_v5, %v2942_v27  ;;  %v1530_v56 = vrot.slane %v1529_v52, 4  ;;  %v6540_v30 = vld [vmem:[%s8982_s5 + $0x1e8] sm:$0xff] }
  0x9b   : > { %v985_v14 = vsel %vm7332_vm7, %v720_v42, %v984_v26  ;;  %v7552_v13 = vrot.slane %v2954_v51, 5  ;;  %v2960_v8 = vrot.slane %v2958_v58, 4  ;;  %v3254_v2 = vunpack.c.l.b16 %v2933_v11  ;;  %4782 = vmatpush.bf16.msra.mxu3 %v6540_v30  ;;  %v6474_v26 = vld [vmem:[#allocation2 + $0x30] sm:$0xff] }
  0x9c   : > { %986 = vst [vmem:[#allocation2 + $0x50] sm:$0x1] %v985_v14  ;;  %v2153_v19 = vsel %vm7430_vm13, %v2151_v60, %v2152_v63  ;;  %v1560_v5 = vshrl.u32 %v7556_v22, 16  ;;  %v2156_v42 = vrot.slane %v7517_v6, 5  ;;  %v2815_v60 = vld [vmem:[#allocation2 + $0x48] sm:$0xf] }
  0x9d   : > { %v2261_v18 = vunpack.c.l.b16 %v2153_v19  ;;  %v737_v63 = vrot.slane %v7305_v54, 4  ;;  %v2159_v7 = vrot.slane %v7528_v32, 5  ;;  %v2969_v54 = vshrl.u32 %v2815_v60, 16 }
  0x9e   : > { %2379 = vmatmul.bf16.gmra.mxu2 %v2287_v15  ;;  %v1532_v15 = vshll.u32 %v7517_v6, 16  ;;  %v2972_v14 = vshll.u32 %v2815_v60, 16 }
  0xa0   : > { %2692 = vmatmul.bf16.gmra.mxu3 %v6472_v23  ;;  %v7530_v23 = vrot.slane %v1532_v15, 5  ;;  %v2150_v15 = vsel %vm7430_vm13, %v6032_v45, %v2149_v46 }
  0xa1   : > { %v2260_v0 = vunpack.c.l.b16 %v2150_v15 }
  0xa2   : > { %1956 = vmatmul.bf16.gmra.mxu1 %v1860_v16  ;;  %v1833_v16 = vunpack.c.l.b16 %v1521_v29  ;;  %v1539_v48 = vor.u32 %v1538_v33, %v7530_v23  ;;  %v1390_v29 = vld [vmem:[#allocation2 + $0x3c] sm:$0xf]  ;;  %v1535_v24 = vsel %vm7408_vm10, %v1530_v56, %v7530_v23  ;;  %v2951_v33 = vor.u32 %v2950_v21, %v2947_v20  ;;  %v7576_v56 = vld [vmem:[#allocation2 + $0x44] sm:$0x1] }
  0xa3   : > { %v1547_v31 = vshrl.u32 %v1390_v29, 16  ;;  %v1550_v46 = vshll.u32 %v1390_v29, 16  ;;  %v1556_v23 = vshll.u32 %v7556_v22, 16  ;;  %v1834_v27 = vunpack.c.l.b16 %v1535_v24 }
  0xa4   : > { %v1861_v55 = vpack.c.b16 %v1833_v16, %v1832_v35  ;;  %v1540_v39 = vrot.slane %v1539_v48, 4  ;;  %v2961_v35 = vor.u32 %v2960_v8, %v7552_v13  ;;  %v2964_v16 = vshll.u32 %v2814_v3, 16  ;;  %v991_v3 = vld [vmem:[#allocation2 + $0x5c] sm:$0x1] }
  0xa5   : > { %v1549_v50 = vrot.slane %v1547_v31, 4  ;;  %v1552_v45 = vrot.slane %v1550_v46, 5  ;;  %v2289_v51 = vpack.c.b16 %v2261_v18, %v2260_v0  ;;  %v1558_v58 = vrot.slane %v1556_v23, 5  ;;  %v1393_v18 = vld [vmem:[#allocation2 + $0x48] sm:$0xf] }
  0xa6   : > { %v1545_v10 = vsel %vm7408_vm10, %v1540_v39, %v1544_v28  ;;  %v2962_v48 = vrot.slane %v2961_v35, 4  ;;  %v2966_v17 = vrot.slane %v2964_v16, 5  ;;  %v2816_v28 = vld [vmem:[#allocation2 + $0x4c] sm:$0xf]  ;;  %v2158_v39 = vrot.slane %v2156_v42, 4 }
  0xa7   : > { %v1835_v52 = vunpack.c.l.b16 %v1545_v10  ;;  %v1553_v30 = vor.u32 %v1552_v45, %v1549_v50  ;;  %v1566_v8 = vshll.u32 %v7576_v56, 16  ;;  %v992_v19 = vsel %vm7332_vm7, %v737_v63, %v991_v3  ;;  %v2817_v16 = vld [vmem:[#allocation2 + $0x50] sm:$0x1]  ;;  %v2818_v63 = vld [vmem:[#allocation2 + $0x54] sm:$0xf]  ;;  %v6475_v3 = vld [vmem:[#allocation2 + $0x3c] sm:$0xff] }
  0xa8   : > { %3378 = vmatmul.bf16.gmra.mxu0 %v3282_v12  ;;  %v3255_v12 = vunpack.c.l.b16 %v2943_v53  ;;  %v6033_v53 = vrot.slane %v2063_v37, 9  ;;  %v2967_v21 = vsel %vm7408_vm10, %v2962_v48, %v2966_v17  ;;  %993 = vst [vmem:[#allocation2 + $0x5c] sm:$0x1] %v992_v19  ;;  %v1571_v50 = vshrl.u32 %v1393_v18, 16 }
  0xa9   : > { %v7574_v11 = vpop.f32.mrf.mxu1  ;;  %v1862_v6 = vpack.c.b16 %v1835_v52, %v1834_v27  ;;  %v3257_v24 = vunpack.c.l.b16 %v2967_v21  ;;  %v1554_v10 = vrot.slane %v1553_v30, 4  ;;  %v1568_v35 = vrot.slane %v1566_v8, 5 }
  0xaa   : > { %v3283_v61 = vpack.c.b16 %v3255_v12, %v3254_v2  ;;  %v2978_v2 = vshll.u32 %v2816_v28, 16  ;;  %v2982_v12 = vshrl.u32 %v2816_v28, 16  ;;  %v2157_v32 = vsel %vm7430_vm13, %v6033_v53, %v2156_v42  ;;  %v7591_v0 = vpop.f32.mrf.mxu0 }
  0xab   : > { %v1559_v37 = vsel %vm7408_vm10, %v1554_v10, %v1558_v58  ;;  %v1574_v45 = vshll.u32 %v1393_v18, 16  ;;  %v1573_v21 = vrot.slane %v1571_v50, 4  ;;  %v2993_v8 = vshrl.u32 %v2818_v63, 16 }
  0xac   : > { %v7593_v31 = vrot.slane %v2978_v2, 5  ;;  %v2984_v46 = vrot.slane %v2982_v12, 4  ;;  %v1836_v53 = vunpack.c.l.b16 %v1559_v37  ;;  %v2996_v2 = vshll.u32 %v2818_v63, 16 }
  0xad   : > { %v1576_v30 = vrot.slane %v1574_v45, 5  ;;  %v754_v12 = vrot.slane %v6965_v34, 4 }
  0xae   : > { %2384 = vmatmul.bf16.gmra.mxu2 %v2288_v1  ;;  %v6508_v1 = vld [vmem:[%s8982_s5 + $0x168] sm:$0xff]  ;;  %v2985_v17 = vor.u32 %v2984_v46, %v7593_v31  ;;  %v2995_v46 = vrot.slane %v2993_v8, 4  ;;  %v2998_v18 = vrot.slane %v2996_v2, 5 }
  0xaf   : > { %3787 = vmatpush.bf16.msra.mxu1 %v6508_v1  ;;  %v2974_v1 = vrot.slane %v2972_v14, 5 }
  0xb0   : > { %2697 = vmatmul.bf16.gmra.mxu3 %v6473_v25  ;;  %v2952_v25 = vrot.slane %v2951_v33, 4  ;;  %v2971_v33 = vrot.slane %v2969_v54, 4 }
  0xb1   : > { %v7597_v52 = vpop.f32.mrf.mxu1 }
  0xb2   : > { %1961 = vmatmul.bf16.gmra.mxu1 %v1861_v55  ;;  %v1562_v55 = vrot.slane %v1560_v5, 4  ;;  %v2957_v20 = vsel %vm7408_vm10, %v2952_v25, %v7552_v13  ;;  %v2160_v13 = vsel %vm7430_vm13, %v2158_v39, %v2159_v7  ;;  %v7595_v5 = vld [vmem:[#allocation2 + $0x4c] sm:$0xf]  ;;  %v2975_v42 = vor.u32 %v2974_v1, %v2971_v33  ;;  %v2064_v39 = vld [vmem:[#allocation2 + $0x3c] sm:$0xe]  ;;  %v7607_v54 = vpop.f32.mrf.mxu0 }
  0xb3   : > { %v3256_v29 = vunpack.c.l.b16 %v2957_v20  ;;  %v2263_v23 = vunpack.c.l.b16 %v2160_v13  ;;  %v2988_v25 = vshll.u32 %v2817_v16, 16  ;;  %v2986_v7 = vrot.slane %v2985_v17, 4 }
  0xb4   : > { %v1563_v15 = vor.u32 %v1562_v55, %v1558_v58  ;;  %v1584_v55 = vshrl.u32 %v7595_v5, 16  ;;  %v2976_v58 = vrot.slane %v2975_v42, 4 }
  0xb5   : > { %v3284_v27 = vpack.c.b16 %v3257_v24, %v3256_v29  ;;  %v2990_v20 = vrot.slane %v2988_v25, 5  ;;  %v6034_v29 = vrot.slane %v2064_v39, 9  ;;  %v2166_v24 = vrot.slane %v7576_v56, 5  ;;  %v6531_v56 = vld [vmem:[%s8982_s5 + $0x1a0] sm:$0xff]  ;;  %v2820_v25 = vld [vmem:[#allocation2 + $0x5c] sm:$0x1] }
  0xb6   : > { %v1564_v49 = vrot.slane %v1563_v15, 4  ;;  %v1586_v15 = vrot.slane %v1584_v55, 4  ;;  %v2981_v33 = vsel %vm7408_vm10, %v2976_v58, %v7593_v31  ;;  %4102 = vmatpush.bf16.msra.mxu2 %v6531_v56  ;;  %v7640_v55 = vld [vmem:[#allocation2 + $0x58] sm:$0xf]  ;;  %v2999_v58 = vor.u32 %v2998_v18, %v2995_v46 }
  0xb7   : > { %v2991_v1 = vsel %vm7408_vm10, %v2986_v7, %v2990_v20  ;;  %v3258_v50 = vunpack.c.l.b16 %v2981_v33  ;;  %v3012_v39 = vshll.u32 %v2820_v25, 16  ;;  %v6547_v7 = vld [vmem:[%s8982_s5 + $0x220] sm:$0xff]  ;;  %v1608_v8 = vshrl.u32 %v7640_v55, 16 }
  0xb8   : > { %3383 = vmatmul.bf16.gmra.mxu0 %v3283_v61  ;;  %v2262_v61 = vunpack.c.l.b16 %v2157_v32  ;;  %v1569_v48 = vsel %vm7408_vm10, %v1564_v49, %v1568_v35  ;;  %v7612_v32 = vld [vmem:[#allocation2 + $0x50] sm:$0x1]  ;;  %v1577_v49 = vor.u32 %v1576_v30, %v1573_v21  ;;  %v3259_v45 = vunpack.c.l.b16 %v2991_v1 }
  0xb9   : > { %v1837_v28 = vunpack.c.l.b16 %v1569_v48  ;;  %v1590_v16 = vshll.u32 %v7612_v32, 16  ;;  %5208 = vmatpush.bf16.msra.mxu0 %v6547_v7  ;;  %v3014_v1 = vrot.slane %v3012_v39, 5  ;;  %v1610_v18 = vrot.slane %v1608_v8, 4 }
  0xba   : > { %v2290_v60 = vpack.c.b16 %v2263_v23, %v2262_v61  ;;  %v998_v61 = vld [vmem:[#allocation2 + $0x68] sm:$0x1]  ;;  %v1578_v63 = vrot.slane %v1577_v49, 4  ;;  %v771_v56 = vrot.slane %v7056_v43, 4 }
  0xbb   : > { %v1863_v10 = vpack.c.b16 %v1837_v28, %v1836_v53  ;;  %v999_v37 = vsel %vm7332_vm7, %v754_v12, %v998_v61  ;;  %v1592_v28 = vrot.slane %v1590_v16, 5  ;;  %v2821_v61 = vld [vmem:[#allocation2 + $0x60] sm:$0xf] }
  0xbc   : > { %1000 = vst [vmem:[#allocation2 + $0x68] sm:$0x1] %v999_v37  ;;  %v7668_v37 = vld [vmem:[#allocation2 + $0x5c] sm:$0x1] }
  0xbd   : > { %v1614_v39 = vshll.u32 %v7668_v37, 16 }
  0xbe   : > { %2389 = vmatmul.bf16.gmra.mxu2 %v2289_v51  ;;  %v1580_v51 = vshll.u32 %v7595_v5, 16 }
  0xc0   : > { %2702 = vmatmul.bf16.gmra.mxu3 %v6474_v26  ;;  %v2163_v26 = vrot.slane %v7556_v22, 5  ;;  %v7609_v14 = vrot.slane %v1580_v51, 5  ;;  %v1396_v51 = vld [vmem:[#allocation2 + $0x54] sm:$0xf] }
  0xc1   : > { %v1595_v20 = vshrl.u32 %v1396_v51, 16  ;;  %v1598_v21 = vshll.u32 %v1396_v51, 16  ;;  %v6476_v51 = vld [vmem:[#allocation2 + $0x48] sm:$0xff] }
  0xc2   : > { %1966 = vmatmul.bf16.gmra.mxu1 %v1862_v6  ;;  %v2819_v6 = vld [vmem:[#allocation2 + $0x58] sm:$0xf]  ;;  %v2165_v19 = vrot.slane %v2163_v26, 4  ;;  %v1587_v35 = vor.u32 %v1586_v15, %v7609_v14  ;;  %v2164_v48 = vsel %vm7430_vm13, %v6034_v29, %v2163_v26  ;;  %v6507_v26 = vld [vmem:[%s8982_s5 + $0x160] sm:$0xff]  ;;  %v1604_v15 = vshll.u32 %v7640_v55, 16 }
  0xc3   : > { %v3002_v22 = vshll.u32 %v2819_v6, 16  ;;  %v3006_v13 = vshrl.u32 %v2819_v6, 16  ;;  %v2264_v2 = vunpack.c.l.b16 %v2164_v48  ;;  %3788 = vmatpush.bf16.msra.mxu1 %v6507_v26  ;;  %v1597_v49 = vrot.slane %v1595_v20, 4 }
  0xc4   : > { %v2167_v17 = vsel %vm7430_vm13, %v2165_v19, %v2166_v24  ;;  %v1588_v53 = vrot.slane %v1587_v35, 4  ;;  %v2170_v19 = vrot.slane %v7595_v5, 5  ;;  %v3000_v24 = vrot.slane %v2999_v58, 4  ;;  %v2822_v5 = vld [vmem:[#allocation2 + $0x64] sm:$0xf] }
  0xc5   : > { %v7627_v23 = vrot.slane %v3002_v22, 5  ;;  %v3008_v31 = vrot.slane %v3006_v13, 4  ;;  %v2265_v12 = vunpack.c.l.b16 %v2167_v17  ;;  %v1583_v13 = vsel %vm7408_vm10, %v1578_v63, %v7609_v14 }
  0xc6   : > { %v1593_v29 = vsel %vm7408_vm10, %v1588_v53, %v1592_v28  ;;  %v1600_v35 = vrot.slane %v1598_v21, 5  ;;  %v7665_v46 = vrot.slane %v1604_v15, 5  ;;  %v2172_v17 = vrot.slane %v2170_v19, 4 }
  0xc7   : > { %v3009_v6 = vor.u32 %v3008_v31, %v7627_v23  ;;  %v2291_v14 = vpack.c.b16 %v2265_v12, %v2264_v2  ;;  %v1838_v31 = vunpack.c.l.b16 %v1583_v13  ;;  %v3017_v53 = vshrl.u32 %v2821_v61, 16  ;;  %v1005_v2 = vld [vmem:[#allocation2 + $0x74] sm:$0x1] }
  0xc8   : > { %3388 = vmatmul.bf16.gmra.mxu0 %v3284_v27  ;;  %v6539_v27 = vld [vmem:[%s8982_s5 + $0x1e0] sm:$0xff]  ;;  %v1601_v63 = vor.u32 %v1600_v35, %v1597_v49  ;;  %v3020_v28 = vshll.u32 %v2821_v61, 16  ;;  %v3026_v26 = vshll.u32 %v2822_v5, 16  ;;  %v3030_v7 = vshrl.u32 %v2822_v5, 16  ;;  %v2823_v49 = vld [vmem:[#allocation2 + $0x68] sm:$0x1] }
  0xc9   : > { %4783 = vmatpush.bf16.msra.mxu3 %v6539_v27  ;;  %v3010_v33 = vrot.slane %v3009_v6, 4  ;;  %v1839_v27 = vunpack.c.l.b16 %v1593_v29  ;;  %v1611_v6 = vor.u32 %v1610_v18, %v7665_v46  ;;  %v1006_v29 = vsel %vm7332_vm7, %v771_v56, %v1005_v2  ;;  %v1399_v18 = vld [vmem:[#allocation2 + $0x60] sm:$0xf]  ;;  %v7696_v61 = vld [vmem:[#allocation2 + $0x64] sm:$0xf] }
  0xca   : > { %v1602_v12 = vrot.slane %v1601_v63, 4  ;;  %v3022_v13 = vrot.slane %v3020_v28, 5  ;;  %1007 = vst [vmem:[#allocation2 + $0x74] sm:$0x1] %v1006_v29  ;;  %v1628_v63 = vshll.u32 %v7696_v61, 16 }
  0xcb   : > { %v3015_v43 = vsel %vm7408_vm10, %v3010_v33, %v3014_v1  ;;  %v1616_v33 = vrot.slane %v1614_v39, 5  ;;  %v7692_v1 = vrot.slane %v3026_v26, 5  ;;  %v2177_v26 = vrot.slane %v7640_v55, 5 }
  0xcc   : > { %v3261_v8 = vunpack.c.l.b16 %v3015_v43  ;;  %v1622_v43 = vshll.u32 %v1399_v18, 16 }
  0xce   : > { %2394 = vmatmul.bf16.gmra.mxu2 %v2290_v60 }
  0xcf   : > { %v7620_v34 = vpop.f32.mrf.mxu1 }
  0xd0   : > { %2707 = vmatmul.bf16.gmra.mxu3 %v6475_v3  ;;  %v3285_v3 = vpack.c.b16 %v3259_v45, %v3258_v50  ;;  %v2173_v50 = vrot.slane %v7612_v32, 5  ;;  %v3005_v45 = vsel %vm7408_vm10, %v3000_v24, %v7627_v23  ;;  %v1864_v32 = vpack.c.b16 %v1839_v27, %v1838_v31 }
  0xd1   : > { %v7634_v42 = vpop.f32.mrf.mxu2  ;;  %v3260_v15 = vunpack.c.l.b16 %v3005_v45  ;;  %v3036_v45 = vshll.u32 %v2823_v49, 16 }
  0xd2   : > { %1971 = vmatmul.bf16.gmra.mxu1 %v1863_v10  ;;  %v2065_v10 = vld [vmem:[#allocation2 + $0x48] sm:$0xe]  ;;  %v2174_v21 = vsel %vm7430_vm13, %v2172_v17, %v2173_v50 }
  0xd3   : > { %v7642_v60 = vpop.f32.mrf.mxu3  ;;  %v6035_v48 = vrot.slane %v2065_v10, 9  ;;  %v1612_v10 = vrot.slane %v1611_v6, 4  ;;  %v2267_v31 = vunpack.c.l.b16 %v2174_v21  ;;  %v3286_v27 = vpack.c.b16 %v3261_v8, %v3260_v15  ;;  %v2066_v21 = vld [vmem:[#allocation2 + $0x54] sm:$0xe] }
  0xd4   : > { %8997 = vst [vmem:[#allocation3_spill] sm:$0xff] %v7642_v60  ;;  %v3038_v2 = vrot.slane %v3036_v45, 5 }
  0xd5   : > { %v7651_v30 = vpop.f32.mrf.mxu0  ;;  %v2171_v23 = vsel %vm7430_vm13, %v6035_v48, %v2170_v19  ;;  %v3032_v19 = vrot.slane %v3030_v7, 4  ;;  %v1607_v48 = vsel %vm7408_vm10, %v1602_v12, %v7665_v46  ;;  %v1617_v17 = vsel %vm7408_vm10, %v1612_v10, %v1616_v33  ;;  %v2824_v7 = vld [vmem:[#allocation2 + $0x6c] sm:$0xf]  ;;  %v2825_v46 = vld [vmem:[#allocation2 + $0x70] sm:$0xf] }
  0xd6   : > { %v1840_v39 = vunpack.c.l.b16 %v1607_v48  ;;  %v7717_v33 = vld [vmem:[#allocation2 + $0x68] sm:$0x1]  ;;  %v3041_v55 = vshrl.u32 %v2824_v7, 16  ;;  %v3050_v49 = vshll.u32 %v2825_v46, 16 }
  0xd7   : > { %v7655_v22 = vpop.f32.mrf.mxu1  ;;  %v3033_v50 = vor.u32 %v3032_v19, %v7692_v1  ;;  %v3044_v19 = vshll.u32 %v2824_v7, 16 }
  0xd8   : > { %3393 = vmatmul.bf16.gmra.mxu0 %v3285_v3  ;;  %v3019_v3 = vrot.slane %v3017_v53, 4  ;;  %v1632_v53 = vshrl.u32 %v7696_v61, 16  ;;  %v3043_v7 = vrot.slane %v3041_v55, 4 }
  0xd9   : > { %v7663_v16 = vpop.f32.mrf.mxu2  ;;  %v3034_v8 = vrot.slane %v3033_v50, 4  ;;  %v2180_v50 = vrot.slane %v7668_v37, 5 }
  0xda   : > { %v3023_v5 = vor.u32 %v3022_v13, %v3019_v3  ;;  %v1624_v3 = vrot.slane %v1622_v43, 5  ;;  %v7713_v13 = vrot.slane %v1628_v63, 5  ;;  %v1634_v29 = vrot.slane %v1632_v53, 4 }
  0xdb   : > { %v7670_v25 = vpop.f32.mrf.mxu3 }
  0xdc   : > { %8998 = vst [vmem:[#allocation4_spill] sm:$0xff] %v7670_v25  ;;  %v3024_v15 = vrot.slane %v3023_v5, 4  ;;  %v6036_v5 = vrot.slane %v2066_v21, 9  ;;  %v1635_v63 = vor.u32 %v1634_v29, %v7713_v13  ;;  %v6538_v21 = vld [vmem:[%s8982_s5 + $0x1d8] sm:$0xff] }
  0xdd   : > { %v7678_v58 = vpop.f32.mrf.mxu0  ;;  %4784 = vmatpush.bf16.msra.mxu3 %v6538_v21  ;;  %v2067_v21 = vld [vmem:[#allocation2 + $0x60] sm:$0xe] }
  0xde   : > { %2399 = vmatmul.bf16.gmra.mxu2 %v2291_v14  ;;  %v2266_v14 = vunpack.c.l.b16 %v2171_v23  ;;  %v1841_v23 = vunpack.c.l.b16 %v1617_v17  ;;  %v2179_v17 = vrot.slane %v2177_v26, 4  ;;  %v3029_v45 = vsel %vm7408_vm10, %v3024_v15, %v7692_v1  ;;  %v6530_v1 = vld [vmem:[%s8982_s5 + $0x198] sm:$0xff] }
  0xdf   : > { %v7682_v20 = vpop.f32.mrf.mxu1  ;;  %4103 = vmatpush.bf16.msra.mxu2 %v6530_v1  ;;  %v6037_v25 = vrot.slane %v2067_v21, 9 }
  0xe0   : > { %2712 = vmatmul.bf16.gmra.mxu3 %v6476_v51  ;;  %v1619_v51 = vshrl.u32 %v1399_v18, 16  ;;  %v2292_v6 = vpack.c.b16 %v2267_v31, %v2266_v14  ;;  %v3054_v18 = vshrl.u32 %v2825_v46, 16  ;;  %v788_v14 = vrot.slane %v7212_v62, 4  ;;  %v6477_v31 = vld [vmem:[#allocation2 + $0x54] sm:$0xff] }
  0xe1   : > { %v7690_v24 = vpop.f32.mrf.mxu2  ;;  %v1638_v62 = vshll.u32 %v7717_v33, 16  ;;  %v7732_v46 = vrot.slane %v3050_v49, 5  ;;  %v1402_v49 = vld [vmem:[#allocation2 + $0x6c] sm:$0xf] }
  0xe2   : > { %8999 = vst [vmem:[#allocation5_spill] sm:$0xff] %v7690_v24  ;;  %1976 = vmatmul.bf16.gmra.mxu1 %v1864_v32  ;;  %v1621_v12 = vrot.slane %v1619_v51, 4  ;;  %v3039_v51 = vsel %vm7408_vm10, %v3034_v8, %v3038_v2  ;;  %v3056_v37 = vrot.slane %v3054_v18, 4  ;;  %v2178_v2 = vsel %vm7430_vm13, %v6036_v5, %v2177_v26  ;;  %v7748_v18 = vld [vmem:[#allocation2 + $0x70] sm:$0xf]  ;;  %v6506_v5 = vld [vmem:[%s8982_s5 + $0x158] sm:$0xff] }
  0xe3   : > { %v7694_v35 = vpop.f32.mrf.mxu3  ;;  %v3263_v29 = vunpack.c.l.b16 %v3039_v51  ;;  %v1656_v51 = vshrl.u32 %v7748_v18, 16  ;;  %3789 = vmatpush.bf16.msra.mxu1 %v6506_v5  ;;  %v7775_v5 = vld [vmem:[#allocation2 + $0x74] sm:$0x1]  ;;  %v6480_v24 = vld [vmem:[#allocation2 + $0x78] sm:$0xff] }
  0xe4   : > { %9000 = vst [vmem:[#allocation6_spill] sm:$0xff] %v7694_v35  ;;  %v1625_v43 = vor.u32 %v1624_v3, %v1621_v12  ;;  %v2181_v12 = vsel %vm7430_vm13, %v2179_v17, %v2180_v50  ;;  %v3262_v3 = vunpack.c.l.b16 %v3029_v45  ;;  %v1643_v17 = vshrl.u32 %v1402_v49, 16 }
  0xe5   : > { %v7698_v56 = vpop.f32.mrf.mxu0  ;;  %v1646_v50 = vshll.u32 %v1402_v49, 16  ;;  %v1652_v45 = vshll.u32 %v7748_v18, 16 }
  0xe6   : > { %v1626_v55 = vrot.slane %v1625_v43, 4  ;;  %v2268_v43 = vunpack.c.l.b16 %v2178_v2 }
  0xe7   : > { %v7708_v28 = vpop.f32.mrf.mxu1  ;;  %v7771_v49 = vrot.slane %v1652_v45, 5  ;;  %v6478_v45 = vld [vmem:[#allocation2 + $0x60] sm:$0xff] }
  0xe8   : > { %3398 = vmatmul.bf16.gmra.mxu0 %v3286_v27  ;;  %v1865_v27 = vpack.c.b16 %v1841_v23, %v1840_v39  ;;  %v3046_v39 = vrot.slane %v3044_v19, 5  ;;  %v1012_v23 = vld [vmem:[#allocation2 + $0x80] sm:$0x1]  ;;  %v1640_v19 = vrot.slane %v1638_v62, 5  ;;  %v3287_v62 = vpack.c.b16 %v3263_v29, %v3262_v3 }
  0xe9   : > { %v7711_v32 = vpop.f32.mrf.mxu2  ;;  %v1013_v15 = vsel %vm7332_vm7, %v788_v14, %v1012_v23  ;;  %v1636_v14 = vrot.slane %v1635_v63, 4  ;;  %v2269_v63 = vunpack.c.l.b16 %v2181_v12  ;;  %v1645_v3 = vrot.slane %v1643_v17, 4 }
  0xea   : > { %9001 = vst [vmem:[#allocation7_spill] sm:$0xff] %v7711_v32  ;;  %v3047_v23 = vor.u32 %v3046_v39, %v3043_v7  ;;  %v1631_v7 = vsel %vm7408_vm10, %v1626_v55, %v7713_v13  ;;  %v2184_v39 = vrot.slane %v7696_v61, 5  ;;  %v1648_v29 = vrot.slane %v1646_v50, 5  ;;  %v2827_v55 = vld [vmem:[#allocation2 + $0x78] sm:$0xf] }
  0xeb   : > { %v7715_v10 = vpop.f32.mrf.mxu3  ;;  %1014 = vst [vmem:[#allocation2 + $0x80] sm:$0x1] %v1013_v15  ;;  %v1658_v13 = vrot.slane %v1656_v51, 4  ;;  %v3065_v17 = vshrl.u32 %v2827_v55, 16  ;;  %v7786_v50 = vld [vmem:[%s8983_s6] ss:$0 sm:$0xff] }
  0xec   : > { %9002 = vst [vmem:[#allocation8_spill] sm:$0xff] %v7715_v10  ;;  %v3057_v10 = vor.u32 %v3056_v37, %v7732_v46  ;;  %v3048_v15 = vrot.slane %v3047_v23, 4  ;;  %v2187_v23 = vrot.slane %v7717_v33, 5  ;;  %v805_v33 = vrot.slane %v7346_v38, 4  ;;  %v1408_v32 = vld [vmem:[#allocation2 + $0x84] sm:$0xf] }
  0xed   : > { %v7720_v48 = vpop.f32.mrf.mxu0  ;;  %v1343_v21 = vadd.f32 %v7786_v50, %v7591_v0  ;;  %v3067_v38 = vrot.slane %v3065_v17, 4  ;;  %v7811_v17 = vld [vmem:[#allocation2 + $0x7c] sm:$0xf] }
  0xee   : > { %2404 = vmatmul.bf16.gmra.mxu2 %v2292_v6  ;;  %v2826_v6 = vld [vmem:[#allocation2 + $0x74] sm:$0x1]  ;;  %v3058_v2 = vrot.slane %v3057_v10, 4  ;;  %v2186_v10 = vrot.slane %v2184_v39, 4 }
  0xef   : > { %v7730_v53 = vpop.f32.mrf.mxu1  ;;  %v3060_v26 = vshll.u32 %v2826_v6, 16  ;;  %v1641_v6 = vsel %vm7408_vm10, %v1636_v14, %v1640_v19  ;;  %v2828_v19 = vld [vmem:[#allocation2 + $0x7c] sm:$0xf] }
  0xf0   : > { %2717 = vmatmul.bf16.gmra.mxu3 %v6477_v31  ;;  %v1843_v35 = vunpack.c.l.b16 %v1641_v6  ;;  %v3074_v6 = vshll.u32 %v2828_v19, 16 }
  0xf1   : > { %v7742_v8 = vpop.f32.mrf.mxu2  ;;  %v3062_v12 = vrot.slane %v3060_v26, 5  ;;  %v3053_v26 = vsel %vm7408_vm10, %v3048_v15, %v7732_v46  ;;  %v3078_v46 = vshrl.u32 %v2828_v19, 16 }
  0xf2   : > { %9003 = vst [vmem:[#allocation9_spill] sm:$0xff] %v7742_v8  ;;  %1981 = vmatmul.bf16.gmra.mxu1 %v1865_v27  ;;  %v6546_v27 = vld [vmem:[%s8982_s5 + $0x218] sm:$0xff] }
  0xf3   : > { %v7750_v31 = vpop.f32.mrf.mxu3  ;;  %5209 = vmatpush.bf16.msra.mxu0 %v6546_v27  ;;  %v2293_v27 = vpack.c.b16 %v2269_v63, %v2268_v43  ;;  %v3063_v51 = vsel %vm7408_vm10, %v3058_v2, %v3062_v12  ;;  %v1649_v43 = vor.u32 %v1648_v29, %v1645_v3  ;;  %v1659_v63 = vor.u32 %v1658_v13, %v7771_v49  ;;  %v1019_v13 = vld [vmem:[#allocation2 + $0x8c] sm:$0x1] }
  0xf4   : > { %9004 = vst [vmem:[#allocation10_spill] sm:$0xff] %v7750_v31  ;;  %v1842_v31 = vunpack.c.l.b16 %v1631_v7  ;;  %v3068_v7 = vshll.u32 %v2827_v55, 16  ;;  %v2188_v12 = vsel %vm7430_vm13, %v2186_v10, %v2187_v23  ;;  %v3264_v3 = vunpack.c.l.b16 %v3053_v26  ;;  %v2829_v10 = vld [vmem:[#allocation2 + $0x80] sm:$0x1]  ;;  %v1405_v26 = vld [vmem:[#allocation2 + $0x78] sm:$0xf] }
  0xf5   : > { %v7765_v37 = vpop.f32.mrf.mxu0  ;;  %v3265_v29 = vunpack.c.l.b16 %v3063_v51  ;;  %v1650_v19 = vrot.slane %v1649_v43, 4  ;;  %v1660_v0 = vrot.slane %v1659_v63, 4  ;;  %v2271_v51 = vunpack.c.l.b16 %v2188_v12 }
  0xf6   : > { %v1866_v15 = vpack.c.b16 %v1843_v35, %v1842_v31  ;;  %v3070_v31 = vrot.slane %v3068_v7, 5 }
  0xf7   : > { %v7767_v1 = vpop.f32.mrf.mxu1  ;;  %v3288_v43 = vpack.c.b16 %v3265_v29, %v3264_v3  ;;  %v1655_v63 = vsel %vm7408_vm10, %v1650_v19, %v7771_v49  ;;  %v2191_v49 = vrot.slane %v7748_v18, 5  ;;  %v1345_v18 = vadd.f32 %v7786_v50, %v7651_v30 }
  0xf8   : > { %3403 = vmatmul.bf16.gmra.mxu0 %v3287_v62  ;;  %v1662_v62 = vshll.u32 %v7775_v5, 16  ;;  %v3071_v7 = vor.u32 %v3070_v31, %v3067_v38  ;;  %v1844_v3 = vunpack.c.l.b16 %v1655_v63  ;;  %v6479_v63 = vld [vmem:[#allocation2 + $0x6c] sm:$0xff] }
  0xf9   : > { %v7773_v61 = vpop.f32.mrf.mxu2 }
  0xfa   : > { %9005 = vst [vmem:[#allocation11_spill] sm:$0xff] %v7773_v61  ;;  %v1020_v61 = vsel %vm7332_vm7, %v805_v33, %v1019_v13  ;;  %v2068_v13 = vld [vmem:[#allocation2 + $0x6c] sm:$0xe]  ;;  %v3072_v19 = vrot.slane %v3071_v7, 4  ;;  %v2193_v7 = vrot.slane %v2191_v49, 4 }
  0xfb   : > { %v7777_v14 = vpop.f32.mrf.mxu3  ;;  %1021 = vst [vmem:[#allocation2 + $0x8c] sm:$0x1] %v1020_v61  ;;  %v1680_v61 = vshrl.u32 %v7811_v17, 16 }
  0xfc   : > { %9006 = vst [vmem:[#allocation12_spill] sm:$0xff] %v7777_v14  ;;  %v2185_v14 = vsel %vm7430_vm13, %v6037_v25, %v2184_v39  ;;  %v7805_v25 = vrot.slane %v3074_v6, 5  ;;  %v3080_v39 = vrot.slane %v3078_v46, 4  ;;  %v3084_v6 = vshll.u32 %v2829_v10, 16 }
  0xfd   : > { %v7797_v60 = vpop.f32.mrf.mxu0  ;;  %v1667_v46 = vshrl.u32 %v1405_v26, 16 }
  0xfe   : > { %2409 = vmatmul.bf16.gmra.mxu2 %v2293_v27  ;;  %v1664_v27 = vrot.slane %v1662_v62, 5  ;;  %v3081_v33 = vor.u32 %v3080_v39, %v7805_v25 }
  0xff   : > { %v1947_v2 = vpop.f32.mrf.mxu1  ;;  %v1669_v31 = vrot.slane %v1667_v46, 4  ;;  %v3077_v46 = vsel %vm7408_vm10, %v3072_v19, %v7805_v25  ;;  %v6529_v19 = vld [vmem:[%s8982_s5 + $0x190] sm:$0xff] }
 0x100   : > { %2722 = vmatmul.bf16.gmra.mxu3 %v6478_v45  ;;  %v7801_v55 = vadd.f32 %v1947_v2, %v1343_v21  ;;  %v2270_v45 = vunpack.c.l.b16 %v2185_v14  ;;  %v1665_v62 = vsel %vm7408_vm10, %v1660_v0, %v1664_v27  ;;  %v1670_v21 = vshll.u32 %v1405_v26, 16  ;;  %4104 = vmatpush.bf16.msra.mxu2 %v6529_v19 }
 0x101   : > { %v7803_v35 = vpop.f32.mrf.mxu2  ;;  %v1845_v38 = vunpack.c.l.b16 %v1665_v62  ;;  %v3082_v0 = vrot.slane %v3081_v33, 4  ;;  %v3086_v27 = vrot.slane %v3084_v6, 5  ;;  %v1682_v26 = vrot.slane %v1680_v61, 4  ;;  %v2831_v33 = vld [vmem:[#allocation2 + $0x88] sm:$0xf] }
 0x102   : > { %9007 = vst [vmem:[#allocation13_spill] sm:$0xff] %v7803_v35  ;;  %1986 = vmatmul.bf16.gmra.mxu1 %v1866_v15  ;;  %v1676_v15 = vshll.u32 %v7811_v17, 16  ;;  %v2294_v12 = vpack.c.b16 %v2271_v51, %v2270_v45  ;;  %v1672_v39 = vrot.slane %v1670_v21, 5  ;;  %v822_v35 = vrot.slane %v6991_v59, 4  ;;  %v7833_v51 = vld [vmem:[#allocation2 + $0x80] sm:$0x1] }
 0x103   : > { %v7809_v23 = vpop.f32.mrf.mxu3  ;;  %v6038_v62 = vrot.slane %v2068_v13, 9  ;;  %v1867_v6 = vpack.c.b16 %v1845_v38, %v1844_v3  ;;  %v1686_v13 = vshll.u32 %v7833_v51, 16  ;;  %v3102_v3 = vshrl.u32 %v2831_v33, 16  ;;  %v1026_v38 = vld [vmem:[#allocation2 + $0x98] sm:$0x1] }
 0x104   : > { %9008 = vst [vmem:[#allocation14_spill] sm:$0xff] %v7809_v23  ;;  %v7828_v10 = vrot.slane %v1676_v15, 5  ;;  %v2830_v23 = vld [vmem:[#allocation2 + $0x84] sm:$0xf]  ;;  %v3087_v15 = vsel %vm7408_vm10, %v3082_v0, %v3086_v27  ;;  %v1673_v61 = vor.u32 %v1672_v39, %v1669_v31  ;;  %v6537_v0 = vld [vmem:[%s8982_s5 + $0x1d0] sm:$0xff] }
 0x105   : > { %v7821_v14 = vpop.f32.mrf.mxu0  ;;  %v3089_v21 = vshrl.u32 %v2830_v23, 16  ;;  %v3092_v59 = vshll.u32 %v2830_v23, 16  ;;  %v2192_v25 = vsel %vm7430_vm13, %v6038_v62, %v2191_v49  ;;  %v3267_v31 = vunpack.c.l.b16 %v3087_v15  ;;  %4785 = vmatpush.bf16.msra.mxu3 %v6537_v0 }
 0x106   : > { %v1683_v30 = vor.u32 %v1682_v26, %v7828_v10  ;;  %v2272_v15 = vunpack.c.l.b16 %v2192_v25 }
 0x107   : > { %v7823_v2 = vpop.f32.mrf.mxu1  ;;  %v3091_v39 = vrot.slane %v3089_v21, 4  ;;  %v3094_v26 = vrot.slane %v3092_v59, 5  ;;  %v1344_v21 = vadd.f32 %v7786_v50, %v7607_v54  ;;  %v7874_v59 = vld [vmem:[#allocation2 + $0x88] sm:$0xf] }
 0x108   : > { %3408 = vmatmul.bf16.gmra.mxu0 %v3288_v43  ;;  %v2194_v43 = vrot.slane %v7775_v5, 5  ;;  %v1684_v62 = vrot.slane %v1683_v30, 4 }
 0x109   : > { %v7826_v29 = vpop.f32.mrf.mxu2 }
 0x10a   : > { %9009 = vst [vmem:[#allocation15_spill] sm:$0xff] %v7826_v29  ;;  %v3098_v29 = vshll.u32 %v2831_v33, 16  ;;  %v2195_v23 = vsel %vm7430_vm13, %v2193_v7, %v2194_v43  ;;  %v1688_v7 = vrot.slane %v1686_v13, 5  ;;  %v2832_v43 = vld [vmem:[#allocation2 + $0x8c] sm:$0x1]  ;;  %v3095_v13 = vor.u32 %v3094_v26, %v3091_v39 }
 0x10b   : > { %v7831_v45 = vpop.f32.mrf.mxu3  ;;  %v3108_v25 = vshll.u32 %v2832_v43, 16  ;;  %v2198_v26 = vrot.slane %v7811_v17, 5 }
 0x10c   : > { %9010 = vst [vmem:[#allocation16_spill] sm:$0xff] %v7831_v45 }
 0x10d   : > { %v7845_v45 = vpop.f32.mrf.mxu0 }
 0x10e   : > { %2414 = vmatmul.bf16.gmra.mxu2 %v2294_v12  ;;  %v3266_v12 = vunpack.c.l.b16 %v3077_v46  ;;  %v7862_v46 = vrot.slane %v3098_v29, 5  ;;  %v6545_v29 = vld [vmem:[%s8982_s5 + $0x210] sm:$0xff] }
 0x10f   : > { %v1952_v5 = vpop.f32.mrf.mxu1  ;;  %5210 = vmatpush.bf16.msra.mxu0 %v6545_v29 }
 0x110   : > { %2727 = vmatmul.bf16.gmra.mxu3 %v6479_v63  ;;  %v7847_v8 = vadd.f32 %v1952_v5, %v1345_v18  ;;  %v1027_v18 = vsel %vm7332_vm7, %v822_v35, %v1026_v38  ;;  %v1674_v63 = vrot.slane %v1673_v61, 4  ;;  %v3104_v5 = vrot.slane %v3102_v3, 4 }
 0x111   : > { %v2375_v27 = vpop.f32.mrf.mxu2  ;;  %1028 = vst [vmem:[#allocation2 + $0x98] sm:$0x1] %v1027_v18  ;;  %v1346_v35 = vadd.f32 %v7786_v50, %v7678_v58  ;;  %v2273_v61 = vunpack.c.l.b16 %v2195_v23  ;;  %v3289_v30 = vpack.c.b16 %v3267_v31, %v3266_v12  ;;  %v1689_v58 = vsel %vm7408_vm10, %v1684_v62, %v1688_v7  ;;  %v2069_v62 = vld [vmem:[#allocation2 + $0x78] sm:$0xe] }
 0x112   : > { %v2455_v49 = vadd.f32 %v2375_v27, %v7801_v55  ;;  %1991 = vmatmul.bf16.gmra.mxu1 %v1867_v6  ;;  %v6505_v6 = vld [vmem:[%s8982_s5 + $0x150] sm:$0xff]  ;;  %v1679_v54 = vsel %vm7408_vm10, %v1674_v63, %v7828_v10  ;;  %v1691_v3 = vshrl.u32 %v1408_v32, 16  ;;  %v1694_v38 = vshll.u32 %v1408_v32, 16 }
 0x113   : > { %v2688_v33 = vpop.f32.mrf.mxu3  ;;  %3790 = vmatpush.bf16.msra.mxu1 %v6505_v6  ;;  %v3105_v27 = vor.u32 %v3104_v5, %v7862_v46  ;;  %v1700_v23 = vshll.u32 %v7874_v59, 16  ;;  %v1704_v12 = vshrl.u32 %v7874_v59, 16  ;;  %v839_v31 = vrot.slane %v7084_v4, 4  ;;  %v2833_v4 = vld [vmem:[#allocation2 + $0x90] sm:$0xf] }
 0x114   : > { %v2768_v55 = vadd.f32 %v2688_v33, %v2455_v49  ;;  %v2028_v10 = vadd.f32 %v7823_v2, %v1344_v21  ;;  %v1347_v32 = vadd.f32 %v7786_v50, %v7698_v56  ;;  %v1846_v49 = vunpack.c.l.b16 %v1679_v54 }
 0x115   : > { %v7881_v19 = vpop.f32.mrf.mxu0  ;;  %v1847_v63 = vunpack.c.l.b16 %v1689_v58  ;;  %v3096_v7 = vrot.slane %v3095_v13, 4  ;;  %v2295_v33 = vpack.c.b16 %v2273_v61, %v2272_v15  ;;  %v1693_v5 = vrot.slane %v1691_v3, 4 }
 0x116   : > { %v1696_v6 = vrot.slane %v1694_v38, 5  ;;  %v3106_v2 = vrot.slane %v3105_v27, 4  ;;  %v3110_v21 = vrot.slane %v3108_v25, 5  ;;  %v7895_v17 = vrot.slane %v1700_v23, 5 }
 0x117   : > { %v1954_v0 = vpop.f32.mrf.mxu1  ;;  %v6039_v54 = vrot.slane %v2069_v62, 9  ;;  %v2200_v58 = vrot.slane %v2198_v26, 4  ;;  %v2201_v13 = vrot.slane %v7833_v51, 5  ;;  %v1868_v15 = vpack.c.b16 %v1847_v63, %v1846_v49  ;;  %v1033_v62 = vld [vmem:[#allocation2 + $0xa4] sm:$0x1] }
 0x118   : > { %v7888_v39 = vadd.f32 %v1954_v0, %v1346_v35  ;;  %3413 = vmatmul.bf16.gmra.mxu0 %v3289_v30  ;;  %v7893_v35 = vld [vmem:[#allocation2 + $0x8c] sm:$0x1]  ;;  %v1706_v0 = vrot.slane %v1704_v12, 4  ;;  %v3101_v61 = vsel %vm7408_vm10, %v3096_v7, %v7862_v46  ;;  %v3113_v30 = vshrl.u32 %v2833_v4, 16 }
 0x119   : > { %v2377_v18 = vpop.f32.mrf.mxu2  ;;  %v3116_v3 = vshll.u32 %v2833_v4, 16  ;;  %v1697_v38 = vor.u32 %v1696_v6, %v1693_v5  ;;  %v1710_v27 = vshll.u32 %v7893_v35, 16  ;;  %v7903_v25 = vadd.f32 %v7821_v14, %v2768_v55 }
 0x11a   : > { %v2456_v43 = vadd.f32 %v2377_v18, %v2028_v10  ;;  %v2834_v10 = vld [vmem:[#allocation2 + $0x94] sm:$0xf]  ;;  %v3111_v18 = vsel %vm7408_vm10, %v3106_v2, %v3110_v21  ;;  %v1707_v46 = vor.u32 %v1706_v0, %v7895_v17  ;;  %v2199_v14 = vsel %vm7430_vm13, %v6039_v54, %v2198_v26  ;;  %v1411_v2 = vld [vmem:[#allocation2 + $0x90] sm:$0xf] }
 0x11b   : > { %v2690_v29 = vpop.f32.mrf.mxu3  ;;  %v3122_v49 = vshll.u32 %v2834_v10, 16  ;;  %v3126_v63 = vshrl.u32 %v2834_v10, 16  ;;  %v3118_v5 = vrot.slane %v3116_v3, 5  ;;  %v1034_v6 = vsel %vm7332_vm7, %v839_v31, %v1033_v62  ;;  %v7922_v21 = vld [vmem:[#allocation2 + $0x94] sm:$0xf] }
 0x11c   : > { %v2769_v56 = vadd.f32 %v2690_v29, %v2456_v43  ;;  %v3268_v43 = vunpack.c.l.b16 %v3101_v61  ;;  %v3269_v29 = vunpack.c.l.b16 %v3111_v18  ;;  %v1708_v0 = vrot.slane %v1707_v46, 4  ;;  %1035 = vst [vmem:[#allocation2 + $0xa4] sm:$0x1] %v1034_v6  ;;  %v2835_v10 = vld [vmem:[#allocation2 + $0x98] sm:$0x1] }
 0x11d   : > { %v7908_v12 = vpop.f32.mrf.mxu0  ;;  %v3128_v54 = vrot.slane %v3126_v63, 4  ;;  %v1718_v61 = vshll.u32 %v1411_v2, 16  ;;  %v1724_v31 = vshll.u32 %v7922_v21, 16  ;;  %v2070_v46 = vld [vmem:[#allocation2 + $0x84] sm:$0xe] }
 0x11e   : > { %2419 = vmatmul.bf16.gmra.mxu2 %v2295_v33  ;;  %v7906_v23 = vadd.f32 %v7845_v45, %v2769_v56  ;;  %v2202_v45 = vsel %vm7430_vm13, %v2200_v58, %v2201_v13  ;;  %v3115_v33 = vrot.slane %v3113_v30, 4  ;;  %v7924_v56 = vrot.slane %v3122_v49, 5 }
 0x11f   : > { %v1957_v51 = vpop.f32.mrf.mxu1  ;;  %v1715_v58 = vshrl.u32 %v1411_v2, 16  ;;  %v2274_v30 = vunpack.c.l.b16 %v2199_v14  ;;  %v2275_v3 = vunpack.c.l.b16 %v2202_v45  ;;  %v3132_v45 = vshll.u32 %v2835_v10, 16  ;;  %v2837_v10 = vld [vmem:[#allocation2 + $0xa0] sm:$0xf] }
 0x120   : > { %2732 = vmatmul.bf16.gmra.mxu3 %v6480_v24  ;;  %v7913_v7 = vadd.f32 %v1957_v51, %v1347_v32  ;;  %v1698_v24 = vrot.slane %v1697_v38, 4  ;;  %v1712_v32 = vrot.slane %v1710_v27, 5  ;;  %v2205_v38 = vrot.slane %v7874_v59, 5 }
 0x121   : > { %v2380_v55 = vpop.f32.mrf.mxu2  ;;  %v1348_v27 = vadd.f32 %v7786_v50, %v7720_v48  ;;  %v3290_v51 = vpack.c.b16 %v3269_v29, %v3268_v43  ;;  %v3119_v49 = vor.u32 %v3118_v5, %v3115_v33  ;;  %v3129_v14 = vor.u32 %v3128_v54, %v7924_v56  ;;  %v2836_v29 = vld [vmem:[#allocation2 + $0x9c] sm:$0xf] }
 0x122   : > { %v2457_v4 = vadd.f32 %v2380_v55, %v7847_v8  ;;  %1996 = vmatmul.bf16.gmra.mxu1 %v1868_v15  ;;  %v1728_v8 = vshrl.u32 %v7922_v21, 16  ;;  %v1703_v18 = vsel %vm7408_vm10, %v1698_v24, %v7895_v17  ;;  %v1713_v55 = vsel %vm7408_vm10, %v1708_v0, %v1712_v32 }
 0x123   : > { %v2693_v26 = vpop.f32.mrf.mxu3  ;;  %v1717_v59 = vrot.slane %v1715_v58, 4  ;;  %v1720_v48 = vrot.slane %v1718_v61, 5  ;;  %v7942_v43 = vrot.slane %v1724_v31, 5  ;;  %v2296_v24 = vpack.c.b16 %v2275_v3, %v2274_v30  ;;  %v6481_v30 = vld [vmem:[#allocation2 + $0x84] sm:$0xff] }
 0x124   : > { %v2770_v13 = vadd.f32 %v2693_v26, %v2457_v4  ;;  %v1730_v4 = vrot.slane %v1728_v8, 4  ;;  %v6040_v33 = vrot.slane %v2070_v46, 9  ;;  %v2207_v5 = vrot.slane %v2205_v38, 4  ;;  %v7945_v26 = vld [vmem:[#allocation2 + $0x98] sm:$0x1] }
 0x125   : > { %v7935_v63 = vpop.f32.mrf.mxu0  ;;  %v2208_v2 = vrot.slane %v7893_v35, 5  ;;  %v1848_v0 = vunpack.c.l.b16 %v1703_v18  ;;  %v1849_v54 = vunpack.c.l.b16 %v1713_v55  ;;  %v3120_v58 = vrot.slane %v3119_v49, 4 }
 0x126   : > { %v3130_v31 = vrot.slane %v3129_v14, 4  ;;  %v3137_v8 = vshrl.u32 %v2836_v29, 16  ;;  %v1721_v3 = vor.u32 %v1720_v48, %v1717_v59  ;;  %v1731_v46 = vor.u32 %v1730_v4, %v7942_v43 }
 0x127   : > { %v1959_v62 = vpop.f32.mrf.mxu1  ;;  %v1734_v35 = vshll.u32 %v7945_v26, 16  ;;  %v3146_v18 = vshll.u32 %v2837_v10, 16  ;;  %v3150_v49 = vshrl.u32 %v2837_v10, 16  ;;  %v1869_v55 = vpack.c.b16 %v1849_v54, %v1848_v0 }
 0x128   : > { %v7940_v6 = vadd.f32 %v1959_v62, %v1348_v27  ;;  %3418 = vmatmul.bf16.gmra.mxu0 %v3290_v51  ;;  %v3134_v27 = vrot.slane %v3132_v45, 5  ;;  %v3140_v62 = vshll.u32 %v2836_v29, 16  ;;  %v2206_v51 = vsel %vm7430_vm13, %v6040_v33, %v2205_v38 }
 0x129   : > { %v2382_v17 = vpop.f32.mrf.mxu2  ;;  %v2209_v14 = vsel %vm7430_vm13, %v2207_v5, %v2208_v2  ;;  %v7957_v45 = vadd.f32 %v7881_v19, %v2770_v13  ;;  %v3139_v29 = vrot.slane %v3137_v8, 4  ;;  %v1722_v19 = vrot.slane %v1721_v3, 4 }
 0x12a   : > { %v2458_v32 = vadd.f32 %v2382_v17, %v7888_v39  ;;  %v1349_v39 = vadd.f32 %v7786_v50, %v7765_v37  ;;  %v3125_v37 = vsel %vm7408_vm10, %v3120_v58, %v7924_v56  ;;  %v3135_v38 = vsel %vm7408_vm10, %v3130_v31, %v3134_v27  ;;  %v6536_v56 = vld [vmem:[%s8982_s5 + $0x1c8] sm:$0xff] }
 0x12b   : > { %v2695_v61 = vpop.f32.mrf.mxu3  ;;  %v3142_v17 = vrot.slane %v3140_v62, 5  ;;  %v1732_v13 = vrot.slane %v1731_v46, 4  ;;  %v2276_v2 = vunpack.c.l.b16 %v2206_v51  ;;  %v7977_v0 = vrot.slane %v3146_v18, 5  ;;  %v1414_v62 = vld [vmem:[#allocation2 + $0x9c] sm:$0xf]  ;;  %4786 = vmatpush.bf16.msra.mxu3 %v6536_v56 }
 0x12c   : > { %v2771_v15 = vadd.f32 %v2695_v61, %v2458_v32  ;;  %v2838_v32 = vld [vmem:[#allocation2 + $0xa4] sm:$0x1]  ;;  %v3152_v54 = vrot.slane %v3150_v49, 4  ;;  %v9011_v58 = vrot.slane %v7251_v41, 4  ;;  %v2277_v31 = vunpack.c.l.b16 %v2209_v14  ;;  %v2071_v18 = vld [vmem:[#allocation2 + $0x90] sm:$0xe] }
 0x12d   : > { %v7962_v48 = vpop.f32.mrf.mxu0  ;;  %v3270_v27 = vunpack.c.l.b16 %v3125_v37  ;;  %v3271_v8 = vunpack.c.l.b16 %v3135_v38  ;;  %v873_v3 = vrot.slane %v7374_v57, 4  ;;  %v3156_v49 = vshll.u32 %v2838_v32, 16  ;;  %v2839_v32 = vld [vmem:[#allocation2 + $0xa8] sm:$0xf] }
 0x12e   : > { %2424 = vmatmul.bf16.gmra.mxu2 %v2296_v24  ;;  %v7960_v59 = vadd.f32 %v7908_v12, %v2771_v15  ;;  %v1040_v24 = vld [vmem:[#allocation2 + $0xb0] sm:$0x1]  ;;  %v1736_v12 = vrot.slane %v1734_v35, 5  ;;  %v6528_v15 = vld [vmem:[%s8982_s5 + $0x188] sm:$0xff]  ;;  %v2212_v35 = vrot.slane %v7922_v21, 5  ;;  %v3153_v14 = vor.u32 %v3152_v54, %v7977_v0 }
 0x12f   : > { %v1962_v4 = vpop.f32.mrf.mxu1  ;;  %v1041_v10 = vsel %vm7332_vm7, %v9011_v58, %v1040_v24  ;;  %4105 = vmatpush.bf16.msra.mxu2 %v6528_v15  ;;  %v6544_v21 = vld [vmem:[%s8982_s5 + $0x208] sm:$0xff]  ;;  %v1742_v37 = vshll.u32 %v1414_v62, 16  ;;  %v6041_v15 = vrot.slane %v2071_v18, 9 }
 0x130   : > { %2737 = vmatmul.bf16.gmra.mxu3 %v6481_v30  ;;  %v7969_v33 = vadd.f32 %v1962_v4, %v1349_v39  ;;  %v7984_v30 = vld [vmem:[#allocation2 + $0xa0] sm:$0xf]  ;;  %v3143_v39 = vor.u32 %v3142_v17, %v3139_v29  ;;  %1042 = vst [vmem:[#allocation2 + $0xb0] sm:$0x1] %v1041_v10  ;;  %v1737_v51 = vsel %vm7408_vm10, %v1732_v13, %v1736_v12  ;;  %v1739_v4 = vshrl.u32 %v1414_v62, 16 }
 0x131   : > { %v2385_v5 = vpop.f32.mrf.mxu2  ;;  %v1748_v38 = vshll.u32 %v7984_v30, 16  ;;  %v2297_v29 = vpack.c.b16 %v2277_v31, %v2276_v2  ;;  %v3291_v17 = vpack.c.b16 %v3271_v8, %v3270_v27  ;;  %5211 = vmatpush.bf16.msra.mxu0 %v6544_v21  ;;  %v1752_v24 = vshrl.u32 %v7984_v30, 16  ;;  %v2840_v2 = vld [vmem:[#allocation2 + $0xac] sm:$0xf] }
 0x132   : > { %v2459_v61 = vadd.f32 %v2385_v5, %v7913_v7  ;;  %2001 = vmatmul.bf16.gmra.mxu1 %v1869_v55  ;;  %v1727_v7 = vsel %vm7408_vm10, %v1722_v19, %v7942_v43  ;;  %v6504_v55 = vld [vmem:[%s8982_s5 + $0x148] sm:$0xff]  ;;  %v1350_v43 = vadd.f32 %v7786_v50, %v7797_v60  ;;  %v2214_v56 = vrot.slane %v2212_v35, 4 }
 0x133   : > { %v2698_v46 = vpop.f32.mrf.mxu3  ;;  %3791 = vmatpush.bf16.msra.mxu1 %v6504_v55  ;;  %v1850_v12 = vunpack.c.l.b16 %v1727_v7  ;;  %v2215_v5 = vrot.slane %v7945_v26, 5  ;;  %v1851_v58 = vunpack.c.l.b16 %v1737_v51  ;;  %v3144_v10 = vrot.slane %v3143_v39, 4  ;;  %v8014_v7 = vld [vmem:[#allocation2 + $0xa4] sm:$0x1] }
 0x134   : > { %v7988_v41 = vadd.f32 %v2698_v46, %v2459_v61  ;;  %v3158_v60 = vrot.slane %v3156_v49, 5  ;;  %v3154_v31 = vrot.slane %v3153_v14, 4  ;;  %v1741_v27 = vrot.slane %v1739_v4, 4 }
 0x135   : > { %v8006_v19 = vpop.f32.mrf.mxu0  ;;  %v1744_v8 = vrot.slane %v1742_v37, 5  ;;  %v8011_v62 = vrot.slane %v1748_v38, 5  ;;  %v1754_v18 = vrot.slane %v1752_v24, 4  ;;  %v3161_v26 = vshrl.u32 %v2839_v32, 16  ;;  %v6482_v37 = vld [vmem:[#allocation2 + $0x90] sm:$0xff] }
 0x136   : > { %v3164_v55 = vshll.u32 %v2839_v32, 16  ;;  %v1351_v51 = vadd.f32 %v7786_v50, %v7574_v11  ;;  %v8020_v39 = vadd.f32 %v7786_v50, %v7597_v52  ;;  %v3170_v21 = vshll.u32 %v2840_v2, 16 }
 0x137   : > { %v1964_v13 = vpop.f32.mrf.mxu1  ;;  %v3174_v14 = vshrl.u32 %v2840_v2, 16  ;;  %v8024_v4 = vadd.f32 %v7786_v50, %v7620_v34  ;;  %v8028_v38 = vsel %vm7430_vm13, %v6041_v15, %v2212_v35  ;;  %v8032_v11 = vsel %vm7430_vm13, %v2214_v56, %v2215_v5 }
 0x138   : > { %v8009_v54 = vadd.f32 %v1964_v13, %v1350_v43  ;;  %3423 = vmatmul.bf16.gmra.mxu0 %v3291_v17  ;;  %v3149_v52 = vsel %vm7408_vm10, %v3144_v10, %v7977_v0  ;;  %v3159_v34 = vsel %vm7408_vm10, %v3154_v31, %v3158_v60  ;;  %v1745_v43 = vor.u32 %v1744_v8, %v1741_v27  ;;  %v1047_v10 = vld [vmem:[#allocation2 + $0xbc] sm:$0x1]  ;;  %v2841_v8 = vld [vmem:[#allocation2 + $0xb0] sm:$0x1] }
 0x139   : > { %v2387_v61 = vpop.f32.mrf.mxu2  ;;  %v1758_v17 = vshll.u32 %v8014_v7, 16  ;;  %v1870_v24 = vpack.c.b16 %v1851_v58, %v1850_v12  ;;  %v1755_v35 = vor.u32 %v1754_v18, %v8011_v62  ;;  %v3163_v13 = vrot.slane %v3161_v26, 4  ;;  %v385_v60 = vld [vmem:[%s6819_s23 + $0xf8] sm:$0xff] }
 0x13a   : > { %v2460_v46 = vadd.f32 %v2387_v61, %v7940_v6  ;;  %v3166_v15 = vrot.slane %v3164_v55, 5  ;;  %v2278_v32 = vunpack.c.l.b16 %v8028_v38  ;;  %v8044_v2 = vrot.slane %v3170_v21, 5  ;;  %v384_v61 = vld [vmem:[%s6819_s23 + $0xf0] sm:$0xff]  ;;  %v2072_v55 = vld [vmem:[#allocation2 + $0x9c] sm:$0xe] }
 0x13b   : > { %v2700_v49 = vpop.f32.mrf.mxu3  ;;  %v3176_v0 = vrot.slane %v3174_v14, 4  ;;  %v8050_v31 = vadd.f32 %v7935_v63, %v7988_v41  ;;  %v3272_v12 = vunpack.c.l.b16 %v3149_v52  ;;  %v3273_v58 = vunpack.c.l.b16 %v3159_v34  ;;  %v1417_v21 = vld [vmem:[#allocation2 + $0xa8] sm:$0xf]  ;;  %v8063_v14 = vld [vmem:[#allocation2 + $0xac] sm:$0xf] }
 0x13c   : > { %v2773_v6 = vadd.f32 %v2700_v49, %v2460_v46  ;;  %v2219_v27 = vrot.slane %v7984_v30, 5  ;;  %v1746_v18 = vrot.slane %v1745_v43, 4  ;;  %v1760_v26 = vrot.slane %v1758_v17, 5  ;;  %v6655_v30 = vld [vmem:[%s8978_s1] ss:$0 sm:$0xff] }
 0x13d   : > { %v8041_v56 = vpop.f32.mrf.mxu0  ;;  %v1048_v49 = vsel %vm7332_vm7, %v873_v3, %v1047_v10  ;;  %v421_v38 = vsub.f32 %v385_v60, %v6655_v30  ;;  %v3167_v52 = vor.u32 %v3166_v15, %v3163_v13  ;;  %v3177_v3 = vor.u32 %v3176_v0, %v8044_v2  ;;  %v6656_v15 = vld [vmem:[%s8979_s2] ss:$0 sm:$0xff] }
 0x13e   : > { %2429 = vmatmul.bf16.gmra.mxu2 %v2297_v29  ;;  %v8060_v63 = vadd.f32 %v7962_v48, %v2773_v6  ;;  %v3180_v34 = vshll.u32 %v2841_v8, 16  ;;  %v1763_v48 = vshrl.u32 %v1417_v21, 16  ;;  %1049 = vst [vmem:[#allocation2 + $0xbc] sm:$0x1] %v1048_v49  ;;  %v1772_v43 = vshll.u32 %v8063_v14, 16 }
 0x13f   : > { %v1967_v5 = vpop.f32.mrf.mxu1  ;;  %v1776_v17 = vshrl.u32 %v8063_v14, 16  ;;  %v2222_v10 = vrot.slane %v8014_v7, 5  ;;  %v1751_v13 = vsel %vm7408_vm10, %v1746_v18, %v8011_v62  ;;  %v457_v60 = vmul.f32 %v6656_v15, %v421_v38  ;;  %v2842_v18 = vld [vmem:[#allocation2 + $0xb4] sm:$0xf] }
 0x140   : > { %2742 = vmatmul.bf16.gmra.mxu3 %v6482_v37  ;;  %v8052_v29 = vadd.f32 %v1967_v5, %v1351_v51  ;;  %v1756_v51 = vrot.slane %v1755_v35, 4  ;;  %v420_v37 = vsub.f32 %v384_v61, %v6655_v30  ;;  %v6042_v35 = vrot.slane %v2072_v55, 9 }
 0x141   : > { %v2390_v46 = vpop.f32.mrf.mxu2  ;;  %v2221_v5 = vrot.slane %v2219_v27, 4  ;;  %v3292_v61 = vpack.c.b16 %v3273_v58, %v3272_v12  ;;  %v3168_v55 = vrot.slane %v3167_v52, 4  ;;  %v3178_v7 = vrot.slane %v3177_v3, 4  ;;  %v2843_v52 = vld [vmem:[#allocation2 + $0xb8] sm:$0xf] }
 0x142   : > { %v2461_v41 = vadd.f32 %v2390_v46, %v7969_v33  ;;  %2006 = vmatmul.bf16.gmra.mxu1 %v1870_v24  ;;  %v1766_v33 = vshll.u32 %v1417_v21, 16  ;;  %v2279_v24 = vunpack.c.l.b16 %v8032_v11  ;;  %v456_v0 = vmul.f32 %v6656_v15, %v420_v37  ;;  %v8091_v15 = vld [vmem:[#allocation2 + $0xb0] sm:$0x1]  ;;  %v6657_v3 = vld [vmem:[%s8980_s3] ss:$0 sm:$0xff] }
 0x143   : > { %v2703_v57 = vpop.f32.mrf.mxu3  ;;  %v1761_v11 = vsel %vm7408_vm10, %v1756_v51, %v1760_v26  ;;  %v3182_v12 = vrot.slane %v3180_v34, 5  ;;  %v1765_v58 = vrot.slane %v1763_v48, 4  ;;  %v1778_v62 = vrot.slane %v1776_v17, 4 }
 0x144   : > { %v2774_v6 = vadd.f32 %v2703_v57, %v2461_v41  ;;  %v1768_v49 = vrot.slane %v1766_v33, 5  ;;  %v8085_v41 = vrot.slane %v1772_v43, 5  ;;  %v2298_v30 = vpack.c.b16 %v2279_v24, %v2278_v32  ;;  %v6483_v24 = vld [vmem:[#allocation2 + $0x9c] sm:$0xff] }
 0x145   : > { %v8079_v8 = vpop.f32.mrf.mxu0  ;;  %v1852_v37 = vunpack.c.l.b16 %v1751_v13  ;;  %v2220_v38 = vsel %vm7430_vm13, %v6042_v35, %v2219_v27  ;;  %v2223_v57 = vsel %vm7430_vm13, %v2221_v5, %v2222_v10  ;;  %v1853_v51 = vunpack.c.l.b16 %v1761_v11 }
 0x146   : > { %v492_v34 = vmul.f32 %v6657_v3, %v456_v0  ;;  %v493_v32 = vmul.f32 %v6657_v3, %v457_v60  ;;  %v3173_v27 = vsel %vm7408_vm10, %v3168_v55, %v8044_v2  ;;  %v3183_v33 = vsel %vm7408_vm10, %v3178_v7, %v3182_v12  ;;  %v6658_v2 = vld [vmem:[%s8981_s4] ss:$0 sm:$0xff] }
 0x147   : > { %v8081_v46 = vpop.f32.mrf.mxu1  ;;  %v3185_v43 = vshrl.u32 %v2842_v18, 16  ;;  %v3188_v17 = vshll.u32 %v2842_v18, 16  ;;  %v1769_v35 = vor.u32 %v1768_v49, %v1765_v58  ;;  %v1779_v5 = vor.u32 %v1778_v62, %v8085_v41 }
 0x148   : > { %3428 = vmatmul.bf16.gmra.mxu0 %v3292_v61  ;;  %v1782_v10 = vshll.u32 %v8091_v15, 16  ;;  %v2280_v61 = vunpack.c.l.b16 %v2220_v38  ;;  %v2281_v13 = vunpack.c.l.b16 %v2223_v57  ;;  %v3194_v0 = vshll.u32 %v2843_v52, 16 }
 0x149   : > { %v2392_v21 = vpop.f32.mrf.mxu2  ;;  %v3198_v60 = vshrl.u32 %v2843_v52, 16  ;;  %v1871_v11 = vpack.c.b16 %v1853_v51, %v1852_v37  ;;  %v528_v55 = vadd.f32 %v6658_v2, %v492_v34  ;;  %v529_v7 = vadd.f32 %v6658_v2, %v493_v32  ;;  %v6527_v51 = vld [vmem:[%s8982_s5 + $0x180] sm:$0xff] }
 0x14a   : > { %v2462_v26 = vadd.f32 %v2392_v21, %v8009_v54  ;;  %v8104_v21 = vunpack.c.l.b16 %v3173_v27  ;;  %v8111_v49 = vunpack.c.l.b16 %v3183_v33  ;;  %v3187_v62 = vrot.slane %v3185_v43, 4  ;;  %v6535_v52 = vld [vmem:[%s8982_s5 + $0x1c0] sm:$0xff]  ;;  %4106 = vmatpush.bf16.msra.mxu2 %v6527_v51  ;;  %v2844_v27 = vld [vmem:[#allocation2 + $0xbc] sm:$0x1]  ;;  %v1420_v33 = vld [vmem:[#allocation2 + $0xb4] sm:$0xf] }
 0x14b   : > { %v2705_v48 = vpop.f32.mrf.mxu3  ;;  %v3190_v18 = vrot.slane %v3188_v17, 5  ;;  %v8114_v38 = vadd.f32 %v8006_v19, %v2774_v6  ;;  %v1770_v37 = vrot.slane %v1769_v35, 4  ;;  %v1780_v57 = vrot.slane %v1779_v5, 4  ;;  %4787 = vmatpush.bf16.msra.mxu3 %v6535_v52 }
 0x14c   : > { %v2775_v54 = vadd.f32 %v2705_v48, %v2462_v26  ;;  %v1784_v26 = vrot.slane %v1782_v10, 5  ;;  %v8125_v34 = vrot.slane %v3194_v0, 5  ;;  %v3200_v19 = vrot.slane %v3198_v60, 4 }
 0x14d   : > { %v8109_v12 = vpop.f32.mrf.mxu0  ;;  %v614_v6 = vpack.c.bf16 %v528_v55, %v528_v55  ;;  %v615_v43 = vpack.c.bf16 %v529_v7, %v529_v7  ;;  %v3293_v35 = vpack.c.b16 %v8111_v49, %v8104_v21  ;;  %v3191_v10 = vor.u32 %v3190_v18, %v3187_v62 }
 0x14e   : > { %2434 = vmatmul.bf16.gmra.mxu2 %v2298_v30  ;;  %v8128_v32 = vadd.f32 %v8041_v56, %v2775_v54  ;;  %v8136_v56 = vld [vmem:[#allocation2 + $0xb8] sm:$0xf]  ;;  %v1785_v60 = vsel %vm7408_vm10, %v1780_v57, %v1784_v26  ;;  %v3204_v21 = vshll.u32 %v2844_v27, 16  ;;  %v1787_v2 = vshrl.u32 %v1420_v33, 16 }
 0x14f   : > { %v1972_v58 = vpop.f32.mrf.mxu1  ;;  %v878_v0 = vshll.u32 %v614_v6, 16  ;;  %v1796_v55 = vshll.u32 %v8136_v56, 16  ;;  %v2036_v49 = vadd.f32 %v8081_v46, %v8020_v39  ;;  %v1800_v57 = vshrl.u32 %v8136_v56, 16 }
 0x150   : > { %2747 = vmatmul.bf16.gmra.mxu3 %v6483_v24  ;;  %v8117_v30 = vadd.f32 %v1972_v58, %v8024_v4  ;;  %v1354_v4 = vadd.f32 %v7786_v50, %v7655_v22  ;;  %v2299_v24 = vpack.c.b16 %v2281_v13, %v2280_v61  ;;  %v1775_v22 = vsel %vm7408_vm10, %v1770_v37, %v8085_v41  ;;  %v2073_v50 = vld [vmem:[#allocation2 + $0xa8] sm:$0xe]  ;;  %v6543_v61 = vld [vmem:[%s8982_s5 + $0x200] sm:$0xff] }
 0x151   : > { %v2395_v3 = vpop.f32.mrf.mxu2  ;;  %v875_v13 = vshrl.u32 %v614_v6, 16  ;;  %5212 = vmatpush.bf16.msra.mxu0 %v6543_v61  ;;  %v1790_v41 = vshll.u32 %v1420_v33, 16  ;;  %v883_v58 = vshrl.u32 %v615_v43, 16  ;;  %v1854_v37 = vunpack.c.l.b16 %v1775_v22  ;;  %v1050_v6 = vld [vmem:[#allocation2 + $0xc0] sm:$0xf] }
 0x152   : > { %v2463_v48 = vadd.f32 %v2395_v3, %v8052_v29  ;;  %2011 = vmatmul.bf16.gmra.mxu1 %v1871_v11  ;;  %v6503_v29 = vld [vmem:[%s8982_s5 + $0x140] sm:$0xff]  ;;  %v3201_v11 = vor.u32 %v3200_v19, %v8125_v34  ;;  %v6043_v51 = vrot.slane %v2073_v50, 9  ;;  %v1855_v52 = vunpack.c.l.b16 %v1785_v60 }
 0x153   : > { %v2708_v17 = vpop.f32.mrf.mxu3  ;;  %3792 = vmatpush.bf16.msra.mxu1 %v6503_v29  ;;  %v877_v7 = vrot.slane %v875_v13, 7  ;;  %v3192_v3 = vrot.slane %v3191_v10, 4  ;;  %v3206_v33 = vrot.slane %v3204_v21, 5  ;;  %v886_v29 = vshll.u32 %v615_v43, 16  ;;  %v6484_v13 = vld [vmem:[#allocation2 + $0xa8] sm:$0xff] }
 0x154   : > { %v2776_v54 = vadd.f32 %v2708_v17, %v2463_v48  ;;  %v3202_v27 = vrot.slane %v3201_v11, 4  ;;  %v1789_v17 = vrot.slane %v1787_v2, 4  ;;  %v1792_v39 = vrot.slane %v1790_v41, 5  ;;  %v8168_v21 = vld [vmem:[#allocation2 + $0xbc] sm:$0x1] }
 0x155   : > { %v8153_v62 = vpop.f32.mrf.mxu0  ;;  %v880_v19 = vor.u32 %v878_v0, %v877_v7  ;;  %v8158_v46 = vrot.slane %v1796_v55, 5  ;;  %v885_v22 = vrot.slane %v883_v58, 7  ;;  %v1802_v5 = vrot.slane %v1800_v57, 4  ;;  %v8173_v2 = vld [vmem:[%s8983_s6] ss:$0 sm:$0xff] }
 0x156   : > { %v8163_v0 = vadd.f32 %v8079_v8, %v2776_v54  ;;  %v9012_v11 = vrot.slane %v8063_v14, 5  ;;  %v1355_v47 = vadd.f32 %v8173_v2, %v7682_v20  ;;  %v1872_v41 = vpack.c.b16 %v1855_v52, %v1854_v37  ;;  %v1054_v55 = vld [vmem:[#allocation2 + $0xc8] sm:$0x1] }
 0x157   : > { %v1974_v18 = vpop.f32.mrf.mxu1  ;;  %v1051_v10 = vsel %vm6897_vm5, %v880_v19, %v1050_v6  ;;  %v3197_v8 = vsel %vm7408_vm10, %v3192_v3, %v8125_v34  ;;  %v888_v54 = vor.u32 %v886_v29, %v885_v22  ;;  %v890_v58 = vrot.slane %v885_v22, 4 }
 0x158   : > { %v8156_v26 = vadd.f32 %v1974_v18, %v1354_v4  ;;  %3433 = vmatmul.bf16.gmra.mxu0 %v3293_v35  ;;  %v881_v4 = vrot.slane %v877_v7, 4  ;;  %v2228_v43 = vrot.slane %v9012_v11, 4  ;;  %v2229_v35 = vrot.slane %v8091_v15, 5  ;;  %1052 = vst [vmem:[#allocation2 + $0xc0] sm:$0xf] %v1051_v10 }
 0x159   : > { %v2397_v48 = vpop.f32.mrf.mxu2  ;;  %v3207_v15 = vsel %vm7408_vm10, %v3202_v27, %v3206_v33  ;;  %v1793_v7 = vor.u32 %v1792_v39, %v1789_v17  ;;  %v9013_v20 = vmov %v9012_v11  ;;  %v1803_v34 = vor.u32 %v1802_v5, %v8158_v46  ;;  %v6660_v5 = vld [vmem:[#allocation2 + $0x10] sm:$0xf] }
 0x15a   : > { %v2464_v61 = vadd.f32 %v2397_v48, %v2036_v49  ;;  %v2227_v37 = vsel %vm7430_vm13, %v6043_v51, %v9013_v20  ;;  %v889_v52 = vsel %vm6888_vm4, %v881_v4, %v888_v54  ;;  %v1055_v14 = vsel %vm7332_vm7, %v890_v58, %v1054_v55 }
 0x15b   : > { %v2710_v50 = vpop.f32.mrf.mxu3  ;;  %1053 = vst [vmem:[#allocation2 + $0xc4] sm:$0xf] %v889_v52  ;;  %v3276_v6 = vunpack.c.l.b16 %v3197_v8  ;;  %v3277_v51 = vunpack.c.l.b16 %v3207_v15  ;;  %v3547_v48 = vrot.slane %v6660_v5, 5  ;;  %v1794_v44 = vrot.slane %v1793_v7, 4 }
 0x15c   : > { %v2777_v60 = vadd.f32 %v2710_v50, %v2464_v61  ;;  %1056 = vst [vmem:[#allocation2 + $0xc8] sm:$0x1] %v1055_v14  ;;  %v2282_v17 = vunpack.c.l.b16 %v2227_v37  ;;  %v1804_v61 = vrot.slane %v1803_v34, 4  ;;  %v1356_v4 = vadd.f32 %v8173_v2, %v7708_v28  ;;  %v3481_v37 = vld [vmem:[#allocation2 + $0xc] sm:$0xe] }
 0x15d   : > { %v8185_v18 = vpop.f32.mrf.mxu0  ;;  %v3294_v10 = vpack.c.b16 %v3277_v51, %v3276_v6 }
 0x15e   : > { %2439 = vmatmul.bf16.gmra.mxu2 %v2299_v24  ;;  %v8183_v49 = vadd.f32 %v8109_v12, %v2777_v60  ;;  %v1806_v24 = vshll.u32 %v8168_v21, 16  ;;  %v2230_v12 = vsel %vm7430_vm13, %v2228_v43, %v2229_v35  ;;  %v1799_v60 = vsel %vm7408_vm10, %v1794_v44, %v8158_v46 }
 0x15f   : > { %v1977_v57 = vpop.f32.mrf.mxu1  ;;  %v2283_v29 = vunpack.c.l.b16 %v2230_v12  ;;  %v2845_v22 = vld [vmem:[#allocation2 + $0xc0] sm:$0xf]  ;;  %v3549_v35 = vrot.slane %v3547_v48, 4  ;;  %v1856_v34 = vunpack.c.l.b16 %v1799_v60  ;;  %v6205_v12 = vrot.slane %v3481_v37, 9 }
 0x160   : > { %2752 = vmatmul.bf16.gmra.mxu3 %v6484_v13  ;;  %v8195_v3 = vadd.f32 %v1977_v57, %v1355_v47  ;;  %v1808_v39 = vrot.slane %v1806_v24, 5  ;;  %v3209_v13 = vshrl.u32 %v2845_v22, 16  ;;  %v3212_v40 = vshll.u32 %v2845_v22, 16  ;;  %v6661_v47 = vld [vmem:[#allocation2 + $0x14] sm:$0x1] }
 0x161   : > { %v2400_v19 = vpop.f32.mrf.mxu2  ;;  %v2300_v54 = vpack.c.b16 %v2283_v29, %v2282_v17  ;;  %v2233_v24 = vrot.slane %v8136_v56, 5 }
 0x162   : > { %v2465_v27 = vadd.f32 %v2400_v19, %v8117_v30  ;;  %2016 = vmatmul.bf16.gmra.mxu1 %v1872_v41  ;;  %v3211_v30 = vrot.slane %v3209_v13, 4  ;;  %v3214_v11 = vrot.slane %v3212_v40, 5  ;;  %v3550_v41 = vrot.slane %v6661_v47, 5  ;;  %v2846_v15 = vld [vmem:[#allocation2 + $0xc4] sm:$0xf] }
 0x163   : > { %v2713_v33 = vpop.f32.mrf.mxu3  ;;  %v1809_v28 = vsel %vm7408_vm10, %v1804_v61, %v1808_v39  ;;  %v2847_v58 = vld [vmem:[#allocation2 + $0xc8] sm:$0x1]  ;;  %v3218_v57 = vshll.u32 %v2846_v15, 16  ;;  %v3222_v20 = vshrl.u32 %v2846_v15, 16  ;;  %v6485_v61 = vld [vmem:[#allocation2 + $0xb4] sm:$0xff] }
 0x164   : > { %v2778_v50 = vadd.f32 %v2713_v33, %v2465_v27  ;;  %v3215_v46 = vor.u32 %v3214_v11, %v3211_v30  ;;  %v3228_v52 = vshll.u32 %v2847_v58, 16  ;;  %v1857_v19 = vunpack.c.l.b16 %v1809_v28  ;;  %v2074_v27 = vld [vmem:[#allocation2 + $0xb4] sm:$0xe]  ;;  %v4221_v58 = vld [vmem:[#allocation2 + $0x1c] sm:$0xf] }
 0x165   : > { %v8210_v8 = vpop.f32.mrf.mxu0  ;;  %v3220_v6 = vrot.slane %v3218_v57, 5  ;;  %v3224_v51 = vrot.slane %v3222_v20, 4  ;;  %v3548_v33 = vsel %vm7430_vm13, %v6205_v12, %v3547_v48  ;;  %v3551_v17 = vsel %vm7430_vm13, %v3549_v35, %v3550_v41 }
 0x166   : > { %v8208_v43 = vadd.f32 %v8153_v62, %v2778_v50  ;;  %v3216_v44 = vrot.slane %v3215_v46, 4  ;;  %v3230_v39 = vrot.slane %v3228_v52, 5  ;;  %v3673_v22 = vunpack.c.l.b16 %v3548_v33 }
 0x167   : > { %v1979_v55 = vpop.f32.mrf.mxu1  ;;  %v3225_v56 = vor.u32 %v3224_v51, %v3220_v6  ;;  %v3674_v50 = vunpack.c.l.b16 %v3551_v17  ;;  %v1873_v13 = vpack.c.b16 %v1857_v19, %v1856_v34  ;;  %v6044_v40 = vrot.slane %v2074_v27, 9  ;;  %v4901_v17 = vld [vmem:[#allocation2 + $0x18] sm:$0xe] }
 0x168   : > { %v8214_v7 = vadd.f32 %v1979_v55, %v1356_v4  ;;  %3438 = vmatmul.bf16.gmra.mxu0 %v3294_v10  ;;  %v2235_v4 = vrot.slane %v2233_v24, 4  ;;  %v2236_v48 = vrot.slane %v8168_v21, 5  ;;  %v3221_v11 = vsel %vm7408_vm10, %v3216_v44, %v3220_v6  ;;  %v4220_v55 = vld [vmem:[#allocation2 + $0x18] sm:$0xf] }
 0x169   : > { %v2402_v62 = vpop.f32.mrf.mxu2  ;;  %v3226_v10 = vrot.slane %v3225_v56, 4  ;;  %v8227_v35 = vpack.c.b16 %v3674_v50, %v3673_v22  ;;  %v3278_v15 = vunpack.c.l.b16 %v3221_v11  ;;  %v2234_v57 = vsel %vm7430_vm13, %v6044_v40, %v2233_v24  ;;  %v4222_v22 = vld [vmem:[#allocation2 + $0x20] sm:$0x1] }
 0x16a   : > { %v2466_v14 = vadd.f32 %v2402_v62, %v8156_v26  ;;  %v1357_v26 = vadd.f32 %v8173_v2, %v7730_v53  ;;  %v4269_v37 = vshrl.u32 %v4220_v55, 16  ;;  %v4272_v62 = vshll.u32 %v4220_v55, 16 }
 0x16b   : > { %v2715_v5 = vpop.f32.mrf.mxu3  ;;  %v3231_v41 = vsel %vm7408_vm10, %v3226_v10, %v3230_v39  ;;  %v1358_v34 = vadd.f32 %v8173_v2, %v7767_v1  ;;  %v4278_v52 = vshll.u32 %v4221_v58, 16  ;;  %v4282_v12 = vshrl.u32 %v4221_v58, 16 }
 0x16c   : > { %v2779_v29 = vadd.f32 %v2715_v5, %v2466_v14  ;;  %v3279_v21 = vunpack.c.l.b16 %v3231_v41  ;;  %v4967_v24 = vrot.slane %v4221_v58, 5  ;;  %v4271_v44 = vrot.slane %v4269_v37, 4 }
 0x16d   : > { %v3401_v60 = vpop.f32.mrf.mxu0  ;;  %v4274_v33 = vrot.slane %v4272_v62, 5  ;;  %v4284_v56 = vrot.slane %v4282_v12, 4  ;;  %v6381_v50 = vrot.slane %v4901_v17, 9  ;;  %v1359_v11 = vadd.f32 %v8173_v2, %v7634_v42 }
 0x16e   : > { %2444 = vmatmul.bf16.gmra.mxu2 %v2300_v54  ;;  %v8230_v47 = vadd.f32 %v8185_v18, %v2779_v29  ;;  %v2237_v18 = vsel %vm7430_vm13, %v2235_v4, %v2236_v48  ;;  %v3295_v19 = vpack.c.b16 %v3279_v21, %v3278_v15  ;;  %v6486_v4 = vld [vmem:[#allocation2 + $0xc0] sm:$0xff]  ;;  %v4288_v48 = vshll.u32 %v4222_v22, 16  ;;  %v6662_v15 = vld [vmem:[#allocation2 + $0x1c] sm:$0xf] }
 0x16f   : > { %v1982_v30 = vpop.f32.mrf.mxu1  ;;  %v2285_v14 = vunpack.c.l.b16 %v2237_v18  ;;  %v4275_v10 = vor.u32 %v4274_v33, %v4271_v44  ;;  %v4968_v55 = vsel %vm7430_vm13, %v6381_v50, %v4967_v24  ;;  %v3554_v21 = vrot.slane %v6662_v15, 5 }
 0x170   : > { %2757 = vmatmul.bf16.gmra.mxu3 %v6485_v61  ;;  %v2041_v53 = vadd.f32 %v1982_v30, %v1357_v26  ;;  %v4280_v61 = vrot.slane %v4278_v52, 5  ;;  %v5093_v62 = vunpack.c.l.b16 %v4968_v55  ;;  %v4224_v52 = vld [vmem:[#allocation2 + $0x28] sm:$0xf]  ;;  %v6511_v55 = vld [vmem:[#allocation2 + $0x18] sm:$0xff] }
 0x171   : > { %v2405_v54 = vpop.f32.mrf.mxu2 }
 0x172   : > { %v2467_v28 = vadd.f32 %v2405_v54, %v8195_v3  ;;  %2021 = vmatmul.bf16.gmra.mxu1 %v1873_v13  ;;  %v2284_v3 = vunpack.c.l.b16 %v2234_v57  ;;  %v4970_v13 = vrot.slane %v4222_v22, 5  ;;  %v4285_v30 = vor.u32 %v4284_v56, %v4280_v61  ;;  %v3482_v57 = vld [vmem:[#allocation2 + $0x18] sm:$0xe] }
 0x173   : > { %v2718_v46 = vpop.f32.mrf.mxu3  ;;  %v4306_v56 = vshrl.u32 %v4224_v52, 16 }
 0x174   : > { %v2780_v20 = vadd.f32 %v2718_v46, %v2467_v28  ;;  %v2301_v39 = vpack.c.b16 %v2285_v14, %v2284_v3  ;;  %v4276_v46 = vrot.slane %v4275_v10, 4  ;;  %v4286_v18 = vrot.slane %v4285_v30, 4 }
 0x175   : > { %v3404_v51 = vpop.f32.mrf.mxu0  ;;  %v6206_v3 = vrot.slane %v3482_v57, 9  ;;  %v3556_v14 = vrot.slane %v3554_v21, 4 }
 0x176   : > { %v8242_v6 = vadd.f32 %v8210_v8, %v2780_v20  ;;  %v4969_v8 = vrot.slane %v4967_v24, 4  ;;  %v4223_v20 = vld [vmem:[#allocation2 + $0x24] sm:$0xf]  ;;  %v4281_v44 = vsel %vm7408_vm10, %v4276_v46, %v4280_v61 }
 0x177   : > { %v1984_v5 = vpop.f32.mrf.mxu1  ;;  %v4293_v33 = vshrl.u32 %v4223_v20, 16  ;;  %v4296_v17 = vshll.u32 %v4223_v20, 16  ;;  %v3555_v61 = vsel %vm7430_vm13, %v6206_v3, %v3554_v21  ;;  %v4225_v21 = vld [vmem:[#allocation2 + $0x2c] sm:$0x1] }
 0x178   : > { %v8244_v27 = vadd.f32 %v1984_v5, %v1358_v34  ;;  %3443 = vmatmul.bf16.gmra.mxu0 %v3295_v19  ;;  %v4971_v28 = vsel %vm7430_vm13, %v4969_v8, %v4970_v13  ;;  %v6663_v19 = vld [vmem:[#allocation2 + $0x20] sm:$0x1]  ;;  %v4974_v13 = vrot.slane %v4224_v52, 5 }
 0x179   : > { %v2407_v29 = vpop.f32.mrf.mxu2  ;;  %v5094_v34 = vunpack.c.l.b16 %v4971_v28  ;;  %v3557_v5 = vrot.slane %v6663_v19, 5  ;;  %v4295_v10 = vrot.slane %v4293_v33, 4  ;;  %v4298_v30 = vrot.slane %v4296_v17, 5 }
 0x17a   : > { %v2468_v1 = vadd.f32 %v2407_v29, %v8214_v7  ;;  %v3675_v28 = vunpack.c.l.b16 %v3555_v61 }
 0x17b   : > { %v2720_v26 = vpop.f32.mrf.mxu3  ;;  %v3558_v8 = vsel %vm7430_vm13, %v3556_v14, %v3557_v5 }
 0x17c   : > { %v2781_v40 = vadd.f32 %v2720_v26, %v2468_v1  ;;  %v5125_v1 = vpack.c.b16 %v5094_v34, %v5093_v62  ;;  %v4668_v26 = vunpack.c.l.b16 %v4281_v44  ;;  %v3676_v15 = vunpack.c.l.b16 %v3558_v8  ;;  %v6664_v44 = vld [vmem:[#allocation2 + $0x28] sm:$0xf]  ;;  %v4227_v8 = vld [vmem:[#allocation2 + $0x34] sm:$0xf] }
 0x17d   : > { %v8251_v54 = vpop.f32.mrf.mxu0  ;;  %v4312_v34 = vshll.u32 %v4225_v21, 16  ;;  %v3561_v33 = vrot.slane %v6664_v44, 5 }
 0x17e   : > { %2449 = vmatmul.bf16.gmra.mxu2 %v2301_v39  ;;  %v8249_v41 = vadd.f32 %v3401_v60, %v2781_v40  ;;  %v4290_v60 = vrot.slane %v4288_v48, 5  ;;  %v3706_v3 = vpack.c.b16 %v3676_v15, %v3675_v28  ;;  %v4326_v15 = vshll.u32 %v4227_v8, 16 }
 0x17f   : > { %v1987_v7 = vpop.f32.mrf.mxu1 }
 0x180   : > { %2762 = vmatmul.bf16.gmra.mxu3 %v6486_v4  ;;  %v8257_v58 = vadd.f32 %v1987_v7, %v1359_v11  ;;  %v4291_v29 = vsel %vm7408_vm10, %v4286_v18, %v4290_v60  ;;  %v4308_v11 = vrot.slane %v4306_v56, 4  ;;  %v4977_v18 = vrot.slane %v4225_v21, 5  ;;  %v9015_v21 = vld [vmem:[#allocation7_spill] sm:$0xff] }
 0x181   : > { %v2410_v42 = vpop.f32.mrf.mxu2  ;;  %v4669_v40 = vunpack.c.l.b16 %v4291_v29 }
 0x182   : > { %v2469_v37 = vadd.f32 %v2410_v42, %v2041_v53  ;;  %3793 = vmatmul.bf16.vlgmr.msra.gmra.mxu1 %v8227_v35  ;;  %v4302_v53 = vshll.u32 %v4224_v52, 16  ;;  %v1360_v35 = vadd.f32 %v8173_v2, %v7663_v16  ;;  %v4902_v16 = vld [vmem:[#allocation2 + $0x24] sm:$0xe]  ;;  %v4976_v42 = vrot.slane %v4974_v13, 4  ;;  %v9014_v52 = vld [vmem:[#allocation5_spill] sm:$0xff] }
 0x183   : > { %v2723_v12 = vpop.f32.mrf.mxu3  ;;  %v6382_v57 = vrot.slane %v4902_v16, 9  ;;  %v4700_v20 = vpack.c.b16 %v4669_v40, %v4668_v26 }
 0x184   : > { %v2782_v24 = vadd.f32 %v2723_v12, %v2469_v37  ;;  %v4299_v37 = vor.u32 %v4298_v30, %v4295_v10  ;;  %v1361_v12 = vadd.f32 %v8173_v2, %v9014_v52  ;;  %v3563_v10 = vrot.slane %v3561_v33, 4  ;;  %v6665_v30 = vld [vmem:[#allocation2 + $0x2c] sm:$0x1] }
 0x185   : > { %v8268_v22 = vpop.f32.mrf.mxu0  ;;  %v4975_v5 = vsel %vm7430_vm13, %v6382_v57, %v4974_v13  ;;  %v3564_v16 = vrot.slane %v6665_v30, 5 }
 0x186   : > { %v8266_v39 = vadd.f32 %v3404_v51, %v2782_v24  ;;  %v4304_v51 = vrot.slane %v4302_v53, 5  ;;  %v4978_v24 = vsel %vm7430_vm13, %v4976_v42, %v4977_v18  ;;  %v4300_v29 = vrot.slane %v4299_v37, 4  ;;  %v3483_v53 = vld [vmem:[#allocation2 + $0x24] sm:$0xe] }
 0x187   : > { %v1989_v50 = vpop.f32.mrf.mxu1  ;;  %v5096_v61 = vunpack.c.l.b16 %v4978_v24  ;;  %v6207_v40 = vrot.slane %v3483_v53, 9  ;;  %v3565_v37 = vsel %vm7430_vm13, %v3563_v10, %v3564_v16  ;;  %v9016_v10 = vld [vmem:[#allocation9_spill] sm:$0xff] }
 0x188   : > { %v8274_v4 = vadd.f32 %v1989_v50, %v1360_v35  ;;  %5213 = vmatmul.bf16.vlgmr.msra.gmra.mxu0 %v5125_v1  ;;  %v4309_v62 = vor.u32 %v4308_v11, %v4304_v51  ;;  %v4226_v1 = vld [vmem:[#allocation2 + $0x30] sm:$0xf]  ;;  %v5095_v50 = vunpack.c.l.b16 %v4975_v5  ;;  %v4305_v11 = vsel %vm7408_vm10, %v4300_v29, %v4304_v51  ;;  %v6512_v29 = vld [vmem:[#allocation2 + $0x24] sm:$0xff] }
 0x189   : > { %v2412_v48 = vpop.f32.mrf.mxu2  ;;  %v3562_v51 = vsel %vm7430_vm13, %v6207_v40, %v3561_v33  ;;  %v4228_v33 = vld [vmem:[#allocation2 + $0x38] sm:$0x1]  ;;  %v1363_v30 = vadd.f32 %v8173_v2, %v9016_v10 }
 0x18a   : > { %v2470_v7 = vadd.f32 %v2412_v48, %v8244_v27  ;;  %v4310_v35 = vrot.slane %v4309_v62, 4  ;;  %v5126_v57 = vpack.c.b16 %v5096_v61, %v5095_v50  ;;  %v4981_v62 = vrot.slane %v4227_v8, 5 }
 0x18b   : > { %v2725_v46 = vpop.f32.mrf.mxu3  ;;  %v3677_v53 = vunpack.c.l.b16 %v3562_v51  ;;  %v4336_v40 = vshll.u32 %v4228_v33, 16 }
 0x18c   : > { %v2783_v60 = vadd.f32 %v2725_v46, %v2470_v7  ;;  %v4317_v7 = vshrl.u32 %v4226_v1, 16  ;;  %v1362_v46 = vadd.f32 %v8173_v2, %v9015_v21 }
 0x18d   : > { %v8282_v14 = vpop.f32.mrf.mxu0 }
 0x18e   : > { %4107 = vmatmul.bf16.vlgmr.msra.gmra.mxu2 %v6511_v55  ;;  %v8280_v27 = vadd.f32 %v8251_v54, %v2783_v60  ;;  %v4314_v54 = vrot.slane %v4312_v34, 5  ;;  %v4320_v55 = vshll.u32 %v4226_v1, 16  ;;  %v4670_v60 = vunpack.c.l.b16 %v4305_v11 }
 0x18f   : > { %v1992_v19 = vpop.f32.mrf.mxu1  ;;  %v4983_v1 = vrot.slane %v4981_v62, 4 }
 0x190   : > { %4788 = vmatmul.bf16.vlgmr.msra.gmra.mxu3 %v4700_v20  ;;  %v8288_v17 = vadd.f32 %v1992_v19, %v1361_v12  ;;  %v4315_v28 = vsel %vm7408_vm10, %v4310_v35, %v4314_v54  ;;  %v4319_v12 = vrot.slane %v4317_v7, 4  ;;  %v4903_v19 = vld [vmem:[#allocation2 + $0x30] sm:$0xe] }
 0x191   : > { %v2415_v56 = vpop.f32.mrf.mxu2  ;;  %v4671_v34 = vunpack.c.l.b16 %v4315_v28  ;;  %v6383_v54 = vrot.slane %v4903_v19, 9  ;;  %v6666_v28 = vld [vmem:[#allocation2 + $0x34] sm:$0xf] }
 0x192   : > { %v2471_v26 = vadd.f32 %v2415_v56, %v8257_v58  ;;  %3798 = vmatmul.bf16.gmra.mxu1 %v3706_v3  ;;  %v4330_v58 = vshrl.u32 %v4227_v8, 16  ;;  %v4322_v3 = vrot.slane %v4320_v55, 5  ;;  %v3678_v56 = vunpack.c.l.b16 %v3565_v37 }
 0x193   : > { %v2728_v13 = vpop.f32.mrf.mxu3  ;;  %v4701_v61 = vpack.c.b16 %v4671_v34, %v4670_v60  ;;  %v4982_v7 = vsel %vm7430_vm13, %v6383_v54, %v4981_v62  ;;  %v4230_v62 = vld [vmem:[#allocation2 + $0x40] sm:$0xf]  ;;  %v9017_v54 = vld [vmem:[#allocation11_spill] sm:$0xff] }
 0x194   : > { %v2784_v48 = vadd.f32 %v2728_v13, %v2471_v26  ;;  %v4332_v24 = vrot.slane %v4330_v58, 4  ;;  %v4984_v26 = vrot.slane %v4228_v33, 5  ;;  %v4323_v8 = vor.u32 %v4322_v3, %v4319_v12 }
 0x195   : > { %v8300_v18 = vpop.f32.mrf.mxu0  ;;  %v3707_v16 = vpack.c.b16 %v3678_v56, %v3677_v53  ;;  %v5097_v37 = vunpack.c.l.b16 %v4982_v7  ;;  %v4988_v10 = vrot.slane %v4230_v62, 5 }
 0x196   : > { %v8298_v42 = vadd.f32 %v8268_v22, %v2784_v48  ;;  %v4328_v22 = vrot.slane %v4326_v15, 5  ;;  %v4985_v55 = vsel %vm7430_vm13, %v4983_v1, %v4984_v26  ;;  %v3568_v15 = vrot.slane %v6666_v28, 5 }
 0x197   : > { %v1994_v20 = vpop.f32.mrf.mxu1  ;;  %v4324_v21 = vrot.slane %v4323_v8, 4  ;;  %v5098_v34 = vunpack.c.l.b16 %v4985_v55  ;;  %v1364_v1 = vadd.f32 %v8173_v2, %v9017_v54  ;;  %v4904_v55 = vld [vmem:[#allocation2 + $0x3c] sm:$0xe] }
 0x198   : > { %v8306_v52 = vadd.f32 %v1994_v20, %v1362_v46  ;;  %5218 = vmatmul.bf16.gmra.mxu0 %v5126_v57  ;;  %v4333_v13 = vor.u32 %v4332_v24, %v4328_v22  ;;  %v3484_v46 = vld [vmem:[#allocation2 + $0x30] sm:$0xe]  ;;  %v4229_v20 = vld [vmem:[#allocation2 + $0x3c] sm:$0xf]  ;;  %v3570_v19 = vrot.slane %v3568_v15, 4 }
 0x199   : > { %v2417_v5 = vpop.f32.mrf.mxu2  ;;  %v6208_v3 = vrot.slane %v3484_v46, 9  ;;  %v4341_v53 = vshrl.u32 %v4229_v20, 16  ;;  %v4344_v56 = vshll.u32 %v4229_v20, 16  ;;  %v5127_v26 = vpack.c.b16 %v5098_v34, %v5097_v37 }
 0x19a   : > { %v2472_v44 = vadd.f32 %v2417_v5, %v8274_v4  ;;  %v4334_v60 = vrot.slane %v4333_v13, 4  ;;  %v6667_v5 = vld [vmem:[#allocation2 + $0x38] sm:$0x1]  ;;  %v4990_v37 = vrot.slane %v4988_v10, 4 }
 0x19b   : > { %v2730_v35 = vpop.f32.mrf.mxu3  ;;  %v3571_v24 = vrot.slane %v6667_v5, 5  ;;  %v4346_v7 = vrot.slane %v4344_v56, 5 }
 0x19c   : > { %v2785_v50 = vadd.f32 %v2730_v35, %v2472_v44  ;;  %v4350_v35 = vshll.u32 %v4230_v62, 16 }
 0x19d   : > { %v8314_v48 = vpop.f32.mrf.mxu0 }
 0x19e   : > { %4112 = vmatmul.bf16.gmra.mxu2 %v6512_v29  ;;  %v8312_v4 = vadd.f32 %v8282_v14, %v2785_v50  ;;  %v4338_v14 = vrot.slane %v4336_v40, 5  ;;  %v4329_v29 = vsel %vm7408_vm10, %v4324_v21, %v4328_v22  ;;  %v3569_v22 = vsel %vm7430_vm13, %v6208_v3, %v3568_v15  ;;  %v4231_v15 = vld [vmem:[#allocation2 + $0x44] sm:$0x1] }
 0x19f   : > { %v1997_v11 = vpop.f32.mrf.mxu1  ;;  %v4672_v8 = vunpack.c.l.b16 %v4329_v29  ;;  %v3572_v40 = vsel %vm7430_vm13, %v3570_v19, %v3571_v24  ;;  %v4991_v34 = vrot.slane %v4231_v15, 5  ;;  %v4360_v5 = vshll.u32 %v4231_v15, 16  ;;  %v9018_v24 = vld [vmem:[#allocation13_spill] sm:$0xff] }
 0x1a0   : > { %4793 = vmatmul.bf16.gmra.mxu3 %v4701_v61  ;;  %v8320_v58 = vadd.f32 %v1997_v11, %v1363_v30  ;;  %v4339_v33 = vsel %vm7408_vm10, %v4334_v60, %v4338_v14  ;;  %v4343_v11 = vrot.slane %v4341_v53, 4  ;;  %v3679_v60 = vunpack.c.l.b16 %v3569_v22 }
 0x1a1   : > { %v2420_v57 = vpop.f32.mrf.mxu2  ;;  %v4673_v30 = vunpack.c.l.b16 %v4339_v33  ;;  %v3680_v14 = vunpack.c.l.b16 %v3572_v40  ;;  %v4232_v40 = vld [vmem:[#allocation2 + $0x48] sm:$0xf] }
 0x1a2   : > { %v2473_v51 = vadd.f32 %v2420_v57, %v8288_v17  ;;  %3803 = vmatmul.bf16.gmra.mxu1 %v3707_v16  ;;  %v4354_v17 = vshrl.u32 %v4230_v62, 16  ;;  %v6513_v57 = vld [vmem:[#allocation2 + $0x30] sm:$0xff]  ;;  %v4347_v3 = vor.u32 %v4346_v7, %v4343_v11  ;;  %v4365_v15 = vshrl.u32 %v4232_v40, 16 }
 0x1a3   : > { %v2733_v12 = vpop.f32.mrf.mxu3  ;;  %v3708_v29 = vpack.c.b16 %v3680_v14, %v3679_v60 }
 0x1a4   : > { %v2786_v44 = vadd.f32 %v2733_v12, %v2473_v51  ;;  %v4356_v21 = vrot.slane %v4354_v17, 4  ;;  %v6384_v51 = vrot.slane %v4904_v55, 9  ;;  %v4702_v12 = vpack.c.b16 %v4673_v30, %v4672_v8  ;;  %v6668_v17 = vld [vmem:[#allocation2 + $0x40] sm:$0xf]  ;;  %v3485_v8 = vld [vmem:[#allocation2 + $0x3c] sm:$0xe] }
 0x1a5   : > { %v8332_v61 = vpop.f32.mrf.mxu0  ;;  %v3575_v54 = vrot.slane %v6668_v17, 5 }
 0x1a6   : > { %v8330_v50 = vadd.f32 %v8300_v18, %v2786_v44  ;;  %v4352_v18 = vrot.slane %v4350_v35, 5  ;;  %v1365_v44 = vadd.f32 %v8173_v2, %v9018_v24  ;;  %v4989_v33 = vsel %vm7430_vm13, %v6384_v51, %v4988_v10  ;;  %v4233_v10 = vld [vmem:[#allocation2 + $0x4c] sm:$0xf] }
 0x1a7   : > { %v1999_v13 = vpop.f32.mrf.mxu1  ;;  %v4992_v35 = vsel %vm7430_vm13, %v4990_v37, %v4991_v34  ;;  %v5099_v11 = vunpack.c.l.b16 %v4989_v33  ;;  %v4374_v37 = vshll.u32 %v4233_v10, 16  ;;  %v9019_v34 = vld [vmem:[#allocation15_spill] sm:$0xff] }
 0x1a8   : > { %v8338_v16 = vadd.f32 %v1999_v13, %v1364_v1  ;;  %5223 = vmatmul.bf16.gmra.mxu0 %v5127_v26  ;;  %v4357_v19 = vor.u32 %v4356_v21, %v4352_v18  ;;  %v4348_v26 = vrot.slane %v4347_v3, 4  ;;  %v5100_v7 = vunpack.c.l.b16 %v4992_v35 }
 0x1a9   : > { %v2422_v28 = vpop.f32.mrf.mxu2  ;;  %v3577_v21 = vrot.slane %v3575_v54, 4  ;;  %v4367_v35 = vrot.slane %v4365_v15, 4 }
 0x1aa   : > { %v2474_v46 = vadd.f32 %v2422_v28, %v8306_v52  ;;  %v4358_v22 = vrot.slane %v4357_v19, 4  ;;  %v6209_v28 = vrot.slane %v3485_v8, 9  ;;  %v4353_v14 = vsel %vm7408_vm10, %v4348_v26, %v4352_v18  ;;  %v4905_v26 = vld [vmem:[#allocation2 + $0x48] sm:$0xe] }
 0x1ab   : > { %v2735_v20 = vpop.f32.mrf.mxu3 }
 0x1ac   : > { %v2787_v62 = vadd.f32 %v2735_v20, %v2474_v46  ;;  %v6669_v46 = vld [vmem:[#allocation2 + $0x44] sm:$0x1]  ;;  %v4368_v20 = vshll.u32 %v4232_v40, 16  ;;  %v3576_v18 = vsel %vm7430_vm13, %v6209_v28, %v3575_v54  ;;  %v4234_v54 = vld [vmem:[#allocation2 + $0x50] sm:$0x1] }
 0x1ad   : > { %v8346_v53 = vpop.f32.mrf.mxu0  ;;  %v3681_v40 = vunpack.c.l.b16 %v3576_v18  ;;  %v3486_v18 = vld [vmem:[#allocation2 + $0x48] sm:$0xe] }
 0x1ae   : > { %4117 = vmatmul.bf16.gmra.mxu2 %v6513_v57  ;;  %v8344_v52 = vadd.f32 %v8314_v48, %v2787_v62  ;;  %v4362_v48 = vrot.slane %v4360_v5, 5  ;;  %v3578_v57 = vrot.slane %v6669_v46, 5  ;;  %v1366_v62 = vadd.f32 %v8173_v2, %v9019_v34 }
 0x1af   : > { %v2002_v56 = vpop.f32.mrf.mxu1  ;;  %v4674_v5 = vunpack.c.l.b16 %v4353_v14  ;;  %v4370_v17 = vrot.slane %v4368_v20, 5  ;;  %v9020_v14 = vld [vmem:[#allocation3_spill] sm:$0xff] }
 0x1b0   : > { %4798 = vmatmul.bf16.gmra.mxu3 %v4702_v12  ;;  %v8352_v1 = vadd.f32 %v2002_v56, %v1365_v44  ;;  %v4363_v51 = vsel %vm7408_vm10, %v4358_v22, %v4362_v48  ;;  %v5128_v12 = vpack.c.b16 %v5100_v7, %v5099_v11  ;;  %v3579_v44 = vsel %vm7430_vm13, %v3577_v21, %v3578_v57  ;;  %v6514_v48 = vld [vmem:[#allocation2 + $0x3c] sm:$0xff] }
 0x1b1   : > { %v2425_v13 = vpop.f32.mrf.mxu2  ;;  %v4675_v56 = vunpack.c.l.b16 %v4363_v51  ;;  %v6385_v7 = vrot.slane %v4905_v26, 9  ;;  %v4371_v46 = vor.u32 %v4370_v17, %v4367_v35  ;;  %v1367_v15 = vadd.f32 %v8173_v2, %v9020_v14  ;;  %v4235_v35 = vld [vmem:[#allocation2 + $0x54] sm:$0xf] }
 0x1b2   : > { %v2475_v30 = vadd.f32 %v2425_v13, %v8320_v58  ;;  %3808 = vmatmul.bf16.gmra.mxu1 %v3708_v29  ;;  %v4378_v58 = vshrl.u32 %v4233_v10, 16  ;;  %v4995_v29 = vrot.slane %v4233_v10, 5  ;;  %v4998_v10 = vrot.slane %v4234_v54, 5 }
 0x1b3   : > { %v2738_v55 = vpop.f32.mrf.mxu3  ;;  %v4703_v21 = vpack.c.b16 %v4675_v56, %v4674_v5 }
 0x1b4   : > { %v2788_v60 = vadd.f32 %v2738_v55, %v2475_v30  ;;  %v4380_v13 = vrot.slane %v4378_v58, 4  ;;  %v3682_v30 = vunpack.c.l.b16 %v3579_v44  ;;  %v4997_v55 = vrot.slane %v4995_v29, 4 }
 0x1b5   : > { %v8364_v19 = vpop.f32.mrf.mxu0  ;;  %v4996_v58 = vsel %vm7430_vm13, %v6385_v7, %v4995_v29  ;;  %v4236_v29 = vld [vmem:[#allocation2 + $0x58] sm:$0xf]  ;;  %v4389_v7 = vshrl.u32 %v4235_v35, 16 }
 0x1b6   : > { %v8362_v3 = vadd.f32 %v8332_v61, %v2788_v60  ;;  %v4376_v61 = vrot.slane %v4374_v37, 5  ;;  %v4384_v60 = vshll.u32 %v4234_v54, 16  ;;  %v3709_v20 = vpack.c.b16 %v3682_v30, %v3681_v40  ;;  %v6671_v40 = vld [vmem:[#allocation2 + $0x50] sm:$0x1] }
 0x1b7   : > { %v2004_v24 = vpop.f32.mrf.mxu1  ;;  %v4999_v34 = vsel %vm7430_vm13, %v4997_v55, %v4998_v10  ;;  %v5101_v26 = vunpack.c.l.b16 %v4996_v58  ;;  %v3585_v30 = vrot.slane %v6671_v40, 5  ;;  %v4392_v55 = vshll.u32 %v4235_v35, 16 }
 0x1b8   : > { %v8370_v33 = vadd.f32 %v2004_v24, %v1366_v62  ;;  %5228 = vmatmul.bf16.gmra.mxu0 %v5128_v12  ;;  %v4381_v57 = vor.u32 %v4380_v13, %v4376_v61  ;;  %v6670_v62 = vld [vmem:[#allocation2 + $0x4c] sm:$0xf]  ;;  %v4372_v24 = vrot.slane %v4371_v46, 4  ;;  %v5002_v58 = vrot.slane %v4236_v29, 5 }
 0x1b9   : > { %v2427_v8 = vpop.f32.mrf.mxu2  ;;  %v3582_v12 = vrot.slane %v6670_v62, 5 }
 0x1ba   : > { %v2476_v22 = vadd.f32 %v2427_v8, %v8338_v16  ;;  %v4382_v56 = vrot.slane %v4381_v57, 4  ;;  %v5102_v8 = vunpack.c.l.b16 %v4999_v34 }
 0x1bb   : > { %v2740_v11 = vpop.f32.mrf.mxu3 }
 0x1bc   : > { %v2789_v28 = vadd.f32 %v2740_v11, %v2476_v22  ;;  %v6210_v22 = vrot.slane %v3486_v18, 9  ;;  %v4377_v11 = vsel %vm7408_vm10, %v4372_v24, %v4376_v61  ;;  %v5129_v57 = vpack.c.b16 %v5102_v8, %v5101_v26 }
 0x1bd   : > { %v8378_v51 = vpop.f32.mrf.mxu0  ;;  %v4391_v24 = vrot.slane %v4389_v7, 4  ;;  %v4394_v18 = vrot.slane %v4392_v55, 5  ;;  %v9022_v55 = vld [vmem:[#allocation6_spill] sm:$0xff] }
 0x1be   : > { %4122 = vmatmul.bf16.gmra.mxu2 %v6514_v48  ;;  %v8376_v16 = vadd.f32 %v8346_v53, %v2789_v28  ;;  %v4386_v53 = vrot.slane %v4384_v60, 5  ;;  %v3584_v48 = vrot.slane %v3582_v12, 4  ;;  %v4398_v28 = vshll.u32 %v4236_v29, 16 }
 0x1bf   : > { %v2007_v37 = vpop.f32.mrf.mxu1  ;;  %v3583_v61 = vsel %vm7430_vm13, %v6210_v22, %v3582_v12  ;;  %v4237_v12 = vld [vmem:[#allocation2 + $0x5c] sm:$0x1] }
 0x1c0   : > { %4803 = vmatmul.bf16.gmra.mxu3 %v4703_v21  ;;  %v8384_v5 = vadd.f32 %v2007_v37, %v1367_v15  ;;  %v4387_v10 = vsel %vm7408_vm10, %v4382_v56, %v4386_v53  ;;  %v9021_v21 = vld [vmem:[#allocation4_spill] sm:$0xff]  ;;  %v4676_v15 = vunpack.c.l.b16 %v4377_v11  ;;  %v3586_v37 = vsel %vm7430_vm13, %v3584_v48, %v3585_v30 }
 0x1c1   : > { %v2430_v44 = vpop.f32.mrf.mxu2  ;;  %v1368_v46 = vadd.f32 %v8173_v2, %v9021_v21  ;;  %v4677_v34 = vunpack.c.l.b16 %v4387_v10  ;;  %v3683_v26 = vunpack.c.l.b16 %v3583_v61  ;;  %v3684_v8 = vunpack.c.l.b16 %v3586_v37 }
 0x1c2   : > { %v2477_v17 = vadd.f32 %v2430_v44, %v8352_v1  ;;  %3813 = vmatmul.bf16.gmra.mxu1 %v3709_v20  ;;  %v4402_v1 = vshrl.u32 %v4236_v29, 16  ;;  %v4906_v44 = vld [vmem:[#allocation2 + $0x54] sm:$0xe]  ;;  %v5004_v48 = vrot.slane %v5002_v58, 4  ;;  %v5005_v29 = vrot.slane %v4237_v12, 5 }
 0x1c3   : > { %v2743_v13 = vpop.f32.mrf.mxu3  ;;  %v6386_v22 = vrot.slane %v4906_v44, 9  ;;  %v4704_v30 = vpack.c.b16 %v4677_v34, %v4676_v15  ;;  %v4408_v7 = vshll.u32 %v4237_v12, 16  ;;  %v1369_v10 = vadd.f32 %v8173_v2, %v9022_v55  ;;  %v3487_v15 = vld [vmem:[#allocation2 + $0x54] sm:$0xe]  ;;  %v4238_v44 = vld [vmem:[#allocation2 + $0x60] sm:$0xf] }
 0x1c4   : > { %v2790_v54 = vadd.f32 %v2743_v13, %v2477_v17  ;;  %v4404_v53 = vrot.slane %v4402_v1, 4  ;;  %v6515_v17 = vld [vmem:[#allocation2 + $0x48] sm:$0xff]  ;;  %v6673_v12 = vld [vmem:[#allocation2 + $0x5c] sm:$0x1] }
 0x1c5   : > { %v8396_v14 = vpop.f32.mrf.mxu0 }
 0x1c6   : > { %v8394_v60 = vadd.f32 %v8364_v19, %v2790_v54  ;;  %v4400_v19 = vrot.slane %v4398_v28, 5  ;;  %v4395_v54 = vor.u32 %v4394_v18, %v4391_v24  ;;  %v3710_v28 = vpack.c.b16 %v3684_v8, %v3683_v26 }
 0x1c7   : > { %v2009_v20 = vpop.f32.mrf.mxu1 }
 0x1c8   : > { %v8402_v62 = vadd.f32 %v2009_v20, %v1368_v46  ;;  %5233 = vmatmul.bf16.gmra.mxu0 %v5129_v57  ;;  %v4405_v11 = vor.u32 %v4404_v53, %v4400_v19  ;;  %v5003_v46 = vsel %vm7430_vm13, %v6386_v22, %v5002_v58  ;;  %v5006_v57 = vsel %vm7430_vm13, %v5004_v48, %v5005_v29  ;;  %v6672_v20 = vld [vmem:[#allocation2 + $0x58] sm:$0xf] }
 0x1c9   : > { %v2432_v56 = vpop.f32.mrf.mxu2  ;;  %v3589_v61 = vrot.slane %v6672_v20, 5  ;;  %v4396_v34 = vrot.slane %v4395_v54, 4  ;;  %v5103_v53 = vunpack.c.l.b16 %v5003_v46  ;;  %v6211_v58 = vrot.slane %v3487_v15, 9 }
 0x1ca   : > { %v2478_v35 = vadd.f32 %v2432_v56, %v8370_v33  ;;  %v4406_v18 = vrot.slane %v4405_v11, 4  ;;  %v4413_v29 = vshrl.u32 %v4238_v44, 16 }
 0x1cb   : > { %v2745_v13 = vpop.f32.mrf.mxu3  ;;  %v3591_v8 = vrot.slane %v3589_v61, 4  ;;  %v4401_v48 = vsel %vm7408_vm10, %v4396_v34, %v4400_v19 }
 0x1cc   : > { %v2791_v40 = vadd.f32 %v2745_v13, %v2478_v35  ;;  %v5104_v35 = vunpack.c.l.b16 %v5006_v57  ;;  %v3592_v13 = vrot.slane %v6673_v12, 5  ;;  %v4678_v57 = vunpack.c.l.b16 %v4401_v48 }
 0x1cd   : > { %v8410_v1 = vpop.f32.mrf.mxu0 }
 0x1ce   : > { %4127 = vmatmul.bf16.gmra.mxu2 %v6515_v17  ;;  %v8408_v33 = vadd.f32 %v8378_v51, %v2791_v40  ;;  %v4410_v51 = vrot.slane %v4408_v7, 5  ;;  %v4239_v17 = vld [vmem:[#allocation2 + $0x64] sm:$0xf]  ;;  %v4416_v40 = vshll.u32 %v4238_v44, 16  ;;  %v5130_v55 = vpack.c.b16 %v5104_v35, %v5103_v53 }
 0x1cf   : > { %v2012_v21 = vpop.f32.mrf.mxu1  ;;  %v4422_v11 = vshll.u32 %v4239_v17, 16  ;;  %v4426_v7 = vshrl.u32 %v4239_v17, 16 }
 0x1d0   : > { %4808 = vmatmul.bf16.gmra.mxu3 %v4704_v30  ;;  %v8416_v37 = vadd.f32 %v2012_v21, %v1369_v10  ;;  %v9023_v30 = vld [vmem:[#allocation8_spill] sm:$0xff]  ;;  %v3590_v10 = vsel %vm7430_vm13, %v6211_v58, %v3589_v61  ;;  %v5009_v21 = vrot.slane %v4239_v17, 5  ;;  %v4240_v61 = vld [vmem:[#allocation2 + $0x68] sm:$0x1]  ;;  %v6516_v58 = vld [vmem:[#allocation2 + $0x54] sm:$0xff] }
 0x1d1   : > { %v2435_v24 = vpop.f32.mrf.mxu2  ;;  %v1370_v54 = vadd.f32 %v8173_v2, %v9023_v30  ;;  %v3593_v2 = vsel %vm7430_vm13, %v3591_v8, %v3592_v13  ;;  %v3685_v44 = vunpack.c.l.b16 %v3590_v10  ;;  %v4428_v53 = vrot.slane %v4426_v7, 4 }
 0x1d2   : > { %v2479_v56 = vadd.f32 %v2435_v24, %v8384_v5  ;;  %3818 = vmatmul.bf16.gmra.mxu1 %v3710_v28  ;;  %v4411_v5 = vsel %vm7408_vm10, %v4406_v18, %v4410_v51  ;;  %v4907_v28 = vld [vmem:[#allocation2 + $0x60] sm:$0xe]  ;;  %v4415_v24 = vrot.slane %v4413_v29, 4  ;;  %v4418_v18 = vrot.slane %v4416_v40, 5  ;;  %v8442_v29 = vld [vmem:[%s8983_s6] ss:$0 sm:$0xff] }
 0x1d3   : > { %v2748_v26 = vpop.f32.mrf.mxu3  ;;  %v4679_v20 = vunpack.c.l.b16 %v4411_v5  ;;  %v3686_v17 = vunpack.c.l.b16 %v3593_v2  ;;  %v5012_v12 = vrot.slane %v4240_v61, 5  ;;  %v9024_v40 = vld [vmem:[#allocation10_spill] sm:$0xff] }
 0x1d4   : > { %v2792_v22 = vadd.f32 %v2748_v26, %v2479_v56  ;;  %v8436_v56 = vrot.slane %v4422_v11, 5  ;;  %v5011_v26 = vrot.slane %v5009_v21, 4  ;;  %v4419_v48 = vor.u32 %v4418_v18, %v4415_v24 }
 0x1d5   : > { %v8430_v19 = vpop.f32.mrf.mxu0  ;;  %v1371_v30 = vadd.f32 %v8442_v29, %v9024_v40  ;;  %v3711_v5 = vpack.c.b16 %v3686_v17, %v3685_v44 }
 0x1d6   : > { %v8428_v46 = vadd.f32 %v8396_v14, %v2792_v22  ;;  %v6387_v14 = vrot.slane %v4907_v28, 9  ;;  %v4705_v22 = vpack.c.b16 %v4679_v20, %v4678_v57  ;;  %v5013_v7 = vsel %vm7430_vm13, %v5011_v26, %v5012_v12  ;;  %v3488_v57 = vld [vmem:[#allocation2 + $0x60] sm:$0xe]  ;;  %v4241_v20 = vld [vmem:[#allocation2 + $0x6c] sm:$0xf] }
 0x1d7   : > { %v2014_v15 = vpop.f32.mrf.mxu1  ;;  %v4420_v18 = vrot.slane %v4419_v48, 4  ;;  %v4440_v17 = vshll.u32 %v4241_v20, 16  ;;  %v9025_v48 = vld [vmem:[#allocation12_spill] sm:$0xff] }
 0x1d8   : > { %v8434_v34 = vadd.f32 %v2014_v15, %v1370_v54  ;;  %5238 = vmatmul.bf16.gmra.mxu0 %v5130_v55  ;;  %v4429_v54 = vor.u32 %v4428_v53, %v8436_v56  ;;  %v5010_v11 = vsel %vm7430_vm13, %v6387_v14, %v5009_v21  ;;  %v6675_v15 = vld [vmem:[#allocation2 + $0x64] sm:$0xf]  ;;  %v5106_v14 = vunpack.c.l.b16 %v5013_v7  ;;  %v4908_v7 = vld [vmem:[#allocation2 + $0x6c] sm:$0xe] }
 0x1d9   : > { %v2437_v51 = vpop.f32.mrf.mxu2  ;;  %v3596_v2 = vrot.slane %v6675_v15, 5  ;;  %v5105_v53 = vunpack.c.l.b16 %v5010_v11 }
 0x1da   : > { %v2480_v35 = vadd.f32 %v2437_v51, %v8402_v62  ;;  %v4432_v62 = vshll.u32 %v4240_v61, 16  ;;  %v4242_v51 = vld [vmem:[#allocation2 + $0x70] sm:$0xf]  ;;  %v4430_v21 = vrot.slane %v4429_v54, 4  ;;  %v4425_v54 = vsel %vm7408_vm10, %v4420_v18, %v8436_v56 }
 0x1db   : > { %v2750_v8 = vpop.f32.mrf.mxu3  ;;  %v3598_v12 = vrot.slane %v3596_v2, 4  ;;  %v4450_v40 = vshrl.u32 %v4242_v51, 16  ;;  %v4442_v56 = vrot.slane %v4440_v17, 5 }
 0x1dc   : > { %v2793_v13 = vadd.f32 %v2750_v8, %v2480_v35  ;;  %v4434_v61 = vrot.slane %v4432_v62, 5  ;;  %v6212_v35 = vrot.slane %v3488_v57, 9  ;;  %v6676_v8 = vld [vmem:[#allocation2 + $0x68] sm:$0x1]  ;;  %v5131_v62 = vpack.c.b16 %v5106_v14, %v5105_v53 }
 0x1dd   : > { %v8454_v10 = vpop.f32.mrf.mxu0  ;;  %v5016_v57 = vrot.slane %v4242_v51, 5 }
 0x1de   : > { %4132 = vmatmul.bf16.gmra.mxu2 %v6516_v58  ;;  %v8452_v55 = vadd.f32 %v8410_v1, %v2793_v13  ;;  %v4437_v58 = vshrl.u32 %v4241_v20, 16  ;;  %v3599_v13 = vrot.slane %v6676_v8, 5 }
 0x1df   : > { %v2017_v28 = vpop.f32.mrf.mxu1 }
 0x1e0   : > { %4813 = vmatmul.bf16.gmra.mxu3 %v4705_v22  ;;  %v8456_v24 = vadd.f32 %v2017_v28, %v1371_v30  ;;  %v4446_v22 = vshll.u32 %v4242_v51, 16  ;;  %v1372_v28 = vadd.f32 %v8442_v29, %v9025_v48  ;;  %v4439_v11 = vrot.slane %v4437_v58, 4 }
 0x1e1   : > { %v2440_v44 = vpop.f32.mrf.mxu2  ;;  %v6388_v58 = vrot.slane %v4908_v7, 9  ;;  %v6677_v7 = vld [vmem:[#allocation2 + $0x70] sm:$0xf] }
 0x1e2   : > { %v2481_v1 = vadd.f32 %v2440_v44, %v8416_v37  ;;  %3823 = vmatmul.bf16.gmra.mxu1 %v3711_v5  ;;  %v4435_v37 = vsel %vm7408_vm10, %v4430_v21, %v4434_v61  ;;  %v3597_v5 = vsel %vm7430_vm13, %v6212_v35, %v3596_v2  ;;  %v8475_v18 = vrot.slane %v4446_v22, 5  ;;  %v4243_v2 = vld [vmem:[#allocation2 + $0x74] sm:$0x1] }
 0x1e3   : > { %v2753_v26 = vpop.f32.mrf.mxu3  ;;  %v4452_v21 = vrot.slane %v4450_v40, 4  ;;  %v4680_v61 = vunpack.c.l.b16 %v4425_v54  ;;  %v4681_v53 = vunpack.c.l.b16 %v4435_v37  ;;  %v3687_v51 = vunpack.c.l.b16 %v3597_v5 }
 0x1e4   : > { %v2794_v30 = vadd.f32 %v2753_v26, %v2481_v1  ;;  %v3600_v1 = vsel %vm7430_vm13, %v3598_v12, %v3599_v13  ;;  %v6517_v26 = vld [vmem:[#allocation2 + $0x60] sm:$0xff]  ;;  %v5019_v48 = vrot.slane %v4243_v2, 5  ;;  %v4443_v17 = vor.u32 %v4442_v56, %v4439_v11 }
 0x1e5   : > { %v8471_v20 = vpop.f32.mrf.mxu0  ;;  %v3688_v8 = vunpack.c.l.b16 %v3600_v1  ;;  %v4453_v13 = vor.u32 %v4452_v21, %v8475_v18  ;;  %v4456_v22 = vshll.u32 %v4243_v2, 16  ;;  %v4706_v54 = vpack.c.b16 %v4681_v53, %v4680_v61  ;;  %v3489_v2 = vld [vmem:[#allocation2 + $0x6c] sm:$0xe] }
 0x1e6   : > { %v8469_v15 = vadd.f32 %v8430_v19, %v2794_v30  ;;  %v5018_v30 = vrot.slane %v5016_v57, 4  ;;  %v5017_v5 = vsel %vm7430_vm13, %v6388_v58, %v5016_v57  ;;  %v4444_v21 = vrot.slane %v4443_v17, 4  ;;  %v4244_v57 = vld [vmem:[#allocation2 + $0x78] sm:$0xf] }
 0x1e7   : > { %v2019_v44 = vpop.f32.mrf.mxu1  ;;  %v4454_v61 = vrot.slane %v4453_v13, 4  ;;  %v4458_v53 = vrot.slane %v4456_v22, 5  ;;  %v5107_v58 = vunpack.c.l.b16 %v5017_v5  ;;  %v4461_v22 = vshrl.u32 %v4244_v57, 16 }
 0x1e8   : > { %9026 = vst [vmem:[#allocation5_spill] sm:$0xff] %v8469_v15  ;;  %v8477_v14 = vadd.f32 %v2019_v44, %v1372_v28  ;;  %5243 = vmatmul.bf16.gmra.mxu0 %v5131_v62  ;;  %v9027_v28 = vld [vmem:[#allocation14_spill] sm:$0xff]  ;;  %v5020_v62 = vsel %vm7430_vm13, %v5018_v30, %v5019_v48  ;;  %v3603_v44 = vrot.slane %v6677_v7, 5  ;;  %v4449_v17 = vsel %vm7408_vm10, %v4444_v21, %v8475_v18 }
 0x1e9   : > { %v2442_v35 = vpop.f32.mrf.mxu2  ;;  %v1373_v37 = vadd.f32 %v8442_v29, %v9027_v28  ;;  %v6678_v48 = vld [vmem:[#allocation2 + $0x74] sm:$0x1]  ;;  %v4459_v13 = vsel %vm7408_vm10, %v4454_v61, %v4458_v53  ;;  %v4464_v28 = vshll.u32 %v4244_v57, 16  ;;  %v4682_v61 = vunpack.c.l.b16 %v4449_v17 }
 0x1ea   : > { %v2482_v19 = vadd.f32 %v2442_v35, %v8434_v34  ;;  %v3712_v34 = vpack.c.b16 %v3688_v8, %v3687_v51  ;;  %v3605_v30 = vrot.slane %v3603_v44, 4  ;;  %v4683_v53 = vunpack.c.l.b16 %v4459_v13 }
 0x1eb   : > { %v2755_v12 = vpop.f32.mrf.mxu3 }
 0x1ec   : > { %v2795_v40 = vadd.f32 %v2755_v12, %v2482_v19  ;;  %v5108_v19 = vunpack.c.l.b16 %v5020_v62  ;;  %v3606_v12 = vrot.slane %v6678_v48, 5  ;;  %v9029_v62 = vld [vmem:[#allocation16_spill] sm:$0xff] }
 0x1ed   : > { %v8490_v1 = vpop.f32.mrf.mxu0 }
 0x1ee   : > { %4137 = vmatmul.bf16.gmra.mxu2 %v6517_v26  ;;  %v8488_v11 = vadd.f32 %v8454_v10, %v2795_v40  ;;  %v4245_v26 = vld [vmem:[#allocation2 + $0x7c] sm:$0xf]  ;;  %v6213_v10 = vrot.slane %v3489_v2, 9 }
 0x1ef   : > { %v2022_v56 = vpop.f32.mrf.mxu1  ;;  %v4474_v5 = vshrl.u32 %v4245_v26, 16  ;;  %v5023_v2 = vrot.slane %v4245_v26, 5 }
 0x1f0   : > { %9028 = vst [vmem:[#allocation7_spill] sm:$0xff] %v8488_v11  ;;  %4818 = vmatmul.bf16.gmra.mxu3 %v4706_v54  ;;  %v8492_v35 = vadd.f32 %v2022_v56, %v1373_v37  ;;  %v4470_v37 = vshll.u32 %v4245_v26, 16  ;;  %v3604_v7 = vsel %vm7430_vm13, %v6213_v10, %v3603_v44  ;;  %v3607_v56 = vsel %vm7430_vm13, %v3605_v30, %v3606_v12  ;;  %v4246_v26 = vld [vmem:[#allocation2 + $0x80] sm:$0x1]  ;;  %v6518_v12 = vld [vmem:[#allocation2 + $0x6c] sm:$0xff] }
 0x1f1   : > { %v2445_v51 = vpop.f32.mrf.mxu2  ;;  %v4476_v44 = vrot.slane %v4474_v5, 4  ;;  %v3689_v10 = vunpack.c.l.b16 %v3604_v7  ;;  %v3690_v30 = vunpack.c.l.b16 %v3607_v56  ;;  %v5025_v17 = vrot.slane %v5023_v2, 4  ;;  %v8517_v5 = vld [vmem:[#allocation2 + $0x88] sm:$0xf]  ;;  %v6679_v56 = vld [vmem:[#allocation2 + $0x7c] sm:$0xf] }
 0x1f2   : > { %v2483_v8 = vadd.f32 %v2445_v51, %v8456_v24  ;;  %3828 = vmatmul.bf16.gmra.mxu1 %v3712_v34  ;;  %v1374_v24 = vadd.f32 %v8442_v29, %v9029_v62  ;;  %v5132_v34 = vpack.c.b16 %v5108_v19, %v5107_v58  ;;  %v4463_v51 = vrot.slane %v4461_v22, 4 }
 0x1f3   : > { %v2758_v40 = vpop.f32.mrf.mxu3  ;;  %v4466_v29 = vrot.slane %v4464_v28, 5  ;;  %v8513_v58 = vrot.slane %v4470_v37, 5  ;;  %v5026_v13 = vrot.slane %v4246_v26, 5  ;;  %v4707_v22 = vpack.c.b16 %v4683_v53, %v4682_v61 }
 0x1f4   : > { %v2796_v54 = vadd.f32 %v2758_v40, %v2483_v8  ;;  %v4909_v8 = vld [vmem:[#allocation2 + $0x78] sm:$0xe]  ;;  %v4480_v37 = vshll.u32 %v4246_v26, 16  ;;  %v3713_v7 = vpack.c.b16 %v3690_v30, %v3689_v10  ;;  %v4494_v10 = vshll.u32 %v8517_v5, 16 }
 0x1f5   : > { %v8509_v21 = vpop.f32.mrf.mxu0  ;;  %v6389_v40 = vrot.slane %v4909_v8, 9  ;;  %v4477_v28 = vor.u32 %v4476_v44, %v8513_v58  ;;  %v3610_v8 = vrot.slane %v6679_v56, 5  ;;  %v4498_v30 = vshrl.u32 %v8517_v5, 16 }
 0x1f6   : > { %v8507_v18 = vadd.f32 %v8471_v20, %v2796_v54  ;;  %v8533_v11 = vrot.slane %v4494_v10, 5 }
 0x1f7   : > { %v2024_v57 = vpop.f32.mrf.mxu1  ;;  %v4478_v26 = vrot.slane %v4477_v28, 4  ;;  %v4500_v15 = vrot.slane %v4498_v30, 4 }
 0x1f8   : > { %9030 = vst [vmem:[#allocation9_spill] sm:$0xff] %v8507_v18  ;;  %v8511_v48 = vadd.f32 %v2024_v57, %v1374_v24  ;;  %5248 = vmatmul.bf16.gmra.mxu0 %v5132_v34  ;;  %v4467_v24 = vor.u32 %v4466_v29, %v4463_v51  ;;  %v4247_v57 = vld [vmem:[#allocation2 + $0x84] sm:$0xf]  ;;  %v5027_v34 = vsel %vm7430_vm13, %v5025_v17, %v5026_v13  ;;  %v3490_v29 = vld [vmem:[#allocation2 + $0x78] sm:$0xe] }
 0x1f9   : > { %v2447_v19 = vpop.f32.mrf.mxu2  ;;  %v4485_v44 = vshrl.u32 %v4247_v57, 16  ;;  %v5110_v17 = vunpack.c.l.b16 %v5027_v34  ;;  %v6214_v13 = vrot.slane %v3490_v29, 9 }
 0x1fa   : > { %v2484_v20 = vadd.f32 %v2447_v19, %v8477_v14  ;;  %v5024_v14 = vsel %vm7430_vm13, %v6389_v40, %v5023_v2  ;;  %v4488_v19 = vshll.u32 %v4247_v57, 16  ;;  %v4468_v2 = vrot.slane %v4467_v24, 4 }
 0x1fb   : > { %v2760_v54 = vpop.f32.mrf.mxu3  ;;  %v5109_v40 = vunpack.c.l.b16 %v5024_v14  ;;  %v4487_v57 = vrot.slane %v4485_v44, 4  ;;  %v3611_v34 = vsel %vm7430_vm13, %v6214_v13, %v3610_v8  ;;  %v8553_v13 = vld [vmem:[#allocation2 + $0x94] sm:$0xf] }
 0x1fc   : > { %v2797_v62 = vadd.f32 %v2760_v54, %v2484_v20  ;;  %v4482_v20 = vrot.slane %v4480_v37, 5  ;;  %v3612_v54 = vrot.slane %v3610_v8, 4  ;;  %v4490_v18 = vrot.slane %v4488_v19, 5  ;;  %v4910_v37 = vld [vmem:[#allocation2 + $0x84] sm:$0xe] }
 0x1fd   : > { %v8526_v53 = vpop.f32.mrf.mxu0  ;;  %v4473_v24 = vsel %vm7408_vm10, %v4468_v2, %v8513_v58  ;;  %v5133_v14 = vpack.c.b16 %v5110_v17, %v5109_v40  ;;  %v4501_v2 = vor.u32 %v4500_v15, %v8533_v11 }
 0x1fe   : > { %4142 = vmatmul.bf16.gmra.mxu2 %v6518_v12  ;;  %v8524_v61 = vadd.f32 %v8490_v1, %v2797_v62  ;;  %v6680_v62 = vld [vmem:[#allocation2 + $0x80] sm:$0x1]  ;;  %v4483_v28 = vsel %vm7408_vm10, %v4478_v26, %v4482_v20  ;;  %v4684_v58 = vunpack.c.l.b16 %v4473_v24  ;;  %v4491_v30 = vor.u32 %v4490_v18, %v4487_v57 }
 0x1ff   : > { %v8528_v51 = vpop.f32.mrf.mxu1  ;;  %v3613_v56 = vrot.slane %v6680_v62, 5  ;;  %v4685_v19 = vunpack.c.l.b16 %v4483_v28  ;;  %v6390_v26 = vrot.slane %v4910_v37, 9  ;;  %v4518_v18 = vshll.u32 %v8553_v13, 16 }
 0x200   : > { %9031 = vst [vmem:[#allocation11_spill] sm:$0xff] %v8524_v61  ;;  %4823 = vmatmul.bf16.gmra.mxu3 %v4707_v22  ;;  %v4502_v24 = vrot.slane %v4501_v2, 4  ;;  %v4522_v28 = vshrl.u32 %v8553_v13, 16 }
 0x201   : > { %v2450_v12 = vpop.f32.mrf.mxu2  ;;  %v3614_v29 = vsel %vm7430_vm13, %v3612_v54, %v3613_v56  ;;  %v6519_v54 = vld [vmem:[#allocation2 + $0x78] sm:$0xff]  ;;  %v4708_v15 = vpack.c.b16 %v4685_v19, %v4684_v58  ;;  %v6681_v58 = vld [vmem:[#allocation2 + $0x88] sm:$0xf] }
 0x202   : > { %v2485_v1 = vadd.f32 %v2450_v12, %v8492_v35  ;;  %3833 = vmatmul.bf16.gmra.mxu1 %v3713_v7  ;;  %v4249_v35 = vld [vmem:[#allocation2 + $0x8c] sm:$0x1]  ;;  %v5030_v7 = vrot.slane %v8517_v5, 5  ;;  %v3691_v12 = vunpack.c.l.b16 %v3611_v34  ;;  %v3692_v8 = vunpack.c.l.b16 %v3614_v29 }
 0x203   : > { %v2763_v61 = vpop.f32.mrf.mxu3  ;;  %v4504_v5 = vshll.u32 %v4249_v35, 16  ;;  %v5033_v17 = vrot.slane %v4249_v35, 5  ;;  %v3617_v19 = vrot.slane %v6681_v58, 5 }
 0x204   : > { %v2798_v22 = vadd.f32 %v2763_v61, %v2485_v1  ;;  %v5032_v40 = vrot.slane %v5030_v7, 4  ;;  %v4250_v1 = vld [vmem:[#allocation2 + $0x90] sm:$0xf] }
 0x205   : > { %v8548_v44 = vpop.f32.mrf.mxu0  ;;  %v4509_v62 = vshrl.u32 %v4250_v1, 16  ;;  %v4512_v56 = vshll.u32 %v4250_v1, 16  ;;  %v4506_v34 = vrot.slane %v4504_v5, 5 }
 0x206   : > { %v8546_v61 = vadd.f32 %v8509_v21, %v2798_v22  ;;  %v4492_v22 = vrot.slane %v4491_v30, 4  ;;  %v5034_v1 = vsel %vm7430_vm13, %v5032_v40, %v5033_v17  ;;  %v8564_v30 = vld [vmem:[#allocation2 + $0x98] sm:$0x1] }
 0x207   : > { %v8550_v10 = vpop.f32.mrf.mxu1  ;;  %v4511_v35 = vrot.slane %v4509_v62, 4  ;;  %v4514_v29 = vrot.slane %v4512_v56, 5  ;;  %v3491_v62 = vld [vmem:[#allocation2 + $0x84] sm:$0xe]  ;;  %v4528_v56 = vshll.u32 %v8564_v30, 16 }
 0x208   : > { %9032 = vst [vmem:[#allocation13_spill] sm:$0xff] %v8546_v61  ;;  %5253 = vmatmul.bf16.gmra.mxu0 %v5133_v14  ;;  %v5031_v61 = vsel %vm7430_vm13, %v6390_v26, %v5030_v7  ;;  %v4524_v14 = vrot.slane %v4522_v28, 4  ;;  %v3874_v7 = vadd.f32 %v8528_v51, %v7903_v25  ;;  %v4497_v26 = vsel %vm7408_vm10, %v4492_v22, %v8533_v11  ;;  %v6682_v51 = vld [vmem:[#allocation2 + $0x8c] sm:$0x1] }
 0x209   : > { %v2452_v20 = vpop.f32.mrf.mxu2  ;;  %v5111_v17 = vunpack.c.l.b16 %v5031_v61  ;;  %v3619_v25 = vrot.slane %v3617_v19, 4  ;;  %v5037_v61 = vrot.slane %v8553_v13, 5 }
 0x20a   : > { %v2486_v21 = vadd.f32 %v2452_v20, %v8511_v48  ;;  %v8560_v48 = vrot.slane %v4518_v18, 5  ;;  %v3714_v20 = vpack.c.b16 %v3692_v8, %v3691_v12  ;;  %v4507_v12 = vsel %vm7408_vm10, %v4502_v24, %v4506_v34 }
 0x20b   : > { %v2765_v57 = vpop.f32.mrf.mxu3  ;;  %v4515_v8 = vor.u32 %v4514_v29, %v4511_v35  ;;  %v4687_v11 = vunpack.c.l.b16 %v4507_v12  ;;  %v4911_v35 = vld [vmem:[#allocation2 + $0x90] sm:$0xe] }
 0x20c   : > { %v2799_v37 = vadd.f32 %v2765_v57, %v2486_v21  ;;  %v6215_v57 = vrot.slane %v3491_v62, 9  ;;  %v3875_v62 = vadd.f32 %v8550_v10, %v7906_v23  ;;  %v5040_v23 = vrot.slane %v8564_v30, 5  ;;  %v4253_v10 = vld [vmem:[#allocation2 + $0x9c] sm:$0xf] }
 0x20d   : > { %v8569_v5 = vpop.f32.mrf.mxu0  ;;  %v4516_v58 = vrot.slane %v4515_v8, 4  ;;  %v6391_v8 = vrot.slane %v4911_v35, 9 }
 0x20e   : > { %4147 = vmatmul.bf16.gmra.mxu2 %v6519_v54  ;;  %v8567_v2 = vadd.f32 %v8526_v53, %v2799_v37  ;;  %v5112_v53 = vunpack.c.l.b16 %v5034_v1  ;;  %v4525_v54 = vor.u32 %v4524_v14, %v8560_v48  ;;  %v4686_v37 = vunpack.c.l.b16 %v4497_v26 }
 0x20f   : > { %v3799_v21 = vpop.f32.mrf.mxu1  ;;  %v3618_v14 = vsel %vm7430_vm13, %v6215_v57, %v3617_v19  ;;  %v4530_v1 = vrot.slane %v4528_v56, 5  ;;  %v4521_v19 = vsel %vm7408_vm10, %v4516_v58, %v8560_v48  ;;  %v8600_v56 = vld [vmem:[#allocation2 + $0xa0] sm:$0xf] }
 0x210   : > { %4828 = vmatmul.bf16.gmra.mxu3 %v4708_v15  ;;  %v3620_v15 = vrot.slane %v6682_v51, 5  ;;  %v5134_v24 = vpack.c.b16 %v5112_v53, %v5111_v17  ;;  %v4526_v34 = vrot.slane %v4525_v54, 4  ;;  %v4709_v26 = vpack.c.b16 %v4687_v11, %v4686_v37 }
 0x211   : > { %v4108_v40 = vpop.f32.mrf.mxu2  ;;  %v3693_v17 = vunpack.c.l.b16 %v3618_v14  ;;  %v5039_v54 = vrot.slane %v5037_v61, 4  ;;  %v8605_v51 = vunpack.c.l.b16 %v4521_v19  ;;  %v4546_v30 = vshrl.u32 %v8600_v56, 16  ;;  %v6683_v19 = vld [vmem:[#allocation2 + $0x94] sm:$0xf] }
 0x212   : > { %v4188_v18 = vadd.f32 %v4108_v40, %v3874_v7  ;;  %3838 = vmatmul.bf16.gmra.mxu1 %v3714_v20  ;;  %v3621_v20 = vsel %vm7430_vm13, %v3619_v25, %v3620_v15  ;;  %v6520_v25 = vld [vmem:[#allocation2 + $0x84] sm:$0xff]  ;;  %v4536_v15 = vshll.u32 %v4253_v10, 16 }
 0x213   : > { %v4789_v28 = vpop.f32.mrf.mxu3  ;;  %v3694_v53 = vunpack.c.l.b16 %v3621_v20  ;;  %v4548_v20 = vrot.slane %v4546_v30, 4 }
 0x214   : > { %v4869_v22 = vadd.f32 %v4789_v28, %v4188_v18  ;;  %v4542_v28 = vshll.u32 %v8600_v56, 16  ;;  %v4538_v35 = vrot.slane %v4536_v15, 5 }
 0x215   : > { %v8590_v7 = vpop.f32.mrf.mxu0 }
 0x216   : > { %v8582_v29 = vadd.f32 %v8548_v44, %v4869_v22  ;;  %v3876_v44 = vadd.f32 %v3799_v21, %v7957_v45  ;;  %v4531_v45 = vsel %vm7408_vm10, %v4526_v34, %v4530_v1  ;;  %v4533_v21 = vshrl.u32 %v4253_v10, 16  ;;  %v8614_v34 = vld [vmem:[#allocation2 + $0xa4] sm:$0x1] }
 0x217   : > { %v8592_v12 = vpop.f32.mrf.mxu1  ;;  %v5038_v22 = vsel %vm7430_vm13, %v6391_v8, %v5037_v61  ;;  %v4544_v14 = vrot.slane %v4542_v28, 5  ;;  %v8620_v8 = vunpack.c.l.b16 %v4531_v45 }
 0x218   : > { %v5358_v13 = vmul.f32 0.044715, %v8582_v29  ;;  %5258 = vmatmul.bf16.gmra.mxu0 %v5134_v24  ;;  %v4535_v58 = vrot.slane %v4533_v21, 4  ;;  %v5041_v24 = vsel %vm7430_vm13, %v5039_v54, %v5040_v23  ;;  %v5113_v15 = vunpack.c.l.b16 %v5038_v22 }
 0x219   : > { %v4110_v40 = vpop.f32.mrf.mxu2  ;;  %v4549_v23 = vor.u32 %v4548_v20, %v4544_v14  ;;  %v5114_v28 = vunpack.c.l.b16 %v5041_v24 }
 0x21a   : > { %v5390_v18 = vmul.f32 %v5358_v13, %v8582_v29  ;;  %v4189_v57 = vadd.f32 %v4110_v40, %v3875_v62  ;;  %v3715_v13 = vpack.c.b16 %v3694_v53, %v3693_v17  ;;  %v3624_v40 = vrot.slane %v6683_v19, 5  ;;  %v6684_v53 = vld [vmem:[#allocation2 + $0x98] sm:$0x1] }
 0x21b   : > { %v4791_v48 = vpop.f32.mrf.mxu3  ;;  %v4539_v54 = vor.u32 %v4538_v35, %v4535_v58  ;;  %v3627_v30 = vrot.slane %v6684_v53, 5  ;;  %v4550_v19 = vrot.slane %v4549_v23, 4  ;;  %v4912_v58 = vld [vmem:[#allocation2 + $0x9c] sm:$0xe] }
 0x21c   : > { %v5422_v37 = vmul.f32 %v5390_v18, %v8582_v29  ;;  %v4870_v11 = vadd.f32 %v4791_v48, %v4189_v57  ;;  %v3492_v18 = vld [vmem:[#allocation2 + $0x90] sm:$0xe]  ;;  %v4552_v57 = vshll.u32 %v8614_v34, 16  ;;  %v3626_v17 = vrot.slane %v3624_v40, 4 }
 0x21d   : > { %v8618_v10 = vpop.f32.mrf.mxu0  ;;  %v6392_v23 = vrot.slane %v4912_v58, 9 }
 0x21e   : > { %v5454_v1 = vadd.f32 %v5422_v37, %v8582_v29  ;;  %v5295_v62 = vadd.f32 %v8569_v5, %v4870_v11  ;;  %4152 = vmatmul.bf16.gmra.mxu2 %v6520_v25  ;;  %v6216_v25 = vrot.slane %v3492_v18, 9  ;;  %v4540_v37 = vrot.slane %v4539_v54, 4 }
 0x21f   : > { %v3804_v61 = vpop.f32.mrf.mxu1  ;;  %v4554_v24 = vrot.slane %v4552_v57, 5 }
 0x220   : > { %v5486_v21 = vmul.f32 0.7978846, %v5454_v1  ;;  %v5359_v48 = vmul.f32 0.044715, %v5295_v62  ;;  %4833 = vmatmul.bf16.gmra.mxu3 %v4709_v26  ;;  %v3625_v20 = vsel %vm7430_vm13, %v6216_v25, %v3624_v40  ;;  %v3628_v26 = vsel %vm7430_vm13, %v3626_v17, %v3627_v30 }
 0x221   : > { %v4113_v5 = vpop.f32.mrf.mxu2  ;;  %v4545_v22 = vsel %vm7408_vm10, %v4540_v37, %v4544_v14  ;;  %v3695_v54 = vunpack.c.l.b16 %v3625_v20  ;;  %v5135_v25 = vpack.c.b16 %v5114_v28, %v5113_v15  ;;  %v4555_v14 = vsel %vm7408_vm10, %v4550_v19, %v4554_v24 }
 0x222   : > { %6589 = vtanh.f32 %v5486_v21  ;;  %v5391_v11 = vmul.f32 %v5359_v48, %v5295_v62  ;;  %v4190_v45 = vadd.f32 %v4113_v5, %v3876_v44  ;;  %3843 = vmatmul.bf16.gmra.mxu1 %v3715_v13  ;;  %v3696_v21 = vunpack.c.l.b16 %v3628_v26  ;;  %v6521_v26 = vld [vmem:[#allocation2 + $0x90] sm:$0xff] }
 0x223   : > { %v4794_v35 = vpop.f32.mrf.mxu3  ;;  %v5326_v44 = vmul.f32 0.5, %v8582_v29  ;;  %v4710_v13 = vpack.c.b16 %v8620_v8, %v8605_v51  ;;  %v5044_v48 = vrot.slane %v8600_v56, 5  ;;  %v8636_v57 = vmul.f32 0.5, %v5295_v62 }
 0x224   : > { %v5423_v1 = vmul.f32 %v5391_v11, %v5295_v62  ;;  %v4871_v18 = vadd.f32 %v4794_v35, %v4190_v45  ;;  %v3877_v17 = vadd.f32 %v8592_v12, %v7960_v59  ;;  %v8641_v29 = vadd.f32 %v3804_v61, %v8050_v31  ;;  %v4256_v12 = vld [vmem:[#allocation2 + $0xa8] sm:$0xf]  ;;  %v8654_v61 = vld [vmem:[#allocation2 + $0xac] sm:$0xf] }
 0x225   : > { %v8643_v53 = vpop.f32.mrf.mxu0  ;;  %v8645_v37 = vunpack.c.l.b16 %v4545_v22  ;;  %v3716_v15 = vpack.c.b16 %v3696_v21, %v3695_v54  ;;  %v5046_v28 = vrot.slane %v5044_v48, 4  ;;  %v8651_v59 = vsel %vm7430_vm13, %v6392_v23, %v5044_v48 }
 0x226   : > { %v5455_v40 = vadd.f32 %v5423_v1, %v5295_v62  ;;  %v5296_v5 = vadd.f32 %v8590_v7, %v4871_v18  ;;  %v8647_v62 = vunpack.c.l.b16 %v4555_v14  ;;  %v5047_v31 = vrot.slane %v8614_v34, 5  ;;  %v8673_v14 = vld [vmem:[#allocation2 + $0xb0] sm:$0x1] }
 0x227   : > { %v3806_v30 = vpop.f32.mrf.mxu1  ;;  %v4557_v1 = vshrl.u32 %v4256_v12, 16  ;;  %v4560_v18 = vshll.u32 %v4256_v12, 16  ;;  %v4566_v54 = vshll.u32 %v8654_v61, 16  ;;  %v4570_v48 = vshrl.u32 %v8654_v61, 16 }
 0x228   : > { %v6590_v56 = vpop.eup %6589  ;;  %v5487_v11 = vmul.f32 0.7978846, %v5455_v40  ;;  %v5360_v7 = vmul.f32 0.044715, %v5296_v5  ;;  %v8656_v58 = vmul.f32 0.5, %v5296_v5  ;;  %5263 = vmatmul.bf16.gmra.mxu0 %v5135_v25  ;;  %v8667_v23 = vadd.f32 %v3806_v30, %v8060_v63 }
 0x229   : > { %v5550_v45 = vadd.f32 1.0, %v6590_v56  ;;  %v4115_v19 = vpop.f32.mrf.mxu2  ;;  %v5048_v25 = vsel %vm7430_vm13, %v5046_v28, %v5047_v31  ;;  %v4562_v56 = vrot.slane %v4560_v18, 5  ;;  %v6686_v63 = vld [vmem:[#allocation2 + $0xa0] sm:$0xf]  ;;  %v3493_v28 = vld [vmem:[#allocation2 + $0x9c] sm:$0xe] }
 0x22a   : > { %6591 = vtanh.f32 %v5487_v11  ;;  %v5392_v35 = vmul.f32 %v5360_v7, %v5296_v5  ;;  %v4191_v20 = vadd.f32 %v4115_v19, %v3877_v17  ;;  %v4559_v17 = vrot.slane %v4557_v1, 4 }
 0x22b   : > { %v5582_v22 = vmul.f32 %v5550_v45, %v5326_v44  ;;  %v4796_v24 = vpop.f32.mrf.mxu3  ;;  %v6685_v44 = vld [vmem:[%s6819_s23] sm:$0xff]  ;;  %v4711_v45 = vpack.c.b16 %v8647_v62, %v8645_v37  ;;  %v3631_v30 = vrot.slane %v6686_v63, 5  ;;  %v6691_v62 = vld [vmem:[#allocation2 + $0xb0] sm:$0x1] }
 0x22c   : > { %v5424_v34 = vmul.f32 %v5392_v35, %v5296_v5  ;;  %v4872_v21 = vadd.f32 %v4796_v24, %v4191_v20  ;;  %v5115_v35 = vunpack.c.l.b16 %v8651_v59  ;;  %v4563_v31 = vor.u32 %v4562_v56, %v4559_v17  ;;  %v6687_v63 = vld [vmem:[#allocation2 + $0xa4] sm:$0x1] }
 0x22d   : > { %v5614_v40 = vadd.f32 %v6685_v44, %v5582_v22  ;;  %v8679_v19 = vpop.f32.mrf.mxu0  ;;  %v4568_v20 = vrot.slane %v4566_v54, 5  ;;  %v4572_v22 = vrot.slane %v4570_v48, 4  ;;  %v3633_v44 = vrot.slane %v3631_v30, 4 }
 0x22e   : > { %v5456_v11 = vadd.f32 %v5424_v34, %v5296_v5  ;;  %v5297_v7 = vadd.f32 %v8618_v10, %v4872_v21  ;;  %4157 = vmatmul.bf16.gmra.mxu2 %v6521_v26  ;;  %v5116_v10 = vunpack.c.l.b16 %v5048_v25  ;;  %v4576_v26 = vshll.u32 %v8673_v14, 16 }
 0x22f   : > { %5646 = vst [vmem:[%s8664_s28] sm:$0xff] %v5614_v40  ;;  %v3809_v12 = vpop.f32.mrf.mxu1  ;;  %v6217_v21 = vrot.slane %v3493_v28, 9  ;;  %v3634_v59 = vrot.slane %v6687_v63, 5  ;;  %v4564_v17 = vrot.slane %v4563_v31, 4  ;;  %v4573_v25 = vor.u32 %v4572_v22, %v4568_v20  ;;  %v6688_v63 = vld [vmem:[%s6819_s23 + $0x8] sm:$0xff] }
 0x230   : > { %v6592_v24 = vpop.eup %6591  ;;  %v5488_v5 = vmul.f32 0.7978846, %v5456_v11  ;;  %v5361_v1 = vmul.f32 0.044715, %v5297_v7  ;;  %4838 = vmatmul.bf16.gmra.mxu3 %v4710_v13  ;;  %v8695_v31 = vmul.f32 0.5, %v5297_v7 }
 0x231   : > { %v5551_v18 = vadd.f32 1.0, %v6592_v24  ;;  %v4118_v34 = vpop.f32.mrf.mxu2  ;;  %v3632_v8 = vsel %vm7430_vm13, %v6217_v21, %v3631_v30  ;;  %v3635_v13 = vsel %vm7430_vm13, %v3633_v44, %v3634_v59  ;;  %v4913_v22 = vld [vmem:[#allocation2 + $0xa8] sm:$0xe] }
 0x232   : > { %6593 = vtanh.f32 %v5488_v5  ;;  %v5393_v54 = vmul.f32 %v5361_v1, %v5297_v7  ;;  %v4192_v48 = vadd.f32 %v4118_v34, %v8641_v29  ;;  %3848 = vmatmul.bf16.gmra.mxu1 %v3716_v15  ;;  %v3697_v24 = vunpack.c.l.b16 %v3632_v8 }
 0x233   : > { %v5583_v56 = vmul.f32 %v5551_v18, %v8636_v57  ;;  %v4799_v51 = vpop.f32.mrf.mxu3  ;;  %v3698_v5 = vunpack.c.l.b16 %v3635_v13  ;;  %v5716_v1 = vmul.f32 %v5614_v40, %v5614_v40  ;;  %v5136_v15 = vpack.c.b16 %v5116_v10, %v5115_v35  ;;  %v4259_v13 = vld [vmem:[#allocation2 + $0xb4] sm:$0xf] }
 0x234   : > { %v5425_v11 = vmul.f32 %v5393_v54, %v5297_v7  ;;  %v4873_v28 = vadd.f32 %v4799_v51, %v4192_v48  ;;  %v4569_v57 = vsel %vm7408_vm10, %v4564_v17, %v4568_v20  ;;  %v8699_v34 = vadd.f32 %v3809_v12, %v8114_v38 }
 0x235   : > { %v5615_v29 = vadd.f32 %v6688_v63, %v5583_v56  ;;  %v8702_v59 = vpop.f32.mrf.mxu0  ;;  %v4574_v48 = vrot.slane %v4573_v25, 4  ;;  %v4578_v35 = vrot.slane %v4576_v26, 5  ;;  %v3717_v17 = vpack.c.b16 %v3698_v5, %v3697_v24  ;;  %v6522_v25 = vld [vmem:[#allocation2 + $0x9c] sm:$0xff] }
 0x236   : > { %v5457_v18 = vadd.f32 %v5425_v11, %v5297_v7  ;;  %v5298_v30 = vadd.f32 %v8643_v53, %v4873_v28  ;;  %v8704_v51 = vunpack.c.l.b16 %v4569_v57  ;;  %v6393_v38 = vrot.slane %v4913_v22, 9 }
 0x237   : > { %5647 = vst [vmem:[%s8664_s28 + $0x8] sm:$0xff] %v5615_v29  ;;  %v5678_v21 = vadd.f32 %v5615_v29, %v5614_v40  ;;  %v5717_v44 = vmul.f32 %v5615_v29, %v5615_v29  ;;  %v3811_v54 = vpop.f32.mrf.mxu1  ;;  %v5051_v12 = vrot.slane %v8654_v61, 5  ;;  %v5054_v26 = vrot.slane %v8673_v14, 5 }
 0x238   : > { %v6594_v10 = vpop.eup %6593  ;;  %v5489_v56 = vmul.f32 0.7978846, %v5457_v18  ;;  %v5362_v20 = vmul.f32 0.044715, %v5298_v30  ;;  %5268 = vmatmul.bf16.gmra.mxu0 %v5136_v15  ;;  %v8710_v24 = vmul.f32 0.5, %v5298_v30  ;;  %v8715_v57 = vadd.f32 %v3811_v54, %v8128_v32  ;;  %v6689_v18 = vld [vmem:[%s6819_s23 + $0x10] sm:$0xff] }
 0x239   : > { %v5748_v7 = vadd.f32 %v5717_v44, %v5716_v1  ;;  %v5552_v53 = vadd.f32 1.0, %v6594_v10  ;;  %v4120_v8 = vpop.f32.mrf.mxu2  ;;  %v4579_v1 = vsel %vm7408_vm10, %v4574_v48, %v4578_v35  ;;  %v5053_v63 = vrot.slane %v5051_v12, 4  ;;  %v6690_v10 = vld [vmem:[#allocation2 + $0xac] sm:$0xf]  ;;  %v8725_v32 = vld [vmem:[#allocation2 + $0xb8] sm:$0xf] }
 0x23a   : > { %6595 = vtanh.f32 %v5489_v56  ;;  %v5394_v40 = vmul.f32 %v5362_v20, %v5298_v30  ;;  %v4193_v11 = vadd.f32 %v4120_v8, %v8667_v23  ;;  %v4581_v23 = vshrl.u32 %v4259_v13, 16 }
 0x23b   : > { %v5584_v28 = vmul.f32 %v5552_v53, %v8656_v58  ;;  %v4801_v5 = vpop.f32.mrf.mxu3  ;;  %v5052_v14 = vsel %vm7430_vm13, %v6393_v38, %v5051_v12  ;;  %v5055_v58 = vsel %vm7430_vm13, %v5053_v63, %v5054_v26  ;;  %v4584_v22 = vshll.u32 %v4259_v13, 16  ;;  %v3494_v38 = vld [vmem:[#allocation2 + $0xa8] sm:$0xe] }
 0x23c   : > { %v5426_v61 = vmul.f32 %v5394_v40, %v5298_v30  ;;  %v4874_v29 = vadd.f32 %v4801_v5, %v4193_v11  ;;  %v8723_v35 = vunpack.c.l.b16 %v4579_v1  ;;  %v3638_v56 = vrot.slane %v6690_v10, 5 }
 0x23d   : > { %v5616_v15 = vadd.f32 %v6689_v18, %v5584_v28  ;;  %v8728_v53 = vpop.f32.mrf.mxu0  ;;  %v4583_v12 = vrot.slane %v4581_v23, 4  ;;  %v4586_v40 = vrot.slane %v4584_v22, 5  ;;  %v4590_v1 = vshll.u32 %v8725_v32, 16 }
 0x23e   : > { %v5458_v44 = vadd.f32 %v5426_v61, %v5298_v30  ;;  %v5299_v48 = vadd.f32 %v8679_v19, %v4874_v29  ;;  %4162 = vmatmul.bf16.gmra.mxu2 %v6522_v25  ;;  %v5117_v19 = vunpack.c.l.b16 %v5052_v14  ;;  %v5118_v25 = vunpack.c.l.b16 %v5055_v58 }
 0x23f   : > { %5648 = vst [vmem:[%s8664_s28 + $0x10] sm:$0xff] %v5616_v15  ;;  %v5679_v54 = vadd.f32 %v5678_v21, %v5616_v15  ;;  %v5718_v20 = vmul.f32 %v5616_v15, %v5616_v15  ;;  %v3814_v8 = vpop.f32.mrf.mxu1  ;;  %v6218_v21 = vrot.slane %v3494_v38, 9  ;;  %v3640_v29 = vrot.slane %v3638_v56, 4 }
 0x240   : > { %v6596_v13 = vpop.eup %6595  ;;  %v5490_v30 = vmul.f32 0.7978846, %v5458_v44  ;;  %v5363_v11 = vmul.f32 0.044715, %v5299_v48  ;;  %4843 = vmatmul.bf16.gmra.mxu3 %v4711_v45  ;;  %v4712_v37 = vpack.c.b16 %v8723_v35, %v8704_v51  ;;  %v3641_v45 = vrot.slane %v6691_v62, 5 }
 0x241   : > { %v5749_v26 = vadd.f32 %v5748_v7, %v5718_v20  ;;  %v5553_v28 = vadd.f32 1.0, %v6596_v13  ;;  %v4123_v5 = vpop.f32.mrf.mxu2  ;;  %v4587_v7 = vor.u32 %v4586_v40, %v4583_v12  ;;  %v8738_v15 = vmul.f32 0.5, %v5299_v48  ;;  %v8740_v44 = vld [vmem:[#allocation2 + $0xbc] sm:$0x1] }
 0x242   : > { %6597 = vtanh.f32 %v5490_v30  ;;  %v5395_v63 = vmul.f32 %v5363_v11, %v5299_v48  ;;  %v4194_v61 = vadd.f32 %v4123_v5, %v8699_v34  ;;  %3853 = vmatmul.bf16.gmra.mxu1 %v3717_v17  ;;  %v5137_v22 = vpack.c.b16 %v5118_v25, %v5117_v19  ;;  %v6692_v34 = vld [vmem:[%s6819_s23 + $0x18] sm:$0xff] }
 0x243   : > { %v5585_v23 = vmul.f32 %v5553_v28, %v8695_v31  ;;  %v4804_v18 = vpop.f32.mrf.mxu3  ;;  %v3639_v31 = vsel %vm7430_vm13, %v6218_v21, %v3638_v56  ;;  %v8745_v10 = vrot.slane %v4590_v1, 5  ;;  %v4594_v20 = vshrl.u32 %v8725_v32, 16 }
 0x244   : > { %v5427_v14 = vmul.f32 %v5395_v63, %v5299_v48  ;;  %v4875_v58 = vadd.f32 %v4804_v18, %v4194_v61  ;;  %v3642_v12 = vsel %vm7430_vm13, %v3640_v29, %v3641_v45  ;;  %v4588_v40 = vrot.slane %v4587_v7, 4  ;;  %v6523_v7 = vld [vmem:[#allocation2 + $0xa8] sm:$0xff] }
 0x245   : > { %v5617_v17 = vadd.f32 %v6692_v34, %v5585_v23  ;;  %v8752_v19 = vpop.f32.mrf.mxu0  ;;  %v4596_v28 = vrot.slane %v4594_v20, 4  ;;  %v4600_v56 = vshll.u32 %v8740_v44, 16  ;;  %v3699_v63 = vunpack.c.l.b16 %v3639_v31 }
 0x246   : > { %v5459_v38 = vadd.f32 %v5427_v14, %v5299_v48  ;;  %v5300_v13 = vadd.f32 %v8702_v59, %v4875_v58  ;;  %v3882_v48 = vadd.f32 %v3814_v8, %v8163_v0  ;;  %v4914_v59 = vld [vmem:[#allocation2 + $0xb4] sm:$0xe]  ;;  %v3700_v18 = vunpack.c.l.b16 %v3642_v12  ;;  %v6693_v12 = vld [vmem:[%s6819_s23 + $0x20] sm:$0xff] }
 0x247   : > { %5649 = vst [vmem:[%s8664_s28 + $0x18] sm:$0xff] %v5617_v17  ;;  %v5680_v30 = vadd.f32 %v5679_v54, %v5617_v17  ;;  %v5719_v11 = vmul.f32 %v5617_v17, %v5617_v17  ;;  %v3816_v25 = vpop.f32.mrf.mxu1  ;;  %v4597_v54 = vor.u32 %v4596_v28, %v8745_v10  ;;  %v4593_v14 = vsel %vm7408_vm10, %v4588_v40, %v8745_v10  ;;  %v4262_v17 = vld [vmem:[#allocation2 + $0xc0] sm:$0xf] }
 0x248   : > { %v6598_v5 = vpop.eup %6597  ;;  %v5491_v21 = vmul.f32 0.7978846, %v5459_v38  ;;  %v5364_v1 = vmul.f32 0.044715, %v5300_v13  ;;  %5273 = vmatmul.bf16.gmra.mxu0 %v5137_v22  ;;  %v8762_v8 = vmul.f32 0.5, %v5300_v13  ;;  %v4602_v58 = vrot.slane %v4600_v56, 5 }
 0x249   : > { %v5750_v61 = vadd.f32 %v5749_v26, %v5719_v11  ;;  %v5554_v23 = vadd.f32 1.0, %v6598_v5  ;;  %v4125_v29 = vpop.f32.mrf.mxu2  ;;  %v6394_v34 = vrot.slane %v4914_v59, 9  ;;  %v4598_v38 = vrot.slane %v4597_v54, 4 }
 0x24a   : > { %6599 = vtanh.f32 %v5491_v21  ;;  %v5396_v62 = vmul.f32 %v5364_v1, %v5300_v13  ;;  %v4195_v45 = vadd.f32 %v4125_v29, %v8715_v57  ;;  %v5058_v57 = vrot.slane %v8725_v32, 5 }
 0x24b   : > { %v5586_v0 = vmul.f32 %v5554_v23, %v8710_v24  ;;  %v4806_v26 = vpop.f32.mrf.mxu3  ;;  %v8767_v11 = vadd.f32 %v3816_v25, %v8183_v49  ;;  %v3718_v10 = vpack.c.b16 %v3700_v18, %v3699_v63  ;;  %v5061_v24 = vrot.slane %v8740_v44, 5 }
 0x24c   : > { %v5428_v31 = vmul.f32 %v5396_v62, %v5300_v13  ;;  %v4876_v20 = vadd.f32 %v4806_v26, %v4195_v45  ;;  %v5059_v56 = vsel %vm7430_vm13, %v6394_v34, %v5058_v57  ;;  %v4605_v5 = vshrl.u32 %v4262_v17, 16  ;;  %v6695_v34 = vld [vmem:[#allocation2 + $0xbc] sm:$0x1] }
 0x24d   : > { %v5618_v22 = vadd.f32 %v6693_v12, %v5586_v0  ;;  %v8774_v32 = vpop.f32.mrf.mxu0  ;;  %v5060_v23 = vrot.slane %v5058_v57, 4  ;;  %v4608_v49 = vshll.u32 %v4262_v17, 16  ;;  %v8781_v44 = vunpack.c.l.b16 %v4593_v14  ;;  %v6694_v14 = vld [vmem:[#allocation2 + $0xb8] sm:$0xf]  ;;  %v8790_v57 = vld [vmem:[#allocation2 + $0xc4] sm:$0xf] }
 0x24e   : > { %v5460_v40 = vadd.f32 %v5428_v31, %v5300_v13  ;;  %v5301_v28 = vadd.f32 %v8728_v53, %v4876_v20  ;;  %4167 = vmatmul.bf16.gmra.mxu2 %v6523_v7  ;;  %v4603_v53 = vsel %vm7408_vm10, %v4598_v38, %v4602_v58  ;;  %v3495_v13 = vld [vmem:[#allocation2 + $0xb4] sm:$0xe]  ;;  %v5119_v45 = vunpack.c.l.b16 %v5059_v56 }
 0x24f   : > { %5650 = vst [vmem:[%s8664_s28 + $0x20] sm:$0xff] %v5618_v22  ;;  %v5681_v21 = vadd.f32 %v5680_v30, %v5618_v22  ;;  %v5720_v1 = vmul.f32 %v5618_v22, %v5618_v22  ;;  %v3819_v59 = vpop.f32.mrf.mxu1  ;;  %v5062_v62 = vsel %vm7430_vm13, %v5060_v23, %v5061_v24  ;;  %v6219_v26 = vrot.slane %v3495_v13, 9 }
 0x250   : > { %v6600_v25 = vpop.eup %6599  ;;  %v5492_v63 = vmul.f32 0.7978846, %v5460_v40  ;;  %v5365_v29 = vmul.f32 0.044715, %v5301_v28  ;;  %4848 = vmatmul.bf16.gmra.mxu3 %v4712_v37  ;;  %v5120_v51 = vunpack.c.l.b16 %v5062_v62  ;;  %v3645_v58 = vrot.slane %v6694_v14, 5 }
 0x251   : > { %v5751_v30 = vadd.f32 %v5750_v61, %v5720_v1  ;;  %v5555_v18 = vadd.f32 1.0, %v6600_v25  ;;  %v4128_v54 = vpop.f32.mrf.mxu2  ;;  %v3648_v61 = vrot.slane %v6695_v34, 5  ;;  %v8786_v17 = vmul.f32 0.5, %v5301_v28  ;;  %v4915_v14 = vld [vmem:[#allocation2 + $0xc0] sm:$0xe] }
 0x252   : > { %6601 = vtanh.f32 %v5492_v63  ;;  %v5397_v7 = vmul.f32 %v5365_v29, %v5301_v28  ;;  %v4196_v0 = vadd.f32 %v4128_v54, %v3882_v48  ;;  %3858 = vmatmul.bf16.gmra.mxu1 %v3718_v10  ;;  %v8788_v38 = vunpack.c.l.b16 %v4603_v53  ;;  %v6696_v48 = vld [vmem:[%s6819_s23 + $0x28] sm:$0xff] }
 0x253   : > { %v5587_v35 = vmul.f32 %v5555_v18, %v8738_v15  ;;  %v4809_v37 = vpop.f32.mrf.mxu3  ;;  %v3647_v22 = vrot.slane %v3645_v58, 4  ;;  %v4607_v10 = vrot.slane %v4605_v5, 4  ;;  %v4610_v15 = vrot.slane %v4608_v49, 5  ;;  %v8805_v54 = vld [vmem:[#allocation2 + $0xc8] sm:$0x1] }
 0x254   : > { %v5429_v31 = vmul.f32 %v5397_v7, %v5301_v28  ;;  %v4877_v20 = vadd.f32 %v4809_v37, %v4196_v0  ;;  %v5138_v56 = vpack.c.b16 %v5120_v51, %v5119_v45  ;;  %v3646_v1 = vsel %vm7430_vm13, %v6219_v26, %v3645_v58  ;;  %v6524_v37 = vld [vmem:[#allocation2 + $0xb4] sm:$0xff] }
 0x255   : > { %v5619_v12 = vadd.f32 %v6696_v48, %v5587_v35  ;;  %v8797_v63 = vpop.f32.mrf.mxu0  ;;  %v3649_v53 = vsel %vm7430_vm13, %v3647_v22, %v3648_v61  ;;  %v4614_v13 = vshll.u32 %v8790_v57, 16  ;;  %v4713_v18 = vpack.c.b16 %v8788_v38, %v8781_v44 }
 0x256   : > { %v5461_v24 = vadd.f32 %v5429_v31, %v5301_v28  ;;  %v5302_v40 = vadd.f32 %v8752_v19, %v4877_v20  ;;  %v3884_v19 = vadd.f32 %v3819_v59, %v8208_v43  ;;  %v3701_v7 = vunpack.c.l.b16 %v3646_v1 }
 0x257   : > { %5651 = vst [vmem:[%s8664_s28 + $0x28] sm:$0xff] %v5619_v12  ;;  %v5682_v23 = vadd.f32 %v5681_v21, %v5619_v12  ;;  %v5721_v25 = vmul.f32 %v5619_v12, %v5619_v12  ;;  %v3821_v29 = vpop.f32.mrf.mxu1  ;;  %v4611_v0 = vor.u32 %v4610_v15, %v4607_v10  ;;  %v3702_v26 = vunpack.c.l.b16 %v3649_v53 }
 0x258   : > { %v6602_v5 = vpop.eup %6601  ;;  %v5493_v49 = vmul.f32 0.7978846, %v5461_v24  ;;  %v5366_v28 = vmul.f32 0.044715, %v5302_v40  ;;  %5278 = vmatmul.bf16.gmra.mxu0 %v5138_v56  ;;  %v4616_v44 = vrot.slane %v4614_v13, 5  ;;  %v4618_v58 = vshrl.u32 %v8790_v57, 16 }
 0x259   : > { %v5752_v21 = vadd.f32 %v5751_v30, %v5721_v25  ;;  %v5556_v62 = vadd.f32 1.0, %v6602_v5  ;;  %v4130_v45 = vpop.f32.mrf.mxu2  ;;  %v4624_v30 = vshll.u32 %v8805_v54, 16  ;;  %v8811_v34 = vmul.f32 0.5, %v5302_v40  ;;  %v3496_v13 = vld [vmem:[#allocation2 + $0xc0] sm:$0xe] }
 0x25a   : > { %6603 = vtanh.f32 %v5493_v49  ;;  %v5398_v51 = vmul.f32 %v5366_v28, %v5302_v40  ;;  %v4197_v35 = vadd.f32 %v4130_v45, %v8767_v11  ;;  %v8814_v20 = vadd.f32 %v3821_v29, %v8230_v47  ;;  %v6697_v11 = vld [vmem:[%s6819_s23 + $0x30] sm:$0xff] }
 0x25b   : > { %v5588_v43 = vmul.f32 %v5556_v62, %v8762_v8  ;;  %v4811_v59 = vpop.f32.mrf.mxu3  ;;  %v4612_v48 = vrot.slane %v4611_v0, 4  ;;  %v4620_v12 = vrot.slane %v4618_v58, 4  ;;  %v6395_v22 = vrot.slane %v4915_v14, 9 }
 0x25c   : > { %v5430_v61 = vmul.f32 %v5398_v51, %v5302_v40  ;;  %v4878_v31 = vadd.f32 %v4811_v59, %v4197_v35  ;;  %v3719_v15 = vpack.c.b16 %v3702_v26, %v3701_v7  ;;  %v5065_v24 = vrot.slane %v8790_v57, 5 }
 0x25d   : > { %v5620_v38 = vadd.f32 %v6697_v11, %v5588_v43  ;;  %v8820_v25 = vpop.f32.mrf.mxu0  ;;  %v4621_v47 = vor.u32 %v4620_v12, %v4616_v44  ;;  %v4626_v29 = vrot.slane %v4624_v30, 5  ;;  %v6700_v12 = vld [vmem:[#allocation2 + $0xc8] sm:$0x1] }
 0x25e   : > { %v5462_v8 = vadd.f32 %v5430_v61, %v5302_v40  ;;  %v5303_v10 = vadd.f32 %v8774_v32, %v4878_v31  ;;  %4172 = vmatmul.bf16.gmra.mxu2 %v6524_v37  ;;  %v5068_v32 = vrot.slane %v8805_v54, 5  ;;  %v6698_v40 = vld [vmem:[#allocation2 + $0xc4] sm:$0xf]  ;;  %v5066_v0 = vsel %vm7430_vm13, %v6395_v22, %v5065_v24 }
 0x25f   : > { %5652 = vst [vmem:[%s8664_s28 + $0x30] sm:$0xff] %v5620_v38  ;;  %v5683_v56 = vadd.f32 %v5682_v23, %v5620_v38  ;;  %v5722_v1 = vmul.f32 %v5620_v38, %v5620_v38  ;;  %v8822_v53 = vpop.f32.mrf.mxu1  ;;  %v3652_v62 = vrot.slane %v6698_v40, 5  ;;  %v4622_v23 = vrot.slane %v4621_v47, 4  ;;  %v8848_v40 = vld [vmem:[#allocation2 + $0xd0] sm:$0xf] }
 0x260   : > { %v6604_v5 = vpop.eup %6603  ;;  %v5494_v49 = vmul.f32 0.7978846, %v5462_v8  ;;  %v5367_v28 = vmul.f32 0.044715, %v5303_v10  ;;  %4853 = vmatmul.bf16.gmra.mxu3 %v4713_v18  ;;  %v5067_v37 = vrot.slane %v5065_v24, 4  ;;  %v4617_v54 = vsel %vm7408_vm10, %v4612_v48, %v4616_v44 }
 0x261   : > { %v5753_v45 = vadd.f32 %v5752_v21, %v5722_v1  ;;  %v5557_v57 = vadd.f32 1.0, %v6604_v5  ;;  %v4133_v7 = vpop.f32.mrf.mxu2  ;;  %v5121_v14 = vunpack.c.l.b16 %v5066_v0  ;;  %v6220_v21 = vrot.slane %v3496_v13, 9  ;;  %v4265_v8 = vld [vmem:[#allocation2 + $0xcc] sm:$0xf] }
 0x262   : > { %6605 = vtanh.f32 %v5494_v49  ;;  %v5399_v51 = vmul.f32 %v5367_v28, %v5303_v10  ;;  %v4198_v35 = vadd.f32 %v4133_v7, %v3884_v19  ;;  %3863 = vmatmul.bf16.gmra.mxu1 %v3719_v15  ;;  %v4627_v58 = vsel %vm7408_vm10, %v4622_v23, %v4626_v29  ;;  %v6699_v19 = vld [vmem:[%s6819_s23 + $0x38] sm:$0xff] }
 0x263   : > { %v5589_v26 = vmul.f32 %v5557_v57, %v8786_v17  ;;  %v4814_v18 = vpop.f32.mrf.mxu3  ;;  %v5069_v30 = vsel %vm7430_vm13, %v5067_v37, %v5068_v32  ;;  %v3653_v17 = vsel %vm7430_vm13, %v6220_v21, %v3652_v62  ;;  %v3654_v11 = vrot.slane %v3652_v62, 4  ;;  %v8854_v37 = vld [vmem:[#allocation2 + $0xd4] sm:$0x1] }
 0x264   : > { %v5431_v43 = vmul.f32 %v5399_v51, %v5303_v10  ;;  %v4879_v59 = vadd.f32 %v4814_v18, %v4198_v35  ;;  %v5122_v31 = vunpack.c.l.b16 %v5069_v30  ;;  %v4696_v48 = vunpack.c.l.b16 %v4617_v54  ;;  %v6525_v51 = vld [vmem:[#allocation2 + $0xc0] sm:$0xff] }
 0x265   : > { %v5621_v61 = vadd.f32 %v6699_v19, %v5589_v26  ;;  %v3655_v22 = vrot.slane %v6700_v12, 5  ;;  %v8841_v1 = vmul.f32 0.5, %v5303_v10  ;;  %v8843_v47 = vpop.f32.mrf.mxu0  ;;  %v3703_v32 = vunpack.c.l.b16 %v3653_v17  ;;  %v4916_v17 = vld [vmem:[#allocation2 + $0xcc] sm:$0xe] }
 0x266   : > { %v5463_v38 = vadd.f32 %v5431_v43, %v5303_v10  ;;  %v8838_v44 = vadd.f32 %v8797_v63, %v4879_v59  ;;  %v5139_v29 = vpack.c.b16 %v5122_v31, %v5121_v14  ;;  %v4697_v63 = vunpack.c.l.b16 %v4627_v58 }
 0x267   : > { %5653 = vst [vmem:[%s8664_s28 + $0x38] sm:$0xff] %v5621_v61  ;;  %v5684_v15 = vadd.f32 %v5683_v56, %v5621_v61  ;;  %v5723_v24 = vmul.f32 %v5621_v61, %v5621_v61  ;;  %v8845_v13 = vpop.f32.mrf.mxu1  ;;  %v3656_v10 = vsel %vm7430_vm13, %v3654_v11, %v3655_v22  ;;  %v4629_v56 = vshrl.u32 %v4265_v8, 16 }
 0x268   : > { %v6606_v5 = vpop.eup %6605  ;;  %v5495_v49 = vmul.f32 0.7978846, %v5463_v38  ;;  %v5368_v28 = vmul.f32 0.044715, %v8838_v44  ;;  %5283 = vmatmul.bf16.gmra.mxu0 %v5139_v29  ;;  %v3704_v35 = vunpack.c.l.b16 %v3656_v10  ;;  %v4632_v54 = vshll.u32 %v4265_v8, 16 }
 0x269   : > { %v5754_v62 = vadd.f32 %v5753_v45, %v5723_v24  ;;  %v5558_v57 = vadd.f32 1.0, %v6606_v5  ;;  %v4135_v7 = vpop.f32.mrf.mxu2  ;;  %v4631_v18 = vrot.slane %v4629_v56, 4  ;;  %v4638_v14 = vshll.u32 %v8848_v40, 16 }
 0x26a   : > { %6607 = vtanh.f32 %v5495_v49  ;;  %v5400_v23 = vmul.f32 %v5368_v28, %v8838_v44  ;;  %v4199_v0 = vadd.f32 %v4135_v7, %v8814_v20  ;;  %v4714_v59 = vpack.c.b16 %v4697_v63, %v4696_v48  ;;  %v6701_v20 = vld [vmem:[%s6819_s23 + $0x40] sm:$0xff] }
 0x26b   : > { %v5590_v26 = vmul.f32 %v5558_v57, %v8811_v34  ;;  %v4816_v45 = vpop.f32.mrf.mxu3  ;;  %v4642_v58 = vshrl.u32 %v8848_v40, 16  ;;  %v4634_v19 = vrot.slane %v4632_v54, 5  ;;  %v4640_v61 = vrot.slane %v4638_v14, 5  ;;  %v6702_v54 = vld [vmem:[%s6819_s23 + $0x48] sm:$0xff] }
 0x26c   : > { %v5432_v21 = vmul.f32 %v5400_v23, %v8838_v44  ;;  %v4880_v43 = vadd.f32 %v4816_v45, %v4199_v0  ;;  %v4648_v31 = vshll.u32 %v8854_v37, 16  ;;  %v3720_v38 = vpack.c.b16 %v3704_v35, %v3703_v32 }
 0x26d   : > { %v5622_v30 = vadd.f32 %v6701_v20, %v5590_v26  ;;  %v4644_v12 = vrot.slane %v4642_v58, 4  ;;  %v3886_v8 = vadd.f32 %v8822_v53, %v8242_v6  ;;  %v8869_v24 = vpop.f32.mrf.mxu0  ;;  %v4635_v5 = vor.u32 %v4634_v19, %v4631_v18 }
 0x26e   : > { %v5464_v34 = vadd.f32 %v5432_v21, %v8838_v44  ;;  %v8864_v11 = vadd.f32 %v8820_v25, %v4880_v43  ;;  %4177 = vmatmul.bf16.gmra.mxu2 %v6525_v51  ;;  %v4650_v25 = vrot.slane %v4648_v31, 5  ;;  %v6396_v57 = vrot.slane %v4916_v17, 9 }
 0x26f   : > { %5654 = vst [vmem:[%s8664_s28 + $0x40] sm:$0xff] %v5622_v30  ;;  %v5685_v22 = vadd.f32 %v5684_v15, %v5622_v30  ;;  %v5724_v48 = vmul.f32 %v5622_v30, %v5622_v30  ;;  %v8871_v29 = vpop.f32.mrf.mxu1  ;;  %v4636_v10 = vrot.slane %v4635_v5, 4  ;;  %v4645_v56 = vor.u32 %v4644_v12, %v4640_v61  ;;  %v6526_v5 = vld [vmem:[#allocation2 + $0xcc] sm:$0xff] }
 0x270   : > { %v6608_v49 = vpop.eup %6607  ;;  %v5496_v28 = vmul.f32 0.7978846, %v5464_v34  ;;  %v5369_v63 = vmul.f32 0.044715, %v8864_v11  ;;  %4858 = vmatmul.bf16.gmra.mxu3 %v4714_v59  ;;  %v5072_v23 = vrot.slane %v8848_v40, 5  ;;  %v5075_v26 = vrot.slane %v8854_v37, 5 }
 0x271   : > { %v5755_v32 = vadd.f32 %v5754_v62, %v5724_v48  ;;  %v5559_v7 = vadd.f32 1.0, %v6608_v49  ;;  %v4138_v15 = vpop.f32.mrf.mxu2  ;;  %v4646_v35 = vrot.slane %v4645_v56, 4  ;;  %v4641_v21 = vsel %vm7408_vm10, %v4636_v10, %v4640_v61 }
 0x272   : > { %6609 = vtanh.f32 %v5496_v28  ;;  %v5401_v6 = vmul.f32 %v5369_v63, %v8864_v11  ;;  %v4200_v53 = vadd.f32 %v4138_v15, %v3886_v8  ;;  %3868 = vmatmul.bf16.gmra.mxu1 %v3720_v38  ;;  %v5073_v18 = vsel %vm7430_vm13, %v6396_v57, %v5072_v23  ;;  %v6703_v15 = vld [vmem:[%s6819_s23 + $0x50] sm:$0xff] }
 0x273   : > { %v5591_v0 = vmul.f32 %v5559_v7, %v8841_v1  ;;  %v4819_v51 = vpop.f32.mrf.mxu3  ;;  %v4651_v40 = vsel %vm7408_vm10, %v4646_v35, %v4650_v25  ;;  %v5074_v43 = vrot.slane %v5072_v23, 4  ;;  %v3887_v37 = vadd.f32 %v8845_v13, %v8249_v41 }
 0x274   : > { %v5433_v62 = vmul.f32 %v5401_v6, %v8864_v11  ;;  %v4881_v45 = vadd.f32 %v4819_v51, %v4200_v53  ;;  %v5123_v61 = vunpack.c.l.b16 %v5073_v18  ;;  %v4698_v38 = vunpack.c.l.b16 %v4641_v21 }
 0x275   : > { %v5623_v14 = vadd.f32 %v6702_v54, %v5591_v0  ;;  %v5249_v30 = vpop.f32.mrf.mxu0  ;;  %v5076_v19 = vsel %vm7430_vm13, %v5074_v43, %v5075_v26  ;;  %v4699_v12 = vunpack.c.l.b16 %v4651_v40  ;;  %v5336_v48 = vmul.f32 0.5, %v8838_v44 }
 0x276   : > { %v5465_v1 = vadd.f32 %v5433_v62, %v8864_v11  ;;  %v8888_v59 = vadd.f32 %v8843_v47, %v4881_v45  ;;  %v3888_v26 = vadd.f32 %v8871_v29, %v8266_v39  ;;  %v5337_v45 = vmul.f32 0.5, %v8864_v11 }
 0x277   : > { %5655 = vst [vmem:[%s8664_s28 + $0x48] sm:$0xff] %v5623_v14  ;;  %v5686_v58 = vadd.f32 %v5685_v22, %v5623_v14  ;;  %v5725_v20 = vmul.f32 %v5623_v14, %v5623_v14  ;;  %v3831_v31 = vpop.f32.mrf.mxu1  ;;  %v5124_v22 = vunpack.c.l.b16 %v5076_v19  ;;  %v4715_v7 = vpack.c.b16 %v4699_v12, %v4698_v38 }
 0x278   : > { %v6610_v9 = vpop.eup %6609  ;;  %v5497_v17 = vmul.f32 0.7978846, %v5465_v1  ;;  %v5370_v34 = vmul.f32 0.044715, %v8888_v59  ;;  %v3889_v38 = vadd.f32 %v3831_v31, %v8280_v27 }
 0x279   : > { %v5756_v47 = vadd.f32 %v5755_v32, %v5725_v20  ;;  %v5560_v41 = vadd.f32 1.0, %v6610_v9  ;;  %v4140_v13 = vpop.f32.mrf.mxu2  ;;  %v5140_v63 = vpack.c.b16 %v5124_v22, %v5123_v61 }
 0x27a   : > { %6611 = vtanh.f32 %v5497_v17  ;;  %v5402_v36 = vmul.f32 %v5370_v34, %v8888_v59  ;;  %v4201_v8 = vadd.f32 %v4140_v13, %v3887_v37  ;;  %v6704_v37 = vld [vmem:[%s6819_s23 + $0x58] sm:$0xff] }
 0x27b   : > { %v5592_v49 = vmul.f32 %v5560_v41, %v5336_v48  ;;  %v4821_v28 = vpop.f32.mrf.mxu3  ;;  %5288 = vmatmul.bf16.gmra.mxu0 %v5140_v63 }
 0x27c   : > { %v5434_v25 = vmul.f32 %v5402_v36, %v8888_v59  ;;  %v4882_v57 = vadd.f32 %v4821_v28, %v4201_v8 }
 0x27d   : > { %v5624_v32 = vadd.f32 %v6703_v15, %v5592_v49  ;;  %v5251_v53 = vpop.f32.mrf.mxu0  ;;  %v6705_v49 = vld [vmem:[%s6819_s23 + $0x60] sm:$0xff] }
 0x27e   : > { %v5466_v44 = vadd.f32 %v5434_v25, %v8888_v59  ;;  %v5307_v10 = vadd.f32 %v8869_v24, %v4882_v57  ;;  %4182 = vmatmul.bf16.gmra.mxu2 %v6526_v5 }
 0x27f   : > { %5656 = vst [vmem:[%s8664_s28 + $0x50] sm:$0xff] %v5624_v32  ;;  %v5687_v56 = vadd.f32 %v5686_v58, %v5624_v32  ;;  %v5726_v6 = vmul.f32 %v5624_v32, %v5624_v32  ;;  %v3834_v23 = vpop.f32.mrf.mxu1 }
 0x280   : > { %v6612_v0 = vpop.eup %6611  ;;  %v5498_v51 = vmul.f32 0.7978846, %v5466_v44  ;;  %v5371_v35 = vmul.f32 0.044715, %v5307_v10  ;;  %4863 = vmatmul.bf16.gmra.mxu3 %v4715_v7  ;;  %v3890_v44 = vadd.f32 %v3834_v23, %v8298_v42 }
 0x281   : > { %v5757_v62 = vadd.f32 %v5756_v47, %v5726_v6  ;;  %v5561_v18 = vadd.f32 1.0, %v6612_v0  ;;  %v4143_v24 = vpop.f32.mrf.mxu2  ;;  %v5338_v47 = vmul.f32 0.5, %v8888_v59  ;;  %v5339_v6 = vmul.f32 0.5, %v5307_v10 }
 0x282   : > { %6613 = vtanh.f32 %v5498_v51  ;;  %v5403_v54 = vmul.f32 %v5371_v35, %v5307_v10  ;;  %v4202_v14 = vadd.f32 %v4143_v24, %v3888_v26  ;;  %v6706_v24 = vld [vmem:[%s6819_s23 + $0x68] sm:$0xff] }
 0x283   : > { %v5593_v21 = vmul.f32 %v5561_v18, %v5337_v45  ;;  %v4824_v40 = vpop.f32.mrf.mxu3 }
 0x284   : > { %v5435_v43 = vmul.f32 %v5403_v54, %v5307_v10  ;;  %v4883_v1 = vadd.f32 %v4824_v40, %v4202_v14 }
 0x285   : > { %v5625_v58 = vadd.f32 %v6704_v37, %v5593_v21  ;;  %v5254_v61 = vpop.f32.mrf.mxu0 }
 0x286   : > { %v5467_v20 = vadd.f32 %v5435_v43, %v5307_v10  ;;  %v5308_v19 = vadd.f32 %v5249_v30, %v4883_v1 }
 0x287   : > { %5657 = vst [vmem:[%s8664_s28 + $0x58] sm:$0xff] %v5625_v58  ;;  %v5688_v39 = vadd.f32 %v5687_v56, %v5625_v58  ;;  %v5727_v29 = vmul.f32 %v5625_v58, %v5625_v58  ;;  %v3836_v9 = vpop.f32.mrf.mxu1 }
 0x288   : > { %v6614_v11 = vpop.eup %6613  ;;  %v5499_v17 = vmul.f32 0.7978846, %v5467_v20  ;;  %v5372_v34 = vmul.f32 0.044715, %v5308_v19  ;;  %v3891_v58 = vadd.f32 %v3836_v9, %v8312_v4 }
 0x289   : > { %v5758_v12 = vadd.f32 %v5757_v62, %v5727_v29  ;;  %v5562_v48 = vadd.f32 1.0, %v6614_v11  ;;  %v4145_v41 = vpop.f32.mrf.mxu2 }
 0x28a   : > { %6615 = vtanh.f32 %v5499_v17  ;;  %v5404_v13 = vmul.f32 %v5372_v34, %v5308_v19  ;;  %v4203_v30 = vadd.f32 %v4145_v41, %v3889_v38 }
 0x28b   : > { %v5594_v22 = vmul.f32 %v5562_v48, %v5338_v47  ;;  %v4826_v36 = vpop.f32.mrf.mxu3  ;;  %v6707_v48 = vld [vmem:[%s6819_s23 + $0x70] sm:$0xff] }
 0x28c   : > { %v5436_v8 = vmul.f32 %v5404_v13, %v5308_v19  ;;  %v4884_v5 = vadd.f32 %v4826_v36, %v4203_v30 }
 0x28d   : > { %v5626_v28 = vadd.f32 %v6705_v49, %v5594_v22  ;;  %v5256_v31 = vpop.f32.mrf.mxu0 }
 0x28e   : > { %v5468_v63 = vadd.f32 %v5436_v8, %v5308_v19  ;;  %v5309_v25 = vadd.f32 %v5251_v53, %v4884_v5 }
 0x28f   : > { %5658 = vst [vmem:[%s8664_s28 + $0x60] sm:$0xff] %v5626_v28  ;;  %v5689_v57 = vadd.f32 %v5688_v39, %v5626_v28  ;;  %v5728_v27 = vmul.f32 %v5626_v28, %v5626_v28  ;;  %v3839_v7 = vpop.f32.mrf.mxu1  ;;  %v5340_v39 = vmul.f32 0.5, %v5308_v19 }
 0x290   : > { %v6616_v59 = vpop.eup %6615  ;;  %v5500_v15 = vmul.f32 0.7978846, %v5468_v63  ;;  %v5373_v32 = vmul.f32 0.044715, %v5309_v25  ;;  %v3892_v49 = vadd.f32 %v3839_v7, %v8330_v50  ;;  %v5341_v63 = vmul.f32 0.5, %v5309_v25 }
 0x291   : > { %v5759_v56 = vadd.f32 %v5758_v12, %v5728_v27  ;;  %v5563_v0 = vadd.f32 1.0, %v6616_v59  ;;  %v4148_v51 = vpop.f32.mrf.mxu2 }
 0x292   : > { %6617 = vtanh.f32 %v5500_v15  ;;  %v5405_v35 = vmul.f32 %v5373_v32, %v5309_v25  ;;  %v4204_v26 = vadd.f32 %v4148_v51, %v3890_v44 }
 0x293   : > { %v5595_v53 = vmul.f32 %v5563_v0, %v5339_v6  ;;  %v4829_v62 = vpop.f32.mrf.mxu3  ;;  %v6708_v6 = vld [vmem:[%s6819_s23 + $0x78] sm:$0xff] }
 0x294   : > { %v5437_v45 = vmul.f32 %v5405_v35, %v5309_v25  ;;  %v4885_v18 = vadd.f32 %v4829_v62, %v4204_v26 }
 0x295   : > { %v5627_v54 = vadd.f32 %v6706_v24, %v5595_v53  ;;  %v5259_v42 = vpop.f32.mrf.mxu0 }
 0x296   : > { %v5469_v14 = vadd.f32 %v5437_v45, %v5309_v25  ;;  %v5310_v21 = vadd.f32 %v5254_v61, %v4885_v18 }
 0x297   : > { %5659 = vst [vmem:[%s8664_s28 + $0x68] sm:$0xff] %v5627_v54  ;;  %v5690_v40 = vadd.f32 %v5689_v57, %v5627_v54  ;;  %v5729_v43 = vmul.f32 %v5627_v54, %v5627_v54  ;;  %v3841_v23 = vpop.f32.mrf.mxu1 }
 0x298   : > { %v6618_v10 = vpop.eup %6617  ;;  %v5501_v1 = vmul.f32 0.7978846, %v5469_v14  ;;  %v5374_v37 = vmul.f32 0.044715, %v5310_v21  ;;  %v3893_v18 = vadd.f32 %v3841_v23, %v8344_v52  ;;  %v5342_v54 = vmul.f32 0.5, %v5310_v21 }
 0x299   : > { %v5760_v20 = vadd.f32 %v5759_v56, %v5729_v43  ;;  %v5564_v29 = vadd.f32 1.0, %v6618_v10  ;;  %v4150_v11 = vpop.f32.mrf.mxu2 }
 0x29a   : > { %6619 = vtanh.f32 %v5501_v1  ;;  %v5406_v17 = vmul.f32 %v5374_v37, %v5310_v21  ;;  %v4205_v34 = vadd.f32 %v4150_v11, %v3891_v58 }
 0x29b   : > { %v5596_v61 = vmul.f32 %v5564_v29, %v5340_v39  ;;  %v4831_v38 = vpop.f32.mrf.mxu3 }
 0x29c   : > { %v5438_v12 = vmul.f32 %v5406_v17, %v5310_v21  ;;  %v4886_v47 = vadd.f32 %v4831_v38, %v4205_v34 }
 0x29d   : > { %v5628_v41 = vadd.f32 %v6707_v48, %v5596_v61  ;;  %v5261_v4 = vpop.f32.mrf.mxu0 }
 0x29e   : > { %v5470_v13 = vadd.f32 %v5438_v12, %v5310_v21  ;;  %v5311_v30 = vadd.f32 %v5256_v31, %v4886_v47 }
 0x29f   : > { %5660 = vst [vmem:[%s8664_s28 + $0x70] sm:$0xff] %v5628_v41  ;;  %v5691_v22 = vadd.f32 %v5690_v40, %v5628_v41  ;;  %v5730_v36 = vmul.f32 %v5628_v41, %v5628_v41  ;;  %v3844_v9 = vpop.f32.mrf.mxu1 }
 0x2a0   : > { %v6620_v19 = vpop.eup %6619  ;;  %v5502_v8 = vmul.f32 0.7978846, %v5470_v13  ;;  %v5375_v5 = vmul.f32 0.044715, %v5311_v30  ;;  %v3894_v12 = vadd.f32 %v3844_v9, %v8362_v3  ;;  %v5343_v48 = vmul.f32 0.5, %v5311_v30 }
 0x2a1   : > { %v5761_v28 = vadd.f32 %v5760_v20, %v5730_v36  ;;  %v5565_v57 = vadd.f32 1.0, %v6620_v19  ;;  %v4153_v27 = vpop.f32.mrf.mxu2  ;;  %v6709_v20 = vld [vmem:[%s6819_s23 + $0x80] sm:$0xff] }
 0x2a2   : > { %6621 = vtanh.f32 %v5502_v8  ;;  %v5407_v59 = vmul.f32 %v5375_v5, %v5311_v30  ;;  %v4206_v15 = vadd.f32 %v4153_v27, %v3892_v49  ;;  %v6710_v49 = vld [vmem:[%s6819_s23 + $0x88] sm:$0xff] }
 0x2a3   : > { %v5597_v31 = vmul.f32 %v5565_v57, %v5341_v63  ;;  %v4834_v32 = vpop.f32.mrf.mxu3 }
 0x2a4   : > { %v5439_v44 = vmul.f32 %v5407_v59, %v5311_v30  ;;  %v4887_v56 = vadd.f32 %v4834_v32, %v4206_v15 }
 0x2a5   : > { %v5629_v0 = vadd.f32 %v6708_v6, %v5597_v31  ;;  %v5264_v50 = vpop.f32.mrf.mxu0 }
 0x2a6   : > { %v5471_v51 = vadd.f32 %v5439_v44, %v5311_v30  ;;  %v5312_v35 = vadd.f32 %v5259_v42, %v4887_v56 }
 0x2a7   : > { %5661 = vst [vmem:[%s8664_s28 + $0x78] sm:$0xff] %v5629_v0  ;;  %v5692_v26 = vadd.f32 %v5691_v22, %v5629_v0  ;;  %v5731_v53 = vmul.f32 %v5629_v0, %v5629_v0  ;;  %v3846_v7 = vpop.f32.mrf.mxu1 }
 0x2a8   : > { %v6622_v25 = vpop.eup %6621  ;;  %v5503_v62 = vmul.f32 0.7978846, %v5471_v51  ;;  %v5376_v45 = vmul.f32 0.044715, %v5312_v35  ;;  %v3895_v32 = vadd.f32 %v3846_v7, %v8376_v16  ;;  %v5344_v56 = vmul.f32 0.5, %v5312_v35 }
 0x2a9   : > { %v5762_v24 = vadd.f32 %v5761_v28, %v5731_v53  ;;  %v5566_v14 = vadd.f32 1.0, %v6622_v25  ;;  %v4155_v40 = vpop.f32.mrf.mxu2 }
 0x2aa   : > { %6623 = vtanh.f32 %v5503_v62  ;;  %v5408_v43 = vmul.f32 %v5376_v45, %v5312_v35  ;;  %v4207_v10 = vadd.f32 %v4155_v40, %v3893_v18  ;;  %v6711_v45 = vld [vmem:[%s6819_s23 + $0x90] sm:$0xff] }
 0x2ab   : > { %v5598_v42 = vmul.f32 %v5566_v14, %v5342_v54  ;;  %v4836_v1 = vpop.f32.mrf.mxu3 }
 0x2ac   : > { %v5440_v37 = vmul.f32 %v5408_v43, %v5312_v35  ;;  %v4888_v58 = vadd.f32 %v4836_v1, %v4207_v10 }
 0x2ad   : > { %v5630_v39 = vadd.f32 %v6709_v20, %v5598_v42  ;;  %v5266_v52 = vpop.f32.mrf.mxu0 }
 0x2ae   : > { %v5472_v29 = vadd.f32 %v5440_v37, %v5312_v35  ;;  %v5313_v11 = vadd.f32 %v5261_v4, %v4888_v58 }
 0x2af   : > { %5662 = vst [vmem:[%s8664_s28 + $0x80] sm:$0xff] %v5630_v39  ;;  %v5693_v17 = vadd.f32 %v5692_v26, %v5630_v39  ;;  %v5732_v34 = vmul.f32 %v5630_v39, %v5630_v39  ;;  %v3849_v23 = vpop.f32.mrf.mxu1 }
 0x2b0   : > { %v6624_v21 = vpop.eup %6623  ;;  %v5504_v61 = vmul.f32 0.7978846, %v5472_v29  ;;  %v5377_v38 = vmul.f32 0.044715, %v5313_v11  ;;  %v3896_v42 = vadd.f32 %v3849_v23, %v8394_v60  ;;  %v5345_v37 = vmul.f32 0.5, %v5313_v11 }
 0x2b1   : > { %v5763_v47 = vadd.f32 %v5762_v24, %v5732_v34  ;;  %v5567_v41 = vadd.f32 1.0, %v6624_v21  ;;  %v4158_v13 = vpop.f32.mrf.mxu2 }
 0x2b2   : > { %6625 = vtanh.f32 %v5504_v61  ;;  %v5409_v22 = vmul.f32 %v5377_v38, %v5313_v11  ;;  %v4208_v36 = vadd.f32 %v4158_v13, %v3894_v12  ;;  %v6712_v61 = vld [vmem:[%s6819_s23 + $0x98] sm:$0xff] }
 0x2b3   : > { %v5599_v4 = vmul.f32 %v5567_v41, %v5343_v48  ;;  %v4839_v19 = vpop.f32.mrf.mxu3 }
 0x2b4   : > { %v5441_v8 = vmul.f32 %v5409_v22, %v5313_v11  ;;  %v4889_v5 = vadd.f32 %v4839_v19, %v4208_v36 }
 0x2b5   : > { %v5631_v28 = vadd.f32 %v6710_v49, %v5599_v4  ;;  %v5269_v3 = vpop.f32.mrf.mxu0 }
 0x2b6   : > { %v5473_v63 = vadd.f32 %v5441_v8, %v5313_v11  ;;  %v5314_v57 = vadd.f32 %v5264_v50, %v4889_v5 }
 0x2b7   : > { %5663 = vst [vmem:[%s8664_s28 + $0x88] sm:$0xff] %v5631_v28  ;;  %v5694_v27 = vadd.f32 %v5693_v17, %v5631_v28  ;;  %v5733_v59 = vmul.f32 %v5631_v28, %v5631_v28  ;;  %v3851_v9 = vpop.f32.mrf.mxu1 }
 0x2b8   : > { %v6626_v30 = vpop.eup %6625  ;;  %v5505_v15 = vmul.f32 0.7978846, %v5473_v63  ;;  %v5378_v31 = vmul.f32 0.044715, %v5314_v57  ;;  %v3897_v22 = vadd.f32 %v3851_v9, %v8408_v33  ;;  %v5346_v4 = vmul.f32 0.5, %v5314_v57 }
 0x2b9   : > { %v5764_v44 = vadd.f32 %v5763_v47, %v5733_v59  ;;  %v5568_v6 = vadd.f32 1.0, %v6626_v30  ;;  %v4160_v0 = vpop.f32.mrf.mxu2  ;;  %v6713_v30 = vld [vmem:[%s6819_s23 + $0xa0] sm:$0xff] }
 0x2ba   : > { %6627 = vtanh.f32 %v5505_v15  ;;  %v5410_v51 = vmul.f32 %v5378_v31, %v5314_v57  ;;  %v4209_v26 = vadd.f32 %v4160_v0, %v3895_v32 }
 0x2bb   : > { %v5600_v53 = vmul.f32 %v5568_v6, %v5344_v56  ;;  %v4841_v50 = vpop.f32.mrf.mxu3 }
 0x2bc   : > { %v5442_v25 = vmul.f32 %v5410_v51, %v5314_v57  ;;  %v4890_v62 = vadd.f32 %v4841_v50, %v4209_v26 }
 0x2bd   : > { %v5632_v18 = vadd.f32 %v6711_v45, %v5600_v53  ;;  %v5271_v16 = vpop.f32.mrf.mxu0 }
 0x2be   : > { %v5474_v24 = vadd.f32 %v5442_v25, %v5314_v57  ;;  %v5315_v54 = vadd.f32 %v5266_v52, %v4890_v62 }
 0x2bf   : > { %5664 = vst [vmem:[%s8664_s28 + $0x90] sm:$0xff] %v5632_v18  ;;  %v5695_v14 = vadd.f32 %v5694_v27, %v5632_v18  ;;  %v5734_v40 = vmul.f32 %v5632_v18, %v5632_v18  ;;  %v3854_v7 = vpop.f32.mrf.mxu1 }
 0x2c0   : > { %v6628_v35 = vpop.eup %6627  ;;  %v5506_v43 = vmul.f32 0.7978846, %v5474_v24  ;;  %v5379_v10 = vmul.f32 0.044715, %v5315_v54  ;;  %v3898_v6 = vadd.f32 %v3854_v7, %v8428_v46  ;;  %v5347_v51 = vmul.f32 0.5, %v5315_v54 }
 0x2c1   : > { %v5765_v1 = vadd.f32 %v5764_v44, %v5734_v40  ;;  %v5569_v58 = vadd.f32 1.0, %v6628_v35  ;;  %v4163_v20 = vpop.f32.mrf.mxu2 }
 0x2c2   : > { %6629 = vtanh.f32 %v5506_v43  ;;  %v5411_v39 = vmul.f32 %v5379_v10, %v5315_v54  ;;  %v4210_v29 = vadd.f32 %v4163_v20, %v3896_v42 }
 0x2c3   : > { %v5601_v17 = vmul.f32 %v5569_v58, %v5345_v37  ;;  %v4844_v34 = vpop.f32.mrf.mxu3 }
 0x2c4   : > { %v5443_v52 = vmul.f32 %v5411_v39, %v5315_v54  ;;  %v4891_v21 = vadd.f32 %v4844_v34, %v4210_v29 }
 0x2c5   : > { %v5633_v38 = vadd.f32 %v6712_v61, %v5601_v17  ;;  %v5274_v60 = vpop.f32.mrf.mxu0 }
 0x2c6   : > { %v5475_v12 = vadd.f32 %v5443_v52, %v5315_v54  ;;  %v5316_v47 = vadd.f32 %v5269_v3, %v4891_v21 }
 0x2c7   : > { %5665 = vst [vmem:[%s8664_s28 + $0x98] sm:$0xff] %v5633_v38  ;;  %v5696_v48 = vadd.f32 %v5695_v14, %v5633_v38  ;;  %v5735_v41 = vmul.f32 %v5633_v38, %v5633_v38  ;;  %v3856_v5 = vpop.f32.mrf.mxu1 }
 0x2c8   : > { %v6630_v23 = vpop.eup %6629  ;;  %v5507_v11 = vmul.f32 0.7978846, %v5475_v12  ;;  %v5380_v13 = vmul.f32 0.044715, %v5316_v47  ;;  %v3899_v37 = vadd.f32 %v3856_v5, %v8452_v55  ;;  %v5348_v20 = vmul.f32 0.5, %v5316_v47 }
 0x2c9   : > { %v5766_v36 = vadd.f32 %v5765_v1, %v5735_v41  ;;  %v5570_v19 = vadd.f32 1.0, %v6630_v23  ;;  %v4165_v8 = vpop.f32.mrf.mxu2 }
 0x2ca   : > { %6631 = vtanh.f32 %v5507_v11  ;;  %v5412_v49 = vmul.f32 %v5380_v13, %v5316_v47  ;;  %v4211_v28 = vadd.f32 %v4165_v8, %v3897_v22 }
 0x2cb   : > { %v5602_v63 = vmul.f32 %v5570_v19, %v5346_v4  ;;  %v4846_v27 = vpop.f32.mrf.mxu3  ;;  %v9033_v4 = vld [vmem:[#allocation5_spill] sm:$0xff] }
 0x2cc   : > { %v5444_v59 = vmul.f32 %v5412_v49, %v5316_v47  ;;  %v4892_v3 = vadd.f32 %v4846_v27, %v4211_v28 }
 0x2cd   : > { %v5634_v15 = vadd.f32 %v6713_v30, %v5602_v63  ;;  %v5276_v50 = vpop.f32.mrf.mxu0 }
 0x2ce   : > { %v5476_v31 = vadd.f32 %v5444_v59, %v5316_v47  ;;  %v5317_v32 = vadd.f32 %v5271_v16, %v4892_v3  ;;  %v6714_v16 = vld [vmem:[%s6819_s23 + $0xa8] sm:$0xff] }
 0x2cf   : > { %5666 = vst [vmem:[%s8664_s28 + $0xa0] sm:$0xff] %v5634_v15  ;;  %v5697_v44 = vadd.f32 %v5696_v48, %v5634_v15  ;;  %v5736_v33 = vmul.f32 %v5634_v15, %v5634_v15  ;;  %v3859_v24 = vpop.f32.mrf.mxu1  ;;  %v6715_v48 = vld [vmem:[%s6819_s23 + $0xb0] sm:$0xff] }
 0x2d0   : > { %v6632_v9 = vpop.eup %6631  ;;  %v5508_v56 = vmul.f32 0.7978846, %v5476_v31  ;;  %v5381_v57 = vmul.f32 0.044715, %v5317_v32  ;;  %v3900_v19 = vadd.f32 %v3859_v24, %v9033_v4  ;;  %v5349_v5 = vmul.f32 0.5, %v5317_v32  ;;  %v6716_v31 = vld [vmem:[%s6819_s23 + $0xb8] sm:$0xff] }
 0x2d1   : > { %v5767_v0 = vadd.f32 %v5766_v36, %v5736_v33  ;;  %v5571_v26 = vadd.f32 1.0, %v6632_v9  ;;  %v4168_v53 = vpop.f32.mrf.mxu2 }
 0x2d2   : > { %6633 = vtanh.f32 %v5508_v56  ;;  %v5413_v25 = vmul.f32 %v5381_v57, %v5317_v32  ;;  %v4212_v62 = vadd.f32 %v4168_v53, %v3898_v6  ;;  %v9034_v53 = vld [vmem:[#allocation7_spill] sm:$0xff] }
 0x2d3   : > { %v5603_v45 = vmul.f32 %v5571_v26, %v5347_v51  ;;  %v4849_v18 = vpop.f32.mrf.mxu3 }
 0x2d4   : > { %v5445_v14 = vmul.f32 %v5413_v25, %v5317_v32  ;;  %v4893_v40 = vadd.f32 %v4849_v18, %v4212_v62 }
 0x2d5   : > { %v5635_v35 = vadd.f32 %v6714_v16, %v5603_v45  ;;  %v5279_v61 = vpop.f32.mrf.mxu0 }
 0x2d6   : > { %v5477_v43 = vadd.f32 %v5445_v14, %v5317_v32  ;;  %v5318_v10 = vadd.f32 %v5274_v60, %v4893_v40 }
 0x2d7   : > { %5667 = vst [vmem:[%s8664_s28 + $0xa8] sm:$0xff] %v5635_v35  ;;  %v5698_v46 = vadd.f32 %v5697_v44, %v5635_v35  ;;  %v5737_v7 = vmul.f32 %v5635_v35, %v5635_v35  ;;  %v3861_v60 = vpop.f32.mrf.mxu1 }
 0x2d8   : > { %v6634_v54 = vpop.eup %6633  ;;  %v5509_v42 = vmul.f32 0.7978846, %v5477_v43  ;;  %v5382_v1 = vmul.f32 0.044715, %v5318_v10  ;;  %v5350_v62 = vmul.f32 0.5, %v5318_v10 }
 0x2d9   : > { %v5768_v58 = vadd.f32 %v5767_v0, %v5737_v7  ;;  %v5572_v39 = vadd.f32 1.0, %v6634_v54  ;;  %v4170_v29 = vpop.f32.mrf.mxu2 }
 0x2da   : > { %6635 = vtanh.f32 %v5509_v42  ;;  %v5414_v17 = vmul.f32 %v5382_v1, %v5318_v10  ;;  %v4213_v34 = vadd.f32 %v4170_v29, %v3899_v37  ;;  %v9035_v29 = vld [vmem:[#allocation9_spill] sm:$0xff] }
 0x2db   : > { %v5604_v52 = vmul.f32 %v5572_v39, %v5348_v20  ;;  %v4851_v21 = vpop.f32.mrf.mxu3 }
 0x2dc   : > { %v5446_v38 = vmul.f32 %v5414_v17, %v5318_v10  ;;  %v4894_v12 = vadd.f32 %v4851_v21, %v4213_v34 }
 0x2dd   : > { %v5636_v41 = vadd.f32 %v6715_v48, %v5604_v52  ;;  %v5281_v33 = vpop.f32.mrf.mxu0 }
 0x2de   : > { %v5478_v23 = vadd.f32 %v5446_v38, %v5318_v10  ;;  %v5319_v11 = vadd.f32 %v5276_v50, %v4894_v12  ;;  %v3901_v50 = vadd.f32 %v3861_v60, %v9034_v53 }
 0x2df   : > { %5668 = vst [vmem:[%s8664_s28 + $0xb0] sm:$0xff] %v5636_v41  ;;  %v5699_v55 = vadd.f32 %v5698_v46, %v5636_v41  ;;  %v5738_v13 = vmul.f32 %v5636_v41, %v5636_v41  ;;  %v3864_v0 = vpop.f32.mrf.mxu1  ;;  %v6717_v46 = vld [vmem:[%s6819_s23 + $0xc0] sm:$0xff] }
 0x2e0   : > { %v6636_v47 = vpop.eup %6635  ;;  %v5510_v22 = vmul.f32 0.7978846, %v5478_v23  ;;  %v5383_v36 = vmul.f32 0.044715, %v5319_v11  ;;  %v3902_v17 = vadd.f32 %v3864_v0, %v9035_v29  ;;  %v5351_v52 = vmul.f32 0.5, %v5319_v11  ;;  %v6719_v0 = vld [vmem:[%s6819_s23 + $0xd0] sm:$0xff] }
 0x2e1   : > { %v5769_v8 = vadd.f32 %v5768_v58, %v5738_v13  ;;  %v5573_v49 = vadd.f32 1.0, %v6636_v47  ;;  %v4173_v28 = vpop.f32.mrf.mxu2  ;;  %v6718_v13 = vld [vmem:[%s6819_s23 + $0xc8] sm:$0xff] }
 0x2e2   : > { %6637 = vtanh.f32 %v5510_v22  ;;  %v5415_v63 = vmul.f32 %v5383_v36, %v5319_v11  ;;  %v4214_v27 = vadd.f32 %v4173_v28, %v3900_v19 }
 0x2e3   : > { %v5605_v59 = vmul.f32 %v5573_v49, %v5349_v5  ;;  %v4854_v3 = vpop.f32.mrf.mxu3  ;;  %v9036_v49 = vld [vmem:[#allocation11_spill] sm:$0xff] }
 0x2e4   : > { %v5447_v30 = vmul.f32 %v5415_v63, %v5319_v11  ;;  %v4895_v15 = vadd.f32 %v4854_v3, %v4214_v27 }
 0x2e5   : > { %v5637_v44 = vadd.f32 %v6716_v31, %v5605_v59  ;;  %v5284_v58 = vpop.f32.mrf.mxu0 }
 0x2e6   : > { %v5479_v9 = vadd.f32 %v5447_v30, %v5319_v11  ;;  %v5320_v56 = vadd.f32 %v5279_v61, %v4895_v15 }
 0x2e7   : > { %5669 = vst [vmem:[%s8664_s28 + $0xb8] sm:$0xff] %v5637_v44  ;;  %v5700_v57 = vadd.f32 %v5699_v55, %v5637_v44  ;;  %v5739_v6 = vmul.f32 %v5637_v44, %v5637_v44  ;;  %v3866_v38 = vpop.f32.mrf.mxu1 }
 0x2e8   : > { %v6638_v32 = vpop.eup %6637  ;;  %v5511_v51 = vmul.f32 0.7978846, %v5479_v9  ;;  %v5384_v26 = vmul.f32 0.044715, %v5320_v56  ;;  %v3903_v28 = vadd.f32 %v3866_v38, %v9036_v49  ;;  %v5352_v27 = vmul.f32 0.5, %v5320_v56 }
 0x2e9   : > { %v5770_v25 = vadd.f32 %v5769_v8, %v5739_v6  ;;  %v5574_v45 = vadd.f32 1.0, %v6638_v32  ;;  %v4175_v18 = vpop.f32.mrf.mxu2 }
 0x2ea   : > { %6639 = vtanh.f32 %v5511_v51  ;;  %v5416_v24 = vmul.f32 %v5384_v26, %v5320_v56  ;;  %v4215_v14 = vadd.f32 %v4175_v18, %v3901_v50 }
 0x2eb   : > { %v5606_v40 = vmul.f32 %v5574_v45, %v5350_v62  ;;  %v4856_v16 = vpop.f32.mrf.mxu3  ;;  %v9037_v45 = vld [vmem:[#allocation13_spill] sm:$0xff] }
 0x2ec   : > { %v5448_v35 = vmul.f32 %v5416_v24, %v5320_v56  ;;  %v4896_v43 = vadd.f32 %v4856_v16, %v4215_v14 }
 0x2ed   : > { %v5638_v7 = vadd.f32 %v6717_v46, %v5606_v40  ;;  %v5286_v3 = vpop.f32.mrf.mxu0 }
 0x2ee   : > { %v5480_v54 = vadd.f32 %v5448_v35, %v5320_v56  ;;  %v5321_v42 = vadd.f32 %v5281_v33, %v4896_v43 }
 0x2ef   : > { %5670 = vst [vmem:[%s8664_s28 + $0xc0] sm:$0xff] %v5638_v7  ;;  %v5701_v1 = vadd.f32 %v5700_v57, %v5638_v7  ;;  %v5740_v37 = vmul.f32 %v5638_v7, %v5638_v7  ;;  %v3869_v9 = vpop.f32.mrf.mxu1 }
 0x2f0   : > { %v6640_v20 = vpop.eup %6639  ;;  %v5512_v10 = vmul.f32 0.7978846, %v5480_v54  ;;  %v5385_v39 = vmul.f32 0.044715, %v5321_v42  ;;  %v3904_v18 = vadd.f32 %v3869_v9, %v9037_v45  ;;  %v5353_v14 = vmul.f32 0.5, %v5321_v42 }
 0x2f1   : > { %v5771_v34 = vadd.f32 %v5770_v25, %v5740_v37  ;;  %v5575_v21 = vadd.f32 1.0, %v6640_v20  ;;  %v4178_v61 = vpop.f32.mrf.mxu2 }
 0x2f2   : > { %6641 = vtanh.f32 %v5512_v10  ;;  %v5417_v12 = vmul.f32 %v5385_v39, %v5321_v42  ;;  %v4216_v48 = vadd.f32 %v4178_v61, %v3902_v17 }
 0x2f3   : > { %v5607_v41 = vmul.f32 %v5575_v21, %v5351_v52  ;;  %v4859_v60 = vpop.f32.mrf.mxu3 }
 0x2f4   : > { %v5449_v23 = vmul.f32 %v5417_v12, %v5321_v42  ;;  %v4897_v55 = vadd.f32 %v4859_v60, %v4216_v48 }
 0x2f5   : > { %v5639_v47 = vadd.f32 %v6718_v13, %v5607_v41 }
 0x2f6   : > { %v5481_v22 = vadd.f32 %v5449_v23, %v5321_v42  ;;  %v5322_v36 = vadd.f32 %v5284_v58, %v4897_v55  ;;  %v6720_v58 = vld [vmem:[%s6819_s23 + $0xd8] sm:$0xff] }
 0x2f7   : > { %5671 = vst [vmem:[%s8664_s28 + $0xc8] sm:$0xff] %v5639_v47  ;;  %v5702_v4 = vadd.f32 %v5701_v1, %v5639_v47  ;;  %v5741_v19 = vmul.f32 %v5639_v47, %v5639_v47  ;;  %v3871_v10 = vpop.f32.mrf.mxu1 }
 0x2f8   : > { %v6642_v8 = vpop.eup %6641  ;;  %v5513_v5 = vmul.f32 0.7978846, %v5481_v22  ;;  %v5386_v11 = vmul.f32 0.044715, %v5322_v36  ;;  %v5289_v7 = vpop.f32.mrf.mxu0  ;;  %v3905_v61 = vadd.f32 %v3871_v10, %v8567_v2  ;;  %v5354_v12 = vmul.f32 0.5, %v5322_v36 }
 0x2f9   : > { %v5772_v63 = vadd.f32 %v5771_v34, %v5741_v19  ;;  %v5576_v59 = vadd.f32 1.0, %v6642_v8  ;;  %v4180_v30 = vpop.f32.mrf.mxu2 }
 0x2fa   : > { %6643 = vtanh.f32 %v5513_v5  ;;  %v5418_v15 = vmul.f32 %v5386_v11, %v5322_v36  ;;  %v4217_v31 = vadd.f32 %v4180_v30, %v3903_v28 }
 0x2fb   : > { %v5608_v44 = vmul.f32 %v5576_v59, %v5352_v27  ;;  %v4861_v33 = vpop.f32.mrf.mxu3 }
 0x2fc   : > { %v5450_v57 = vmul.f32 %v5418_v15, %v5322_v36  ;;  %v4898_v6 = vadd.f32 %v4861_v33, %v4217_v31 }
 0x2fd   : > { %v5640_v32 = vadd.f32 %v6719_v0, %v5608_v44  ;;  %v6722_v44 = vld [vmem:[%s6819_s23 + $0xe8] sm:$0xff] }
 0x2fe   : > { %v5482_v51 = vadd.f32 %v5450_v57, %v5322_v36  ;;  %v5323_v26 = vadd.f32 %v5286_v3, %v4898_v6 }
 0x2ff   : > { %5672 = vst [vmem:[%s8664_s28 + $0xd0] sm:$0xff] %v5640_v32  ;;  %v5703_v53 = vadd.f32 %v5702_v4, %v5640_v32  ;;  %v5742_v50 = vmul.f32 %v5640_v32, %v5640_v32  ;;  %v6721_v4 = vld [vmem:[%s6819_s23 + $0xe0] sm:$0xff] }
 0x300   : > { %v6644_v56 = vpop.eup %6643  ;;  %v5514_v25 = vmul.f32 0.7978846, %v5482_v51  ;;  %v5387_v62 = vmul.f32 0.044715, %v5323_v26  ;;  %v5291_v8 = vpop.f32.mrf.mxu0  ;;  %v5355_v59 = vmul.f32 0.5, %v5323_v26 }
 0x301   : > { %v5773_v24 = vadd.f32 %v5772_v63, %v5742_v50  ;;  %v5577_v40 = vadd.f32 1.0, %v6644_v56  ;;  %v4183_v16 = vpop.f32.mrf.mxu2  ;;  %v6723_v56 = vld [vmem:[%s6819_s23 + $0xf0] sm:$0xff] }
 0x302   : > { %6645 = vtanh.f32 %v5514_v25  ;;  %v5419_v35 = vmul.f32 %v5387_v62, %v5323_v26  ;;  %v4218_v43 = vadd.f32 %v4183_v16, %v3904_v18 }
 0x303   : > { %v5609_v46 = vmul.f32 %v5577_v40, %v5353_v14  ;;  %v4864_v54 = vpop.f32.mrf.mxu3 }
 0x304   : > { %v5451_v1 = vmul.f32 %v5419_v35, %v5323_v26  ;;  %v4899_v37 = vadd.f32 %v4864_v54, %v4218_v43  ;;  %v6724_v35 = vld [vmem:[%s6819_s23 + $0xf8] sm:$0xff]  ;;  %s349_s23 = scalar_lea.vmem %s8985_s8, %s9041_s10 }
 0x305   : > { %v5641_v20 = vadd.f32 %v6720_v58, %v5609_v46 }
 0x306   : > { %v5483_v39 = vadd.f32 %v5451_v1, %v5323_v26  ;;  %v5324_v29 = vadd.f32 %v5289_v7, %v4899_v37 }
 0x307   : > { %5673 = vst [vmem:[%s8664_s28 + $0xd8] sm:$0xff] %v5641_v20  ;;  %v5704_v17 = vadd.f32 %v5703_v53, %v5641_v20  ;;  %v5743_v34 = vmul.f32 %v5641_v20, %v5641_v20 }
 0x308   : > { %v6646_v42 = vpop.eup %6645  ;;  %v5515_v52 = vmul.f32 0.7978846, %v5483_v39  ;;  %v5388_v21 = vmul.f32 0.044715, %v5324_v29  ;;  %v5356_v53 = vmul.f32 0.5, %v5324_v29 }
 0x309   : > { %v5774_v38 = vadd.f32 %v5773_v24, %v5743_v34  ;;  %v5578_v48 = vadd.f32 1.0, %v6646_v42  ;;  %v4185_v41 = vpop.f32.mrf.mxu2 }
 0x30a   : > { %6647 = vtanh.f32 %v5515_v52  ;;  %v5420_v60 = vmul.f32 %v5388_v21, %v5324_v29  ;;  %v4219_v23 = vadd.f32 %v4185_v41, %v3905_v61 }
 0x30b   : > { %v5610_v55 = vmul.f32 %v5578_v48, %v5354_v12  ;;  %v4866_v13 = vpop.f32.mrf.mxu3 }
 0x30c   : > { %v5452_v47 = vmul.f32 %v5420_v60, %v5324_v29  ;;  %v4900_v22 = vadd.f32 %v4866_v13, %v4219_v23 }
 0x30d   : > { %v5642_v19 = vadd.f32 %v6721_v4, %v5610_v55 }
 0x30e   : > { %v5484_v5 = vadd.f32 %v5452_v47, %v5324_v29  ;;  %v5325_v11 = vadd.f32 %v5291_v8, %v4900_v22 }
 0x30f   : > { %5674 = vst [vmem:[%s8664_s28 + $0xe0] sm:$0xff] %v5642_v19  ;;  %v5705_v2 = vadd.f32 %v5704_v17, %v5642_v19  ;;  %v5744_v49 = vmul.f32 %v5642_v19, %v5642_v19 }
 0x310   : > { %v6648_v36 = vpop.eup %6647  ;;  %v5516_v28 = vmul.f32 0.7978846, %v5484_v5  ;;  %v5389_v63 = vmul.f32 0.044715, %v5325_v11  ;;  %v5357_v14 = vmul.f32 0.5, %v5325_v11 }
 0x311   : > { %v5775_v27 = vadd.f32 %v5774_v38, %v5744_v49  ;;  %v5579_v3 = vadd.f32 1.0, %v6648_v36 }
 0x312   : > { %6649 = vtanh.f32 %v5516_v28  ;;  %v5421_v30 = vmul.f32 %v5389_v63, %v5325_v11 }
 0x313   : > { %v5611_v15 = vmul.f32 %v5579_v3, %v5355_v59 }
 0x314   : > { %v5453_v31 = vmul.f32 %v5421_v30, %v5325_v11 }
 0x315   : > { %v5643_v33 = vadd.f32 %v6722_v44, %v5611_v15 }
 0x316   : > { %v5485_v9 = vadd.f32 %v5453_v31, %v5325_v11 }
 0x317   : > { %5675 = vst [vmem:[%s8664_s28 + $0xe8] sm:$0xff] %v5643_v33  ;;  %v5706_v57 = vadd.f32 %v5705_v2, %v5643_v33  ;;  %v5745_v6 = vmul.f32 %v5643_v33, %v5643_v33 }
 0x318   : > { %v6650_v0 = vpop.eup %6649  ;;  %v5517_v32 = vmul.f32 0.7978846, %v5485_v9 }
 0x319   : > { %v5776_v51 = vadd.f32 %v5775_v27, %v5745_v6  ;;  %v5580_v26 = vadd.f32 1.0, %v6650_v0 }
 0x31a   : > { %6651 = vtanh.f32 %v5517_v32 }
 0x31b   : > { %v5612_v50 = vmul.f32 %v5580_v26, %v5356_v53 }
 0x31d   : > { %v5644_v25 = vadd.f32 %v6723_v56, %v5612_v50 }
 0x31f   : > { %5676 = vst [vmem:[%s8664_s28 + $0xf0] sm:$0xff] %v5644_v25  ;;  %v5707_v62 = vadd.f32 %v5706_v57, %v5644_v25  ;;  %v5746_v45 = vmul.f32 %v5644_v25, %v5644_v25 }
 0x320   : > { %v6652_v18 = vpop.eup %6651 }
 0x321   : > { %v5777_v24 = vadd.f32 %v5776_v51, %v5746_v45  ;;  %v5581_v40 = vadd.f32 1.0, %v6652_v18 }
 0x323   : > { %v5613_v16 = vmul.f32 %v5581_v40, %v5357_v14 }
 0x325   : > { %v5645_v43 = vadd.f32 %v6724_v35, %v5613_v16 }
 0x327   : > { %5677 = vst [vmem:[%s8664_s28 + $0xf8] sm:$0xff] %v5645_v43  ;;  %v5708_v46 = vadd.f32 %v5707_v62, %v5645_v43  ;;  %v5747_v7 = vmul.f32 %v5645_v43, %v5645_v43 }
 0x329   : > { %v5709_v54 = vrot.slane %v5708_v46, 4  ;;  %v5778_v1 = vadd.f32 %v5777_v24, %v5747_v7 }
 0x32b   : > { %v5710_v37 = vadd.f32 %v5709_v54, %v5708_v46  ;;  %v5779_v58 = vrot.slane %v5778_v1, 4 }
 0x32d   : > { %v5711_v20 = vrot.slane %v5710_v37, 2  ;;  %v5780_v10 = vadd.f32 %v5779_v58, %v5778_v1 }
 0x32f   : > { %v5712_v39 = vadd.f32 %v5711_v20, %v5710_v37  ;;  %v5781_v29 = vrot.slane %v5780_v10, 2 }
 0x331   : > { %v5713_v17 = vrot.slane %v5712_v39, 1  ;;  %v5782_v34 = vadd.f32 %v5781_v29, %v5780_v10 }
 0x333   : > { %v5714_v42 = vadd.f32 %v5713_v17, %v5712_v39  ;;  %v5783_v52 = vrot.slane %v5782_v34, 1 }
 0x335   : > { %5715 = vst [vmem:[%s349_s23] sm:$0x1] %v5714_v42  ;;  %v5784_v21 = vadd.f32 %v5783_v52, %v5782_v34 }
 0x337   : > { %5785 = vst [vmem:[%s352_s12] sm:$0x1] %v5784_v21 }
 0x338 PF: > { %s20_s30 = sadd.s32 1, %s6731_s30  }
 0x339   : > { %p17_p5 = scmp.ge.s32.totalorder %s20_s30, 4  }
 0x33b   :  { %19 = sbr.rel (!%p17_p5) target bundleno = 1 (0x1), region = 104 }

</bundles_post_ra>
